<compile_context>
chip_gen: v5e
topology: v5e:2x2
jax: 0.10.0
libtpu: 0.0.40
codegen_flags: <defaults>
</compile_context>

<pallas_src>
import math
import functools

import jax
import jax.numpy as jnp
from jax.experimental import pallas as pl
from jax.experimental.pallas import tpu as pltpu


_LAYER_KEYS = ('ln1_w', 'ln1_b', 'wqkv', 'bqkv', 'wo', 'bo',
               'ln2_w', 'ln2_b', 'wfc', 'bfc', 'wpr', 'bpr')
_SHARED_KEYS = ('vew', 'veb', 'lnf_w', 'lnf_b',
                'fc1_w', 'fc1_b', 'fc2_w', 'fc2_b', 'fc3_w', 'fc3_b',
                'cw1a', 'cw1b', 'cb1', 'cw2', 'cb2')


def _layer_map(rank):
    def im(bi, l):
        return (l,) + (0,) * (rank - 1)
    return im


def _const_map(rank):
    def im(bi, l):
        return (0,) * rank
    return im


def _batch_map(rank):
    def im(bi, l):
        return (bi,) + (0,) * (rank - 1)
    return im


def _layernorm(x, w, b, eps=1e-5):
    mu = jnp.mean(x, axis=-1, keepdims=True)
    var = jnp.mean(jnp.square(x - mu), axis=-1, keepdims=True)
    return (x - mu) * jax.lax.rsqrt(var + eps) * w + b


# ------------------------------ the fused kernel ------------------------------

def _classifier_kernel(
        # per-batch-block inputs
        image_ref, pe_ref, bias_ref, t0_ref,
        # stacked per-layer transformer params (selected by the layer grid axis)
        ln1w_ref, ln1b_ref, wqkv_ref, bqkv_ref, wo_ref, bo_ref,
        ln2w_ref, ln2b_ref, wfc_ref, bfc_ref, wpr_ref, bpr_ref,
        # shared VMEM-resident params
        vew_ref, veb_ref, lnfw_ref, lnfb_ref,
        fc1w_ref, fc1b_ref, fc2w_ref, fc2b_ref, fc3w_ref, fc3b_ref,
        cw1a_ref, cw1b_ref, cb1_ref, cw2_ref, cb2_ref,
        # output + scratch
        out_ref, x_sc,
        *, n_head):
    layer = pl.program_id(1)
    n_layers = pl.num_programs(1)
    Bl, T, W = x_sc.shape
    H = n_head
    hd = W // H
    N = Bl * T
    scale = 1.0 / math.sqrt(hd)
    bf16, f32 = jnp.bfloat16, jnp.float32

    # ------------- layer 0 only: visual_embed + AbsTimeEncoding add -------------
    @pl.when(layer == 0)
    def _():
        img = image_ref[...].reshape(N, image_ref.shape[-1])            # already bf16
        emb = jnp.dot(img, vew_ref[...], preferred_element_type=f32) + veb_ref[...]
        x_sc[...] = emb.reshape(Bl, T, W) + pe_ref[...]

    x = x_sc[...]                                                       # (Bl, T, W) f32, resident

    # ----------------------- residual attention block ---------------------------
    h = _layernorm(x, ln1w_ref[0], ln1b_ref[0])
    h2d = h.reshape(N, W).astype(bf16)

    # Fused QKV: one lane-dense (N, W) @ (W, 3W) matmul, then carve heads afterward.
    qkv = jnp.dot(h2d, wqkv_ref[0], preferred_element_type=f32) + bqkv_ref[0]     # (N, 3W)
    qkv3 = qkv.reshape(Bl, T, 3 * W)
    q_all = qkv3[:, :, 0:W] * scale
    k_all = qkv3[:, :, W:2 * W]
    v_all = qkv3[:, :, 2 * W:3 * W]
    kbias = bias_ref[0]                                                 # (Bl, 1, T) key-pad bias

    # Attention core stays per-head (T=8 -> negligible FLOPs); softmax uses approx reciprocal.
    heads = []
    for hh in range(H):                                                 # static unroll, H small
        sl = slice(hh * hd, (hh + 1) * hd)
        q = q_all[:, :, sl].astype(bf16)
        k = k_all[:, :, sl].astype(bf16)
        v = v_all[:, :, sl].astype(bf16)
        s = jnp.einsum('btd,bsd->bts', q, k, preferred_element_type=f32) + kbias   # (Bl, T, T)
        m = jnp.max(s, axis=-1, keepdims=True)
        p = jnp.exp(s - m)
        p = p * pl.reciprocal(jnp.sum(p, axis=-1, keepdims=True), approx=True)
        heads.append(jnp.einsum('bts,bsd->btd', p.astype(bf16), v,
                                preferred_element_type=f32))            # (Bl, T, hd)

    # Output projection: reassemble head-concat -> ONE (N, W) @ (W, W) matmul (MXU does head-sum).
    o = jnp.concatenate(heads, axis=-1).reshape(N, W).astype(bf16)
    attn = jnp.dot(o, wo_ref[0], preferred_element_type=f32) + bo_ref[0]
    x1 = x + attn.reshape(Bl, T, W)

    # LayerNorm 2 + QuickGELU MLP (big-N f32-accumulated bf16 dots).
    h2 = _layernorm(x1, ln2w_ref[0], ln2b_ref[0]).reshape(N, W).astype(bf16)
    m1 = jnp.dot(h2, wfc_ref[0], preferred_element_type=f32) + bfc_ref[0]
    m1 = m1 * jax.nn.sigmoid(1.702 * m1)                                # QuickGELU (f32, EUP)
    m2 = jnp.dot(m1.astype(bf16), wpr_ref[0], preferred_element_type=f32) + bpr_ref[0]
    x_new = x1 + m2.reshape(Bl, T, W)
    x_sc[...] = x_new

    # ---------- last layer only: ln_final + text MLP + classifier head ----------
    @pl.when(layer == n_layers - 1)
    def _():
        x0 = x_new[:, 0, :]                                             # t=0 token, (Bl, W)
        img_feat = _layernorm(x0, lnfw_ref[...], lnfb_ref[...]).astype(bf16)

        t0 = t0_ref[0].astype(bf16)                                     # (Bl, V) == text[:, 0]
        t1 = jnp.maximum(jnp.dot(t0, fc1w_ref[...],
                                 preferred_element_type=f32) + fc1b_ref[...], 0.0)
        t2 = jnp.maximum(jnp.dot(t1.astype(bf16), fc2w_ref[...],
                                 preferred_element_type=f32) + fc2b_ref[...], 0.0)
        txt_feat = (jnp.dot(t2.astype(bf16), fc3w_ref[...],
                            preferred_element_type=f32) + fc3b_ref[...]).astype(bf16)

        # cat([img, txt]) @ W1  ==  img @ W1[:W] + txt @ W1[W:]   (no in-kernel lane concat);
        # hidden width is zero-padded to a multiple of 128 lanes (padded cols stay 0 after ReLU).
        hcls = jnp.maximum(
            jnp.dot(img_feat, cw1a_ref[...], preferred_element_type=f32)
            + jnp.dot(txt_feat, cw1b_ref[...], preferred_element_type=f32)
            + cb1_ref[...], 0.0)
        # DynamicMLP applies ReLU after the LAST Linear too (activation appended after each Linear).
        logits = jnp.maximum(
            jnp.dot(hcls.astype(bf16), cw2_ref[...],
                    preferred_element_type=f32) + cb2_ref[...], 0.0)
        out_ref[0] = logits.astype(out_ref.dtype)


# --------------------------------- forward ------------------------------------

def classifier_forward(packed, image, text, padding, times, *, n_head, n_classes,
                       batch_block=32, vmem_limit_mb=48):
    """batch_block: tune so N = batch_block*T >= 128 (v5e) / 256 (v6e, v7x); keep
    B/batch_block even for v7x megacore.  vmem_limit_mb: keep <= ~48 on v7x (64 MiB/TC)."""
    B, T, Vw = image.shape
    W = packed['vew'].shape[1]
    L = packed['wqkv'].shape[0]
    V = packed['fc1_w'].shape[0]
    out_pad = packed['cw2'].shape[1]

    bb = max(1, min(batch_block, B))
    Bp = -(-B // bb) * bb
    if Bp != B:                                   # zero-pad batch to a multiple of batch_block
        padn = Bp - B
        image = jnp.pad(image, ((0, padn), (0, 0), (0, 0)))
        text = jnp.pad(text, ((0, padn), (0, 0), (0, 0)))
        padding = jnp.pad(padding, ((0, padn), (0, 0)))
        times = jnp.pad(times, ((0, padn), (0, 0)))
    Bb = Bp // bb

    # AbsTimeEncoding (glue): interleaved sin/cos time table, added to the embedded images.
    div_term = jnp.exp(jnp.arange(0, W, 2, dtype=jnp.float32) * (-(math.log(10000.0) / W)))
    arg = times.astype(jnp.float32)[:, :, None] * div_term[None, None, :]
    pe = jnp.stack([jnp.sin(arg), jnp.cos(arg)], axis=-1).reshape(Bp, T, W)

    # key_padding_mask (torch: padding <= 0 -> -inf score); shared across heads inside the kernel.
    # NOTE: a fully-padded subject yields a uniform softmax over padded keys (diverges from torch's
    # NaN behaviour); such rows only exist in the zero-padded batch tail, which is sliced off.
    bias = jnp.where(padding <= 0, -1e30, 0.0).astype(jnp.float32).reshape(Bb, bb, 1, T)

    # encode_text uses text[:, 0] only.
    t0 = text[:, 0].astype(jnp.float32).reshape(Bb, bb, V)

    image_bf = image.astype(jnp.bfloat16)          # kernel casts to bf16 anyway; halves input DMA

    batch_inputs = [image_bf, pe, bias, t0]
    batch_specs = [
        pl.BlockSpec((bb, T, Vw), _batch_map(3)),
        pl.BlockSpec((bb, T, W), _batch_map(3)),
        pl.BlockSpec((1, bb, 1, T), _batch_map(4)),
        pl.BlockSpec((1, bb, V), _batch_map(3)),
    ]
    layer_inputs = [packed[k] for k in _LAYER_KEYS]
    layer_specs = [pl.BlockSpec((1,) + packed[k].shape[1:], _layer_map(packed[k].ndim))
                   for k in _LAYER_KEYS]
    shared_inputs = [packed[k] for k in _SHARED_KEYS]
    shared_specs = [pl.BlockSpec(packed[k].shape, _const_map(packed[k].ndim))
                    for k in _SHARED_KEYS]

    out = pl.pallas_call(
        functools.partial(_classifier_kernel, n_head=n_head),
        grid=(Bb, L),
        in_specs=batch_specs + layer_specs + shared_specs,
        out_specs=pl.BlockSpec((1, bb, out_pad), _batch_map(3)),
        out_shape=jax.ShapeDtypeStruct((Bb, bb, out_pad), jnp.float32),
        scratch_shapes=[pltpu.VMEM((bb, T, W), jnp.float32)],   # layer-resident activations
        compiler_params=pltpu.CompilerParams(
            dimension_semantics=("parallel", "arbitrary"),
            vmem_limit_bytes=vmem_limit_mb * 1024 * 1024),
    )(*batch_inputs, *layer_inputs, *shared_inputs)

    return out.reshape(Bp, out_pad)[:B, :n_classes]


# ----------------------------- parameters -------------------------------------

def init_params(key, *, vision_width, vocab_size, transformer_width,
                transformer_layers, n_classes=2):
    """Torch-equivalent parameters; Linear weights stored as (in_features, out_features)."""
    W, V = transformer_width, vocab_size
    cd = W + V                       # classifier_dim
    d1 = 2 * cd                      # DynamicMLP hidden width (classifier_depth = 2)
    kit = iter(jax.random.split(key, 8 + 8 * transformer_layers))

    def nrm(shape, std):
        return (std * jax.random.normal(next(kit), shape)).astype(jnp.float32)

    attn_std = W ** -0.5
    proj_std = W ** -0.5 * (2 * transformer_layers) ** -0.5
    fc_std = (2 * W) ** -0.5

    params = {
        'visual_embed_w': nrm((vision_width, W), vision_width ** -0.5),
        'visual_embed_b': jnp.zeros((W,), jnp.float32),
        'ln_final_w': jnp.ones((W,), jnp.float32),
        'ln_final_b': jnp.zeros((W,), jnp.float32),
        # textual MLP: vocab -> 4*vocab -> 4*vocab -> vocab (ReLU after fc1/fc2)
        'fc1_w': nrm((V, 4 * V), 0.02), 'fc1_b': jnp.zeros((4 * V,), jnp.float32),
        'fc2_w': nrm((4 * V, 4 * V), 0.02), 'fc2_b': jnp.zeros((4 * V,), jnp.float32),
        'fc3_w': nrm((4 * V, V), 0.02), 'fc3_b': jnp.zeros((V,), jnp.float32),
        # mlp_final (DynamicMLP depth 2): (W+V) -> 2*(W+V) -> n_classes, ReLU after each Linear
        'cls1_w': nrm((cd, d1), 0.02), 'cls1_b': jnp.zeros((d1,), jnp.float32),
        'cls2_w': nrm((d1, n_classes), 0.02), 'cls2_b': jnp.zeros((n_classes,), jnp.float32),
        'layers': [],
    }
    for _ in range(transformer_layers):
        params['layers'].append({
            'ln1_w': jnp.ones((W,), jnp.float32), 'ln1_b': jnp.zeros((W,), jnp.float32),
            'wq': nrm((W, W), attn_std), 'bq': jnp.zeros((W,), jnp.float32),
            'wk': nrm((W, W), attn_std), 'bk': jnp.zeros((W,), jnp.float32),
            'wv': nrm((W, W), attn_std), 'bv': jnp.zeros((W,), jnp.float32),
            'wo': nrm((W, W), proj_std), 'bo': jnp.zeros((W,), jnp.float32),
            'ln2_w': jnp.ones((W,), jnp.float32), 'ln2_b': jnp.zeros((W,), jnp.float32),
            'wfc': nrm((W, 4 * W), fc_std), 'bfc': jnp.zeros((4 * W,), jnp.float32),
            'wpr': nrm((4 * W, W), proj_std), 'bpr': jnp.zeros((W,), jnp.float32),
        })
    return params


def pack_params(params, *, n_head, out_pad=128, lane=128):
    """Repack torch-layout params into stacked, kernel-ready arrays.

    Per-layer tensors get a leading layer axis (pipelined by the layer grid axis); QKV is fused
    column-wise into (L, W, 3W) for a single lane-dense matmul; all matmul weights are bf16
    (f32 accumulation in-kernel); the classifier hidden / output widths are zero-padded to lane-
    dense multiples of 128 and sliced back in the wrapper."""
    del n_head  # head split happens with static lane slices in-kernel
    layers = params['layers']
    L = len(layers)
    W = layers[0]['wq'].shape[0]
    W4 = layers[0]['wfc'].shape[1]
    bf16, f32 = jnp.bfloat16, jnp.float32

    def stk(key, newshape=None, dtype=f32):
        a = jnp.stack([lp[key] for lp in layers], axis=0)
        if newshape is not None:
            a = a.reshape((L,) + newshape)
        return a.astype(dtype)

    wqkv = jnp.concatenate([stk('wq'), stk('wk'), stk('wv')], axis=-1)            # (L, W, 3W)
    bqkv = jnp.concatenate([stk('bq'), stk('bk'), stk('bv')], axis=-1)[:, None, :]  # (L, 1, 3W)

    packed = {
        'ln1_w': stk('ln1_w', (1, W)), 'ln1_b': stk('ln1_b', (1, W)),
        'wqkv': wqkv.astype(bf16), 'bqkv': bqkv.astype(f32),
        'wo': stk('wo', dtype=bf16), 'bo': stk('bo', (1, W)),
        'ln2_w': stk('ln2_w', (1, W)), 'ln2_b': stk('ln2_b', (1, W)),
        'wfc': stk('wfc', dtype=bf16), 'bfc': stk('bfc', (1, W4)),
        'wpr': stk('wpr', dtype=bf16), 'bpr': stk('bpr', (1, W)),
        'vew': params['visual_embed_w'].astype(bf16),
        'veb': params['visual_embed_b'].reshape(1, -1).astype(f32),
        'lnf_w': params['ln_final_w'].reshape(1, -1).astype(f32),
        'lnf_b': params['ln_final_b'].reshape(1, -1).astype(f32),
        'fc1_w': params['fc1_w'].astype(bf16), 'fc1_b': params['fc1_b'].reshape(1, -1).astype(f32),
        'fc2_w': params['fc2_w'].astype(bf16), 'fc2_b': params['fc2_b'].reshape(1, -1).astype(f32),
        'fc3_w': params['fc3_w'].astype(bf16), 'fc3_b': params['fc3_b'].reshape(1, -1).astype(f32),
    }

    # classifier head: split the first layer at W (image) / V (text) rows; pad the hidden width
    # d1 = 2*(W+V) up to a multiple of 128 lanes and the output up to out_pad columns with zeros.
    cls1_w, cls1_b = params['cls1_w'], params['cls1_b']
    cls2_w, cls2_b = params['cls2_w'], params['cls2_b']
    d1 = cls1_w.shape[1]
    d1p = -(-d1 // lane) * lane
    n_classes = cls2_w.shape[1]
    assert n_classes <= out_pad
    cw1 = jnp.pad(cls1_w, ((0, 0), (0, d1p - d1)))
    packed['cw1a'] = cw1[:W].astype(bf16)
    packed['cw1b'] = cw1[W:].astype(bf16)
    packed['cb1'] = jnp.pad(cls1_b, (0, d1p - d1)).reshape(1, -1).astype(f32)
    packed['cw2'] = jnp.pad(cls2_w, ((0, d1p - d1), (0, out_pad - n_classes))).astype(bf16)
    packed['cb2'] = jnp.pad(cls2_b, (0, out_pad - n_classes)).reshape(1, -1).astype(f32)
    return packed


# --------------------------------- demo ----------------------------------------

if __name__ == "__main__":
    B, T, C = 32, 8, 3
    vision_width, vocab_size = 64, 13
    transformer_width, transformer_heads, transformer_layers = 128, 4, 2
    n_classes = 2
    batch_block = 16          # N = 128 per block, Bb = 2 (even -> v7x megacore friendly)

    key = jax.random.PRNGKey(0)
    kp, ki, kt = jax.random.split(key, 3)
    params = init_params(kp, vision_width=vision_width, vocab_size=vocab_size,
                         transformer_width=transformer_width,
                         transformer_layers=transformer_layers, n_classes=n_classes)
    packed = pack_params(params, n_head=transformer_heads)

    image = jax.random.normal(ki, (B, T, vision_width), jnp.float32)
    text = jax.random.normal(kt, (B, C, vocab_size), jnp.float32)
    # variable-length subjects: padding <= 0 marks padded timepoints
    lengths = T - (jnp.arange(B) % 4)
    padding = (jnp.arange(T)[None, :] < lengths[:, None]).astype(jnp.float32)
    times = jnp.broadcast_to(jnp.arange(T, dtype=jnp.float32)[None, :], (B, T))

    fwd = jax.jit(functools.partial(classifier_forward, n_head=transformer_heads,
                                    n_classes=n_classes, batch_block=batch_block))
    logits = fwd(packed, image, text, padding, times)
    jax.block_until_ready(logits)
    assert logits.shape == (B, n_classes) and logits.dtype == jnp.float32
    assert bool(jnp.all(jnp.isfinite(logits)))
    print("KERNEL_OK")
</pallas_src>

<mosaic_0001>
module attributes {stable_mosaic.version = 11 : i64} {
  func.func @_classifier_kernel(%arg0: i32, %arg1: i32, %arg2: memref<16x8x64xbf16, #tpu.memory_space<vmem>>, %arg3: memref<16x8x128xf32, #tpu.memory_space<vmem>>, %arg4: memref<1x16x1x8xf32, #tpu.memory_space<vmem>>, %arg5: memref<1x16x13xf32, #tpu.memory_space<vmem>>, %arg6: memref<1x1x128xf32, #tpu.memory_space<vmem>>, %arg7: memref<1x1x128xf32, #tpu.memory_space<vmem>>, %arg8: memref<1x128x384xbf16, #tpu.memory_space<vmem>>, %arg9: memref<1x1x384xf32, #tpu.memory_space<vmem>>, %arg10: memref<1x128x128xbf16, #tpu.memory_space<vmem>>, %arg11: memref<1x1x128xf32, #tpu.memory_space<vmem>>, %arg12: memref<1x1x128xf32, #tpu.memory_space<vmem>>, %arg13: memref<1x1x128xf32, #tpu.memory_space<vmem>>, %arg14: memref<1x128x512xbf16, #tpu.memory_space<vmem>>, %arg15: memref<1x1x512xf32, #tpu.memory_space<vmem>>, %arg16: memref<1x512x128xbf16, #tpu.memory_space<vmem>>, %arg17: memref<1x1x128xf32, #tpu.memory_space<vmem>>, %arg18: memref<64x128xbf16, #tpu.memory_space<vmem>>, %arg19: memref<1x128xf32, #tpu.memory_space<vmem>>, %arg20: memref<1x128xf32, #tpu.memory_space<vmem>>, %arg21: memref<1x128xf32, #tpu.memory_space<vmem>>, %arg22: memref<13x52xbf16, #tpu.memory_space<vmem>>, %arg23: memref<1x52xf32, #tpu.memory_space<vmem>>, %arg24: memref<52x52xbf16, #tpu.memory_space<vmem>>, %arg25: memref<1x52xf32, #tpu.memory_space<vmem>>, %arg26: memref<52x13xbf16, #tpu.memory_space<vmem>>, %arg27: memref<1x13xf32, #tpu.memory_space<vmem>>, %arg28: memref<128x384xbf16, #tpu.memory_space<vmem>>, %arg29: memref<13x384xbf16, #tpu.memory_space<vmem>>, %arg30: memref<1x384xf32, #tpu.memory_space<vmem>>, %arg31: memref<384x128xbf16, #tpu.memory_space<vmem>>, %arg32: memref<1x128xf32, #tpu.memory_space<vmem>>, %arg33: memref<1x16x128xf32, #tpu.memory_space<vmem>>, %arg34: memref<16x8x128xf32, #tpu.memory_space<vmem>>) attributes {dimension_semantics = [#tpu.dimension_semantics<parallel>, #tpu.dimension_semantics<arbitrary>], iteration_bounds = array<i64: 2, 2>, scalar_prefetch = 0 : i64, scratch_operands = 1 : i64, tpu.core_type = #tpu.core_type<tc>, window_params = [{transform_indices = @transform_0, window_bounds = array<i64: 16, 8, 64>}, {transform_indices = @transform_1, window_bounds = array<i64: 16, 8, 128>}, {transform_indices = @transform_2, window_bounds = array<i64: 1, 16, 1, 8>}, {transform_indices = @transform_3, window_bounds = array<i64: 1, 16, 13>}, {transform_indices = @transform_4, window_bounds = array<i64: 1, 1, 128>}, {transform_indices = @transform_5, window_bounds = array<i64: 1, 1, 128>}, {transform_indices = @transform_6, window_bounds = array<i64: 1, 128, 384>}, {transform_indices = @transform_7, window_bounds = array<i64: 1, 1, 384>}, {transform_indices = @transform_8, window_bounds = array<i64: 1, 128, 128>}, {transform_indices = @transform_9, window_bounds = array<i64: 1, 1, 128>}, {transform_indices = @transform_10, window_bounds = array<i64: 1, 1, 128>}, {transform_indices = @transform_11, window_bounds = array<i64: 1, 1, 128>}, {transform_indices = @transform_12, window_bounds = array<i64: 1, 128, 512>}, {transform_indices = @transform_13, window_bounds = array<i64: 1, 1, 512>}, {transform_indices = @transform_14, window_bounds = array<i64: 1, 512, 128>}, {transform_indices = @transform_15, window_bounds = array<i64: 1, 1, 128>}, {pipeline_mode = #tpu.pipeline_mode<synchronous>, transform_indices = @transform_16, window_bounds = array<i64: 64, 128>}, {pipeline_mode = #tpu.pipeline_mode<synchronous>, transform_indices = @transform_17, window_bounds = array<i64: 1, 128>}, {pipeline_mode = #tpu.pipeline_mode<synchronous>, transform_indices = @transform_18, window_bounds = array<i64: 1, 128>}, {pipeline_mode = #tpu.pipeline_mode<synchronous>, transform_indices = @transform_19, window_bounds = array<i64: 1, 128>}, {pipeline_mode = #tpu.pipeline_mode<synchronous>, transform_indices = @transform_20, window_bounds = array<i64: 13, 52>}, {pipeline_mode = #tpu.pipeline_mode<synchronous>, transform_indices = @transform_21, window_bounds = array<i64: 1, 52>}, {pipeline_mode = #tpu.pipeline_mode<synchronous>, transform_indices = @transform_22, window_bounds = array<i64: 52, 52>}, {pipeline_mode = #tpu.pipeline_mode<synchronous>, transform_indices = @transform_23, window_bounds = array<i64: 1, 52>}, {pipeline_mode = #tpu.pipeline_mode<synchronous>, transform_indices = @transform_24, window_bounds = array<i64: 52, 13>}, {pipeline_mode = #tpu.pipeline_mode<synchronous>, transform_indices = @transform_25, window_bounds = array<i64: 1, 13>}, {pipeline_mode = #tpu.pipeline_mode<synchronous>, transform_indices = @transform_26, window_bounds = array<i64: 128, 384>}, {pipeline_mode = #tpu.pipeline_mode<synchronous>, transform_indices = @transform_27, window_bounds = array<i64: 13, 384>}, {pipeline_mode = #tpu.pipeline_mode<synchronous>, transform_indices = @transform_28, window_bounds = array<i64: 1, 384>}, {pipeline_mode = #tpu.pipeline_mode<synchronous>, transform_indices = @transform_29, window_bounds = array<i64: 384, 128>}, {pipeline_mode = #tpu.pipeline_mode<synchronous>, transform_indices = @transform_30, window_bounds = array<i64: 1, 128>}, {transform_indices = @transform_31, window_bounds = array<i64: 1, 16, 128>}]} {
    %c0_i32 = arith.constant 0 : i32
    %0 = arith.cmpi eq, %arg1, %c0_i32 : i32
    %1 = arith.extui %0 : i1 to i32
    %c0_i32_0 = arith.constant 0 : i32
    %2 = arith.cmpi ne, %1, %c0_i32_0 : i32
    scf.if %2 {
      %c0_79 = arith.constant 0 : index
      %c0_80 = arith.constant 0 : index
      %c0_81 = arith.constant 0 : index
      %204 = vector.load %arg2[%c0_79, %c0_80, %c0_81] : memref<16x8x64xbf16, #tpu.memory_space<vmem>>, vector<16x8x64xbf16>
      %205 = vector.shape_cast %204 : vector<16x8x64xbf16> to vector<128x64xbf16>
      %c0_82 = arith.constant 0 : index
      %c0_83 = arith.constant 0 : index
      %206 = vector.load %arg18[%c0_82, %c0_83] : memref<64x128xbf16, #tpu.memory_space<vmem>>, vector<64x128xbf16>
      %cst_84 = arith.constant dense<0.000000e+00> : vector<128x128xf32>
      %207 = tpu.matmul %205, %206, %cst_84 {dimension_numbers = #tpu.dot_dimension_numbers<[1], [0], [0], [1], [0, 0, 1, 1], [], []>} : vector<128x64xbf16>, vector<64x128xbf16>, vector<128x128xf32> -> vector<128x128xf32>
      %c0_85 = arith.constant 0 : index
      %c0_86 = arith.constant 0 : index
      %208 = vector.load %arg19[%c0_85, %c0_86] : memref<1x128xf32, #tpu.memory_space<vmem>>, vector<1x128xf32>
      %209 = vector.broadcast %208 : vector<1x128xf32> to vector<128x128xf32>
      %210 = arith.addf %207, %209 : vector<128x128xf32>
      %211 = vector.shape_cast %210 : vector<128x128xf32> to vector<16x8x128xf32>
      %c0_87 = arith.constant 0 : index
      %c0_88 = arith.constant 0 : index
      %c0_89 = arith.constant 0 : index
      %212 = vector.load %arg3[%c0_87, %c0_88, %c0_89] : memref<16x8x128xf32, #tpu.memory_space<vmem>>, vector<16x8x128xf32>
      %213 = arith.addf %211, %212 : vector<16x8x128xf32>
      %c0_90 = arith.constant 0 : index
      %c0_91 = arith.constant 0 : index
      %c0_92 = arith.constant 0 : index
      %214 = vector.load %arg34[%c0_90, %c0_91, %c0_92] : memref<16x8x128xf32, #tpu.memory_space<vmem>>, vector<16x8x128xf32>
      tpu.vector_store %arg34[%c0_90, %c0_91, %c0_92], %213 {strides = array<i32>} : memref<16x8x128xf32, #tpu.memory_space<vmem>>, vector<16x8x128xf32>,
    } else {
    }
    %c0 = arith.constant 0 : index
    %c0_1 = arith.constant 0 : index
    %c0_2 = arith.constant 0 : index
    %3 = vector.load %arg34[%c0, %c0_1, %c0_2] : memref<16x8x128xf32, #tpu.memory_space<vmem>>, vector<16x8x128xf32>
    %c0_3 = arith.constant 0 : index
    %c0_4 = arith.constant 0 : index
    %c0_5 = arith.constant 0 : index
    %4 = vector.load %arg6[%c0_3, %c0_4, %c0_5] : memref<1x1x128xf32, #tpu.memory_space<vmem>>, vector<1x1x128xf32>
    %5 = vector.shape_cast %4 : vector<1x1x128xf32> to vector<1x128xf32>
    %c0_6 = arith.constant 0 : index
    %c0_7 = arith.constant 0 : index
    %c0_8 = arith.constant 0 : index
    %6 = vector.load %arg7[%c0_6, %c0_7, %c0_8] : memref<1x1x128xf32, #tpu.memory_space<vmem>>, vector<1x1x128xf32>
    %7 = vector.shape_cast %6 : vector<1x1x128xf32> to vector<1x128xf32>
    %cst = arith.constant dense<0.000000e+00> : vector<16x8xf32>
    %8 = vector.multi_reduction <add>, %3, %cst [2] : vector<16x8x128xf32> to vector<16x8xf32>
    %9 = vector.shape_cast %8 : vector<16x8xf32> to vector<16x8x1xf32>
    %cst_9 = arith.constant 1.280000e+02 : f32
    %10 = vector.broadcast %cst_9 : f32 to vector<16x8x1xf32>
    %11 = arith.divf %9, %10 : vector<16x8x1xf32>
    %12 = vector.broadcast %11 : vector<16x8x1xf32> to vector<16x8x128xf32>
    %13 = arith.subf %3, %12 : vector<16x8x128xf32>
    %14 = arith.mulf %13, %13 : vector<16x8x128xf32>
    %cst_10 = arith.constant dense<0.000000e+00> : vector<16x8xf32>
    %15 = vector.multi_reduction <add>, %14, %cst_10 [2] : vector<16x8x128xf32> to vector<16x8xf32>
    %16 = vector.shape_cast %15 : vector<16x8xf32> to vector<16x8x1xf32>
    %cst_11 = arith.constant 1.280000e+02 : f32
    %17 = vector.broadcast %cst_11 : f32 to vector<16x8x1xf32>
    %18 = arith.divf %16, %17 : vector<16x8x1xf32>
    %19 = vector.broadcast %11 : vector<16x8x1xf32> to vector<16x8x128xf32>
    %20 = arith.subf %3, %19 : vector<16x8x128xf32>
    %cst_12 = arith.constant 9.99999974E-6 : f32
    %21 = vector.broadcast %cst_12 : f32 to vector<16x8x1xf32>
    %22 = arith.addf %18, %21 : vector<16x8x1xf32>
    %23 = math.rsqrt %22 : vector<16x8x1xf32>
    %24 = vector.broadcast %23 : vector<16x8x1xf32> to vector<16x8x128xf32>
    %25 = arith.mulf %20, %24 : vector<16x8x128xf32>
    %26 = vector.shape_cast %5 : vector<1x128xf32> to vector<1x1x128xf32>
    %27 = vector.broadcast %26 : vector<1x1x128xf32> to vector<16x8x128xf32>
    %28 = arith.mulf %25, %27 : vector<16x8x128xf32>
    %29 = vector.shape_cast %7 : vector<1x128xf32> to vector<1x1x128xf32>
    %30 = vector.broadcast %29 : vector<1x1x128xf32> to vector<16x8x128xf32>
    %31 = arith.addf %28, %30 : vector<16x8x128xf32>
    %32 = vector.shape_cast %31 : vector<16x8x128xf32> to vector<128x128xf32>
    %33 = arith.truncf %32 : vector<128x128xf32> to vector<128x128xbf16>
    %c0_13 = arith.constant 0 : index
    %c0_14 = arith.constant 0 : index
    %c0_15 = arith.constant 0 : index
    %34 = vector.load %arg8[%c0_13, %c0_14, %c0_15] : memref<1x128x384xbf16, #tpu.memory_space<vmem>>, vector<1x128x384xbf16>
    %35 = vector.shape_cast %34 : vector<1x128x384xbf16> to vector<128x384xbf16>
    %cst_16 = arith.constant dense<0.000000e+00> : vector<128x384xf32>
    %36 = tpu.matmul %33, %35, %cst_16 {dimension_numbers = #tpu.dot_dimension_numbers<[1], [0], [0], [1], [0, 0, 1, 1], [], []>} : vector<128x128xbf16>, vector<128x384xbf16>, vector<128x384xf32> -> vector<128x384xf32>
    %c0_17 = arith.constant 0 : index
    %c0_18 = arith.constant 0 : index
    %c0_19 = arith.constant 0 : index
    %37 = vector.load %arg9[%c0_17, %c0_18, %c0_19] : memref<1x1x384xf32, #tpu.memory_space<vmem>>, vector<1x1x384xf32>
    %38 = vector.shape_cast %37 : vector<1x1x384xf32> to vector<1x384xf32>
    %39 = vector.broadcast %38 : vector<1x384xf32> to vector<128x384xf32>
    %40 = arith.addf %36, %39 : vector<128x384xf32>
    %41 = vector.shape_cast %40 : vector<128x384xf32> to vector<16x8x384xf32>
    %42 = vector.extract_strided_slice %41 {offsets = [0, 0, 0], sizes = [16, 8, 128], strides = [1, 1, 1]} : vector<16x8x384xf32> to vector<16x8x128xf32>
    %cst_20 = arith.constant 0.176776692 : f32
    %43 = vector.broadcast %cst_20 : f32 to vector<16x8x128xf32>
    %44 = arith.mulf %42, %43 : vector<16x8x128xf32>
    %45 = vector.extract_strided_slice %41 {offsets = [0, 0, 128], sizes = [16, 8, 128], strides = [1, 1, 1]} : vector<16x8x384xf32> to vector<16x8x128xf32>
    %46 = vector.extract_strided_slice %41 {offsets = [0, 0, 256], sizes = [16, 8, 128], strides = [1, 1, 1]} : vector<16x8x384xf32> to vector<16x8x128xf32>
    %c0_21 = arith.constant 0 : index
    %c0_22 = arith.constant 0 : index
    %c0_23 = arith.constant 0 : index
    %c0_24 = arith.constant 0 : index
    %47 = vector.load %arg4[%c0_21, %c0_22, %c0_23, %c0_24] : memref<1x16x1x8xf32, #tpu.memory_space<vmem>>, vector<1x16x1x8xf32>
    %48 = vector.shape_cast %47 : vector<1x16x1x8xf32> to vector<16x1x8xf32>
    %49 = vector.extract_strided_slice %44 {offsets = [0, 0, 0], sizes = [16, 8, 32], strides = [1, 1, 1]} : vector<16x8x128xf32> to vector<16x8x32xf32>
    %50 = arith.truncf %49 : vector<16x8x32xf32> to vector<16x8x32xbf16>
    %51 = vector.extract_strided_slice %45 {offsets = [0, 0, 0], sizes = [16, 8, 32], strides = [1, 1, 1]} : vector<16x8x128xf32> to vector<16x8x32xf32>
    %52 = arith.truncf %51 : vector<16x8x32xf32> to vector<16x8x32xbf16>
    %53 = vector.extract_strided_slice %46 {offsets = [0, 0, 0], sizes = [16, 8, 32], strides = [1, 1, 1]} : vector<16x8x128xf32> to vector<16x8x32xf32>
    %54 = arith.truncf %53 : vector<16x8x32xf32> to vector<16x8x32xbf16>
    "tpu.trace_start"() <{level = 10 : i32, message = "btd,bsd->bts"}> : () -> ()
    %cst_25 = arith.constant dense<0.000000e+00> : vector<16x8x8xf32>
    %55 = tpu.matmul %50, %52, %cst_25 {dimension_numbers = #tpu.dot_dimension_numbers<[2], [2], [1], [1], [0, 0, 0, 1, 1, 1], [0], [0]>} : vector<16x8x32xbf16>, vector<16x8x32xbf16>, vector<16x8x8xf32> -> vector<16x8x8xf32>
    "tpu.trace_stop"() : () -> ()
    %56 = vector.broadcast %48 : vector<16x1x8xf32> to vector<16x8x8xf32>
    %57 = arith.addf %55, %56 : vector<16x8x8xf32>
    %cst_26 = arith.constant dense<0xFF800000> : vector<16x8xf32>
    %58 = vector.multi_reduction <maximumf>, %57, %cst_26 [2] : vector<16x8x8xf32> to vector<16x8xf32>
    %59 = vector.shape_cast %58 : vector<16x8xf32> to vector<16x8x1xf32>
    %60 = vector.broadcast %59 : vector<16x8x1xf32> to vector<16x8x8xf32>
    %61 = arith.subf %57, %60 : vector<16x8x8xf32>
    %62 = math.exp %61 : vector<16x8x8xf32>
    %cst_27 = arith.constant dense<0.000000e+00> : vector<16x8xf32>
    %63 = vector.multi_reduction <add>, %62, %cst_27 [2] : vector<16x8x8xf32> to vector<16x8xf32>
    %64 = vector.shape_cast %63 : vector<16x8xf32> to vector<16x8x1xf32>
    %65 = tpu.reciprocal %64 {approx = true} : vector<16x8x1xf32> -> vector<16x8x1xf32>
    %66 = vector.broadcast %65 : vector<16x8x1xf32> to vector<16x8x8xf32>
    %67 = arith.mulf %62, %66 : vector<16x8x8xf32>
    %68 = arith.truncf %67 : vector<16x8x8xf32> to vector<16x8x8xbf16>
    "tpu.trace_start"() <{level = 10 : i32, message = "bts,bsd->btd"}> : () -> ()
    %cst_28 = arith.constant dense<0.000000e+00> : vector<16x8x32xf32>
    %69 = tpu.matmul %68, %54, %cst_28 {dimension_numbers = #tpu.dot_dimension_numbers<[2], [1], [1], [2], [0, 0, 0, 1, 1, 2], [0], [0]>} : vector<16x8x8xbf16>, vector<16x8x32xbf16>, vector<16x8x32xf32> -> vector<16x8x32xf32>
    "tpu.trace_stop"() : () -> ()
    %70 = vector.extract_strided_slice %44 {offsets = [0, 0, 32], sizes = [16, 8, 32], strides = [1, 1, 1]} : vector<16x8x128xf32> to vector<16x8x32xf32>
    %71 = arith.truncf %70 : vector<16x8x32xf32> to vector<16x8x32xbf16>
    %72 = vector.extract_strided_slice %45 {offsets = [0, 0, 32], sizes = [16, 8, 32], strides = [1, 1, 1]} : vector<16x8x128xf32> to vector<16x8x32xf32>
    %73 = arith.truncf %72 : vector<16x8x32xf32> to vector<16x8x32xbf16>
    %74 = vector.extract_strided_slice %46 {offsets = [0, 0, 32], sizes = [16, 8, 32], strides = [1, 1, 1]} : vector<16x8x128xf32> to vector<16x8x32xf32>
    %75 = arith.truncf %74 : vector<16x8x32xf32> to vector<16x8x32xbf16>
    "tpu.trace_start"() <{level = 10 : i32, message = "btd,bsd->bts"}> : () -> ()
    %cst_29 = arith.constant dense<0.000000e+00> : vector<16x8x8xf32>
    %76 = tpu.matmul %71, %73, %cst_29 {dimension_numbers = #tpu.dot_dimension_numbers<[2], [2], [1], [1], [0, 0, 0, 1, 1, 1], [0], [0]>} : vector<16x8x32xbf16>, vector<16x8x32xbf16>, vector<16x8x8xf32> -> vector<16x8x8xf32>
    "tpu.trace_stop"() : () -> ()
    %77 = vector.broadcast %48 : vector<16x1x8xf32> to vector<16x8x8xf32>
    %78 = arith.addf %76, %77 : vector<16x8x8xf32>
    %cst_30 = arith.constant dense<0xFF800000> : vector<16x8xf32>
    %79 = vector.multi_reduction <maximumf>, %78, %cst_30 [2] : vector<16x8x8xf32> to vector<16x8xf32>
    %80 = vector.shape_cast %79 : vector<16x8xf32> to vector<16x8x1xf32>
    %81 = vector.broadcast %80 : vector<16x8x1xf32> to vector<16x8x8xf32>
    %82 = arith.subf %78, %81 : vector<16x8x8xf32>
    %83 = math.exp %82 : vector<16x8x8xf32>
    %cst_31 = arith.constant dense<0.000000e+00> : vector<16x8xf32>
    %84 = vector.multi_reduction <add>, %83, %cst_31 [2] : vector<16x8x8xf32> to vector<16x8xf32>
    %85 = vector.shape_cast %84 : vector<16x8xf32> to vector<16x8x1xf32>
    %86 = tpu.reciprocal %85 {approx = true} : vector<16x8x1xf32> -> vector<16x8x1xf32>
    %87 = vector.broadcast %86 : vector<16x8x1xf32> to vector<16x8x8xf32>
    %88 = arith.mulf %83, %87 : vector<16x8x8xf32>
    %89 = arith.truncf %88 : vector<16x8x8xf32> to vector<16x8x8xbf16>
    "tpu.trace_start"() <{level = 10 : i32, message = "bts,bsd->btd"}> : () -> ()
    %cst_32 = arith.constant dense<0.000000e+00> : vector<16x8x32xf32>
    %90 = tpu.matmul %89, %75, %cst_32 {dimension_numbers = #tpu.dot_dimension_numbers<[2], [1], [1], [2], [0, 0, 0, 1, 1, 2], [0], [0]>} : vector<16x8x8xbf16>, vector<16x8x32xbf16>, vector<16x8x32xf32> -> vector<16x8x32xf32>
    "tpu.trace_stop"() : () -> ()
    %91 = vector.extract_strided_slice %44 {offsets = [0, 0, 64], sizes = [16, 8, 32], strides = [1, 1, 1]} : vector<16x8x128xf32> to vector<16x8x32xf32>
    %92 = arith.truncf %91 : vector<16x8x32xf32> to vector<16x8x32xbf16>
    %93 = vector.extract_strided_slice %45 {offsets = [0, 0, 64], sizes = [16, 8, 32], strides = [1, 1, 1]} : vector<16x8x128xf32> to vector<16x8x32xf32>
    %94 = arith.truncf %93 : vector<16x8x32xf32> to vector<16x8x32xbf16>
    %95 = vector.extract_strided_slice %46 {offsets = [0, 0, 64], sizes = [16, 8, 32], strides = [1, 1, 1]} : vector<16x8x128xf32> to vector<16x8x32xf32>
    %96 = arith.truncf %95 : vector<16x8x32xf32> to vector<16x8x32xbf16>
    "tpu.trace_start"() <{level = 10 : i32, message = "btd,bsd->bts"}> : () -> ()
    %cst_33 = arith.constant dense<0.000000e+00> : vector<16x8x8xf32>
    %97 = tpu.matmul %92, %94, %cst_33 {dimension_numbers = #tpu.dot_dimension_numbers<[2], [2], [1], [1], [0, 0, 0, 1, 1, 1], [0], [0]>} : vector<16x8x32xbf16>, vector<16x8x32xbf16>, vector<16x8x8xf32> -> vector<16x8x8xf32>
    "tpu.trace_stop"() : () -> ()
    %98 = vector.broadcast %48 : vector<16x1x8xf32> to vector<16x8x8xf32>
    %99 = arith.addf %97, %98 : vector<16x8x8xf32>
    %cst_34 = arith.constant dense<0xFF800000> : vector<16x8xf32>
    %100 = vector.multi_reduction <maximumf>, %99, %cst_34 [2] : vector<16x8x8xf32> to vector<16x8xf32>
    %101 = vector.shape_cast %100 : vector<16x8xf32> to vector<16x8x1xf32>
    %102 = vector.broadcast %101 : vector<16x8x1xf32> to vector<16x8x8xf32>
    %103 = arith.subf %99, %102 : vector<16x8x8xf32>
    %104 = math.exp %103 : vector<16x8x8xf32>
    %cst_35 = arith.constant dense<0.000000e+00> : vector<16x8xf32>
    %105 = vector.multi_reduction <add>, %104, %cst_35 [2] : vector<16x8x8xf32> to vector<16x8xf32>
    %106 = vector.shape_cast %105 : vector<16x8xf32> to vector<16x8x1xf32>
    %107 = tpu.reciprocal %106 {approx = true} : vector<16x8x1xf32> -> vector<16x8x1xf32>
    %108 = vector.broadcast %107 : vector<16x8x1xf32> to vector<16x8x8xf32>
    %109 = arith.mulf %104, %108 : vector<16x8x8xf32>
    %110 = arith.truncf %109 : vector<16x8x8xf32> to vector<16x8x8xbf16>
    "tpu.trace_start"() <{level = 10 : i32, message = "bts,bsd->btd"}> : () -> ()
    %cst_36 = arith.constant dense<0.000000e+00> : vector<16x8x32xf32>
    %111 = tpu.matmul %110, %96, %cst_36 {dimension_numbers = #tpu.dot_dimension_numbers<[2], [1], [1], [2], [0, 0, 0, 1, 1, 2], [0], [0]>} : vector<16x8x8xbf16>, vector<16x8x32xbf16>, vector<16x8x32xf32> -> vector<16x8x32xf32>
    "tpu.trace_stop"() : () -> ()
    %112 = vector.extract_strided_slice %44 {offsets = [0, 0, 96], sizes = [16, 8, 32], strides = [1, 1, 1]} : vector<16x8x128xf32> to vector<16x8x32xf32>
    %113 = arith.truncf %112 : vector<16x8x32xf32> to vector<16x8x32xbf16>
    %114 = vector.extract_strided_slice %45 {offsets = [0, 0, 96], sizes = [16, 8, 32], strides = [1, 1, 1]} : vector<16x8x128xf32> to vector<16x8x32xf32>
    %115 = arith.truncf %114 : vector<16x8x32xf32> to vector<16x8x32xbf16>
    %116 = vector.extract_strided_slice %46 {offsets = [0, 0, 96], sizes = [16, 8, 32], strides = [1, 1, 1]} : vector<16x8x128xf32> to vector<16x8x32xf32>
    %117 = arith.truncf %116 : vector<16x8x32xf32> to vector<16x8x32xbf16>
    "tpu.trace_start"() <{level = 10 : i32, message = "btd,bsd->bts"}> : () -> ()
    %cst_37 = arith.constant dense<0.000000e+00> : vector<16x8x8xf32>
    %118 = tpu.matmul %113, %115, %cst_37 {dimension_numbers = #tpu.dot_dimension_numbers<[2], [2], [1], [1], [0, 0, 0, 1, 1, 1], [0], [0]>} : vector<16x8x32xbf16>, vector<16x8x32xbf16>, vector<16x8x8xf32> -> vector<16x8x8xf32>
    "tpu.trace_stop"() : () -> ()
    %119 = vector.broadcast %48 : vector<16x1x8xf32> to vector<16x8x8xf32>
    %120 = arith.addf %118, %119 : vector<16x8x8xf32>
    %cst_38 = arith.constant dense<0xFF800000> : vector<16x8xf32>
    %121 = vector.multi_reduction <maximumf>, %120, %cst_38 [2] : vector<16x8x8xf32> to vector<16x8xf32>
    %122 = vector.shape_cast %121 : vector<16x8xf32> to vector<16x8x1xf32>
    %123 = vector.broadcast %122 : vector<16x8x1xf32> to vector<16x8x8xf32>
    %124 = arith.subf %120, %123 : vector<16x8x8xf32>
    %125 = math.exp %124 : vector<16x8x8xf32>
    %cst_39 = arith.constant dense<0.000000e+00> : vector<16x8xf32>
    %126 = vector.multi_reduction <add>, %125, %cst_39 [2] : vector<16x8x8xf32> to vector<16x8xf32>
    %127 = vector.shape_cast %126 : vector<16x8xf32> to vector<16x8x1xf32>
    %128 = tpu.reciprocal %127 {approx = true} : vector<16x8x1xf32> -> vector<16x8x1xf32>
    %129 = vector.broadcast %128 : vector<16x8x1xf32> to vector<16x8x8xf32>
    %130 = arith.mulf %125, %129 : vector<16x8x8xf32>
    %131 = arith.truncf %130 : vector<16x8x8xf32> to vector<16x8x8xbf16>
    "tpu.trace_start"() <{level = 10 : i32, message = "bts,bsd->btd"}> : () -> ()
    %cst_40 = arith.constant dense<0.000000e+00> : vector<16x8x32xf32>
    %132 = tpu.matmul %131, %117, %cst_40 {dimension_numbers = #tpu.dot_dimension_numbers<[2], [1], [1], [2], [0, 0, 0, 1, 1, 2], [0], [0]>} : vector<16x8x8xbf16>, vector<16x8x32xbf16>, vector<16x8x32xf32> -> vector<16x8x32xf32>
    "tpu.trace_stop"() : () -> ()
    %133 = tpu.concatenate %69, %90, %111, %132 in 2 : vector<16x8x32xf32>, vector<16x8x32xf32>, vector<16x8x32xf32>, vector<16x8x32xf32> -> vector<16x8x128xf32>
    %134 = vector.shape_cast %133 : vector<16x8x128xf32> to vector<128x128xf32>
    %135 = arith.truncf %134 : vector<128x128xf32> to vector<128x128xbf16>
    %c0_41 = arith.constant 0 : index
    %c0_42 = arith.constant 0 : index
    %c0_43 = arith.constant 0 : index
    %136 = vector.load %arg10[%c0_41, %c0_42, %c0_43] : memref<1x128x128xbf16, #tpu.memory_space<vmem>>, vector<1x128x128xbf16>
    %137 = vector.shape_cast %136 : vector<1x128x128xbf16> to vector<128x128xbf16>
    %cst_44 = arith.constant dense<0.000000e+00> : vector<128x128xf32>
    %138 = tpu.matmul %135, %137, %cst_44 {dimension_numbers = #tpu.dot_dimension_numbers<[1], [0], [0], [1], [0, 0, 1, 1], [], []>} : vector<128x128xbf16>, vector<128x128xbf16>, vector<128x128xf32> -> vector<128x128xf32>
    %c0_45 = arith.constant 0 : index
    %c0_46 = arith.constant 0 : index
    %c0_47 = arith.constant 0 : index
    %139 = vector.load %arg11[%c0_45, %c0_46, %c0_47] : memref<1x1x128xf32, #tpu.memory_space<vmem>>, vector<1x1x128xf32>
    %140 = vector.shape_cast %139 : vector<1x1x128xf32> to vector<1x128xf32>
    %141 = vector.broadcast %140 : vector<1x128xf32> to vector<128x128xf32>
    %142 = arith.addf %138, %141 : vector<128x128xf32>
    %143 = vector.shape_cast %142 : vector<128x128xf32> to vector<16x8x128xf32>
    %144 = arith.addf %3, %143 : vector<16x8x128xf32>
    %c0_48 = arith.constant 0 : index
    %c0_49 = arith.constant 0 : index
    %c0_50 = arith.constant 0 : index
    %145 = vector.load %arg12[%c0_48, %c0_49, %c0_50] : memref<1x1x128xf32, #tpu.memory_space<vmem>>, vector<1x1x128xf32>
    %146 = vector.shape_cast %145 : vector<1x1x128xf32> to vector<1x128xf32>
    %c0_51 = arith.constant 0 : index
    %c0_52 = arith.constant 0 : index
    %c0_53 = arith.constant 0 : index
    %147 = vector.load %arg13[%c0_51, %c0_52, %c0_53] : memref<1x1x128xf32, #tpu.memory_space<vmem>>, vector<1x1x128xf32>
    %148 = vector.shape_cast %147 : vector<1x1x128xf32> to vector<1x128xf32>
    %cst_54 = arith.constant dense<0.000000e+00> : vector<16x8xf32>
    %149 = vector.multi_reduction <add>, %144, %cst_54 [2] : vector<16x8x128xf32> to vector<16x8xf32>
    %150 = vector.shape_cast %149 : vector<16x8xf32> to vector<16x8x1xf32>
    %cst_55 = arith.constant 1.280000e+02 : f32
    %151 = vector.broadcast %cst_55 : f32 to vector<16x8x1xf32>
    %152 = arith.divf %150, %151 : vector<16x8x1xf32>
    %153 = vector.broadcast %152 : vector<16x8x1xf32> to vector<16x8x128xf32>
    %154 = arith.subf %144, %153 : vector<16x8x128xf32>
    %155 = arith.mulf %154, %154 : vector<16x8x128xf32>
    %cst_56 = arith.constant dense<0.000000e+00> : vector<16x8xf32>
    %156 = vector.multi_reduction <add>, %155, %cst_56 [2] : vector<16x8x128xf32> to vector<16x8xf32>
    %157 = vector.shape_cast %156 : vector<16x8xf32> to vector<16x8x1xf32>
    %cst_57 = arith.constant 1.280000e+02 : f32
    %158 = vector.broadcast %cst_57 : f32 to vector<16x8x1xf32>
    %159 = arith.divf %157, %158 : vector<16x8x1xf32>
    %160 = vector.broadcast %152 : vector<16x8x1xf32> to vector<16x8x128xf32>
    %161 = arith.subf %144, %160 : vector<16x8x128xf32>
    %cst_58 = arith.constant 9.99999974E-6 : f32
    %162 = vector.broadcast %cst_58 : f32 to vector<16x8x1xf32>
    %163 = arith.addf %159, %162 : vector<16x8x1xf32>
    %164 = math.rsqrt %163 : vector<16x8x1xf32>
    %165 = vector.broadcast %164 : vector<16x8x1xf32> to vector<16x8x128xf32>
    %166 = arith.mulf %161, %165 : vector<16x8x128xf32>
    %167 = vector.shape_cast %146 : vector<1x128xf32> to vector<1x1x128xf32>
    %168 = vector.broadcast %167 : vector<1x1x128xf32> to vector<16x8x128xf32>
    %169 = arith.mulf %166, %168 : vector<16x8x128xf32>
    %170 = vector.shape_cast %148 : vector<1x128xf32> to vector<1x1x128xf32>
    %171 = vector.broadcast %170 : vector<1x1x128xf32> to vector<16x8x128xf32>
    %172 = arith.addf %169, %171 : vector<16x8x128xf32>
    %173 = vector.shape_cast %172 : vector<16x8x128xf32> to vector<128x128xf32>
    %174 = arith.truncf %173 : vector<128x128xf32> to vector<128x128xbf16>
    %c0_59 = arith.constant 0 : index
    %c0_60 = arith.constant 0 : index
    %c0_61 = arith.constant 0 : index
    %175 = vector.load %arg14[%c0_59, %c0_60, %c0_61] : memref<1x128x512xbf16, #tpu.memory_space<vmem>>, vector<1x128x512xbf16>
    %176 = vector.shape_cast %175 : vector<1x128x512xbf16> to vector<128x512xbf16>
    %cst_62 = arith.constant dense<0.000000e+00> : vector<128x512xf32>
    %177 = tpu.matmul %174, %176, %cst_62 {dimension_numbers = #tpu.dot_dimension_numbers<[1], [0], [0], [1], [0, 0, 1, 1], [], []>} : vector<128x128xbf16>, vector<128x512xbf16>, vector<128x512xf32> -> vector<128x512xf32>
    %c0_63 = arith.constant 0 : index
    %c0_64 = arith.constant 0 : index
    %c0_65 = arith.constant 0 : index
    %178 = vector.load %arg15[%c0_63, %c0_64, %c0_65] : memref<1x1x512xf32, #tpu.memory_space<vmem>>, vector<1x1x512xf32>
    %179 = vector.shape_cast %178 : vector<1x1x512xf32> to vector<1x512xf32>
    %180 = vector.broadcast %179 : vector<1x512xf32> to vector<128x512xf32>
    %181 = arith.addf %177, %180 : vector<128x512xf32>
    %cst_66 = arith.constant 1.702000e+00 : f32
    %182 = vector.broadcast %cst_66 : f32 to vector<128x512xf32>
    %183 = arith.mulf %182, %181 : vector<128x512xf32>
    %184 = arith.negf %183 : vector<128x512xf32>
    %185 = math.exp %184 : vector<128x512xf32>
    %cst_67 = arith.constant 1.000000e+00 : f32
    %186 = vector.broadcast %cst_67 : f32 to vector<128x512xf32>
    %187 = arith.addf %186, %185 : vector<128x512xf32>
    %188 = arith.divf %186, %187 : vector<128x512xf32>
    %189 = arith.mulf %181, %188 : vector<128x512xf32>
    %190 = arith.truncf %189 : vector<128x512xf32> to vector<128x512xbf16>
    %c0_68 = arith.constant 0 : index
    %c0_69 = arith.constant 0 : index
    %c0_70 = arith.constant 0 : index
    %191 = vector.load %arg16[%c0_68, %c0_69, %c0_70] : memref<1x512x128xbf16, #tpu.memory_space<vmem>>, vector<1x512x128xbf16>
    %192 = vector.shape_cast %191 : vector<1x512x128xbf16> to vector<512x128xbf16>
    %cst_71 = arith.constant dense<0.000000e+00> : vector<128x128xf32>
    %193 = tpu.matmul %190, %192, %cst_71 {dimension_numbers = #tpu.dot_dimension_numbers<[1], [0], [0], [1], [0, 0, 1, 1], [], []>} : vector<128x512xbf16>, vector<512x128xbf16>, vector<128x128xf32> -> vector<128x128xf32>
    %c0_72 = arith.constant 0 : index
    %c0_73 = arith.constant 0 : index
    %c0_74 = arith.constant 0 : index
    %194 = vector.load %arg17[%c0_72, %c0_73, %c0_74] : memref<1x1x128xf32, #tpu.memory_space<vmem>>, vector<1x1x128xf32>
    %195 = vector.shape_cast %194 : vector<1x1x128xf32> to vector<1x128xf32>
    %196 = vector.broadcast %195 : vector<1x128xf32> to vector<128x128xf32>
    %197 = arith.addf %193, %196 : vector<128x128xf32>
    %198 = vector.shape_cast %197 : vector<128x128xf32> to vector<16x8x128xf32>
    %199 = arith.addf %144, %198 : vector<16x8x128xf32>
    %c0_75 = arith.constant 0 : index
    %c0_76 = arith.constant 0 : index
    %c0_77 = arith.constant 0 : index
    %200 = vector.load %arg34[%c0_75, %c0_76, %c0_77] : memref<16x8x128xf32, #tpu.memory_space<vmem>>, vector<16x8x128xf32>
    tpu.vector_store %arg34[%c0_75, %c0_76, %c0_77], %199 {strides = array<i32>} : memref<16x8x128xf32, #tpu.memory_space<vmem>>, vector<16x8x128xf32>,
    %c1_i32 = arith.constant 1 : i32
    %201 = arith.cmpi eq, %arg1, %c1_i32 : i32
    %202 = arith.extui %201 : i1 to i32
    %c0_i32_78 = arith.constant 0 : i32
    %203 = arith.cmpi ne, %202, %c0_i32_78 : i32
    scf.if %203 {
      %204 = vector.extract_strided_slice %199 {offsets = [0, 0, 0], sizes = [16, 1, 128], strides = [1, 1, 1]} : vector<16x8x128xf32> to vector<16x1x128xf32>
      %205 = vector.shape_cast %204 : vector<16x1x128xf32> to vector<16x128xf32>
      %c0_79 = arith.constant 0 : index
      %c0_80 = arith.constant 0 : index
      %206 = vector.load %arg20[%c0_79, %c0_80] : memref<1x128xf32, #tpu.memory_space<vmem>>, vector<1x128xf32>
      %c0_81 = arith.constant 0 : index
      %c0_82 = arith.constant 0 : index
      %207 = vector.load %arg21[%c0_81, %c0_82] : memref<1x128xf32, #tpu.memory_space<vmem>>, vector<1x128xf32>
      %cst_83 = arith.constant dense<0.000000e+00> : vector<16xf32>
      %208 = vector.multi_reduction <add>, %205, %cst_83 [1] : vector<16x128xf32> to vector<16xf32>
      %209 = vector.shape_cast %208 : vector<16xf32> to vector<16x1xf32>
      %cst_84 = arith.constant 1.280000e+02 : f32
      %210 = vector.broadcast %cst_84 : f32 to vector<16x1xf32>
      %211 = arith.divf %209, %210 : vector<16x1xf32>
      %212 = vector.broadcast %211 : vector<16x1xf32> to vector<16x128xf32>
      %213 = arith.subf %205, %212 : vector<16x128xf32>
      %214 = arith.mulf %213, %213 : vector<16x128xf32>
      %cst_85 = arith.constant dense<0.000000e+00> : vector<16xf32>
      %215 = vector.multi_reduction <add>, %214, %cst_85 [1] : vector<16x128xf32> to vector<16xf32>
      %216 = vector.shape_cast %215 : vector<16xf32> to vector<16x1xf32>
      %cst_86 = arith.constant 1.280000e+02 : f32
      %217 = vector.broadcast %cst_86 : f32 to vector<16x1xf32>
      %218 = arith.divf %216, %217 : vector<16x1xf32>
      %219 = vector.broadcast %211 : vector<16x1xf32> to vector<16x128xf32>
      %220 = arith.subf %205, %219 : vector<16x128xf32>
      %cst_87 = arith.constant 9.99999974E-6 : f32
      %221 = vector.broadcast %cst_87 : f32 to vector<16x1xf32>
      %222 = arith.addf %218, %221 : vector<16x1xf32>
      %223 = math.rsqrt %222 : vector<16x1xf32>
      %224 = vector.broadcast %223 : vector<16x1xf32> to vector<16x128xf32>
      %225 = arith.mulf %220, %224 : vector<16x128xf32>
      %226 = vector.broadcast %206 : vector<1x128xf32> to vector<16x128xf32>
      %227 = arith.mulf %225, %226 : vector<16x128xf32>
      %228 = vector.broadcast %207 : vector<1x128xf32> to vector<16x128xf32>
      %229 = arith.addf %227, %228 : vector<16x128xf32>
      %230 = arith.truncf %229 : vector<16x128xf32> to vector<16x128xbf16>
      %c0_88 = arith.constant 0 : index
      %c0_89 = arith.constant 0 : index
      %c0_90 = arith.constant 0 : index
      %231 = vector.load %arg5[%c0_88, %c0_89, %c0_90] : memref<1x16x13xf32, #tpu.memory_space<vmem>>, vector<1x16x13xf32>
      %232 = vector.shape_cast %231 : vector<1x16x13xf32> to vector<16x13xf32>
      %233 = arith.truncf %232 : vector<16x13xf32> to vector<16x13xbf16>
      %c0_91 = arith.constant 0 : index
      %c0_92 = arith.constant 0 : index
      %234 = vector.load %arg22[%c0_91, %c0_92] : memref<13x52xbf16, #tpu.memory_space<vmem>>, vector<13x52xbf16>
      %cst_93 = arith.constant dense<0.000000e+00> : vector<16x52xf32>
      %235 = tpu.matmul %233, %234, %cst_93 {dimension_numbers = #tpu.dot_dimension_numbers<[1], [0], [0], [1], [0, 0, 1, 1], [], []>} : vector<16x13xbf16>, vector<13x52xbf16>, vector<16x52xf32> -> vector<16x52xf32>
      %c0_94 = arith.constant 0 : index
      %c0_95 = arith.constant 0 : index
      %236 = vector.load %arg23[%c0_94, %c0_95] : memref<1x52xf32, #tpu.memory_space<vmem>>, vector<1x52xf32>
      %237 = vector.broadcast %236 : vector<1x52xf32> to vector<16x52xf32>
      %238 = arith.addf %235, %237 : vector<16x52xf32>
      %cst_96 = arith.constant 0.000000e+00 : f32
      %239 = vector.broadcast %cst_96 : f32 to vector<16x52xf32>
      %240 = arith.maximumf %238, %239 : vector<16x52xf32>
      %241 = arith.truncf %240 : vector<16x52xf32> to vector<16x52xbf16>
      %c0_97 = arith.constant 0 : index
      %c0_98 = arith.constant 0 : index
      %242 = vector.load %arg24[%c0_97, %c0_98] : memref<52x52xbf16, #tpu.memory_space<vmem>>, vector<52x52xbf16>
      %cst_99 = arith.constant dense<0.000000e+00> : vector<16x52xf32>
      %243 = tpu.matmul %241, %242, %cst_99 {dimension_numbers = #tpu.dot_dimension_numbers<[1], [0], [0], [1], [0, 0, 1, 1], [], []>} : vector<16x52xbf16>, vector<52x52xbf16>, vector<16x52xf32> -> vector<16x52xf32>
      %c0_100 = arith.constant 0 : index
      %c0_101 = arith.constant 0 : index
      %244 = vector.load %arg25[%c0_100, %c0_101] : memref<1x52xf32, #tpu.memory_space<vmem>>, vector<1x52xf32>
      %245 = vector.broadcast %244 : vector<1x52xf32> to vector<16x52xf32>
      %246 = arith.addf %243, %245 : vector<16x52xf32>
      %cst_102 = arith.constant 0.000000e+00 : f32
      %247 = vector.broadcast %cst_102 : f32 to vector<16x52xf32>
      %248 = arith.maximumf %246, %247 : vector<16x52xf32>
      %249 = arith.truncf %248 : vector<16x52xf32> to vector<16x52xbf16>
      %c0_103 = arith.constant 0 : index
      %c0_104 = arith.constant 0 : index
      %250 = vector.load %arg26[%c0_103, %c0_104] : memref<52x13xbf16, #tpu.memory_space<vmem>>, vector<52x13xbf16>
      %cst_105 = arith.constant dense<0.000000e+00> : vector<16x13xf32>
      %251 = tpu.matmul %249, %250, %cst_105 {dimension_numbers = #tpu.dot_dimension_numbers<[1], [0], [0], [1], [0, 0, 1, 1], [], []>} : vector<16x52xbf16>, vector<52x13xbf16>, vector<16x13xf32> -> vector<16x13xf32>
      %c0_106 = arith.constant 0 : index
      %c0_107 = arith.constant 0 : index
      %252 = vector.load %arg27[%c0_106, %c0_107] : memref<1x13xf32, #tpu.memory_space<vmem>>, vector<1x13xf32>
      %253 = vector.broadcast %252 : vector<1x13xf32> to vector<16x13xf32>
      %254 = arith.addf %251, %253 : vector<16x13xf32>
      %255 = arith.truncf %254 : vector<16x13xf32> to vector<16x13xbf16>
      %c0_108 = arith.constant 0 : index
      %c0_109 = arith.constant 0 : index
      %256 = vector.load %arg28[%c0_108, %c0_109] : memref<128x384xbf16, #tpu.memory_space<vmem>>, vector<128x384xbf16>
      %cst_110 = arith.constant dense<0.000000e+00> : vector<16x384xf32>
      %257 = tpu.matmul %230, %256, %cst_110 {dimension_numbers = #tpu.dot_dimension_numbers<[1], [0], [0], [1], [0, 0, 1, 1], [], []>} : vector<16x128xbf16>, vector<128x384xbf16>, vector<16x384xf32> -> vector<16x384xf32>
      %c0_111 = arith.constant 0 : index
      %c0_112 = arith.constant 0 : index
      %258 = vector.load %arg29[%c0_111, %c0_112] : memref<13x384xbf16, #tpu.memory_space<vmem>>, vector<13x384xbf16>
      %cst_113 = arith.constant dense<0.000000e+00> : vector<16x384xf32>
      %259 = tpu.matmul %255, %258, %cst_113 {dimension_numbers = #tpu.dot_dimension_numbers<[1], [0], [0], [1], [0, 0, 1, 1], [], []>} : vector<16x13xbf16>, vector<13x384xbf16>, vector<16x384xf32> -> vector<16x384xf32>
      %260 = arith.addf %257, %259 : vector<16x384xf32>
      %c0_114 = arith.constant 0 : index
      %c0_115 = arith.constant 0 : index
      %261 = vector.load %arg30[%c0_114, %c0_115] : memref<1x384xf32, #tpu.memory_space<vmem>>, vector<1x384xf32>
      %262 = vector.broadcast %261 : vector<1x384xf32> to vector<16x384xf32>
      %263 = arith.addf %260, %262 : vector<16x384xf32>
      %cst_116 = arith.constant 0.000000e+00 : f32
      %264 = vector.broadcast %cst_116 : f32 to vector<16x384xf32>
      %265 = arith.maximumf %263, %264 : vector<16x384xf32>
      %266 = arith.truncf %265 : vector<16x384xf32> to vector<16x384xbf16>
      %c0_117 = arith.constant 0 : index
      %c0_118 = arith.constant 0 : index
      %267 = vector.load %arg31[%c0_117, %c0_118] : memref<384x128xbf16, #tpu.memory_space<vmem>>, vector<384x128xbf16>
      %cst_119 = arith.constant dense<0.000000e+00> : vector<16x128xf32>
      %268 = tpu.matmul %266, %267, %cst_119 {dimension_numbers = #tpu.dot_dimension_numbers<[1], [0], [0], [1], [0, 0, 1, 1], [], []>} : vector<16x384xbf16>, vector<384x128xbf16>, vector<16x128xf32> -> vector<16x128xf32>
      %c0_120 = arith.constant 0 : index
      %c0_121 = arith.constant 0 : index
      %269 = vector.load %arg32[%c0_120, %c0_121] : memref<1x128xf32, #tpu.memory_space<vmem>>, vector<1x128xf32>
      %270 = vector.broadcast %269 : vector<1x128xf32> to vector<16x128xf32>
      %271 = arith.addf %268, %270 : vector<16x128xf32>
      %cst_122 = arith.constant 0.000000e+00 : f32
      %272 = vector.broadcast %cst_122 : f32 to vector<16x128xf32>
      %273 = arith.maximumf %271, %272 : vector<16x128xf32>
      %c0_123 = arith.constant 0 : index
      %c0_124 = arith.constant 0 : index
      %c0_125 = arith.constant 0 : index
      %274 = vector.load %arg33[%c0_123, %c0_124, %c0_125] : memref<1x16x128xf32, #tpu.memory_space<vmem>>, vector<1x16x128xf32>
      %275 = vector.shape_cast %274 : vector<1x16x128xf32> to vector<16x128xf32>
      %276 = vector.shape_cast %273 : vector<16x128xf32> to vector<1x16x128xf32>
      tpu.vector_store %arg33[%c0_123, %c0_124, %c0_125], %276 {strides = array<i32>} : memref<1x16x128xf32, #tpu.memory_space<vmem>>, vector<1x16x128xf32>,
    } else {
    }
    return
  }
  func.func @transform_0(%arg0: i32, %arg1: i32) -> (i32, i32, i32) {
    %c0_i32 = arith.constant 0 : i32
    %c0_i32_0 = arith.constant 0 : i32
    %c0_i32_1 = arith.constant 0 : i32
    return %arg0, %c0_i32, %c0_i32_0 : i32, i32, i32
  }
  func.func @transform_1(%arg0: i32, %arg1: i32) -> (i32, i32, i32) {
    %c0_i32 = arith.constant 0 : i32
    %c0_i32_0 = arith.constant 0 : i32
    %c0_i32_1 = arith.constant 0 : i32
    return %arg0, %c0_i32, %c0_i32_0 : i32, i32, i32
  }
  func.func @transform_2(%arg0: i32, %arg1: i32) -> (i32, i32, i32, i32) {
    %c0_i32 = arith.constant 0 : i32
    %c0_i32_0 = arith.constant 0 : i32
    %c0_i32_1 = arith.constant 0 : i32
    %c0_i32_2 = arith.constant 0 : i32
    return %arg0, %c0_i32, %c0_i32_0, %c0_i32_1 : i32, i32, i32, i32
  }
  func.func @transform_3(%arg0: i32, %arg1: i32) -> (i32, i32, i32) {
    %c0_i32 = arith.constant 0 : i32
    %c0_i32_0 = arith.constant 0 : i32
    %c0_i32_1 = arith.constant 0 : i32
    return %arg0, %c0_i32, %c0_i32_0 : i32, i32, i32
  }
  func.func @transform_4(%arg0: i32, %arg1: i32) -> (i32, i32, i32) {
    %c0_i32 = arith.constant 0 : i32
    %c0_i32_0 = arith.constant 0 : i32
    %c0_i32_1 = arith.constant 0 : i32
    return %arg1, %c0_i32, %c0_i32_0 : i32, i32, i32
  }
  func.func @transform_5(%arg0: i32, %arg1: i32) -> (i32, i32, i32) {
    %c0_i32 = arith.constant 0 : i32
    %c0_i32_0 = arith.constant 0 : i32
    %c0_i32_1 = arith.constant 0 : i32
    return %arg1, %c0_i32, %c0_i32_0 : i32, i32, i32
  }
  func.func @transform_6(%arg0: i32, %arg1: i32) -> (i32, i32, i32) {
    %c0_i32 = arith.constant 0 : i32
    %c0_i32_0 = arith.constant 0 : i32
    %c0_i32_1 = arith.constant 0 : i32
    return %arg1, %c0_i32, %c0_i32_0 : i32, i32, i32
  }
  func.func @transform_7(%arg0: i32, %arg1: i32) -> (i32, i32, i32) {
    %c0_i32 = arith.constant 0 : i32
    %c0_i32_0 = arith.constant 0 : i32
    %c0_i32_1 = arith.constant 0 : i32
    return %arg1, %c0_i32, %c0_i32_0 : i32, i32, i32
  }
  func.func @transform_8(%arg0: i32, %arg1: i32) -> (i32, i32, i32) {
    %c0_i32 = arith.constant 0 : i32
    %c0_i32_0 = arith.constant 0 : i32
    %c0_i32_1 = arith.constant 0 : i32
    return %arg1, %c0_i32, %c0_i32_0 : i32, i32, i32
  }
  func.func @transform_9(%arg0: i32, %arg1: i32) -> (i32, i32, i32) {
    %c0_i32 = arith.constant 0 : i32
    %c0_i32_0 = arith.constant 0 : i32
    %c0_i32_1 = arith.constant 0 : i32
    return %arg1, %c0_i32, %c0_i32_0 : i32, i32, i32
  }
  func.func @transform_10(%arg0: i32, %arg1: i32) -> (i32, i32, i32) {
    %c0_i32 = arith.constant 0 : i32
    %c0_i32_0 = arith.constant 0 : i32
    %c0_i32_1 = arith.constant 0 : i32
    return %arg1, %c0_i32, %c0_i32_0 : i32, i32, i32
  }
  func.func @transform_11(%arg0: i32, %arg1: i32) -> (i32, i32, i32) {
    %c0_i32 = arith.constant 0 : i32
    %c0_i32_0 = arith.constant 0 : i32
    %c0_i32_1 = arith.constant 0 : i32
    return %arg1, %c0_i32, %c0_i32_0 : i32, i32, i32
  }
  func.func @transform_12(%arg0: i32, %arg1: i32) -> (i32, i32, i32) {
    %c0_i32 = arith.constant 0 : i32
    %c0_i32_0 = arith.constant 0 : i32
    %c0_i32_1 = arith.constant 0 : i32
    return %arg1, %c0_i32, %c0_i32_0 : i32, i32, i32
  }
  func.func @transform_13(%arg0: i32, %arg1: i32) -> (i32, i32, i32) {
    %c0_i32 = arith.constant 0 : i32
    %c0_i32_0 = arith.constant 0 : i32
    %c0_i32_1 = arith.constant 0 : i32
    return %arg1, %c0_i32, %c0_i32_0 : i32, i32, i32
  }
  func.func @transform_14(%arg0: i32, %arg1: i32) -> (i32, i32, i32) {
    %c0_i32 = arith.constant 0 : i32
    %c0_i32_0 = arith.constant 0 : i32
    %c0_i32_1 = arith.constant 0 : i32
    return %arg1, %c0_i32, %c0_i32_0 : i32, i32, i32
  }
  func.func @transform_15(%arg0: i32, %arg1: i32) -> (i32, i32, i32) {
    %c0_i32 = arith.constant 0 : i32
    %c0_i32_0 = arith.constant 0 : i32
    %c0_i32_1 = arith.constant 0 : i32
    return %arg1, %c0_i32, %c0_i32_0 : i32, i32, i32
  }
  func.func @transform_16(%arg0: i32, %arg1: i32) -> (i32, i32) {
    %c0_i32 = arith.constant 0 : i32
    %c0_i32_0 = arith.constant 0 : i32
    %c0_i32_1 = arith.constant 0 : i32
    return %c0_i32, %c0_i32_0 : i32, i32
  }
  func.func @transform_17(%arg0: i32, %arg1: i32) -> (i32, i32) {
    %c0_i32 = arith.constant 0 : i32
    %c0_i32_0 = arith.constant 0 : i32
    %c0_i32_1 = arith.constant 0 : i32
    return %c0_i32, %c0_i32_0 : i32, i32
  }
  func.func @transform_18(%arg0: i32, %arg1: i32) -> (i32, i32) {
    %c0_i32 = arith.constant 0 : i32
    %c0_i32_0 = arith.constant 0 : i32
    %c0_i32_1 = arith.constant 0 : i32
    return %c0_i32, %c0_i32_0 : i32, i32
  }
  func.func @transform_19(%arg0: i32, %arg1: i32) -> (i32, i32) {
    %c0_i32 = arith.constant 0 : i32
    %c0_i32_0 = arith.constant 0 : i32
    %c0_i32_1 = arith.constant 0 : i32
    return %c0_i32, %c0_i32_0 : i32, i32
  }
  func.func @transform_20(%arg0: i32, %arg1: i32) -> (i32, i32) {
    %c0_i32 = arith.constant 0 : i32
    %c0_i32_0 = arith.constant 0 : i32
    %c0_i32_1 = arith.constant 0 : i32
    return %c0_i32, %c0_i32_0 : i32, i32
  }
  func.func @transform_21(%arg0: i32, %arg1: i32) -> (i32, i32) {
    %c0_i32 = arith.constant 0 : i32
    %c0_i32_0 = arith.constant 0 : i32
    %c0_i32_1 = arith.constant 0 : i32
    return %c0_i32, %c0_i32_0 : i32, i32
  }
  func.func @transform_22(%arg0: i32, %arg1: i32) -> (i32, i32) {
    %c0_i32 = arith.constant 0 : i32
    %c0_i32_0 = arith.constant 0 : i32
    %c0_i32_1 = arith.constant 0 : i32
    return %c0_i32, %c0_i32_0 : i32, i32
  }
  func.func @transform_23(%arg0: i32, %arg1: i32) -> (i32, i32) {
    %c0_i32 = arith.constant 0 : i32
    %c0_i32_0 = arith.constant 0 : i32
    %c0_i32_1 = arith.constant 0 : i32
    return %c0_i32, %c0_i32_0 : i32, i32
  }
  func.func @transform_24(%arg0: i32, %arg1: i32) -> (i32, i32) {
    %c0_i32 = arith.constant 0 : i32
    %c0_i32_0 = arith.constant 0 : i32
    %c0_i32_1 = arith.constant 0 : i32
    return %c0_i32, %c0_i32_0 : i32, i32
  }
  func.func @transform_25(%arg0: i32, %arg1: i32) -> (i32, i32) {
    %c0_i32 = arith.constant 0 : i32
    %c0_i32_0 = arith.constant 0 : i32
    %c0_i32_1 = arith.constant 0 : i32
    return %c0_i32, %c0_i32_0 : i32, i32
  }
  func.func @transform_26(%arg0: i32, %arg1: i32) -> (i32, i32) {
    %c0_i32 = arith.constant 0 : i32
    %c0_i32_0 = arith.constant 0 : i32
    %c0_i32_1 = arith.constant 0 : i32
    return %c0_i32, %c0_i32_0 : i32, i32
  }
  func.func @transform_27(%arg0: i32, %arg1: i32) -> (i32, i32) {
    %c0_i32 = arith.constant 0 : i32
    %c0_i32_0 = arith.constant 0 : i32
    %c0_i32_1 = arith.constant 0 : i32
    return %c0_i32, %c0_i32_0 : i32, i32
  }
  func.func @transform_28(%arg0: i32, %arg1: i32) -> (i32, i32) {
    %c0_i32 = arith.constant 0 : i32
    %c0_i32_0 = arith.constant 0 : i32
    %c0_i32_1 = arith.constant 0 : i32
    return %c0_i32, %c0_i32_0 : i32, i32
  }
  func.func @transform_29(%arg0: i32, %arg1: i32) -> (i32, i32) {
    %c0_i32 = arith.constant 0 : i32
    %c0_i32_0 = arith.constant 0 : i32
    %c0_i32_1 = arith.constant 0 : i32
    return %c0_i32, %c0_i32_0 : i32, i32
  }
  func.func @transform_30(%arg0: i32, %arg1: i32) -> (i32, i32) {
    %c0_i32 = arith.constant 0 : i32
    %c0_i32_0 = arith.constant 0 : i32
    %c0_i32_1 = arith.constant 0 : i32
    return %c0_i32, %c0_i32_0 : i32, i32
  }
  func.func @transform_31(%arg0: i32, %arg1: i32) -> (i32, i32, i32) {
    %c0_i32 = arith.constant 0 : i32
    %c0_i32_0 = arith.constant 0 : i32
    %c0_i32_1 = arith.constant 0 : i32
    return %arg0, %c0_i32, %c0_i32_0 : i32, i32, i32
  }
}

</mosaic_0001>

<bundles_post_ra>
// kernel: classifier_forward.1
= control target key start
LH: loop header
LB: loop body
LE: loop exit
PB: predicated region body
PF: predicated region fallthrough
CT: control target
= control target key end

     0   :  { %s12240_s6 = smov 1   ;;  %s12241_s10 = smov 2   ;;  %s18236_s0 = inlined_call_operand.smem [shape: u32[32], index: -1, kind: input, shape index: {}] }
   0x1   :  { %s12284_s5 = sld [smem:[%s18236_s0]]   ;;  %s12242_s14 = smov 3  }
   0x2   :  { %s12289_s9 = sld [smem:[%s18236_s0 + %s12240_s6]]   ;;  %s12243_s18 = smov 4  }
   0x3   :  { %s12294_s13 = sld [smem:[%s18236_s0 + %s12241_s10]]   ;;  %s12244_s22 = smov 5  }
   0x4   :  { %s12299_s17 = sld [smem:[%s18236_s0 + %s12242_s14]]   ;;  %s12245_s26 = smov 6  }
   0x5   :  { %s12304_s21 = sld [smem:[%s18236_s0 + %s12243_s18]]   ;;  %s12246_s30 = smov 7  }
   0x6   :  { %s12309_s25 = sld [smem:[%s18236_s0 + %s12244_s22]]   ;;  %s12247_s4 = smov 8  }
   0x7   :  { %18380 = sst [smem:[#allocation3_spill]] %s12284_s5  ;;  %s12248_s10 = smov 9  }
   0x8   :  { %18381 = sst [smem:[#allocation4_spill]] %s12289_s9  ;;  %s12249_s15 = smov 10  }
   0x9   :  { %18382 = sst [smem:[#allocation5_spill]] %s12294_s13  ;;  %s12250_s20 = smov 11  }
   0xa   :  { %18383 = sst [smem:[#allocation6_spill]] %s12299_s17  ;;  %s12252_s1 = smov 13  }
   0xb   :  { %s12314_s29 = sld [smem:[%s18236_s0 + %s12245_s26]]   ;;  %s12251_s26 = smov 12  }
   0xc   :  { %s12319_s3 = sld [smem:[%s18236_s0 + %s12246_s30]]   ;;  %s12253_s7 = smov 14  }
   0xd   :  { %s12324_s8 = sld [smem:[%s18236_s0 + %s12247_s4]]   ;;  %s12255_s22 = smov 16  }
   0xe   :  { %s12329_s14 = sld [smem:[%s18236_s0 + %s12248_s10]]   ;;  %s12256_s28 = smov 17  }
   0xf   :  { %s12334_s19 = sld [smem:[%s18236_s0 + %s12249_s15]]   ;;  %s12254_s15 = smov 15  }
  0x10   :  { %s12339_s24 = sld [smem:[%s18236_s0 + %s12250_s20]]   ;;  %s12443_s23 = smov 0  }
  0x11   :  { %s12344_s30 = sld [smem:[%s18236_s0 + %s12251_s26]]   ;;  %s12445_s26 = smov 0  }
  0x12   :  { %s12349_s6 = sld [smem:[%s18236_s0 + %s12252_s1]]   ;;  %s12449_s1 = smov 0  }
  0x13   :  { %s12354_s12 = sld [smem:[%s18236_s0 + %s12253_s7]]   ;;  %s12257_s7 = smov 18  }
  0x14   :  { %s12359_s20 = sld [smem:[%s18236_s0 + %s12254_s15]]   ;;  %s12258_s15 = smov 19  }
  0x15   :  { %s12364_s27 = sld [smem:[%s18236_s0 + %s12255_s22]]   ;;  %s12259_s22 = smov 20  }
  0x16   :  { %s12369_s4 = sld [smem:[%s18236_s0 + %s12256_s28]]   ;;  %s12260_s28 = smov 21  }
  0x19   :  { %18384 = sst [smem:[#allocation7_spill]] %s12354_s12 }
  0x1a   :  { %18385 = sst [smem:[#allocation8_spill]] %s12359_s20 }
  0x1b   :  { %18386 = sst [smem:[#allocation9_spill]] %s12364_s27 }
  0x1c   :  { %18387 = sst [smem:[#allocation10_spill]] %s12369_s4 }
  0x1d   :  { %s12374_s12 = sld [smem:[%s18236_s0 + %s12257_s7]]   ;;  %s12261_s7 = smov 22  }
  0x1e   :  { %s12379_s20 = sld [smem:[%s18236_s0 + %s12258_s15]]   ;;  %s12262_s15 = smov 23  }
  0x1f   :  { %s12384_s27 = sld [smem:[%s18236_s0 + %s12259_s22]]   ;;  %s12263_s22 = smov 24  }
  0x20   :  { %s12389_s4 = sld [smem:[%s18236_s0 + %s12260_s28]]   ;;  %s12264_s28 = smov 25  }
  0x23   :  { %18388 = sst [smem:[#allocation11_spill]] %s12374_s12 }
  0x24   :  { %18389 = sst [smem:[#allocation12_spill]] %s12379_s20 }
  0x25   :  { %18390 = sst [smem:[#allocation13_spill]] %s12384_s27 }
  0x26   :  { %18391 = sst [smem:[#allocation14_spill]] %s12389_s4 }
  0x27   :  { %s12394_s12 = sld [smem:[%s18236_s0 + %s12261_s7]]   ;;  %s12265_s7 = smov 26  }
  0x28   :  { %s12399_s20 = sld [smem:[%s18236_s0 + %s12262_s15]]   ;;  %s12266_s15 = smov 27  }
  0x29   :  { %s12404_s27 = sld [smem:[%s18236_s0 + %s12263_s22]]   ;;  %s12267_s22 = smov 28  }
  0x2a   :  { %s12409_s4 = sld [smem:[%s18236_s0 + %s12264_s28]]   ;;  %s12268_s28 = smov 29  }
  0x2d   :  { %18392 = sst [smem:[#allocation15_spill]] %s12394_s12 }
  0x2e   :  { %18393 = sst [smem:[#allocation16_spill]] %s12399_s20 }
  0x2f   :  { %18394 = sst [smem:[#allocation17_spill]] %s12404_s27 }
  0x30   :  { %18395 = sst [smem:[#allocation18_spill]] %s12409_s4 }
  0x31   :  { %s12414_s12 = sld [smem:[%s18236_s0 + %s12265_s7]]   ;;  %s12269_s7 = smov 30  }
  0x32   :  { %s12419_s20 = sld [smem:[%s18236_s0 + %s12266_s15]]   ;;  %s12270_s15 = smov 31  }
  0x33   :  { %s12424_s27 = sld [smem:[%s18236_s0 + %s12267_s22]]   ;;  %s12441_s22 = smov 0  }
  0x34   :  { %s12429_s4 = sld [smem:[%s18236_s0 + %s12268_s28]]   ;;  %s12447_s28 = smov 0  }
  0x37   :  { %18396 = sst [smem:[#allocation19_spill]] %s12414_s12 }
  0x38   :  { %18397 = sst [smem:[#allocation20_spill]] %s12419_s20 }
  0x39   :  { %18398 = sst [smem:[#allocation21_spill]] %s12424_s27 }
  0x3a   :  { %18399 = sst [smem:[#allocation22_spill]] %s12429_s4 }
  0x3b   :  { %s12434_s12 = sld [smem:[%s18236_s0 + %s12269_s7]]  }
  0x3c   :  { %s12439_s20 = sld [smem:[%s18236_s0 + %s12270_s15]]  }
  0x41   :  { %18400 = sst [smem:[#allocation23_spill]] %s12434_s12 }
  0x42   :  { %18401 = sst [smem:[#allocation24_spill]] %s12439_s20 }
  0x43 LB: > { %18402 = sst [smem:[#allocation25_spill]] %s12230_s26  ;;  %s82_s0 = sadd.s32 1, %s12230_s26  ;;  %s12238_s1 = sphi %s12449_s1, %s73_s1   ;;  %s12234_s28 = sphi %s12447_s28, %s18987_s28   ;;  %s12230_s26 = sphi %s12445_s26, %s18986_s26   ;;  %s12226_s23 = sphi %s12443_s23, %s18985_s23   ;;  %s12222_s22 = sphi %s12441_s22, %s18984_s22  }
  0x44   : > { %18403 = sst [smem:[#allocation26_spill]] %s12234_s28  ;;  %s85_s2 = sadd.s32 1, %s12234_s28 }
  0x45   : > { %18404 = sst [smem:[#allocation27_spill]] %s12238_s1  ;;  %p83_p0 = scmp.ge.s32.totalorder %s82_s0, 2 }
  0x46   : > { %p10251_p1 = scmp.ge.s32.totalorder %s12238_s1, 1  ;;  %p1018_p2 = scmp.lt.s32.totalorder %s12238_s1, 5 }
  0x47   : > { %s18989_s0 = smov (%p83_p0, %s82_s0), 0  ;;  %s18991_s2 = smov (!%p83_p0, %s85_s2), %s12234_s28 }
  0x48   : > { %18405 = sst [smem:[#allocation28_spill]] %s18989_s0  ;;  %p1019_p3 = pnand %p10251_p1, %p1018_p2 }
  0x49   : > { %p87_p4 = scmp.ge.s32.totalorder %s18991_s2, 2 }
  0x4a   : > { %1022 = sbr.rel (%p1019_p3) target bundleno = 5119 (0x13ff), region = 144 }
  0x4b   : > { %s18993_s2 = smov (%p87_p4, %s18991_s2), 0 }
  0x4c   : > { %18406 = sst [smem:[#allocation29_spill]] %s18993_s2 }
  0x4f   : > { %s10252_s7 = sshll.u32 %s12226_s23, 4  ;;  %s18407_s5 = sld [smem:[#allocation3_spill]] }
  0x50   : > { %s18408_s9 = sld [smem:[#allocation4_spill]]  ;;  %p1170_p5 = scmp.lt.s32.totalorder %s12226_s23, 1 }
  0x51   : > { %s18409_s13 = sld [smem:[#allocation5_spill]]  ;;  %p1159_p6 = scmp.lt.s32.totalorder %s10252_s7, 31 }
  0x52   : > { %s18410_s17 = sld [smem:[#allocation6_spill]]  ;;  %s18995_s23 = smov (!%p1170_p5, %s12226_s23), 1 }
  0x53   : > { %s18411_s20 = sld [smem:[#allocation24_spill]]  ;;  %s18997_s7 = smov (!%p1159_p6, %s10252_s7), 31 }
  0x54   : > { %s10256_s10 = sshll.u32 %s18995_s23, 4  ;;  %p1179_p7 = scmp.lt.s32.totalorder %s12222_s22, 1 }
  0x55   : > { %s10253_s11 = sshll.u32 %s18997_s7, 2  ;;  %s10255_s15 = sshll.u32 %s18997_s7, 3 }
  0x56   : > { %s12475_s16 = scalar_lea.vmem %s18407_s5, %s10253_s11  ;;  %s12478_s18 = scalar_lea.vmem %s18408_s9, %s10255_s15 }
  0x57   : > { %s12481_s2 = scalar_lea.vmem %s18409_s13, %s10256_s10  ;;  %s18415_s7 = sld [smem:[#allocation7_spill]] }
  0x58   : > { %18412 = sst [smem:[#allocation30_spill]] %s12481_s2  ;;  %s12484_s0 = scalar_lea.vmem %s18410_s17, %s10256_s10 }
  0x59   : > { %18413 = sst [smem:[#allocation31_spill]] %s12484_s0  ;;  %s12490_s23 = scalar_lea.vmem %s18411_s20, %s10256_s10 }
  0x5a   : > { %s12487_s28 = scalar_select %p1179_p7, %s12222_s22, 1 }
  0x5b   : > { %18414 = sst [smem:[#allocation32_spill]] %s12490_s23  ;;  %p10269_p8 = scmp.ne.s32.totalorder %s12222_s22, 0 }
  0x5c   : > { %s18416_s15 = sld [smem:[#allocation8_spill]]  ;;  %s11342_s9 = smul.u32 192, %s12487_s28 }
  0x5d   : > { %s11144_s13 = sshll.u32 %s12487_s28, 6  ;;  %s11343_s17 = smul.u32 3, %s12487_s28 }
  0x5e   : > { %s12500_s26 = scalar_lea.vmem %s12324_s8, %s11144_s13  ;;  %s12503_s1 = scalar_lea.vmem %s12314_s29, %s11342_s9 }
  0x5f   : > { %s1201_s12 = scalar_lea.vmem %s12329_s14, %s12487_s28  ;;  %s12508_s27 = scalar_lea.vmem %s12319_s3, %s11343_s17 }
  0x60   : > { %s12512_s4 = scalar_lea.vmem %s12334_s19, %s12487_s28  ;;  %s12516_s0 = scalar_lea.vmem %s12339_s24, %s12487_s28 }
  0x61   : > { %s11145_s10 = sshll.u32 %s12487_s28, 8  ;;  %s10264_s11 = sshll.u32 %s12487_s28, 2 }
  0x62   : > { %s12520_s20 = scalar_lea.vmem %s12344_s30, %s11145_s10  ;;  %s12524_s23 = scalar_lea.vmem %s12349_s6, %s10264_s11 }
  0x63   : > { %s12527_s5 = scalar_lea.vmem %s18415_s7, %s11145_s10  ;;  %s1224_s2 = scalar_lea.vmem %s18416_s15, %s12487_s28 }
  0x64   : > { %1234 = sbr.rel (%p10269_p8) target bundleno = 285 (0x11d), region = 148  ;;  %s18417_s9 = sld [smem:[#allocation9_spill]] (!%p10269_p8) }
  0x65   : > { %s18418_s13 = sld [smem:[#allocation10_spill]] (!%p10269_p8) }
  0x69   : > { %v11148_v4 = vld [vmem:[%s12475_s16] sm:$0xff]  ;;  %v11150_v5 = vld [vmem:[%s12475_s16 + $0x10] sm:$0xff]  ;;  %vm1327_vm0 = vcmask 523264   ;;  %v11149_v8 = vld [vmem:[%s12475_s16 + $0x8] sm:$0xff] }
  0x6a   : > { %v11159_v0 = vld [vmem:[%s18417_s9 + $0x18] sm:$0xff]  ;;  %v11158_v1 = vld [vmem:[%s18417_s9 + $0x10] sm:$0xff]  ;;  %v11157_v2 = vld [vmem:[%s18417_s9 + $0x8] sm:$0xff] }
  0x6b   : > { %1356 = vmatpush.bf16.msra.mxu0 %v11159_v0  ;;  %11314 = vmatpush.bf16.msra.mxu1 %v11159_v0  ;;  %v11156_v3 = vld [vmem:[%s18417_s9] sm:$0xff]  ;;  %v11154_v7 = vld [vmem:[%s12475_s16 + $0x30] sm:$0xff]  ;;  %v11151_v9 = vld [vmem:[%s12475_s16 + $0x18] sm:$0xff] }
  0x6c   : > { %11315 = vmatpush.bf16.msra.mxu2 %v11159_v0  ;;  %11316 = vmatpush.bf16.msra.mxu3 %v11159_v0  ;;  %v11152_v6 = vld [vmem:[%s12475_s16 + $0x20] sm:$0xff]  ;;  %v11153_v10 = vld [vmem:[%s12475_s16 + $0x28] sm:$0xff]  ;;  %v11155_v11 = vld [vmem:[%s12475_s16 + $0x38] sm:$0xff] }
  0x6d   : > { %v12553_v12 = vld [vmem:[%s18418_s13] ss:$0 sm:$0xff]  ;;  %v1402_v28 = vld [vmem:[%s12478_s18 + $0x8] sm:$0xff]  ;;  %v1403_v44 = vld [vmem:[%s12478_s18 + $0x10] sm:$0xff] }
  0x6e   : > { %v1401_v14 = vld [vmem:[%s12478_s18] sm:$0xff]  ;;  %v1406_v30 = vld [vmem:[%s12478_s18 + $0x28] sm:$0xff]  ;;  %v1407_v46 = vld [vmem:[%s12478_s18 + $0x30] sm:$0xff] }
  0x6f   : > { %1357 = vmatpush.bf16.msra.mxu0 %v11158_v1  ;;  %11317 = vmatpush.bf16.msra.mxu1 %v11158_v1  ;;  %v1405_v16 = vld [vmem:[%s12478_s18 + $0x20] sm:$0xff]  ;;  %v1410_v38 = vld [vmem:[%s12478_s18 + $0x48] sm:$0xff]  ;;  %v1411_v54 = vld [vmem:[%s12478_s18 + $0x50] sm:$0xff] }
  0x70   : > { %11318 = vmatpush.bf16.msra.mxu2 %v11158_v1  ;;  %11319 = vmatpush.bf16.msra.mxu3 %v11158_v1  ;;  %v1409_v22 = vld [vmem:[%s12478_s18 + $0x40] sm:$0xff]  ;;  %v1414_v40 = vld [vmem:[%s12478_s18 + $0x68] sm:$0xff]  ;;  %v1415_v56 = vld [vmem:[%s12478_s18 + $0x70] sm:$0xff] }
  0x71   : > { %v1413_v24 = vld [vmem:[%s12478_s18 + $0x60] sm:$0xff]  ;;  %v1404_v60 = vld [vmem:[%s12478_s18 + $0x18] sm:$0xff] }
  0x72   : > { %v1408_v62 = vld [vmem:[%s12478_s18 + $0x38] sm:$0xff] }
  0x73   : > { %1358 = vmatpush.bf16.msra.mxu0 %v11157_v2  ;;  %11320 = vmatpush.bf16.msra.mxu1 %v11157_v2 }
  0x74   : > { %11321 = vmatpush.bf16.msra.mxu2 %v11157_v2  ;;  %11322 = vmatpush.bf16.msra.mxu3 %v11157_v2 }
  0x77   : > { %1359 = vmatpush.bf16.msra.mxu0 %v11156_v3  ;;  %11323 = vmatpush.bf16.msra.mxu1 %v11156_v3 }
  0x78   : > { %11324 = vmatpush.bf16.msra.mxu2 %v11156_v3  ;;  %11325 = vmatpush.bf16.msra.mxu3 %v11156_v3 }
  0x7a   : > { %10318 = vmatmul.msk.bf16.vlgmr.msra.gmra.mxu0 %vm1327_vm0, %v11148_v4  ;;  %10320 = vmatmul.msk.bf16.vlgmr.msra.gmra.mxu1 %vm1327_vm0, %v11150_v5 }
  0x7b   : > { %10322 = vmatmul.msk.bf16.vlgmr.msra.gmra.mxu2 %vm1327_vm0, %v11152_v6  ;;  %10324 = vmatmul.msk.bf16.vlgmr.msra.gmra.mxu3 %vm1327_vm0, %v11154_v7  ;;  %v1412_v6 = vld [vmem:[%s12478_s18 + $0x58] sm:$0xff] }
  0x8a   : > { %10319 = vmatmul.msk.bf16.gmra.mxu0 %vm1327_vm0, %v11149_v8  ;;  %10321 = vmatmul.msk.bf16.gmra.mxu1 %vm1327_vm0, %v11151_v9  ;;  %v1416_v8 = vld [vmem:[%s12478_s18 + $0x78] sm:$0xff] }
  0x8b   : > { %10323 = vmatmul.msk.bf16.gmra.mxu2 %vm1327_vm0, %v11153_v10  ;;  %10325 = vmatmul.msk.bf16.gmra.mxu3 %vm1327_vm0, %v11155_v11 }
  0xf7   : > { %v1361_v13 = vpop.f32.mrf.mxu0  ;;  %v1371_v15 = vpop.f32.mrf.mxu1 }
  0xf8   : > { %v1362_v17 = vadd.f32 %v12553_v12, %v1361_v13  ;;  %v1372_v18 = vadd.f32 %v12553_v12, %v1371_v15 }
  0xfa   : > { %v1417_v19 = vadd.f32 %v1401_v14, %v1362_v17  ;;  %v1421_v20 = vadd.f32 %v1405_v16, %v1372_v18 }
  0xfc   : > { %1433 = vst [vmem:[#allocation2 + $0x30] sm:$0xff] %v1417_v19 }
  0xfd   : > { %1437 = vst [vmem:[#allocation2 + $0x50] sm:$0xff] %v1421_v20 }
  0xfe   : > { %v1381_v21 = vpop.f32.mrf.mxu2  ;;  %v1391_v23 = vpop.f32.mrf.mxu3 }
  0xff   : > { %v1382_v25 = vadd.f32 %v12553_v12, %v1381_v21  ;;  %v1392_v26 = vadd.f32 %v12553_v12, %v1391_v23  ;;  %v1363_v27 = vpop.f32.mrf.mxu0  ;;  %v1373_v29 = vpop.f32.mrf.mxu1 }
 0x100   : > { %v1364_v31 = vadd.f32 %v12553_v12, %v1363_v27  ;;  %v1374_v32 = vadd.f32 %v12553_v12, %v1373_v29 }
 0x101   : > { %v1425_v33 = vadd.f32 %v1409_v22, %v1382_v25  ;;  %v1429_v34 = vadd.f32 %v1413_v24, %v1392_v26 }
 0x102   : > { %v1418_v35 = vadd.f32 %v1402_v28, %v1364_v31  ;;  %v1422_v36 = vadd.f32 %v1406_v30, %v1374_v32 }
 0x103   : > { %1441 = vst [vmem:[#allocation2 + $0x40] sm:$0xff] %v1425_v33 }
 0x104   : > { %1445 = vst [vmem:[#allocation2 + $0x60] sm:$0xff] %v1429_v34 }
 0x105   : > { %1434 = vst [vmem:[#allocation2] sm:$0xff] %v1418_v35 }
 0x106   : > { %1438 = vst [vmem:[#allocation2 + $0x68] sm:$0xff] %v1422_v36  ;;  %v1383_v37 = vpop.f32.mrf.mxu2  ;;  %v1393_v39 = vpop.f32.mrf.mxu3 }
 0x107   : > { %v1384_v41 = vadd.f32 %v12553_v12, %v1383_v37  ;;  %v1394_v42 = vadd.f32 %v12553_v12, %v1393_v39  ;;  %v1366_v43 = vpop.f32.mrf.mxu0  ;;  %v1376_v45 = vpop.f32.mrf.mxu1 }
 0x108   : > { %v1367_v47 = vadd.f32 %v12553_v12, %v1366_v43  ;;  %v1377_v48 = vadd.f32 %v12553_v12, %v1376_v45 }
 0x109   : > { %v1426_v49 = vadd.f32 %v1410_v38, %v1384_v41  ;;  %v1430_v50 = vadd.f32 %v1414_v40, %v1394_v42 }
 0x10a   : > { %v1419_v51 = vadd.f32 %v1403_v44, %v1367_v47  ;;  %v1423_v52 = vadd.f32 %v1407_v46, %v1377_v48 }
 0x10b   : > { %1442 = vst [vmem:[#allocation2 + $0x20] sm:$0xff] %v1426_v49 }
 0x10c   : > { %1446 = vst [vmem:[#allocation2 + $0x70] sm:$0xff] %v1430_v50 }
 0x10d   : > { %1435 = vst [vmem:[#allocation2 + $0x58] sm:$0xff] %v1419_v51 }
 0x10e   : > { %1439 = vst [vmem:[#allocation2 + $0x8] sm:$0xff] %v1423_v52  ;;  %v1386_v53 = vpop.f32.mrf.mxu2  ;;  %v1396_v55 = vpop.f32.mrf.mxu3 }
 0x10f   : > { %v1387_v57 = vadd.f32 %v12553_v12, %v1386_v53  ;;  %v1397_v58 = vadd.f32 %v12553_v12, %v1396_v55  ;;  %v1368_v59 = vpop.f32.mrf.mxu0  ;;  %v1378_v61 = vpop.f32.mrf.mxu1 }
 0x110   : > { %v1369_v63 = vadd.f32 %v12553_v12, %v1368_v59  ;;  %v1379_v0 = vadd.f32 %v12553_v12, %v1378_v61 }
 0x111   : > { %v1427_v1 = vadd.f32 %v1411_v54, %v1387_v57  ;;  %v1431_v2 = vadd.f32 %v1415_v56, %v1397_v58 }
 0x112   : > { %v1420_v3 = vadd.f32 %v1404_v60, %v1369_v63  ;;  %v1424_v4 = vadd.f32 %v1408_v62, %v1379_v0 }
 0x113   : > { %1443 = vst [vmem:[#allocation2 + $0x10] sm:$0xff] %v1427_v1 }
 0x114   : > { %1447 = vst [vmem:[#allocation2 + $0x78] sm:$0xff] %v1431_v2 }
 0x115   : > { %1436 = vst [vmem:[#allocation2 + $0x18] sm:$0xff] %v1420_v3 }
 0x116   : > { %1440 = vst [vmem:[#allocation2 + $0x48] sm:$0xff] %v1424_v4  ;;  %v1388_v5 = vpop.f32.mrf.mxu2  ;;  %v1398_v7 = vpop.f32.mrf.mxu3 }
 0x117   : > { %v1389_v9 = vadd.f32 %v12553_v12, %v1388_v5  ;;  %v1399_v10 = vadd.f32 %v12553_v12, %v1398_v7 }
 0x119   : > { %v1428_v11 = vadd.f32 %v1412_v6, %v1389_v9  ;;  %v1432_v13 = vadd.f32 %v1416_v8, %v1399_v10 }
 0x11b   : > { %1444 = vst [vmem:[#allocation2 + $0x38] sm:$0xff] %v1428_v11 }
 0x11c   : > { %1448 = vst [vmem:[#allocation2 + $0x28] sm:$0xff] %v1432_v13 }
 0x11d PF: > { %v1451_v14 = vld [vmem:[#allocation2 + $0x58] sm:$0xff]  ;;  %v1449_v15 = vld [vmem:[#allocation2 + $0x30] sm:$0xff]  ;;  %v1450_v17 = vld [vmem:[#allocation2] sm:$0xff]  ;;  %v12271_v12 = vmov 128.0   ;;  %s18422_s17 = scalar_lea.vmem %s12304_s21, %s12487_s28  ;;  %s18450_s16 = sld [smem:[#allocation30_spill]] }
 0x11e   : > { %1471 = vadd.xlane.f32.xlu1 %v1451_v14  ;;  %1467 = vadd.xlane.f32.xlu0 %v1449_v15  ;;  %v1452_v16 = vld [vmem:[#allocation2 + $0x18] sm:$0xff]  ;;  %v1454_v18 = vld [vmem:[#allocation2 + $0x68] sm:$0xff]  ;;  %v1453_v19 = vld [vmem:[#allocation2 + $0x50] sm:$0xff]  ;;  %11563 = vrcp.f32 %v12271_v12  ;;  %s12273_s18 = smov 64   ;;  %s12274_s7 = smov 32  }
 0x11f   : > { %v1455_v20 = vld [vmem:[#allocation2 + $0x8] sm:$0xff]  ;;  %v12619_v52 = vld [vmem:[#allocation2 + $0x10] sm:$0xff]  ;;  %v12624_v55 = vld [vmem:[#allocation2 + $0x20] sm:$0xff]  ;;  %p10902_p9 = scmp.ne.s32.totalorder %s12222_s22, 1 }
 0x120   : > { %v12621_v53 = vld [vmem:[#allocation2 + $0x48] sm:$0xff]  ;;  %v12631_v57 = vld [vmem:[#allocation2 + $0x40] sm:$0xff]  ;;  %v12638_v60 = vld [vmem:[#allocation2 + $0x70] sm:$0xff]  ;;  %s18968_s22 = sld [smem:[#allocation14_spill]] (!%p10902_p9) }
 0x121   : > { %v12642_v61 = vld [vmem:[#allocation2 + $0x60] sm:$0xff]  ;;  %v10412_v62 = vld [vmem:[%s12503_s1 + $0xa8] sm:$0xf]  ;;  %v11182_v63 = vld [vmem:[%s12503_s1 + $0xb0] sm:$0xf0]  ;;  %s18975_s11 = sld [smem:[#allocation11_spill]] (!%p10902_p9) }
 0x122   : > { %v12636_v59 = vld [vmem:[#allocation2 + $0x38] sm:$0xff]  ;;  %v11181_v0 = vld [vmem:[%s12503_s1 + $0xac] sm:$0xf]  ;;  %v10413_v1 = vor.u32 %v11182_v63, %v10412_v62  ;;  %v10420_v3 = vld [vmem:[%s12503_s1 + $0xb0] sm:$0xf]  ;;  %s18976_s15 = sld [smem:[#allocation12_spill]] (!%p10902_p9) }
 0x123   : > { %v10414_v2 = vld [vmem:[%s12503_s1 + $0xb4] sm:$0xf0]  ;;  %v11183_v4 = vld [vmem:[%s12503_s1 + $0xb8] sm:$0xf0]  ;;  %v10400_v7 = vld [vmem:[%s12503_s1 + $0x90] sm:$0xf] }
 0x124   : > { %v11564_v21 = vpop.eup %11563  ;;  %v10417_v5 = vor.u32 %v11181_v0, %v10414_v2  ;;  %v10421_v6 = vor.u32 %v11183_v4, %v10420_v3  ;;  %2008 = vmatpush.bf16.msra.mxu0 %v10413_v1  ;;  %v11179_v8 = vld [vmem:[%s12503_s1 + $0x98] sm:$0xf0]  ;;  %v11178_v9 = vld [vmem:[%s12503_s1 + $0x94] sm:$0xf]  ;;  %v10402_v11 = vld [vmem:[%s12503_s1 + $0x9c] sm:$0xf0] }
 0x125   : > { %v1500_v22 = vmul.f32 128.0, %v11564_v21  ;;  %vm1504_vm1 = vweird.f32 %v11564_v21  ;;  %v10401_v10 = vor.u32 %v11179_v8, %v10400_v7  ;;  %v10408_v13 = vld [vmem:[%s12503_s1 + $0x98] sm:$0xf]  ;;  %v10390_v12 = vld [vmem:[%s12503_s1 + $0x84] sm:$0xf0]  ;;  %s18977_s10 = sld [smem:[#allocation20_spill]] (!%p10902_p9) }
 0x126   : > { %1473 = vadd.xlane.f32.xlu1 %v1452_v16  ;;  %1469 = vadd.xlane.f32.xlu0 %v1450_v17  ;;  %v10354_v62 = vld [vmem:[%s12503_s1 + $0x3c] sm:$0xf0]  ;;  %v10360_v63 = vld [vmem:[%s12503_s1 + $0x38] sm:$0xf]  ;;  %v11168_v0 = vld [vmem:[%s12503_s1 + $0x40] sm:$0xf0] }
 0x127   : > { %v1501_v23 = vsub.f32 1.0, %v1500_v22  ;;  %2057 = vmatpush.bf16.msra.mxu1 %v10417_v5  ;;  %2106 = vmatpush.bf16.msra.mxu2 %v10421_v6  ;;  %v11177_v22 = vld [vmem:[%s12503_s1 + $0x88] sm:$0xf0]  ;;  %v10361_v2 = vor.u32 %v11168_v0, %v10360_v63  ;;  %v10340_v3 = vld [vmem:[%s12503_s1 + $0x18] sm:$0xf]  ;;  %s18978_s13 = sld [smem:[#allocation18_spill]] (!%p10902_p9) }
 0x128   : > { %2009 = vmatpush.bf16.msra.mxu0 %v10401_v10  ;;  %v11164_v4 = vld [vmem:[%s12503_s1 + $0x20] sm:$0xf0]  ;;  %v11163_v5 = vld [vmem:[%s12503_s1 + $0x1c] sm:$0xf]  ;;  %v10342_v8 = vld [vmem:[%s12503_s1 + $0x24] sm:$0xf0] }
 0x129   : > { %v1502_v24 = vmul.f32 %v11564_v21, %v1501_v23  ;;  %v10341_v7 = vor.u32 %v11164_v4, %v10340_v3  ;;  %v11165_v10 = vld [vmem:[%s12503_s1 + $0x28] sm:$0xf0] }
 0x12b   : > { %v1503_v25 = vadd.f32 %v11564_v21, %v1502_v24 }
 0x12d   : > { %v12587_v26 = vsel %vm1504_vm1, %v11564_v21, %v1503_v25  ;;  %v10396_v21 = vld [vmem:[%s12503_s1 + $0x80] sm:$0xf] }
 0x12e   : > { %1477 = vadd.xlane.f32.xlu1 %v1454_v18  ;;  %1475 = vadd.xlane.f32.xlu0 %v1453_v19  ;;  %18419 = vst [vmem:[#allocation33_spill] sm:$0xff] %v12587_v26  ;;  %v10397_v24 = vor.u32 %v11177_v22, %v10396_v21  ;;  %v10376_v25 = vld [vmem:[%s12503_s1 + $0x60] sm:$0xf]  ;;  %v11162_v22 = vld [vmem:[%s12503_s1 + $0x10] sm:$0xf0] }
 0x136   : > { %1479 = vadd.xlane.f32.xlu1 %v1455_v20 }
 0x191   : > { %v1472_v27 = vpop.xlane.xlu1 %1471  ;;  %v1468_v28 = vpop.xlane.xlu0 %1467 }
 0x192   : > { %v1506_v29 = vmul.f32 %v12587_v26, %v1468_v28  ;;  %v1508_v38 = vmul.f32 %v12587_v26, %v1472_v27  ;;  %v11173_v27 = vld [vmem:[%s12503_s1 + $0x68] sm:$0xf0]  ;;  %v11172_v28 = vld [vmem:[%s12503_s1 + $0x64] sm:$0xf] }
 0x194   : > { %v12590_v30 = vsub.f32 %v1449_v15, %v1506_v29  ;;  %v12607_v45 = vsub.f32 %v1451_v14, %v1508_v38  ;;  %v11180_v14 = vld [vmem:[%s12503_s1 + $0xa0] sm:$0xf0]  ;;  %v10405_v15 = vor.u32 %v11178_v9, %v10402_v11  ;;  %v10377_v29 = vor.u32 %v11173_v27, %v10376_v25  ;;  %v10364_v38 = vld [vmem:[%s12503_s1 + $0x48] sm:$0xf]  ;;  %v10348_v9 = vld [vmem:[%s12503_s1 + $0x20] sm:$0xf] }
 0x196   : > { %v1538_v31 = vmul.f32 %v12590_v30, %v12590_v30  ;;  %v1540_v49 = vmul.f32 %v12607_v45, %v12607_v45  ;;  %2058 = vmatpush.bf16.msra.mxu1 %v10405_v15 }
 0x198   : > { %1554 = vadd.xlane.f32.xlu2 %v1538_v31  ;;  %v10378_v31 = vld [vmem:[%s12503_s1 + $0x6c] sm:$0xf0] }
 0x199   : > { %v1474_v32 = vpop.xlane.xlu1 %1473  ;;  %v1470_v33 = vpop.xlane.xlu0 %1469 }
 0x19a   : > { %v1509_v34 = vmul.f32 %v12587_v26, %v1474_v32  ;;  %v1507_v35 = vmul.f32 %v12587_v26, %v1470_v33  ;;  %v10384_v32 = vld [vmem:[%s12503_s1 + $0x68] sm:$0xf]  ;;  %v11174_v33 = vld [vmem:[%s12503_s1 + $0x70] sm:$0xf0] }
 0x19c   : > { %v12596_v36 = vsub.f32 %v1452_v16, %v1509_v34  ;;  %v12598_v37 = vsub.f32 %v1450_v17, %v1507_v35  ;;  %v10409_v16 = vor.u32 %v11180_v14, %v10408_v13  ;;  %v10388_v17 = vld [vmem:[%s12503_s1 + $0x78] sm:$0xf]  ;;  %v10381_v34 = vor.u32 %v11172_v28, %v10378_v31 }
 0x19d   : > { %v10385_v35 = vor.u32 %v11174_v33, %v10384_v32  ;;  %v10345_v13 = vor.u32 %v11163_v5, %v10342_v8  ;;  %v10349_v14 = vor.u32 %v11165_v10, %v10348_v9 }
 0x19e   : > { %v1541_v39 = vmul.f32 %v12596_v36, %v12596_v36  ;;  %v1539_v40 = vmul.f32 %v12598_v37, %v12598_v37  ;;  %2107 = vmatpush.bf16.msra.mxu2 %v10409_v16  ;;  %v10328_v16 = vld [vmem:[%s12503_s1] sm:$0xf] }
 0x1a0   : > { %1560 = vadd.xlane.f32.xlu0 %v1541_v39  ;;  %1556 = vadd.xlane.f32.xlu2 %v1539_v40  ;;  %v11170_v39 = vld [vmem:[%s12503_s1 + $0x50] sm:$0xf0]  ;;  %v11169_v40 = vld [vmem:[%s12503_s1 + $0x4c] sm:$0xf] }
 0x1a1   : > { %v1478_v41 = vpop.xlane.xlu1 %1477  ;;  %v1476_v42 = vpop.xlane.xlu0 %1475 }
 0x1a2   : > { %v1511_v43 = vmul.f32 %v12587_v26, %v1478_v41  ;;  %v1510_v44 = vmul.f32 %v12587_v26, %v1476_v42  ;;  %2108 = vmatpush.bf16.msra.mxu2 %v10397_v24  ;;  %v10365_v41 = vor.u32 %v11170_v39, %v10364_v38  ;;  %v10366_v42 = vld [vmem:[%s12503_s1 + $0x54] sm:$0xf0] }
 0x1a4   : > { %v12609_v46 = vsub.f32 %v1454_v18, %v1511_v43  ;;  %v12611_v47 = vsub.f32 %v1453_v19, %v1510_v44  ;;  %v11176_v18 = vld [vmem:[%s12503_s1 + $0x80] sm:$0xf0]  ;;  %v11175_v19 = vld [vmem:[%s12503_s1 + $0x7c] sm:$0xf]  ;;  %v10372_v43 = vld [vmem:[%s12503_s1 + $0x50] sm:$0xf] }
 0x1a5   : > { %v10393_v23 = vor.u32 %v11175_v19, %v10390_v12  ;;  %v11171_v44 = vld [vmem:[%s12503_s1 + $0x58] sm:$0xf0]  ;;  %v11160_v19 = vld [vmem:[%s12503_s1 + $0x4] sm:$0xf]  ;;  %v10336_v12 = vld [vmem:[%s12503_s1 + $0x8] sm:$0xf] }
 0x1a6   : > { %v1543_v48 = vmul.f32 %v12609_v46, %v12609_v46  ;;  %v1542_v50 = vmul.f32 %v12611_v47, %v12611_v47  ;;  %2109 = vmatpush.bf16.msra.mxu2 %v10385_v35 }
 0x1a7   : > { %2059 = vmatpush.bf16.msra.mxu1 %v10393_v23  ;;  %v10337_v23 = vor.u32 %v11162_v22, %v10336_v12 }
 0x1a8   : > { %1564 = vadd.xlane.f32.xlu1 %v1543_v48  ;;  %1558 = vadd.xlane.f32.xlu2 %v1540_v49  ;;  %v10369_v48 = vor.u32 %v11169_v40, %v10366_v42  ;;  %v10373_v49 = vor.u32 %v11171_v44, %v10372_v43 }
 0x1a9   : > { %1562 = vadd.xlane.f32.xlu0 %v1542_v50  ;;  %v1480_v51 = vpop.xlane.xlu1 %1479  ;;  %v10352_v50 = vld [vmem:[%s12503_s1 + $0x30] sm:$0xf] }
 0x1aa   : > { %v1512_v54 = vmul.f32 %v12587_v26, %v1480_v51  ;;  %2110 = vmatpush.bf16.msra.mxu2 %v10373_v49  ;;  %v11167_v51 = vld [vmem:[%s12503_s1 + $0x38] sm:$0xf0] }
 0x1ab   : > { %2060 = vmatpush.bf16.msra.mxu1 %v10381_v34 }
 0x1ac   : > { %v12629_v56 = vsub.f32 %v1455_v20, %v1512_v54  ;;  %v10389_v20 = vor.u32 %v11176_v18, %v10388_v17  ;;  %v11166_v54 = vld [vmem:[%s12503_s1 + $0x34] sm:$0xf]  ;;  %v11161_v17 = vld [vmem:[%s12503_s1 + $0x8] sm:$0xf0] }
 0x1ad   : > { %v10357_v1 = vor.u32 %v11166_v54, %v10354_v62  ;;  %v10329_v18 = vor.u32 %v11161_v17, %v10328_v16 }
 0x1ae   : > { %v1544_v58 = vmul.f32 %v12629_v56, %v12629_v56  ;;  %2010 = vmatpush.bf16.msra.mxu0 %v10389_v20  ;;  %2111 = vmatpush.bf16.msra.mxu2 %v10361_v2  ;;  %v10330_v20 = vld [vmem:[%s12503_s1 + $0xc] sm:$0xf0]  ;;  %s18423_s1 = scalar_lea.vmem %s12309_s25, %s12487_s28  ;;  %s18972_s28 = sld [smem:[#allocation19_spill]] (!%p10902_p9) }
 0x1af   : > { %2061 = vmatpush.bf16.msra.mxu1 %v10369_v48  ;;  %v10333_v21 = vor.u32 %v11160_v19, %v10330_v20 }
 0x1b0   : > { %1487 = vadd.xlane.f32.xlu1 %v12619_v52  ;;  %1481 = vadd.xlane.f32.xlu2 %v12621_v53 }
 0x1b1   : > { %1485 = vadd.xlane.f32.xlu0 %v12624_v55 }
 0x1b2   : > { %2011 = vmatpush.bf16.msra.mxu0 %v10377_v29  ;;  %2112 = vmatpush.bf16.msra.mxu2 %v10349_v14 }
 0x1b3   : > { %2062 = vmatpush.bf16.msra.mxu1 %v10357_v1 }
 0x1b6   : > { %2012 = vmatpush.bf16.msra.mxu0 %v10365_v41  ;;  %2113 = vmatpush.bf16.msra.mxu2 %v10337_v23 }
 0x1b7   : > { %2063 = vmatpush.bf16.msra.mxu1 %v10345_v13 }
 0x1b8   : > { %1483 = vadd.xlane.f32.xlu2 %v12631_v57 }
 0x1b9   : > { %1566 = vadd.xlane.f32.xlu0 %v1544_v58  ;;  %v10353_v58 = vor.u32 %v11167_v51, %v10352_v50 }
 0x1bb   : > { %2013 = vmatpush.bf16.msra.mxu0 %v10353_v58  ;;  %2064 = vmatpush.bf16.msra.mxu1 %v10333_v21 }
 0x1bf   : > { %2014 = vmatpush.bf16.msra.mxu0 %v10341_v7 }
 0x1c0   : > { %1489 = vadd.xlane.f32.xlu2 %v12636_v59 }
 0x1c1   : > { %1493 = vadd.xlane.f32.xlu0 %v12638_v60 }
 0x1c3   : > { %2015 = vmatpush.bf16.msra.mxu0 %v10329_v18 }
 0x1c8   : > { %1491 = vadd.xlane.f32.xlu2 %v12642_v61 }
 0x20b   : > { %v1555_v6 = vpop.xlane.xlu2 %1554 }
 0x20c   : > { %v1586_v11 = vmul.f32 %v1555_v6, %v12587_v26 }
 0x20e   : > { %v1602_v15 = vadd.f32 1e-05, %v1586_v11 }
 0x210   : > { %11565 = vrsqrt.f32 %v1602_v15  ;;  %vm1624_vm3 = vweird.f32 %v1602_v15 }
 0x213   : > { %v1557_v24 = vpop.xlane.xlu2 %1556  ;;  %v1561_v25 = vpop.xlane.xlu0 %1560 }
 0x214   : > { %v1587_v27 = vmul.f32 %v1557_v24, %v12587_v26  ;;  %v1589_v28 = vmul.f32 %v1561_v25, %v12587_v26 }
 0x216   : > { %v11566_v29 = vpop.eup %11565  ;;  %v1603_v31 = vadd.f32 1e-05, %v1587_v27  ;;  %v12696_v32 = vadd.f32 1e-05, %v1589_v28 }
 0x217   : > { %v1619_v33 = vmul.f32 %v11566_v29, %v1602_v15  ;;  %vm1625_vm2 = vweird.f32 %v11566_v29 }
 0x218   : > { %11567 = vrsqrt.f32 %v1603_v31  ;;  %vm12713_vm4 = vmor %vm1624_vm3, %vm1625_vm2  ;;  %vm1634_vm6 = vweird.f32 %v1603_v31  ;;  %vm1654_vm12 = vweird.f32 %v12696_v32 }
 0x219   : > { %v1620_v34 = vmul.f32 %v11566_v29, %v1619_v33  ;;  %11569 = vrsqrt.f32 %v12696_v32  ;;  %v12760_v33 = vld [vmem:[%s18423_s1] ss:$0 sm:$0xff]  ;;  %s18980_s1 = sld [smem:[#allocation21_spill]] (!%p10902_p9) }
 0x21b   : > { %v1621_v35 = vmul.f32 0.5, %v1620_v34  ;;  %v1565_v38 = vpop.xlane.xlu1 %1564  ;;  %v1559_v39 = vpop.xlane.xlu2 %1558 }
 0x21c   : > { %v1591_v40 = vmul.f32 %v1565_v38, %v12587_v26  ;;  %v1588_v41 = vmul.f32 %v1559_v39, %v12587_v26  ;;  %v1563_v42 = vpop.xlane.xlu0 %1562 }
 0x21d   : > { %v1622_v43 = vsub.f32 1.5, %v1621_v35  ;;  %v1590_v49 = vmul.f32 %v1563_v42, %v12587_v26 }
 0x21e   : > { %v11568_v44 = vpop.eup %11567  ;;  %v12701_v48 = vadd.f32 1e-05, %v1588_v41  ;;  %v12706_v54 = vadd.f32 1e-05, %v1591_v40 }
 0x21f   : > { %v12704_v50 = vpop.eup %11569  ;;  %v1629_v51 = vmul.f32 %v11568_v44, %v1603_v31  ;;  %v1623_v58 = vmul.f32 %v11566_v29, %v1622_v43  ;;  %v12711_v0 = vadd.f32 1e-05, %v1590_v49  ;;  %vm1635_vm5 = vweird.f32 %v11568_v44 }
 0x220   : > { %v1649_v63 = vmul.f32 %v12704_v50, %v12696_v32  ;;  %11571 = vrsqrt.f32 %v12701_v48  ;;  %vm1636_vm7 = vmor %vm1634_vm6, %vm1635_vm5  ;;  %vm1655_vm9 = vweird.f32 %v12704_v50  ;;  %vm1644_vm10 = vweird.f32 %v12701_v48 }
 0x221   : > { %v1630_v62 = vmul.f32 %v11568_v44, %v1629_v51  ;;  %11573 = vrsqrt.f32 %v12706_v54  ;;  %v1627_v8 = vsel %vm12713_vm4, %v11566_v29, %v1623_v58  ;;  %v12781_v58 = vld [vmem:[#allocation2 + $0x28] sm:$0xff]  ;;  %vm12790_vm13 = vmor %vm1654_vm12, %vm1655_vm9  ;;  %vm1674_vm0 = vweird.f32 %v12706_v54 }
 0x222   : > { %v1650_v10 = vmul.f32 %v12704_v50, %v1649_v63  ;;  %11575 = vrsqrt.f32 %v12711_v0  ;;  %v1778_v20 = vmul.f32 %v1627_v8, %v12590_v30  ;;  %vm1664_vm2 = vweird.f32 %v12711_v0 }
 0x223   : > { %v1631_v1 = vmul.f32 0.5, %v1630_v62  ;;  %v1488_v2 = vpop.xlane.xlu1 %1487  ;;  %v1482_v3 = vpop.xlane.xlu2 %1481 }
 0x224   : > { %v1516_v5 = vmul.f32 %v12587_v26, %v1488_v2  ;;  %v1513_v6 = vmul.f32 %v12587_v26, %v1482_v3  ;;  %v1486_v7 = vpop.xlane.xlu0 %1485  ;;  %v1651_v12 = vmul.f32 0.5, %v1650_v10  ;;  %v12788_v2 = vld [vmem:[#allocation2 + $0x78] sm:$0xff] }
 0x225   : > { %v1632_v9 = vsub.f32 1.5, %v1631_v1  ;;  %v1515_v11 = vmul.f32 %v12587_v26, %v1486_v7 }
 0x226   : > { %v12726_v13 = vsub.f32 %v12621_v53, %v1513_v6  ;;  %v12729_v14 = vsub.f32 %v12619_v52, %v1516_v5  ;;  %v11572_v15 = vpop.eup %11571  ;;  %v12742_v53 = vld [vmem:[%s18422_s17] ss:$0 sm:$0xff]  ;;  %v1652_v34 = vsub.f32 1.5, %v1651_v12  ;;  %s18979_s17 = sld [smem:[#allocation22_spill]] (!%p10902_p9) }
 0x227   : > { %v1633_v16 = vmul.f32 %v11568_v44, %v1632_v9  ;;  %v12732_v17 = vsub.f32 %v12624_v55, %v1515_v11  ;;  %v1639_v18 = vmul.f32 %v11572_v15, %v12701_v48  ;;  %v12744_v21 = vpop.eup %11573  ;;  %v1797_v31 = vmul.f32 %v12742_v53, %v1778_v20 }
 0x228   : > { %v1545_v19 = vmul.f32 %v12726_v13, %v12726_v13  ;;  %v1548_v22 = vmul.f32 %v12729_v14, %v12729_v14  ;;  %v12751_v25 = vpop.eup %11575  ;;  %v1669_v39 = vmul.f32 %v12744_v21, %v12706_v54  ;;  %vm1645_vm8 = vweird.f32 %v11572_v15 }
 0x229   : > { %v1637_v52 = vsel %vm1636_vm7, %v11568_v44, %v1633_v16  ;;  %v1640_v55 = vmul.f32 %v11572_v15, %v1639_v18  ;;  %v1547_v23 = vmul.f32 %v12732_v17, %v12732_v17  ;;  %v1659_v40 = vmul.f32 %v12751_v25, %v12711_v0  ;;  %vm12777_vm11 = vmor %vm1644_vm10, %vm1645_vm8 }
 0x22a   : > { %1568 = vadd.xlane.f32.xlu1 %v1545_v19  ;;  %v1779_v30 = vmul.f32 %v1637_v52, %v12598_v37  ;;  %1574 = vadd.xlane.f32.xlu0 %v1548_v22  ;;  %v1816_v43 = vadd.f32 %v12760_v33, %v1797_v31  ;;  %v1653_v49 = vmul.f32 %v12704_v50, %v1652_v34  ;;  %vm1675_vm14 = vweird.f32 %v12744_v21 }
 0x22b   : > { %v1484_v24 = vpop.xlane.xlu2 %1483  ;;  %v1641_v27 = vmul.f32 0.5, %v1640_v55  ;;  %1572 = vadd.xlane.f32.xlu2 %v1547_v23  ;;  %v1670_v62 = vmul.f32 %v12744_v21, %v1669_v39  ;;  %v1660_v1 = vmul.f32 %v12751_v25, %v1659_v40  ;;  %vm1665_vm15 = vweird.f32 %v12751_v25  ;;  %vm1676_vm1 = vmor %vm1674_vm0, %vm1675_vm14 }
 0x22c   : > { %v1514_v28 = vmul.f32 %v12587_v26, %v1484_v24  ;;  %v12754_v29 = vpop.xlane.xlu0 %1566  ;;  %v1798_v35 = vmul.f32 %v12742_v53, %v1779_v30  ;;  %v1657_v32 = vsel %vm12790_vm13, %v12704_v50, %v1653_v49  ;;  %vm1666_vm3 = vmor %vm1664_vm2, %vm1665_vm15  ;;  %vm2283_vm10 = vcmask 261120  }
 0x22d   : > { %v1642_v38 = vsub.f32 1.5, %v1641_v27  ;;  %v1671_v9 = vmul.f32 0.5, %v1670_v62  ;;  %v1661_v10 = vmul.f32 0.5, %v1660_v1 }
 0x22e   : > { %v12764_v37 = vsub.f32 %v12631_v57, %v1514_v28  ;;  %v1817_v41 = vadd.f32 %v12760_v33, %v1798_v35 }
 0x22f   : > { %v1643_v42 = vmul.f32 %v11572_v15, %v1642_v38  ;;  %v1662_v19 = vsub.f32 1.5, %v1661_v10 }
 0x230   : > { %v1546_v44 = vmul.f32 %v12764_v37, %v12764_v37  ;;  %v1832_v51 = vpack.c.bf16 %v1817_v41, %v1816_v43 }
 0x231   : > { %v1647_v63 = vsel %vm12777_vm11, %v11572_v15, %v1643_v42  ;;  %v1781_v15 = vmul.f32 %v1657_v32, %v12596_v36  ;;  %v1663_v55 = vmul.f32 %v12751_v25, %v1662_v19 }
 0x232   : > { %1570 = vadd.xlane.f32.xlu1 %v1546_v44  ;;  %2016 = vmatmul.bf16.vlgmr.msra.gmra.mxu0 %v1832_v51  ;;  %v1780_v8 = vmul.f32 %v1647_v63, %v12607_v45 }
 0x233   : > { %v1490_v48 = vpop.xlane.xlu2 %1489  ;;  %2065 = vmatmul.bf16.vlgmr.msra.gmra.mxu1 %v1832_v51  ;;  %2114 = vmatmul.bf16.vlgmr.msra.gmra.mxu2 %v1832_v51  ;;  %v1800_v52 = vmul.f32 %v12742_v53, %v1781_v15  ;;  %v1667_v30 = vsel %vm1666_vm3, %v12751_v25, %v1663_v55 }
 0x234   : > { %v1517_v4 = vmul.f32 %v12587_v26, %v1490_v48  ;;  %v1494_v5 = vpop.xlane.xlu0 %1493  ;;  %1497 = vadd.xlane.f32.xlu0 %v12781_v58  ;;  %1495 = vadd.xlane.f32.xlu2 %v12788_v2  ;;  %v1799_v18 = vmul.f32 %v12742_v53, %v1780_v8  ;;  %v1782_v54 = vmul.f32 %v1667_v30, %v12611_v47 }
 0x235   : > { %v1519_v6 = vmul.f32 %v12587_v26, %v1494_v5  ;;  %v1819_v23 = vadd.f32 %v12760_v33, %v1800_v52 }
 0x236   : > { %v12802_v7 = vsub.f32 %v12636_v59, %v1517_v4  ;;  %v1672_v59 = vsub.f32 1.5, %v1671_v9  ;;  %v1818_v36 = vadd.f32 %v12760_v33, %v1799_v18  ;;  %v1801_v28 = vmul.f32 %v12742_v53, %v1782_v54 }
 0x237   : > { %v12806_v11 = vsub.f32 %v12638_v60, %v1519_v6 }
 0x238   : > { %v1549_v50 = vmul.f32 %v12802_v7, %v12802_v7  ;;  %v1673_v12 = vmul.f32 %v12744_v21, %v1672_v59  ;;  %v1820_v0 = vadd.f32 %v12760_v33, %v1801_v28 }
 0x239   : > { %v1551_v16 = vmul.f32 %v12806_v11, %v12806_v11 }
 0x23a   : > { %1576 = vadd.xlane.f32.xlu1 %v1549_v50  ;;  %v1677_v24 = vsel %vm1676_vm1, %v12744_v21, %v1673_v12  ;;  %v1592_v21 = vmul.f32 %v12754_v29, %v12587_v26 }
 0x23b   : > { %v1492_v20 = vpop.xlane.xlu2 %1491  ;;  %v1783_v27 = vmul.f32 %v1677_v24, %v12609_v46 }
 0x23c   : > { %v1518_v45 = vmul.f32 %v12587_v26, %v1492_v20  ;;  %1580 = vadd.xlane.f32.xlu2 %v1551_v16  ;;  %v1608_v25 = vadd.f32 1e-05, %v1592_v21  ;;  %v12866_v16 = vld [vmem:[%s12508_s27] sm:$0x7]  ;;  %s12272_s27 = smov 96  }
 0x23d   : > { %v1802_v31 = vmul.f32 %v12742_v53, %v1783_v27 }
 0x23e   : > { %v12818_v60 = vsub.f32 %v12642_v61, %v1518_v45  ;;  %v1833_v61 = vpack.c.bf16 %v1819_v23, %v1818_v36  ;;  %11577 = vrsqrt.f32 %v1608_v25  ;;  %vm1684_vm4 = vweird.f32 %v1608_v25 }
 0x23f   : > { %v1821_v34 = vadd.f32 %v12760_v33, %v1802_v31  ;;  %v12880_v36 = vperm.slane %v12866_v16, 0 }
 0x240   : > { %v1550_v22 = vmul.f32 %v12818_v60, %v12818_v60 }
 0x241   : > { %v1834_v35 = vpack.c.bf16 %v1821_v34, %v1820_v0 }
 0x242   : > { %1578 = vadd.xlane.f32.xlu1 %v1550_v22  ;;  %2021 = vmatmul.bf16.gmra.mxu0 %v1833_v61 }
 0x243   : > { %2070 = vmatmul.bf16.gmra.mxu1 %v1833_v61  ;;  %2119 = vmatmul.bf16.gmra.mxu2 %v1833_v61  ;;  %v12893_v61 = vperm.slane %v12866_v16, 1 }
 0x244   : > { %v12839_v47 = vpop.eup %11577 }
 0x245   : > { %v1679_v46 = vmul.f32 %v12839_v47, %v1608_v25  ;;  %vm1685_vm5 = vweird.f32 %v12839_v47 }
 0x246   : > { %vm12870_vm8 = vmor %vm1684_vm4, %vm1685_vm5 }
 0x247   : > { %v1680_v42 = vmul.f32 %v12839_v47, %v1679_v46 }
 0x249   : > { %v1681_v29 = vmul.f32 0.5, %v1680_v42 }
 0x24b   : > { %v1682_v63 = vsub.f32 1.5, %v1681_v29 }
 0x24d   : > { %v1683_v10 = vmul.f32 %v12839_v47, %v1682_v63 }
 0x24f   : > { %v1687_v24 = vsel %vm12870_vm8, %v12839_v47, %v1683_v10 }
 0x250   : > { %v1784_v25 = vmul.f32 %v1687_v24, %v12629_v56 }
 0x252   : > { %2026 = vmatmul.bf16.gmra.mxu0 %v1834_v35  ;;  %v1803_v29 = vmul.f32 %v12742_v53, %v1784_v25 }
 0x253   : > { %2075 = vmatmul.bf16.gmra.mxu1 %v1834_v35  ;;  %2124 = vmatmul.bf16.gmra.mxu2 %v1834_v35 }
 0x29d   : > { %v1569_v38 = vpop.xlane.xlu1 %1568  ;;  %v1575_v41 = vpop.xlane.xlu0 %1574 }
 0x29e   : > { %v1593_v39 = vmul.f32 %v1569_v38, %v12587_v26  ;;  %v1573_v40 = vpop.xlane.xlu2 %1572  ;;  %v1596_v50 = vmul.f32 %v1575_v41, %v12587_v26 }
 0x29f   : > { %v1595_v44 = vmul.f32 %v1573_v40, %v12587_v26 }
 0x2a0   : > { %v1609_v43 = vadd.f32 1e-05, %v1593_v39  ;;  %v12888_v22 = vadd.f32 1e-05, %v1596_v50 }
 0x2a1   : > { %v12845_v49 = vadd.f32 1e-05, %v1595_v44 }
 0x2a2   : > { %11579 = vrsqrt.f32 %v1609_v43  ;;  %vm1694_vm6 = vweird.f32 %v1609_v43  ;;  %vm1724_vm5 = vweird.f32 %v12888_v22 }
 0x2a3   : > { %11581 = vrsqrt.f32 %v12845_v49  ;;  %vm1714_vm15 = vweird.f32 %v12845_v49 }
 0x2a5   : > { %v1571_v57 = vpop.xlane.xlu1 %1570 }
 0x2a6   : > { %v1594_v51 = vmul.f32 %v1571_v57, %v12587_v26 }
 0x2a7   : > { %v1498_v48 = vpop.xlane.xlu0 %1497  ;;  %v1496_v4 = vpop.xlane.xlu2 %1495 }
 0x2a8   : > { %v11580_v62 = vpop.eup %11579  ;;  %v12849_v1 = vadd.f32 1e-05, %v1594_v51  ;;  %v1521_v5 = vmul.f32 %v12587_v26, %v1498_v48  ;;  %v1520_v32 = vmul.f32 %v12587_v26, %v1496_v4 }
 0x2a9   : > { %v1689_v3 = vmul.f32 %v11580_v62, %v1609_v43  ;;  %v12854_v6 = vpop.eup %11581  ;;  %vm1695_vm7 = vweird.f32 %v11580_v62 }
 0x2aa   : > { %11583 = vrsqrt.f32 %v12849_v1  ;;  %v12858_v9 = vsub.f32 %v12781_v58, %v1521_v5  ;;  %v12863_v15 = vsub.f32 %v12788_v2, %v1520_v32  ;;  %v1709_v58 = vmul.f32 %v12854_v6, %v12845_v49  ;;  %vm12884_vm9 = vmor %vm1694_vm6, %vm1695_vm7 }
 0x2ab   : > { %v1690_v8 = vmul.f32 %v11580_v62, %v1689_v3  ;;  %vm1704_vm11 = vweird.f32 %v12849_v1  ;;  %vm1715_vm13 = vweird.f32 %v12854_v6 }
 0x2ac   : > { %v1553_v59 = vmul.f32 %v12858_v9, %v12858_v9  ;;  %v1552_v2 = vmul.f32 %v12863_v15, %v12863_v15  ;;  %v1710_v28 = vmul.f32 %v12854_v6, %v1709_v58  ;;  %vm12953_vm0 = vmor %vm1714_vm15, %vm1715_vm13 }
 0x2ad   : > { %v1691_v18 = vmul.f32 0.5, %v1690_v8  ;;  %v1577_v19 = vpop.xlane.xlu1 %1576 }
 0x2ae   : > { %v1597_v45 = vmul.f32 %v1577_v19, %v12587_v26  ;;  %1584 = vadd.xlane.f32.xlu1 %v1553_v59  ;;  %1582 = vadd.xlane.f32.xlu0 %v1552_v2  ;;  %v1711_v39 = vmul.f32 0.5, %v1710_v28 }
 0x2af   : > { %v1692_v52 = vsub.f32 1.5, %v1691_v18  ;;  %v2017_v27 = vpop.f32.mrf.mxu0  ;;  %v1581_v48 = vpop.xlane.xlu2 %1580  ;;  %v1822_v18 = vadd.f32 %v12760_v33, %v1803_v29 }
 0x2b0   : > { %v12882_v12 = vpop.eup %11583  ;;  %v12890_v23 = vadd.f32 1e-05, %v1597_v45  ;;  %v2066_v31 = vpop.f32.mrf.mxu1  ;;  %v2018_v35 = vadd.f32 %v2017_v27, %v12880_v36  ;;  %v1599_v19 = vmul.f32 %v1581_v48, %v12587_v26 }
 0x2b1   : > { %v1693_v30 = vmul.f32 %v11580_v62, %v1692_v52  ;;  %v1699_v54 = vmul.f32 %v12882_v12, %v12849_v1  ;;  %v2067_v21 = vadd.f32 %v2066_v31, %v12893_v61  ;;  %vm1705_vm12 = vweird.f32 %v12882_v12 }
 0x2b2   : > { %11585 = vrsqrt.f32 %v12890_v23  ;;  %v2155_v46 = vmul.f32 0.17677669, %v2018_v35  ;;  %vm12934_vm14 = vmor %vm1704_vm11, %vm1705_vm12  ;;  %vm1734_vm1 = vweird.f32 %v12890_v23 }
 0x2b3   : > { %v1697_v0 = vsel %vm12884_vm9, %v11580_v62, %v1693_v30  ;;  %v1700_v34 = vmul.f32 %v12882_v12, %v1699_v54  ;;  %11587 = vrsqrt.f32 %v12888_v22  ;;  %v2203_v40 = vpack.c.bf16 %v2067_v21, %v2067_v21 }
 0x2b4   : > { %v1785_v38 = vmul.f32 %v1697_v0, %v12726_v13  ;;  %v12910_v41 = vpack.c.bf16 %v2155_v46, %v2155_v46  ;;  %v1712_v13 = vsub.f32 1.5, %v1711_v39  ;;  %v12958_v0 = vadd.f32 1e-05, %v1599_v19 }
 0x2b5   : > { %v1701_v47 = vmul.f32 0.5, %v1700_v34  ;;  %v2288_v43 = vsel %vm2283_vm10, %v2203_v40, 0  ;;  %v1579_v44 = vpop.xlane.xlu1 %1578  ;;  %v3092_v2 = vunpack.c.l.b16 %v2203_v40 }
 0x2b6   : > { %v3087_v51 = vunpack.c.l.b16 %v12910_v41  ;;  %2297 = vmatpush.bf16.xpose.msrb.mxu1 %v2288_v43  ;;  %v1804_v62 = vmul.f32 %v12742_v53, %v1785_v38  ;;  %v1598_v5 = vmul.f32 %v1579_v44, %v12587_v26  ;;  %v1713_v58 = vmul.f32 %v12854_v6, %v1712_v13 }
 0x2b7   : > { %v1702_v42 = vsub.f32 1.5, %v1701_v47  ;;  %v2019_v56 = vpop.f32.mrf.mxu0  ;;  %v12963_v34 = vpack.c.b16 %v3092_v2, %v3092_v2  ;;  %vm1754_vm9 = vweird.f32 %v12958_v0 }
 0x2b8   : > { %v12914_v57 = vpop.eup %11585  ;;  %v2020_v3 = vadd.f32 %v2019_v56, %v12880_v36  ;;  %v2068_v4 = vpop.f32.mrf.mxu1  ;;  %v12925_v8 = vpack.c.b16 %v3087_v51, %v3087_v51  ;;  %v1823_v20 = vadd.f32 %v12760_v33, %v1804_v62  ;;  %v12943_v55 = vadd.f32 1e-05, %v1598_v5 }
 0x2b9   : > { %v12918_v63 = vpop.eup %11587  ;;  %v2069_v32 = vadd.f32 %v2068_v4, %v12893_v61  ;;  %v1703_v10 = vmul.f32 %v12882_v12, %v1702_v42  ;;  %v1729_v50 = vmul.f32 %v12914_v57, %v12890_v23  ;;  %18437 = vst [vmem:[#allocation35_spill] sm:$0xff] %v12963_v34  ;;  %vm1735_vm2 = vweird.f32 %v12914_v57 }
 0x2ba   : > { %18432 = vst [vmem:[#allocation34_spill] sm:$0xff] %v12925_v8  ;;  %v1719_v1 = vmul.f32 %v12918_v63, %v12888_v22  ;;  %3089 = vrot.lane.b32.xlu2 %v12925_v8, %s12272_s27  ;;  %v2156_v45 = vmul.f32 0.17677669, %v2020_v3  ;;  %v1835_v24 = vpack.c.bf16 %v1823_v20, %v1822_v18  ;;  %11589 = vrsqrt.f32 %v12943_v55  ;;  %vm13000_vm3 = vmor %vm1734_vm1, %vm1735_vm2 }
 0x2bb   : > { %v2204_v52 = vpack.c.bf16 %v2069_v32, %v2069_v32  ;;  %v1707_v30 = vsel %vm12934_vm14, %v12882_v12, %v1703_v10  ;;  %v1730_v54 = vmul.f32 %v12914_v57, %v1729_v50  ;;  %v1717_v12 = vsel %vm12953_vm0, %v12854_v6, %v1713_v58 }
 0x2bc   : > { %v1720_v31 = vmul.f32 %v12918_v63, %v1719_v1  ;;  %2031 = vmatmul.bf16.gmra.mxu0 %v1835_v24  ;;  %2080 = vmatmul.bf16.gmra.mxu1 %v1835_v24  ;;  %v2188_v35 = vpack.c.bf16 %v2156_v45, %v2156_v45  ;;  %v1786_v47 = vmul.f32 %v1707_v30, %v12764_v37  ;;  %11591 = vrsqrt.f32 %v12958_v0 }
 0x2bd   : > { %v2307_v27 = vsel %vm2283_vm10, %v2204_v52, 0  ;;  %2129 = vmatmul.bf16.gmra.mxu2 %v1835_v24  ;;  %v3121_v21 = vunpack.c.l.b16 %v2204_v52  ;;  %v1731_v46 = vmul.f32 0.5, %v1730_v54  ;;  %v1787_v6 = vmul.f32 %v1717_v12, %v12732_v17 }
 0x2be   : > { %2316 = vmatpush.bf16.xpose.msra.mxu3 %v2307_v27  ;;  %v1721_v39 = vmul.f32 0.5, %v1720_v31  ;;  %v3116_v43 = vunpack.c.l.b16 %v2188_v35  ;;  %v1805_v44 = vmul.f32 %v12742_v53, %v1786_v47  ;;  %vm1725_vm4 = vweird.f32 %v12918_v63 }
 0x2bf   : > { %v2022_v49 = vpop.f32.mrf.mxu0  ;;  %v12974_v42 = vpack.c.b16 %v3121_v21, %v3121_v21  ;;  %v1732_v29 = vsub.f32 1.5, %v1731_v46  ;;  %v1806_v56 = vmul.f32 %v12742_v53, %v1787_v6  ;;  %vm1726_vm6 = vmor %vm1724_vm5, %vm1725_vm4  ;;  %vm1744_vm7 = vweird.f32 %v12943_v55 }
 0x2c0   : > { %v2071_v25 = vpop.f32.mrf.mxu1  ;;  %v12981_v51 = vpop.eup %11589  ;;  %v1722_v62 = vsub.f32 1.5, %v1721_v39  ;;  %v12989_v48 = vpack.c.b16 %v3116_v43, %v3116_v43  ;;  %v1824_v5 = vadd.f32 %v12760_v33, %v1805_v44  ;;  %v2023_v19 = vadd.f32 %v2022_v49, %v12880_v36 }
 0x2c1   : > { %v2072_v38 = vadd.f32 %v2071_v25, %v12893_v61  ;;  %18438 = vst [vmem:[#allocation36_spill] sm:$0xff] %v12974_v42  ;;  %v1733_v32 = vmul.f32 %v12914_v57, %v1732_v29  ;;  %v1739_v10 = vmul.f32 %v12981_v51, %v12943_v55  ;;  %v1825_v18 = vadd.f32 %v12760_v33, %v1806_v56 }
 0x2c2   : > { %3094 = vrot.lane.b32.xlu0 %v12963_v34, %s12272_s27  ;;  %18439 = vst [vmem:[#allocation37_spill] sm:$0xff] %v12989_v48  ;;  %v12991_v3 = vpop.eup %11591  ;;  %v1723_v1 = vmul.f32 %v12918_v63, %v1722_v62  ;;  %v2157_v22 = vmul.f32 0.17677669, %v2023_v19  ;;  %vm1745_vm8 = vweird.f32 %v12981_v51  ;;  %vm2588_vm4 = vcmask 64512  }
 0x2c3   : > { %v12972_v40 = vpack.c.bf16 %v2072_v38, %v2072_v38  ;;  %v1749_v59 = vmul.f32 %v12991_v3, %v12958_v0  ;;  %v1836_v20 = vpack.c.bf16 %v1825_v18, %v1824_v5  ;;  %v1737_v2 = vsel %vm13000_vm3, %v12914_v57, %v1733_v32  ;;  %vm13050_vm12 = vmor %vm1744_vm7, %vm1745_vm8 }
 0x2c4   : > { %v1740_v45 = vmul.f32 %v12981_v51, %v1739_v10  ;;  %v1727_v24 = vsel %vm1726_vm6, %v12918_v63, %v1723_v1  ;;  %v1789_v57 = vmul.f32 %v1737_v2, %v12802_v7  ;;  %v13025_v47 = vpack.c.bf16 %v2157_v22, %v2157_v22 }
 0x2c5   : > { %v2326_v37 = vsel %vm2283_vm10, %v12972_v40, 0  ;;  %10423 = vmatmul.msk.bf16.vlgmr.msra.gmra.mxu3 %vm2283_vm10, %v2188_v35  ;;  %v1750_v30 = vmul.f32 %v12991_v3, %v1749_v59  ;;  %v1788_v35 = vmul.f32 %v1727_v24, %v12729_v14  ;;  %vm1755_vm11 = vweird.f32 %v12991_v3 }
 0x2c6   : > { %2335 = vmatpush.bf16.xpose.msrb.mxu3 %v2326_v37  ;;  %v1741_v31 = vmul.f32 0.5, %v1740_v45  ;;  %v1808_v38 = vmul.f32 %v12742_v53, %v1789_v57  ;;  %vm13056_vm13 = vmor %vm1754_vm9, %vm1755_vm11  ;;  %vm2784_vm5 = vcmask 1043456   ;;  %vm6126_vm6 = vcmask 523264  }
 0x2c7   : > { %3123 = vrot.lane.b32.xlu1 %v12974_v42, %s12272_s27  ;;  %v12984_v17 = vpop.f32.mrf.mxu0  ;;  %v1751_v21 = vmul.f32 0.5, %v1750_v30  ;;  %v1807_v14 = vmul.f32 %v12742_v53, %v1788_v35  ;;  %vm6143_vm7 = vcmask 785408  }
 0x2c8   : > { %v2073_v13 = vpop.f32.mrf.mxu1  ;;  %v1742_v6 = vsub.f32 1.5, %v1741_v31  ;;  %v2025_v59 = vadd.f32 %v12984_v17, %v12880_v36 }
 0x2c9   : > { %v2074_v4 = vadd.f32 %v2073_v13, %v12893_v61  ;;  %v1752_v44 = vsub.f32 1.5, %v1751_v21  ;;  %v1827_v13 = vadd.f32 %v12760_v33, %v1808_v38  ;;  %v1826_v23 = vadd.f32 %v12760_v33, %v1807_v14 }
 0x2ca   : > { %3118 = vrot.lane.b32.xlu0 %v12989_v48, %s12272_s27  ;;  %v2158_v24 = vmul.f32 0.17677669, %v2025_v59 }
 0x2cb   : > { %v13004_v50 = vpack.c.bf16 %v2074_v4, %v2074_v4  ;;  %v1743_v4 = vmul.f32 %v12981_v51, %v1742_v6  ;;  %v1753_v18 = vmul.f32 %v12991_v3, %v1752_v44 }
 0x2cc   : > { %2036 = vmatmul.bf16.gmra.mxu0 %v1836_v20  ;;  %2085 = vmatmul.bf16.gmra.mxu1 %v1836_v20  ;;  %v13078_v30 = vpack.c.bf16 %v2158_v24, %v2158_v24 }
 0x2cd   : > { %v2345_v58 = vsel %vm2283_vm10, %v13004_v50, 0  ;;  %2134 = vmatmul.bf16.gmra.mxu2 %v1836_v20  ;;  %v1837_v20 = vpack.c.bf16 %v1827_v13, %v1826_v23  ;;  %v1747_v55 = vsel %vm13050_vm12, %v12981_v51, %v1743_v4  ;;  %v1757_v45 = vsel %vm13056_vm13, %v12991_v3, %v1753_v18 }
 0x2ce   : > { %2354 = vmatpush.bf16.xpose.msra.mxu3 %v2345_v58  ;;  %v1790_v17 = vmul.f32 %v1747_v55, %v12818_v60  ;;  %v1791_v51 = vmul.f32 %v1757_v45, %v12806_v11  ;;  %v13103_v45 = vpop.f32.mrf.mxu2 }
 0x2cf   : > { %v2027_v52 = vpop.f32.mrf.mxu0 }
 0x2d0   : > { %v2028_v54 = vadd.f32 %v2027_v52, %v12880_v36  ;;  %v2076_v27 = vpop.f32.mrf.mxu1 }
 0x2d1   : > { %v2077_v28 = vadd.f32 %v2076_v27, %v12893_v61  ;;  %v1810_v27 = vmul.f32 %v12742_v53, %v1791_v51  ;;  %v11543_v51 = vld [vmem:[%s18450_s16 + $0x1] ss:$0 sm:$0xff] }
 0x2d2   : > { %v2159_v49 = vmul.f32 0.17677669, %v2028_v54  ;;  %v1809_v54 = vmul.f32 %v12742_v53, %v1790_v17 }
 0x2d3   : > { %v2207_v12 = vpack.c.bf16 %v2077_v28, %v2077_v28  ;;  %v1829_v60 = vadd.f32 %v12760_v33, %v1810_v27 }
 0x2d4   : > { %v2191_v25 = vpack.c.bf16 %v2159_v49, %v2159_v49  ;;  %v1828_v22 = vadd.f32 %v12760_v33, %v1809_v54 }
 0x2d5   : > { %v2364_v63 = vsel %vm2283_vm10, %v2207_v12, 0  ;;  %v3208_v46 = vunpack.c.l.b16 %v2207_v12  ;;  %10424 = vmatmul.msk.bf16.vlgmr.msrb.gmra.mxu3 %vm2283_vm10, %v13025_v47 }
 0x2d6   : > { %v3203_v39 = vunpack.c.l.b16 %v2191_v25  ;;  %2373 = vmatpush.bf16.xpose.msrb.mxu3 %v2364_v63  ;;  %v1838_v28 = vpack.c.bf16 %v1829_v60, %v1828_v22 }
 0x2d7   : > { %v13030_v43 = vpack.c.b16 %v3208_v46, %v3208_v46  ;;  %v2029_v7 = vpop.f32.mrf.mxu0 }
 0x2d8   : > { %v2030_v29 = vadd.f32 %v2029_v7, %v12880_v36  ;;  %v2078_v37 = vpop.f32.mrf.mxu1  ;;  %v13037_v56 = vpack.c.b16 %v3203_v39, %v3203_v39 }
 0x2d9   : > { %18442 = vst [vmem:[#allocation38_spill] sm:$0xff] %v13030_v43  ;;  %v2079_v62 = vadd.f32 %v2078_v37, %v12893_v61  ;;  %3210 = vrot.lane.b32.xlu1 %v13030_v43, %s12272_s27  ;;  %v11552_v43 = vld [vmem:[%s18450_s16 + $0x8] ss:$0 sm:$0xff] }
 0x2da   : > { %18443 = vst [vmem:[#allocation39_spill] sm:$0xff] %v13037_v56  ;;  %v2160_v5 = vmul.f32 0.17677669, %v2030_v29  ;;  %3205 = vrot.lane.b32.xlu2 %v13037_v56, %s12272_s27  ;;  %v11553_v56 = vld [vmem:[%s18450_s16 + $0xb] ss:$0 sm:$0xff] }
 0x2db   : > { %v2208_v10 = vpack.c.bf16 %v2079_v62, %v2079_v62 }
 0x2dc   : > { %v2192_v0 = vpack.c.bf16 %v2160_v5, %v2160_v5  ;;  %2041 = vmatmul.bf16.gmra.mxu0 %v1837_v20  ;;  %2090 = vmatmul.bf16.gmra.mxu1 %v1837_v20 }
 0x2dd   : > { %v3237_v19 = vunpack.c.l.b16 %v2208_v10  ;;  %2139 = vmatmul.bf16.gmra.mxu2 %v1837_v20  ;;  %v2383_v3 = vsel %vm2283_vm10, %v2208_v10, 0 }
 0x2de   : > { %v3232_v58 = vunpack.c.l.b16 %v2192_v0 }
 0x2df   : > { %v13065_v2 = vpack.c.b16 %v3237_v19, %v3237_v19 }
 0x2e0   : > { %v13070_v52 = vpack.c.b16 %v3232_v58, %v3232_v58 }
 0x2e1   : > { %18448 = vst [vmem:[#allocation40_spill] sm:$0xff] %v13065_v2  ;;  %3239 = vrot.lane.b32.xlu0 %v13065_v2, %s12272_s27 }
 0x2e2   : > { %18449 = vst [vmem:[#allocation41_spill] sm:$0xff] %v13070_v52  ;;  %3234 = vrot.lane.b32.xlu2 %v13070_v52, %s12272_s27 }
 0x2e5   : > { %10425 = vmatmul.msk.bf16.vlgmr.msra.gmra.mxu3 %vm2283_vm10, %v13078_v30 }
 0x2e6   : > { %2392 = vmatpush.bf16.xpose.msra.mxu3 %v2383_v3 }
 0x2ec   : > { %2046 = vmatmul.bf16.gmra.mxu0 %v1838_v28  ;;  %2095 = vmatmul.bf16.gmra.mxu1 %v1838_v28 }
 0x2ed   : > { %2144 = vmatmul.bf16.gmra.mxu2 %v1838_v28 }
 0x2f5   : > { %10426 = vmatmul.msk.bf16.vlgmr.msrb.gmra.mxu3 %vm2283_vm10, %v2191_v25 }
 0x305   : > { %10427 = vmatmul.msk.bf16.vlgmr.msra.gmra.mxu3 %vm2283_vm10, %v2192_v0 }
 0x321   : > { %v1585_v11 = vpop.xlane.xlu1 %1584  ;;  %v1583_v31 = vpop.xlane.xlu0 %1582 }
 0x322   : > { %v1601_v57 = vmul.f32 %v1585_v11, %v12587_v26  ;;  %v1600_v49 = vmul.f32 %v1583_v31, %v12587_v26 }
 0x324   : > { %v1617_v12 = vadd.f32 1e-05, %v1601_v57  ;;  %v1616_v35 = vadd.f32 1e-05, %v1600_v49  ;;  %v13120_v57 = vpop.f32.mrf.mxu2 }
 0x326   : > { %11593 = vrsqrt.f32 %v1617_v12  ;;  %vm1774_vm0 = vweird.f32 %v1617_v12  ;;  %vm1764_vm2 = vweird.f32 %v1616_v35 }
 0x327   : > { %11595 = vrsqrt.f32 %v1616_v35 }
 0x32c   : > { %v11594_v21 = vpop.eup %11593 }
 0x32d   : > { %v11596_v63 = vpop.eup %11595  ;;  %v1769_v46 = vmul.f32 %v11594_v21, %v1617_v12  ;;  %vm1775_vm14 = vweird.f32 %v11594_v21 }
 0x32e   : > { %v1759_v38 = vmul.f32 %v11596_v63, %v1616_v35  ;;  %vm1765_vm15 = vweird.f32 %v11596_v63  ;;  %vm1776_vm1 = vmor %vm1774_vm0, %vm1775_vm14 }
 0x32f   : > { %v1770_v6 = vmul.f32 %v11594_v21, %v1769_v46  ;;  %vm1766_vm3 = vmor %vm1764_vm2, %vm1765_vm15 }
 0x330   : > { %v1760_v39 = vmul.f32 %v11596_v63, %v1759_v38 }
 0x331   : > { %v1771_v7 = vmul.f32 0.5, %v1770_v6 }
 0x332   : > { %v1761_v25 = vmul.f32 0.5, %v1760_v39 }
 0x333   : > { %v1772_v14 = vsub.f32 1.5, %v1771_v7 }
 0x334   : > { %v1762_v44 = vsub.f32 1.5, %v1761_v25 }
 0x335   : > { %v1773_v29 = vmul.f32 %v11594_v21, %v1772_v14  ;;  %v13133_v14 = vpop.f32.mrf.mxu2 }
 0x336   : > { %v1763_v37 = vmul.f32 %v11596_v63, %v1762_v44 }
 0x337   : > { %v1777_v62 = vsel %vm1776_vm1, %v11594_v21, %v1773_v29 }
 0x338   : > { %v1767_v13 = vsel %vm1766_vm3, %v11596_v63, %v1763_v37  ;;  %v1793_v4 = vmul.f32 %v1777_v62, %v12858_v9 }
 0x339   : > { %v1792_v5 = vmul.f32 %v1767_v13, %v12863_v15  ;;  %v2032_v18 = vpop.f32.mrf.mxu0  ;;  %v2081_v0 = vpop.f32.mrf.mxu1 }
 0x33a   : > { %v1812_v32 = vmul.f32 %v12742_v53, %v1793_v4  ;;  %v2082_v59 = vadd.f32 %v2081_v0, %v12893_v61  ;;  %v2033_v20 = vadd.f32 %v2032_v18, %v12880_v36 }
 0x33b   : > { %v1811_v10 = vmul.f32 %v12742_v53, %v1792_v5 }
 0x33c   : > { %v1831_v23 = vadd.f32 %v12760_v33, %v1812_v32  ;;  %v13099_v55 = vpack.c.bf16 %v2082_v59, %v2082_v59  ;;  %v2161_v53 = vmul.f32 0.17677669, %v2033_v20 }
 0x33d   : > { %v1830_v1 = vadd.f32 %v12760_v33, %v1811_v10  ;;  %v13151_v0 = vpop.f32.mrf.mxu2 }
 0x33e   : > { %v2402_v9 = vsel %vm2283_vm10, %v13099_v55, 0  ;;  %v13106_v24 = vpack.c.bf16 %v2161_v53, %v2161_v53  ;;  %v13155_v53 = vperm.slane %v12866_v16, 2 }
 0x33f   : > { %v1839_v19 = vpack.c.bf16 %v1831_v23, %v1830_v1  ;;  %2411 = vmatpush.bf16.xpose.msrb.mxu3 %v2402_v9 }
 0x340   : > { %v2116_v16 = vadd.f32 %v13103_v45, %v13155_v53 }
 0x341   : > { %2051 = vmatmul.bf16.gmra.mxu0 %v1839_v19  ;;  %2100 = vmatmul.bf16.gmra.mxu1 %v1839_v19  ;;  %v2034_v15 = vpop.f32.mrf.mxu0  ;;  %v2083_v58 = vpop.f32.mrf.mxu1 }
 0x342   : > { %2149 = vmatmul.bf16.gmra.mxu2 %v1839_v19  ;;  %v2084_v33 = vadd.f32 %v2083_v58, %v12893_v61  ;;  %v2035_v31 = vadd.f32 %v2034_v15, %v12880_v36 }
 0x344   : > { %v13108_v17 = vpack.c.bf16 %v2084_v33, %v2084_v33  ;;  %v2162_v63 = vmul.f32 0.17677669, %v2035_v31 }
 0x346   : > { %10428 = vmatmul.msk.bf16.vlgmr.msrb.gmra.mxu3 %vm2283_vm10, %v13106_v24  ;;  %v2421_v54 = vsel %vm2283_vm10, %v13108_v17, 0  ;;  %v13131_v7 = vpack.c.bf16 %v2162_v63, %v2162_v63 }
 0x347   : > { %2430 = vmatpush.bf16.xpose.msra.mxu3 %v2421_v54  ;;  %v11545_v54 = vld [vmem:[%s18450_s16 + $0x3] ss:$0 sm:$0xff] }
 0x348   : > { %v2318_v3 = vpop.f32.mrf.mxu3 }
 0x349   : > { %v13115_v27 = vadd.f32 %v11543_v51, %v2318_v3  ;;  %v2037_v22 = vpop.f32.mrf.mxu0  ;;  %v2086_v60 = vpop.f32.mrf.mxu1 }
 0x34a   : > { %v2087_v28 = vadd.f32 %v2086_v60, %v12893_v61  ;;  %v2038_v5 = vadd.f32 %v2037_v22, %v12880_v36 }
 0x34b   : > { %v2592_v11 = vsel %vm2588_vm4, %v13115_v27, -inf }
 0x34c   : > { %2593 = vmax.xlane.f32.xlu0 %v2592_v11  ;;  %v2211_v49 = vpack.c.bf16 %v2087_v28, %v2087_v28  ;;  %v2163_v1 = vmul.f32 0.17677669, %v2038_v5 }
 0x34e   : > { %v2440_v12 = vsel %vm2283_vm10, %v2211_v49, 0  ;;  %v3324_v35 = vunpack.c.l.b16 %v2211_v49  ;;  %v13157_v15 = vpack.c.bf16 %v2163_v1, %v2163_v1 }
 0x34f   : > { %2449 = vmatpush.bf16.xpose.msrb.mxu3 %v2440_v12 }
 0x350   : > { %v2320_v21 = vpop.f32.mrf.mxu3  ;;  %v13126_v46 = vpack.c.b16 %v3324_v35, %v3324_v35  ;;  %v13178_v35 = vpack.c.bf16 %v2116_v16, %v2116_v16 }
 0x351   : > { %10422 = vmatmul.msk.bf16.vlgmr.msrb.gmra.mxu1 %vm2283_vm10, %v12910_v41  ;;  %v2039_v38 = vpop.f32.mrf.mxu0  ;;  %v2088_v6 = vpop.f32.mrf.mxu1 }
 0x352   : > { %18451 = vst [vmem:[#allocation42_spill] sm:$0xff] %v13126_v46  ;;  %v2089_v39 = vadd.f32 %v2088_v6, %v12893_v61  ;;  %3326 = vrot.lane.b32.xlu2 %v13126_v46, %s12272_s27  ;;  %v2125_v21 = vpop.f32.mrf.mxu2  ;;  %v2040_v63 = vadd.f32 %v2039_v38, %v12880_v36  ;;  %v2118_v38 = vadd.f32 %v13120_v57, %v13155_v53 }
 0x353   : > { %18453 = vst [vmem:[#allocation44_spill] sm:$0xff] %v13178_v35 }
 0x354   : > { %v2212_v25 = vpack.c.bf16 %v2089_v39, %v2089_v39 }
 0x356   : > { %v3353_v41 = vunpack.c.l.b16 %v2212_v25  ;;  %10429 = vmatmul.msk.bf16.vlgmr.msra.gmra.mxu3 %vm2283_vm10, %v13131_v7  ;;  %v2459_v44 = vsel %vm2283_vm10, %v2212_v25, 0  ;;  %v2126_v25 = vadd.f32 %v2125_v21, %v13155_v53 }
 0x357   : > { %2468 = vmatpush.bf16.xpose.msra.mxu3 %v2459_v44  ;;  %v2786_v44 = vsel %vm2784_vm5, %v13178_v35, 0 }
 0x358   : > { %v13138_v29 = vpop.f32.mrf.mxu3  ;;  %v13140_v37 = vpack.c.b16 %v3353_v41, %v3353_v41 }
 0x359   : > { %v2042_v62 = vpop.f32.mrf.mxu0  ;;  %v2091_v13 = vpop.f32.mrf.mxu1 }
 0x35a   : > { %18452 = vst [vmem:[#allocation43_spill] sm:$0xff] %v13140_v37  ;;  %v2092_v4 = vadd.f32 %v2091_v13, %v12893_v61  ;;  %3355 = vrot.lane.b32.xlu2 %v13140_v37, %s12272_s27  ;;  %v2043_v32 = vadd.f32 %v2042_v62, %v12880_v36  ;;  %v2164_v13 = vmul.f32 0.17677669, %v2040_v63 }
 0x35c   : > { %v13147_v10 = vpack.c.bf16 %v2092_v4, %v2092_v4  ;;  %v2165_v59 = vmul.f32 0.17677669, %v2043_v32  ;;  %v13195_v32 = vpack.c.bf16 %v2126_v25, %v2126_v25  ;;  %v13200_v1 = vpack.c.bf16 %v2164_v13, %v2164_v13 }
 0x35e   : > { %v2478_v23 = vsel %vm2283_vm10, %v13147_v10, 0  ;;  %v13159_v58 = vpack.c.bf16 %v2165_v59, %v2165_v59  ;;  %v2862_v57 = vsel %vm2784_vm5, %v13195_v32, 0 }
 0x35f   : > { %2487 = vmatpush.bf16.xpose.msrb.mxu0 %v2478_v23 }
 0x360   : > { %v2339_v18 = vpop.f32.mrf.mxu3 }
 0x361   : > { %v2044_v19 = vpop.f32.mrf.mxu0  ;;  %v2093_v20 = vpop.f32.mrf.mxu1  ;;  %v13198_v18 = vpack.c.bf16 %v2118_v38, %v2118_v38 }
 0x362   : > { %v2094_v9 = vadd.f32 %v2093_v20, %v12893_v61  ;;  %v2045_v33 = vadd.f32 %v2044_v19, %v12880_v36  ;;  %v11546_v20 = vld [vmem:[%s18450_s16 + $0x4] ss:$0 sm:$0xff] }
 0x364   : > { %v13162_v51 = vpack.c.bf16 %v2094_v9, %v2094_v9  ;;  %v2166_v60 = vmul.f32 0.17677669, %v2045_v33 }
 0x366   : > { %10430 = vmatmul.msk.bf16.vlgmr.msrb.gmra.mxu3 %vm2283_vm10, %v13157_v15  ;;  %10432 = vmatmul.msk.bf16.vlgmr.msrb.gmra.mxu0 %vm2283_vm10, %v13159_v58  ;;  %v2497_v3 = vsel %vm2283_vm10, %v13162_v51, 0  ;;  %v13181_v45 = vpack.c.bf16 %v2166_v60, %v2166_v60  ;;  %v2127_v60 = vpop.f32.mrf.mxu2 }
 0x367   : > { %2506 = vmatpush.bf16.xpose.msra.mxu1 %v2497_v3 }
 0x368   : > { %v2356_v22 = vpop.f32.mrf.mxu3 }
 0x369   : > { %v13173_v28 = vadd.f32 %v11545_v54, %v2356_v22  ;;  %v2047_v11 = vpop.f32.mrf.mxu0  ;;  %v2096_v31 = vpop.f32.mrf.mxu1  ;;  %v2805_v54 = vsel %vm2784_vm5, %v13198_v18, 0 }
 0x36a   : > { %v2097_v49 = vadd.f32 %v2096_v31, %v12893_v61  ;;  %v2048_v6 = vadd.f32 %v2047_v11, %v12880_v36  ;;  %v2128_v31 = vadd.f32 %v2127_v60, %v13155_v53 }
 0x36b   : > { %v2598_v12 = vsel %vm2588_vm4, %v13173_v28, -inf }
 0x36c   : > { %2599 = vmax.xlane.f32.xlu0 %v2598_v12  ;;  %v13184_v39 = vpack.c.bf16 %v2097_v49, %v2097_v49  ;;  %v2167_v4 = vmul.f32 0.17677669, %v2048_v6  ;;  %v13223_v21 = vpack.c.bf16 %v2128_v31, %v2128_v31 }
 0x36e   : > { %10433 = vmatmul.msk.bf16.vlgmr.msra.gmra.mxu1 %vm2283_vm10, %v13181_v45  ;;  %v2516_v41 = vsel %vm2283_vm10, %v13184_v39, 0  ;;  %v13202_v59 = vpack.c.bf16 %v2167_v4, %v2167_v4  ;;  %v2881_v6 = vsel %vm2784_vm5, %v13223_v21, 0  ;;  %v2121_v4 = vadd.f32 %v13133_v14, %v13155_v53 }
 0x36f   : > { %2525 = vmatpush.bf16.xpose.msrb.mxu2 %v2516_v41  ;;  %v2123_v14 = vadd.f32 %v13151_v0, %v13155_v53 }
 0x370   : > { %v2358_v62 = vpop.f32.mrf.mxu3 }
 0x371   : > { %v2098_v5 = vpop.f32.mrf.mxu1  ;;  %v2049_v16 = vpop.f32.mrf.mxu0 }
 0x372   : > { %v2099_v23 = vadd.f32 %v2098_v5, %v12893_v61  ;;  %v2050_v11 = vadd.f32 %v2049_v16, %v12880_v36 }
 0x374   : > { %v13204_v19 = vpack.c.bf16 %v2099_v23, %v2099_v23  ;;  %v2168_v12 = vmul.f32 0.17677669, %v2050_v11 }
 0x376   : > { %10431 = vmatmul.msk.bf16.vlgmr.msra.gmra.mxu3 %vm2283_vm10, %v13200_v1  ;;  %10434 = vmatmul.msk.bf16.vlgmr.msrb.gmra.mxu2 %vm2283_vm10, %v13202_v59  ;;  %v2535_v9 = vsel %vm2283_vm10, %v13204_v19, 0  ;;  %v13225_v63 = vpack.c.bf16 %v2168_v12, %v2168_v12 }
 0x377   : > { %2795 = vmatpush.bf16.msra.mxu2 %v2786_v44  ;;  %2544 = vmatpush.bf16.xpose.msrb.mxu3 %v2535_v9  ;;  %v2130_v44 = vpop.f32.mrf.mxu2 }
 0x378   : > { %v2375_v33 = vpop.f32.mrf.mxu3 }
 0x379   : > { %v13217_v3 = vadd.f32 %v11546_v20, %v2375_v33 }
 0x37b   : > { %2871 = vmatpush.bf16.msrb.mxu2 %v2862_v57  ;;  %v2601_v22 = vsel %vm2588_vm4, %v13217_v3, -inf  ;;  %v13238_v57 = vpack.c.bf16 %v2121_v4, %v2121_v4 }
 0x37c   : > { %2602 = vmax.xlane.f32.xlu1 %v2601_v22 }
 0x37d   : > { %v2824_v22 = vsel %vm2784_vm5, %v13238_v57, 0 }
 0x37f   : > { %2814 = vmatpush.bf16.msra.mxu3 %v2805_v54  ;;  %v2132_v38 = vpop.f32.mrf.mxu2  ;;  %v2131_v54 = vadd.f32 %v2130_v44, %v13155_v53 }
 0x380   : > { %v2377_v49 = vpop.f32.mrf.mxu3 }
 0x381   : > { %v13252_v12 = vpack.c.bf16 %v2131_v54, %v2131_v54 }
 0x383   : > { %18455 = vst [vmem:[#allocation46_spill] sm:$0xff] %v13252_v12  ;;  %v2900_v0 = vsel %vm2784_vm5, %v13252_v12, 0 }
 0x386   : > { %10435 = vmatmul.msk.bf16.vlgmr.msrb.gmra.mxu3 %vm2283_vm10, %v13225_v63 }
 0x387   : > { %2890 = vmatpush.bf16.msrb.mxu3 %v2881_v6  ;;  %v13231_v62 = vpop.f32.mrf.mxu2 }
 0x388   : > { %v2394_v25 = vpop.f32.mrf.mxu3 }
 0x38f   : > { %v13233_v13 = vpop.f32.mrf.mxu2 }
 0x390   : > { %v2396_v41 = vpop.f32.mrf.mxu3 }
 0x391   : > { %v13255_v41 = vpack.c.bf16 %v2123_v14, %v2123_v14 }
 0x393   : > { %18456 = vst [vmem:[#allocation47_spill] sm:$0xff] %v13255_v41 }
 0x397   : > { %v13250_v60 = vpop.f32.mrf.mxu2 }
 0x3be   : > { %v2052_v5 = vpop.f32.mrf.mxu0  ;;  %v2101_v23 = vpop.f32.mrf.mxu1 }
 0x3bf   : > { %v2102_v20 = vadd.f32 %v2101_v23, %v12893_v61  ;;  %v2053_v9 = vadd.f32 %v2052_v5, %v12880_v36  ;;  %v2133_v23 = vadd.f32 %v2132_v38, %v13155_v53  ;;  %v13274_v38 = vpop.f32.mrf.mxu2 }
 0x3c1   : > { %v13241_v33 = vpack.c.bf16 %v2102_v20, %v2102_v20  ;;  %v2169_v11 = vmul.f32 0.17677669, %v2053_v9  ;;  %v11549_v20 = vld [vmem:[%s18450_s16] ss:$0 sm:$0xff] }
 0x3c3   : > { %18454 = vst [vmem:[#allocation45_spill] sm:$0xff] %v13241_v33  ;;  %v2554_v16 = vsel %vm2283_vm10, %v13241_v33, 0  ;;  %v13257_v44 = vpack.c.bf16 %v2169_v11, %v2169_v11  ;;  %v13279_v11 = vld [vmem:[%s18450_s16 + $0x2] ss:$0 sm:$0xff]  ;;  %v11558_v33 = vld [vmem:[%s18450_s16 + $0xf] ss:$0 sm:$0xff] }
 0x3c4   : > { %2563 = vmatpush.bf16.xpose.msra.mxu0 %v2554_v16  ;;  %18458 = vst [vmem:[#allocation49_spill] sm:$0xff] %v13279_v11 }
 0x3c6   : > { %v2054_v31 = vpop.f32.mrf.mxu0  ;;  %v2103_v49 = vpop.f32.mrf.mxu1 }
 0x3c7   : > { %v2104_v6 = vadd.f32 %v2103_v49, %v12893_v61  ;;  %v2055_v4 = vadd.f32 %v2054_v31, %v12880_v36  ;;  %v2843_v36 = vsel %vm2784_vm5, %v13255_v41, 0 }
 0x3c9   : > { %v13260_v5 = vpack.c.bf16 %v2104_v6, %v2104_v6  ;;  %v2170_v9 = vmul.f32 0.17677669, %v2055_v4  ;;  %v2413_v54 = vpop.f32.mrf.mxu3  ;;  %v13291_v4 = vadd.f32 %v13279_v11, %v13138_v29  ;;  %v13359_v11 = vpop.permute.xlu1 %3123 }
 0x3ca   : > { %18467 = vst [vmem:[#allocation58_spill] sm:$0xff] %v13359_v11 }
 0x3cb   : > { %10436 = vmatmul.msk.bf16.vlgmr.msra.gmra.mxu0 %vm2283_vm10, %v13257_v44  ;;  %v2573_v61 = vsel %vm2283_vm10, %v13260_v5, 0  ;;  %v13281_v31 = vpack.c.bf16 %v2170_v9, %v2170_v9 }
 0x3cc   : > { %2833 = vmatpush.bf16.msrb.mxu0 %v2824_v22  ;;  %2582 = vmatpush.bf16.xpose.msrb.mxu1 %v2573_v61  ;;  %v13272_v22 = vpack.c.bf16 %v2133_v23, %v2133_v23  ;;  %v13293_v61 = vpop.f32.mrf.mxu2 }
 0x3cd   : > { %18459 = vst [vmem:[#allocation50_spill] sm:$0xff] %v13281_v31 }
 0x3ce   : > { %v2299_v16 = vpop.f32.mrf.mxu1  ;;  %18457 = vst [vmem:[#allocation48_spill] sm:$0xff] %v13272_v22  ;;  %v2919_v6 = vsel %vm2784_vm5, %v13272_v22, 0 }
 0x3cf   : > { %v13276_v14 = vadd.f32 %v11549_v20, %v2299_v16  ;;  %v11547_v20 = vld [vmem:[%s18450_s16 + $0x5] ss:$0 sm:$0xff] }
 0x3d0   : > { %2909 = vmatpush.bf16.msra.mxu0 %v2900_v0  ;;  %v13298_v9 = vadd.f32 %v11547_v20, %v2394_v25  ;;  %v13313_v20 = vld [vmem:[%s18450_s16 + $0x7] ss:$0 sm:$0xff] }
 0x3d1   : > { %v2589_v49 = vsel %vm2588_vm4, %v13276_v14, -inf  ;;  %v2415_v0 = vpop.f32.mrf.mxu3  ;;  %18460 = vst [vmem:[#allocation51_spill] sm:$0xff] %v13313_v20 }
 0x3d2   : > { %2590 = vmax.xlane.f32.xlu2 %v2589_v49  ;;  %v11548_v49 = vld [vmem:[%s18450_s16 + $0x6] ss:$0 sm:$0xff]  ;;  %v11551_v0 = vld [vmem:[%s18450_s16 + $0xa] ss:$0 sm:$0xff] }
 0x3d3   : > { %10437 = vmatmul.msk.bf16.vlgmr.msrb.gmra.mxu1 %vm2283_vm10, %v13281_v31 }
 0x3d4   : > { %2852 = vmatpush.bf16.msra.mxu1 %v2843_v36  ;;  %v2595_v36 = vsel %vm2588_vm4, %v13291_v4, -inf  ;;  %v13303_v29 = vpop.f32.mrf.mxu2 }
 0x3d6   : > { %v2301_v23 = vpop.f32.mrf.mxu1 }
 0x3d7   : > { %v13306_v23 = vadd.f32 %v11548_v49, %v2413_v54 }
 0x3d8   : > { %2928 = vmatpush.bf16.msrb.mxu1 %v2919_v6  ;;  %v2604_v6 = vsel %vm2588_vm4, %v13298_v9, -inf }
 0x3d9   : > { %v2432_v16 = vpop.f32.mrf.mxu3  ;;  %v2607_v25 = vsel %vm2588_vm4, %v13306_v23, -inf }
 0x3da   : > { %2596 = vmax.xlane.f32.xlu2 %v2595_v36 }
 0x3e1   : > { %v2434_v26 = vpop.f32.mrf.mxu3 }
 0x3e2   : > { %2605 = vmax.xlane.f32.xlu2 %v2604_v6  ;;  %v13317_v6 = vpop.f32.mrf.mxu2  ;;  %v13321_v26 = vadd.f32 %v13313_v20, %v2432_v16 }
 0x3e3   : > { %v2489_v37 = vpop.f32.mrf.mxu0 }
 0x3e4   : > { %v13308_v46 = vadd.f32 %v11551_v0, %v2489_v37  ;;  %v2610_v8 = vsel %vm2588_vm4, %v13321_v26, -inf }
 0x3e6   : > { %v2619_v36 = vsel %vm2588_vm4, %v13308_v46, -inf }
 0x3e7   : > { %2620 = vmax.xlane.f32.xlu0 %v2619_v36 }
 0x3e9   : > { %v2451_v54 = vpop.f32.mrf.mxu3 }
 0x3ea   : > { %2608 = vmax.xlane.f32.xlu2 %v2607_v25  ;;  %v13330_v36 = vpop.f32.mrf.mxu2  ;;  %v13332_v2 = vadd.f32 %v11552_v43, %v2451_v54  ;;  %v13341_v54 = vpop.permute.xlu2 %3089 }
 0x3eb   : > { %v2491_v37 = vpop.f32.mrf.mxu0  ;;  %v2508_v49 = vpop.f32.mrf.mxu1  ;;  %18461 = vst [vmem:[#allocation52_spill] sm:$0xff] %v13341_v54 }
 0x3ec   : > { %v13323_v0 = vadd.f32 %v11553_v56, %v2508_v49  ;;  %v2613_v37 = vsel %vm2588_vm4, %v13332_v2, -inf  ;;  %v11555_v56 = vld [vmem:[%s18450_s16 + $0xc] ss:$0 sm:$0xff] }
 0x3ee   : > { %v2622_v25 = vsel %vm2588_vm4, %v13323_v0, -inf }
 0x3ef   : > { %2623 = vmax.xlane.f32.xlu1 %v2622_v25  ;;  %2611 = vmax.xlane.f32.xlu0 %v2610_v8 }
 0x3f1   : > { %v2453_v52 = vpop.f32.mrf.mxu3 }
 0x3f3   : > { %v2510_v16 = vpop.f32.mrf.mxu1 }
 0x3f4   : > { %v13343_v16 = vpop.permute.xlu2 %3205 }
 0x3f5   : > { %18462 = vst [vmem:[#allocation53_spill] sm:$0xff] %v13343_v16 }
 0x3f7   : > { %2614 = vmax.xlane.f32.xlu0 %v2613_v37  ;;  %v13347_v37 = vpop.permute.xlu0 %3094 }
 0x3f9   : > { %v2470_v49 = vpop.f32.mrf.mxu3  ;;  %v2527_v48 = vpop.f32.mrf.mxu2 }
 0x3fa   : > { %v13337_v42 = vadd.f32 %v11555_v56, %v2527_v48 }
 0x3fc   : > { %v2625_v25 = vsel %vm2588_vm4, %v13337_v42, -inf  ;;  %v13345_v22 = vpop.permute.xlu2 %3234 }
 0x3fd   : > { %2626 = vmax.xlane.f32.xlu1 %v2625_v25  ;;  %18463 = vst [vmem:[#allocation54_spill] sm:$0xff] %v13345_v22 }
 0x3ff   : > { %v13351_v56 = vpop.permute.xlu0 %3118 }
 0x400   : > { %18464 = vst [vmem:[#allocation55_spill] sm:$0xff] %v13351_v56  ;;  %v11554_v56 = vld [vmem:[%s18450_s16 + $0x9] ss:$0 sm:$0xff] }
 0x401   : > { %v2472_v8 = vpop.f32.mrf.mxu3  ;;  %v2529_v34 = vpop.f32.mrf.mxu2 }
 0x402   : > { %v11557_v8 = vld [vmem:[%s18450_s16 + $0xe] ss:$0 sm:$0xff] }
 0x404   : > { %v13349_v48 = vpop.permute.xlu2 %3326 }
 0x407   : > { %v13355_v25 = vpop.permute.xlu0 %3239 }
 0x408   : > { %18466 = vst [vmem:[#allocation57_spill] sm:$0xff] %v13355_v25 }
 0x409   : > { %v2546_v52 = vpop.f32.mrf.mxu3 }
 0x40c   : > { %v13353_v12 = vpop.permute.xlu2 %3355 }
 0x40d   : > { %18465 = vst [vmem:[#allocation56_spill] sm:$0xff] %v13353_v12 }
 0x411   : > { %v2548_v43 = vpop.f32.mrf.mxu3 }
 0x412   : > { %v2594_v43 = vpop.xlane.xlu0 %2593 }
 0x413   : > { %v2638_v35 = vsub.f32 %v13115_v27, %v2594_v43 }
 0x415   : > { %v2655_v25 = vmul.f32 1.442695, %v2638_v35 }
 0x41a   : > { %v2600_v54 = vpop.xlane.xlu0 %2599 }
 0x41b   : > { %v2640_v43 = vsub.f32 %v13173_v28, %v2600_v54 }
 0x445   : > { %v2591_v34 = vpop.xlane.xlu2 %2590 }
 0x446   : > { %v2637_v20 = vsub.f32 %v13276_v14, %v2591_v34  ;;  %v13369_v34 = vpop.permute.xlu1 %3210 }
 0x448   : > { %v2653_v22 = vmul.f32 1.442695, %v2637_v20  ;;  %v2565_v41 = vpop.f32.mrf.mxu0  ;;  %v13371_v20 = vadd.f32 %v11554_v56, %v2470_v49  ;;  %v2659_v56 = vmul.f32 1.442695, %v2640_v43 }
 0x449   : > { %v13362_v31 = vadd.f32 %v11557_v8, %v2565_v41 }
 0x44a   : > { %11597 = vpow2.f32 %v2653_v22 }
 0x44b   : > { %v2631_v12 = vsel %vm2588_vm4, %v13362_v31, -inf  ;;  %11599 = vpow2.f32 %v2655_v25 }
 0x44c   : > { %2632 = vmax.xlane.f32.xlu1 %v2631_v12 }
 0x44d   : > { %v2597_v16 = vpop.xlane.xlu2 %2596 }
 0x44e   : > { %v2639_v14 = vsub.f32 %v13291_v4, %v2597_v16  ;;  %v11556_v4 = vld [vmem:[%s18450_s16 + $0xd] ss:$0 sm:$0xff]  ;;  %v2616_v16 = vsel %vm2588_vm4, %v13371_v20, -inf  ;;  %v2603_v54 = vpop.xlane.xlu1 %2602 }
 0x450   : > { %v13373_v27 = vpop.eup %11597  ;;  %v2657_v41 = vmul.f32 1.442695, %v2639_v14  ;;  %v2567_v22 = vpop.f32.mrf.mxu0  ;;  %v13388_v14 = vadd.f32 %v11556_v4, %v2546_v52 }
 0x451   : > { %v2584_v8 = vpop.f32.mrf.mxu1  ;;  %v2685_v35 = vsel %vm2588_vm4, %v13373_v27, 0.0 }
 0x452   : > { %v13376_v12 = vadd.f32 %v11558_v33, %v2584_v8  ;;  %11601 = vpow2.f32 %v2657_v41  ;;  %2686 = vadd.xlane.f32.xlu0 %v2685_v35  ;;  %v13386_v33 = vpop.eup %11599  ;;  %18468 = vst [vmem:[#allocation59_spill] sm:$0xff] %v13388_v14 }
 0x453   : > { %11603 = vpow2.f32 %v2659_v56  ;;  %v2688_v43 = vsel %vm2588_vm4, %v13386_v33, 0.0 }
 0x454   : > { %v2634_v49 = vsel %vm2588_vm4, %v13376_v12, -inf  ;;  %2617 = vmax.xlane.f32.xlu1 %v2616_v16 }
 0x455   : > { %2635 = vmax.xlane.f32.xlu2 %v2634_v49  ;;  %v2606_v25 = vpop.xlane.xlu2 %2605  ;;  %v2641_v49 = vsub.f32 %v13217_v3, %v2603_v54 }
 0x456   : > { %v2642_v28 = vsub.f32 %v13298_v9, %v2606_v25  ;;  %v2628_v9 = vsel %vm2588_vm4, %v13388_v14, -inf }
 0x457   : > { %v2661_v52 = vmul.f32 1.442695, %v2641_v49 }
 0x458   : > { %v13390_v41 = vpop.eup %11601  ;;  %v2663_v22 = vmul.f32 1.442695, %v2642_v28 }
 0x459   : > { %v2586_v8 = vpop.f32.mrf.mxu1  ;;  %v2691_v35 = vsel %vm2588_vm4, %v13390_v41, 0.0  ;;  %v13399_v16 = vpop.eup %11603 }
 0x45a   : > { %11605 = vpow2.f32 %v2663_v22  ;;  %2692 = vadd.xlane.f32.xlu0 %v2691_v35  ;;  %v2621_v4 = vpop.xlane.xlu0 %2620  ;;  %v2694_v8 = vsel %vm2588_vm4, %v13399_v16, 0.0 }
 0x45b   : > { %v2647_v25 = vsub.f32 %v13308_v46, %v2621_v4  ;;  %11607 = vpow2.f32 %v2661_v52 }
 0x45c   : > { %2689 = vadd.xlane.f32.xlu1 %v2688_v43 }
 0x45d   : > { %2629 = vmax.xlane.f32.xlu2 %v2628_v9  ;;  %v2609_v56 = vpop.xlane.xlu2 %2608  ;;  %v2673_v3 = vmul.f32 1.442695, %v2647_v25 }
 0x45e   : > { %v2643_v54 = vsub.f32 %v13306_v23, %v2609_v56 }
 0x45f   : > { %11609 = vpow2.f32 %v2673_v3 }
 0x460   : > { %v13402_v28 = vpop.eup %11605  ;;  %v2665_v35 = vmul.f32 1.442695, %v2643_v54 }
 0x461   : > { %v2700_v22 = vsel %vm2588_vm4, %v13402_v28, 0.0  ;;  %v13410_v46 = vpop.eup %11607 }
 0x462   : > { %v2624_v49 = vpop.xlane.xlu1 %2623  ;;  %11611 = vpow2.f32 %v2665_v35  ;;  %v2697_v23 = vsel %vm2588_vm4, %v13410_v46, 0.0 }
 0x463   : > { %v2648_v9 = vsub.f32 %v13323_v0, %v2624_v49  ;;  %v2612_v0 = vpop.xlane.xlu0 %2611 }
 0x464   : > { %2695 = vadd.xlane.f32.xlu1 %v2694_v8  ;;  %v2644_v35 = vsub.f32 %v13321_v26, %v2612_v0 }
 0x465   : > { %2701 = vadd.xlane.f32.xlu2 %v2700_v22  ;;  %v13412_v43 = vpop.eup %11609  ;;  %v2675_v52 = vmul.f32 1.442695, %v2648_v9 }
 0x466   : > { %v2715_v4 = vsel %vm2588_vm4, %v13412_v43, 0.0  ;;  %v2667_v9 = vmul.f32 1.442695, %v2644_v35 }
 0x467   : > { %11613 = vpow2.f32 %v2675_v52 }
 0x468   : > { %v13418_v56 = vpop.eup %11611 }
 0x469   : > { %v2703_v3 = vsel %vm2588_vm4, %v13418_v56, 0.0 }
 0x46b   : > { %v2615_v52 = vpop.xlane.xlu0 %2614 }
 0x46c   : > { %2698 = vadd.xlane.f32.xlu1 %v2697_v23 }
 0x46d   : > { %2716 = vadd.xlane.f32.xlu2 %v2715_v4  ;;  %v13420_v25 = vpop.eup %11613  ;;  %v2645_v4 = vsub.f32 %v13332_v2, %v2615_v52  ;;  %v3150_v2 = vunpack.c.l.b16 %v12972_v40  ;;  %v3174_v40 = vunpack.c.l.b16 %v13078_v30  ;;  %v3266_v52 = vunpack.c.l.b16 %v13099_v55 }
 0x46e   : > { %v2718_v54 = vsel %vm2588_vm4, %v13420_v25, 0.0 }
 0x46f   : > { %v2669_v14 = vmul.f32 1.442695, %v2645_v4  ;;  %v13463_v4 = vpack.c.b16 %v3266_v52, %v3266_v52 }
 0x470   : > { %v2627_v22 = vpop.xlane.xlu1 %2626 }
 0x471   : > { %v2649_v8 = vsub.f32 %v13337_v42, %v2627_v22  ;;  %v3145_v22 = vunpack.c.l.b16 %v13025_v47 }
 0x473   : > { %v2677_v49 = vmul.f32 1.442695, %v2649_v8  ;;  %v13452_v8 = vpack.c.b16 %v3145_v22, %v3145_v22  ;;  %v3464_v22 = vunpack.c.l.b16 %v13225_v63  ;;  %v2141_v63 = vadd.f32 %v13250_v60, %v13155_v53 }
 0x474   : > { %2704 = vadd.xlane.f32.xlu1 %v2703_v3 }
 0x475   : > { %2719 = vadd.xlane.f32.xlu2 %v2718_v54  ;;  %11615 = vpow2.f32 %v2677_v49  ;;  %v13442_v54 = vpack.c.b16 %v3150_v2, %v3150_v2  ;;  %v13457_v49 = vpack.c.b16 %v3174_v40, %v3174_v40  ;;  %v2136_v2 = vadd.f32 %v13231_v62, %v13155_v53 }
 0x476   : > { %11617 = vpow2.f32 %v2667_v9 }
 0x477   : > { %11619 = vpow2.f32 %v2669_v14 }
 0x47b   : > { %v13428_v23 = vpop.eup %11615 }
 0x47c   : > { %v2721_v11 = vsel %vm2588_vm4, %v13428_v23, 0.0  ;;  %v13433_v3 = vpop.eup %11617 }
 0x47d   : > { %2722 = vadd.xlane.f32.xlu2 %v2721_v11  ;;  %v2706_v42 = vsel %vm2588_vm4, %v13433_v3, 0.0  ;;  %v13437_v26 = vpop.eup %11619  ;;  %v3348_v11 = vunpack.c.l.b16 %v13200_v1 }
 0x47e   : > { %v2709_v0 = vsel %vm2588_vm4, %v13437_v26, 0.0 }
 0x47f   : > { %v13447_v14 = vpack.c.b16 %v3348_v11, %v3348_v11 }
 0x481   : > { %18469 = vst [vmem:[#allocation60_spill] sm:$0xff] %v13447_v14 }
 0x485   : > { %2707 = vadd.xlane.f32.xlu2 %v2706_v42 }
 0x48d   : > { %2710 = vadd.xlane.f32.xlu2 %v2709_v0 }
 0x4a5   : > { %3152 = vrot.lane.b32.xlu2 %v13442_v54, %s12272_s27 }
 0x4ad   : > { %3350 = vrot.lane.b32.xlu2 %v13447_v14, %s12272_s27 }
 0x4b5   : > { %3147 = vrot.lane.b32.xlu2 %v13452_v8, %s12272_s27 }
 0x4bd   : > { %3176 = vrot.lane.b32.xlu2 %v13457_v49, %s12272_s27 }
 0x4bf   : > { %v2633_v35 = vpop.xlane.xlu1 %2632 }
 0x4c0   : > { %v2651_v9 = vsub.f32 %v13362_v31, %v2633_v35  ;;  %v13477_v35 = vpack.c.bf16 %v2136_v2, %v2136_v2  ;;  %v3382_v2 = vunpack.c.l.b16 %v13147_v10 }
 0x4c2   : > { %v2681_v1 = vmul.f32 1.442695, %v2651_v9 }
 0x4c4   : > { %11621 = vpow2.f32 %v2681_v1 }
 0x4c5   : > { %v2687_v47 = vpop.xlane.xlu0 %2686  ;;  %3268 = vrot.lane.b32.xlu2 %v13463_v4, %s12272_s27 }
 0x4c6   : > { %11623 = vrcp.f32 %v2687_v47  ;;  %v13482_v47 = vpack.c.b16 %v3464_v22, %v3464_v22  ;;  %v13498_v22 = vpack.c.bf16 %v2141_v63, %v2141_v63  ;;  %v2143_v63 = vadd.f32 %v13274_v38, %v13155_v53 }
 0x4c7   : > { %v13465_v0 = vpop.xlane.xlu1 %2617  ;;  %v2146_v38 = vadd.f32 %v13293_v61, %v13155_v53 }
 0x4c8   : > { %v2636_v42 = vpop.xlane.xlu2 %2635  ;;  %18470 = vst [vmem:[#allocation61_spill] sm:$0xff] %v13482_v47  ;;  %v2976_v10 = vsel %vm2784_vm5, %v13498_v22, 0 }
 0x4c9   : > { %v2652_v30 = vsub.f32 %v13376_v12, %v2636_v42  ;;  %v2938_v42 = vsel %vm2784_vm5, %v13477_v35, 0  ;;  %v13539_v61 = vpack.c.bf16 %v2146_v38, %v2146_v38 }
 0x4ca   : > { %v13472_v31 = vpop.eup %11621 }
 0x4cb   : > { %v2683_v11 = vmul.f32 1.442695, %v2652_v30  ;;  %v2727_v55 = vsel %vm2588_vm4, %v13472_v31, 0.0  ;;  %v2138_v30 = vadd.f32 %v13233_v13, %v13155_v53 }
 0x4cc   : > { %v11624_v40 = vpop.eup %11623  ;;  %2728 = vadd.xlane.f32.xlu1 %v2727_v55 }
 0x4cd   : > { %11625 = vpow2.f32 %v2683_v11  ;;  %v2749_v12 = vmul.f32 %v11624_v40, %v13373_v27  ;;  %v2693_v9 = vpop.xlane.xlu0 %2692  ;;  %3466 = vrot.lane.b32.xlu2 %v13482_v47, %s12272_s27 }
 0x4ce   : > { %11627 = vrcp.f32 %v2693_v9  ;;  %v13503_v9 = vpack.c.b16 %v3382_v2, %v3382_v2  ;;  %v3179_v2 = vunpack.c.l.b16 %v13004_v50  ;;  %v2148_v50 = vadd.f32 %v13303_v29, %v13155_v53 }
 0x4cf   : > { %v2765_v62 = vpack.c.bf16 %v2749_v12, %v2749_v12  ;;  %v2690_v52 = vpop.xlane.xlu1 %2689  ;;  %v13501_v12 = vpack.c.bf16 %v2138_v30, %v2138_v30 }
 0x4d0   : > { %v13480_v1 = vpop.xlane.xlu2 %2629  ;;  %11629 = vrcp.f32 %v2690_v52  ;;  %v13544_v29 = vpack.c.bf16 %v2148_v50, %v2148_v50 }
 0x4d1   : > { %10438 = vmatmul.msk.bf16.vlgmr.msra.gmra.mxu2 %vm2588_vm4, %v2765_v62 }
 0x4d2   : > { %2947 = vmatpush.bf16.msra.mxu2 %v2938_v42 }
 0x4d3   : > { %v13491_v27 = vpop.eup %11625 }
 0x4d4   : > { %v2730_v11 = vsel %vm2588_vm4, %v13491_v27, 0.0  ;;  %v11628_v55 = vpop.eup %11627 }
 0x4d5   : > { %2731 = vadd.xlane.f32.xlu0 %v2730_v11  ;;  %v2751_v60 = vmul.f32 %v11628_v55, %v13390_v41  ;;  %3384 = vrot.lane.b32.xlu2 %v13503_v9, %s12272_s27  ;;  %v2957_v41 = vsel %vm2784_vm5, %v13501_v12, 0 }
 0x4d6   : > { %v11630_v40 = vpop.eup %11629 }
 0x4d7   : > { %v2767_v62 = vpack.c.bf16 %v2751_v60, %v2751_v60  ;;  %v2750_v52 = vmul.f32 %v11630_v40, %v13386_v33  ;;  %v2696_v13 = vpop.xlane.xlu1 %2695  ;;  %v3406_v33 = vunpack.c.l.b16 %v13181_v45  ;;  %v13520_v60 = vpack.c.bf16 %v2143_v63, %v2143_v63 }
 0x4d8   : > { %v2702_v42 = vpop.xlane.xlu2 %2701  ;;  %11631 = vrcp.f32 %v2696_v13  ;;  %v3319_v40 = vunpack.c.l.b16 %v13157_v15  ;;  %v3493_v13 = vunpack.c.l.b16 %v13257_v44  ;;  %v3469_v44 = vunpack.c.l.b16 %v13204_v19 }
 0x4d9   : > { %v2766_v14 = vpack.c.bf16 %v2750_v52, %v2750_v52  ;;  %10440 = vmatmul.msk.bf16.vlgmr.msrb.gmra.mxu0 %vm2588_vm4, %v2767_v62  ;;  %11633 = vrcp.f32 %v2702_v42  ;;  %v13518_v55 = vpack.c.b16 %v3406_v33, %v3406_v33  ;;  %v13531_v42 = vpack.c.b16 %v3179_v2, %v3179_v2 }
 0x4da   : > { %2985 = vmatpush.bf16.msrb.mxu0 %v2976_v10  ;;  %v3440_v19 = vunpack.c.l.b16 %v13184_v39 }
 0x4db   : > { %10439 = vmatmul.msk.bf16.vlgmr.msra.gmra.mxu3 %vm2588_vm4, %v2766_v14 }
 0x4dc   : > { %2966 = vmatpush.bf16.msra.mxu3 %v2957_v41  ;;  %v13541_v41 = vpack.c.b16 %v3319_v40, %v3319_v40  ;;  %v13563_v40 = vpack.c.b16 %v3469_v44, %v3469_v44 }
 0x4dd   : > { %3408 = vrot.lane.b32.xlu2 %v13518_v55, %s12272_s27 }
 0x4de   : > { %v11632_v30 = vpop.eup %11631  ;;  %18472 = vst [vmem:[#allocation63_spill] sm:$0xff] %v13563_v40 }
 0x4df   : > { %v2699_v11 = vpop.xlane.xlu1 %2698  ;;  %v2752_v14 = vmul.f32 %v11632_v30, %v13399_v16  ;;  %v11634_v45 = vpop.eup %11633  ;;  %v2995_v16 = vsel %vm2784_vm5, %v13520_v60, 0  ;;  %v13547_v30 = vpack.c.b16 %v3493_v13, %v3493_v13 }
 0x4e0   : > { %11635 = vrcp.f32 %v2699_v11  ;;  %v2717_v52 = vpop.xlane.xlu2 %2716  ;;  %v2754_v10 = vmul.f32 %v11634_v45, %v13402_v28  ;;  %v3863_v11 = vunpack.c.l.b16 %v13223_v21  ;;  %v3033_v45 = vsel %vm2784_vm5, %v13544_v29, 0 }
 0x4e1   : > { %v2768_v62 = vpack.c.bf16 %v2752_v14, %v2752_v14  ;;  %18471 = vst [vmem:[#allocation62_spill] sm:$0xff] %v13547_v30  ;;  %v3014_v14 = vsel %vm2784_vm5, %v13539_v61, 0  ;;  %v13567_v21 = vpack.c.b16 %v3440_v19, %v3440_v19 }
 0x4e2   : > { %v2770_v28 = vpack.c.bf16 %v2754_v10, %v2754_v10  ;;  %v13573_v13 = vpack.c.b16 %v3863_v11, %v3863_v11  ;;  %v3295_v10 = vunpack.c.l.b16 %v13108_v17  ;;  %v3290_v17 = vunpack.c.l.b16 %v13131_v7 }
 0x4e3   : > { %10441 = vmatmul.msk.bf16.vlgmr.msra.gmra.mxu1 %vm2588_vm4, %v2768_v62  ;;  %v3377_v7 = vunpack.c.l.b16 %v13159_v58 }
 0x4e4   : > { %3004 = vmatpush.bf16.msra.mxu1 %v2995_v16  ;;  %18473 = vst [vmem:[#allocation64_spill] sm:$0xff] %v13573_v13 }
 0x4e5   : > { %3181 = vrot.lane.b32.xlu1 %v13531_v42, %s12272_s27  ;;  %3495 = vrot.lane.b32.xlu2 %v13547_v30, %s12272_s27 }
 0x4e6   : > { %v11636_v15 = vpop.eup %11635 }
 0x4e7   : > { %v2753_v33 = vmul.f32 %v11636_v15, %v13410_v46  ;;  %v2705_v63 = vpop.xlane.xlu1 %2704  ;;  %v2151_v46 = vadd.f32 %v13317_v6, %v13155_v53  ;;  %v3435_v6 = vunpack.c.l.b16 %v13202_v59  ;;  %v3791_v15 = vunpack.c.l.b16 %v13238_v57 }
 0x4e8   : > { %11637 = vrcp.f32 %v2705_v63  ;;  %v2720_v38 = vpop.xlane.xlu2 %2719 }
 0x4e9   : > { %3321 = vrot.lane.b32.xlu0 %v13541_v41, %s12272_s27  ;;  %v2769_v2 = vpack.c.bf16 %v2753_v33, %v2753_v33  ;;  %v13570_v62 = vpack.c.bf16 %v2151_v46, %v2151_v46  ;;  %v13584_v44 = vpack.c.b16 %v3435_v6, %v3435_v6  ;;  %11639 = vrcp.f32 %v2717_v52 }
 0x4ea   : > { %v13588_v33 = vpack.c.b16 %v3295_v10, %v3295_v10  ;;  %v13590_v63 = vpack.c.b16 %v3791_v15, %v3791_v15  ;;  %v3261_v52 = vunpack.c.l.b16 %v13106_v24  ;;  %v3411_v46 = vunpack.c.l.b16 %v13162_v51 }
 0x4eb   : > { %10442 = vmatmul.msk.bf16.vlgmr.msrb.gmra.mxu2 %vm2588_vm4, %v2769_v2  ;;  %10443 = vmatmul.msk.bf16.vlgmr.msrb.gmra.mxu3 %vm2588_vm4, %v2770_v28  ;;  %v3052_v59 = vsel %vm2784_vm5, %v13570_v62, 0  ;;  %18474 = vst [vmem:[#allocation65_spill] sm:$0xff] %v13584_v44  ;;  %v13598_v28 = vpack.c.b16 %v3290_v17, %v3290_v17 }
 0x4ec   : > { %3023 = vmatpush.bf16.msrb.mxu2 %v3014_v14  ;;  %3042 = vmatpush.bf16.msrb.mxu3 %v3033_v45  ;;  %18475 = vst [vmem:[#allocation66_spill] sm:$0xff] %v13590_v63  ;;  %v13603_v19 = vpack.c.b16 %v3261_v52, %v3261_v52  ;;  %v2153_v14 = vadd.f32 %v13330_v36, %v13155_v53  ;;  %v3527_v36 = vunpack.c.l.b16 %v13260_v5 }
 0x4ed   : > { %3471 = vrot.lane.b32.xlu1 %v13563_v40, %s12272_s27  ;;  %3865 = vrot.lane.b32.xlu2 %v13573_v13, %s12272_s27  ;;  %v13619_v58 = vpack.c.b16 %v3411_v46, %v3411_v46 }
 0x4ee   : > { %v11638_v39 = vpop.eup %11637 }
 0x4ef   : > { %v2755_v50 = vmul.f32 %v11638_v39, %v13418_v56  ;;  %v11640_v57 = vpop.eup %11639  ;;  %v13614_v39 = vpack.c.bf16 %v2153_v14, %v2153_v14  ;;  %18476 = vst [vmem:[#allocation67_spill] sm:$0xff] %v13619_v58  ;;  %v3216_v14 = vsel %vm2283_vm10, %v13369_v34, 0  ;;  %v3332_v34 = vsel %vm2283_vm10, %v13349_v48, 0 }
 0x4f0   : > { %v2723_v56 = vpop.xlane.xlu2 %2722  ;;  %v2759_v11 = vmul.f32 %v11640_v57, %v13412_v43  ;;  %v13612_v43 = vpack.c.b16 %v3377_v7, %v3377_v7  ;;  %v3767_v57 = vunpack.c.l.b16 %v13198_v18  ;;  %v3839_v7 = vunpack.c.l.b16 %v13195_v32 }
 0x4f1   : > { %3442 = vrot.lane.b32.xlu0 %v13567_v21, %s12272_s27  ;;  %v2771_v16 = vpack.c.bf16 %v2755_v50, %v2755_v50  ;;  %v3071_v51 = vsel %vm2784_vm5, %v13614_v39, 0 }
 0x4f2   : > { %v2775_v24 = vpack.c.bf16 %v2759_v11, %v2759_v11  ;;  %v13638_v52 = vpack.c.b16 %v3767_v57, %v3767_v57 }
 0x4f3   : > { %10444 = vmatmul.msk.bf16.vlgmr.msra.gmra.mxu0 %vm2588_vm4, %v2771_v16  ;;  %v13627_v16 = vpack.c.b16 %v3527_v36, %v3527_v36 }
 0x4f4   : > { %3061 = vmatpush.bf16.msra.mxu0 %v3052_v59  ;;  %18478 = vst [vmem:[#allocation69_spill] sm:$0xff] %v13638_v52 }
 0x4f5   : > { %3437 = vrot.lane.b32.xlu1 %v13584_v44, %s12272_s27  ;;  %3793 = vrot.lane.b32.xlu2 %v13590_v63, %s12272_s27  ;;  %18477 = vst [vmem:[#allocation68_spill] sm:$0xff] %v13627_v16 }
 0x4f8   : > { %v2708_v2 = vpop.xlane.xlu2 %2707 }
 0x4f9   : > { %3297 = vrot.lane.b32.xlu0 %v13588_v33, %s12272_s27  ;;  %11641 = vrcp.f32 %v2708_v2 }
 0x4fd   : > { %3292 = vrot.lane.b32.xlu1 %v13598_v28, %s12272_s27 }
 0x4ff   : > { %v11642_v45 = vpop.eup %11641 }
 0x500   : > { %v2756_v6 = vmul.f32 %v11642_v45, %v13433_v3  ;;  %v2711_v50 = vpop.xlane.xlu2 %2710 }
 0x501   : > { %3263 = vrot.lane.b32.xlu0 %v13603_v19, %s12272_s27  ;;  %11643 = vrcp.f32 %v2711_v50 }
 0x502   : > { %v2772_v53 = vpack.c.bf16 %v2756_v6, %v2756_v6  ;;  %11645 = vrcp.f32 %v2720_v38  ;;  %v3100_v38 = vsel %vm2283_vm10, %v13347_v37, 0  ;;  %v13645_v37 = vpack.c.b16 %v3839_v7, %v3839_v7  ;;  %v18481_v6 = vld [vmem:[#allocation52_spill] sm:$0xff] }
 0x503   : > { %10448 = vmatmul.msk.bf16.vlgmr.msrb.gmra.mxu0 %vm2588_vm4, %v2775_v24  ;;  %11647 = vrcp.f32 %v2723_v56  ;;  %v2646_v24 = vsub.f32 %v13371_v20, %v13465_v0 }
 0x504   : > { %10445 = vmatmul.msk.bf16.vlgmr.msrb.gmra.mxu1 %vm2588_vm4, %v2772_v53  ;;  %18479 = vst [vmem:[#allocation70_spill] sm:$0xff] %v13645_v37  ;;  %v18482_v53 = vld [vmem:[#allocation45_spill] sm:$0xff] }
 0x505   : > { %3379 = vrot.lane.b32.xlu1 %v13612_v43, %s12272_s27  ;;  %3080 = vmatpush.bf16.msrb.mxu1 %v3071_v51  ;;  %v3498_v36 = vunpack.c.l.b16 %v18482_v53  ;;  %v18483_v51 = vld [vmem:[#allocation53_spill] sm:$0xff] }
 0x507   : > { %v11644_v3 = vpop.eup %11643 }
 0x508   : > { %v2757_v10 = vmul.f32 %v11644_v3, %v13437_v26  ;;  %v3153_v15 = vpop.permute.xlu2 %3152  ;;  %v11646_v17 = vpop.eup %11645  ;;  %v13672_v3 = vpack.c.b16 %v3498_v36, %v3498_v36 }
 0x509   : > { %3413 = vrot.lane.b32.xlu0 %v13619_v58, %s12272_s27  ;;  %v3158_v59 = vsel %vm2283_vm10, %v3153_v15, 0  ;;  %v2760_v26 = vmul.f32 %v11646_v17, %v13420_v25  ;;  %v11648_v11 = vpop.eup %11647  ;;  %v3935_v25 = vunpack.c.l.b16 %v13477_v35 }
 0x50a   : > { %v2773_v5 = vpack.c.bf16 %v2757_v10, %v2757_v10  ;;  %3167 = vmatpush.bf16.xpose.msrb.mxu0 %v3158_v59  ;;  %v2761_v18 = vmul.f32 %v11648_v11, %v13428_v23  ;;  %v2671_v23 = vmul.f32 1.442695, %v2646_v24  ;;  %18484 = vst [vmem:[#allocation52_spill] sm:$0xff] %v13672_v3  ;;  %v18487_v24 = vld [vmem:[#allocation59_spill] sm:$0xff] }
 0x50b   : > { %v2776_v2 = vpack.c.bf16 %v2760_v26, %v2760_v26  ;;  %v13655_v32 = vpack.c.b16 %v3935_v25, %v3935_v25 }
 0x50c   : > { %10446 = vmatmul.msk.bf16.vlgmr.msra.gmra.mxu2 %vm2588_vm4, %v2773_v5  ;;  %v2777_v56 = vpack.c.bf16 %v2761_v18, %v2761_v18  ;;  %11649 = vpow2.f32 %v2671_v23  ;;  %v2650_v23 = vsub.f32 %v18487_v24, %v13480_v1  ;;  %v18493_v24 = vld [vmem:[#allocation50_spill] sm:$0xff] }
 0x50d   : > { %3529 = vrot.lane.b32.xlu1 %v13627_v16, %s12272_s27  ;;  %3109 = vmatpush.bf16.xpose.msra.mxu2 %v3100_v38  ;;  %18480 = vst [vmem:[#allocation71_spill] sm:$0xff] %v13655_v32 }
 0x50e   : > { %v2679_v53 = vmul.f32 1.442695, %v2650_v23  ;;  %v3522_v23 = vunpack.c.l.b16 %v18493_v24 }
 0x510   : > { %v13659_v46 = vpop.permute.xlu2 %3350 }
 0x512   : > { %v13661_v45 = vpop.eup %11649 }
 0x513   : > { %v2712_v20 = vsel %vm2588_vm4, %v13661_v45, 0.0 }
 0x514   : > { %10449 = vmatmul.msk.bf16.vlgmr.msra.gmra.mxu1 %vm2588_vm4, %v2776_v2 }
 0x515   : > { %3769 = vrot.lane.b32.xlu1 %v13638_v52, %s12272_s27 }
 0x518   : > { %v3148_v35 = vpop.permute.xlu2 %3147 }
 0x51c   : > { %10450 = vmatmul.msk.bf16.vlgmr.msrb.gmra.mxu2 %vm2588_vm4, %v2777_v56 }
 0x51d   : > { %3841 = vrot.lane.b32.xlu1 %v13645_v37, %s12272_s27  ;;  %3225 = vmatpush.bf16.xpose.msrb.mxu2 %v3216_v14 }
 0x520   : > { %v3177_v0 = vpop.permute.xlu2 %3176 }
 0x525   : > { %3937 = vrot.lane.b32.xlu1 %v13655_v32, %s12272_s27 }
 0x528   : > { %v3269_v48 = vpop.permute.xlu2 %3268 }
 0x529   : > { %v3274_v17 = vsel %vm2283_vm10, %v3269_v48, 0 }
 0x52c   : > { %10454 = vmatmul.msk.bf16.vlgmr.msra.gmra.mxu2 %vm2283_vm10, %v18481_v6 }
 0x52d   : > { %3341 = vmatpush.bf16.xpose.msra.mxu2 %v3332_v34 }
 0x530   : > { %v13679_v38 = vpop.permute.xlu2 %3466 }
 0x533   : > { %2713 = vadd.xlane.f32.xlu0 %v2712_v20 }
 0x538   : > { %v3385_v18 = vpop.permute.xlu2 %3384 }
 0x539   : > { %v3390_v14 = vsel %vm2283_vm10, %v3385_v18, 0 }
 0x53c   : > { %10458 = vmatmul.msk.bf16.vlgmr.msrb.gmra.mxu2 %vm2283_vm10, %v18483_v51 }
 0x53f   : > { %v2729_v50 = vpop.xlane.xlu1 %2728 }
 0x540   : > { %11651 = vrcp.f32 %v2729_v50 }
 0x546   : > { %v11652_v10 = vpop.eup %11651 }
 0x547   : > { %3500 = vrot.lane.b32.xlu0 %v13672_v3, %s12272_s27  ;;  %v2763_v15 = vmul.f32 %v11652_v10, %v13472_v31 }
 0x548   : > { %v2732_v59 = vpop.xlane.xlu0 %2731 }
 0x549   : > { %11653 = vrcp.f32 %v2732_v59  ;;  %v2779_v5 = vpack.c.bf16 %v2763_v15, %v2763_v15 }
 0x54a   : > { %11655 = vpow2.f32 %v2679_v53 }
 0x54b   : > { %10452 = vmatmul.msk.bf16.vlgmr.msra.gmra.mxu0 %vm2588_vm4, %v2779_v5 }
 0x54c   : > { %3283 = vmatpush.bf16.xpose.msra.mxu0 %v3274_v17 }
 0x54f   : > { %v11654_v57 = vpop.eup %11653 }
 0x550   : > { %v2764_v26 = vmul.f32 %v11654_v57, %v13491_v27  ;;  %v13703_v59 = vpop.eup %11655 }
 0x552   : > { %v2780_v2 = vpack.c.bf16 %v2764_v26, %v2764_v26 }
 0x554   : > { %10453 = vmatmul.msk.bf16.vlgmr.msrb.gmra.mxu1 %vm2588_vm4, %v2780_v2  ;;  %v13683_v11 = vpop.f32.mrf.mxu2 }
 0x555   : > { %18485 = vst [vmem:[#allocation45_spill] sm:$0xff] %v13683_v11 }
 0x556   : > { %v13685_v7 = vpop.f32.mrf.mxu0 }
 0x557   : > { %18486 = vst [vmem:[#allocation53_spill] sm:$0xff] %v13685_v7  ;;  %v3182_v31 = vpop.permute.xlu1 %3181  ;;  %v18516_v7 = vld [vmem:[#allocation48_spill] sm:$0xff] }
 0x558   : > { %v3187_v56 = vsel %vm2283_vm10, %v3182_v31, 0 }
 0x559   : > { %3196 = vmatpush.bf16.xpose.msra.mxu1 %v3187_v56 }
 0x55b   : > { %v3322_v25 = vpop.permute.xlu0 %3321  ;;  %10456 = vmatmul.msk.bf16.vlgmr.msrb.gmra.mxu0 %vm2283_vm10, %v3148_v35 }
 0x55c   : > { %10462 = vmatmul.msk.bf16.vlgmr.msra.gmra.mxu2 %vm2283_vm10, %v3322_v25  ;;  %3399 = vmatpush.bf16.xpose.msrb.mxu0 %v3390_v14  ;;  %v2799_v27 = vpop.f32.mrf.mxu2 }
 0x55e   : > { %v13693_v34 = vpop.f32.mrf.mxu3  ;;  %v2837_v6 = vpop.f32.mrf.mxu0 }
 0x55f   : > { %18488 = vst [vmem:[#allocation59_spill] sm:$0xff] %v13693_v34  ;;  %v13695_v20 = vpop.permute.xlu1 %3471  ;;  %v13863_v34 = vld [vmem:[%s18450_s16 + $0x1] ss:$0 sm:$0xff] }
 0x560   : > { %v13697_v50 = vpop.f32.mrf.mxu1 }
 0x561   : > { %18489 = vst [vmem:[#allocation72_spill] sm:$0xff] %v13697_v50  ;;  %v3911_v50 = vunpack.c.l.b16 %v18516_v7 }
 0x563   : > { %v3443_v36 = vpop.permute.xlu0 %3442 }
 0x564   : > { %v3448_v51 = vsel %vm2283_vm10, %v3443_v36, 0  ;;  %10457 = vmatmul.msk.bf16.vlgmr.msra.gmra.mxu1 %vm2283_vm10, %v3177_v0  ;;  %v2724_v0 = vsel %vm2588_vm4, %v13703_v59, 0.0 }
 0x565   : > { %3457 = vmatpush.bf16.xpose.msrb.mxu2 %v3448_v51  ;;  %v3409_v51 = vpop.permute.xlu2 %3408 }
 0x566   : > { %v2818_v35 = vpop.f32.mrf.mxu3 }
 0x567   : > { %v3438_v48 = vpop.permute.xlu1 %3437  ;;  %v13720_v35 = vpack.c.b16 %v3522_v23, %v3522_v23 }
 0x568   : > { %v2856_v10 = vpop.f32.mrf.mxu1 }
 0x569   : > { %18495 = vst [vmem:[#allocation76_spill] sm:$0xff] %v13720_v35  ;;  %v18497_v10 = vld [vmem:[#allocation44_spill] sm:$0xff] }
 0x56b   : > { %v3298_v15 = vpop.permute.xlu0 %3297 }
 0x56c   : > { %v3303_v1 = vsel %vm2283_vm10, %v3298_v15, 0  ;;  %10466 = vmatmul.msk.bf16.vlgmr.msrb.gmra.mxu2 %vm2283_vm10, %v3438_v48  ;;  %v3743_v15 = vunpack.c.l.b16 %v18497_v10 }
 0x56d   : > { %3312 = vmatpush.bf16.xpose.msrb.mxu1 %v3303_v1 }
 0x56e   : > { %v13705_v5 = vpop.f32.mrf.mxu2  ;;  %v13707_v17 = vpop.f32.mrf.mxu3 }
 0x56f   : > { %18490 = vst [vmem:[#allocation73_spill] sm:$0xff] %v13705_v5  ;;  %v3293_v57 = vpop.permute.xlu1 %3292  ;;  %v12143_v5 = vld [vmem:[%s18450_s16 + $0x6] ss:$0 sm:$0xff] }
 0x570   : > { %18491 = vst [vmem:[#allocation74_spill] sm:$0xff] %v13707_v17  ;;  %v13711_v26 = vpop.f32.mrf.mxu0  ;;  %v18514_v17 = vld [vmem:[#allocation56_spill] sm:$0xff] }
 0x571   : > { %2725 = vadd.xlane.f32.xlu0 %v2724_v0  ;;  %18492 = vst [vmem:[#allocation75_spill] sm:$0xff] %v13711_v26 }
 0x572   : > { %18521 = vst [vmem:[#allocation56_spill] sm:$0xff] %v13863_v34 }
 0x573   : > { %v3264_v2 = vpop.permute.xlu0 %3263 }
 0x574   : > { %10460 = vmatmul.msk.bf16.vlgmr.msra.gmra.mxu0 %vm2283_vm10, %v3264_v2  ;;  %10461 = vmatmul.msk.bf16.vlgmr.msrb.gmra.mxu1 %vm2283_vm10, %v3293_v57  ;;  %v13729_v57 = vpack.c.b16 %v3743_v15, %v3743_v15  ;;  %v3959_v2 = vunpack.c.l.b16 %v13501_v12  ;;  %v4031_v12 = vunpack.c.l.b16 %v13539_v61 }
 0x576   : > { %v2875_v31 = vpop.f32.mrf.mxu2  ;;  %v2894_v18 = vpop.f32.mrf.mxu3  ;;  %18498 = vst [vmem:[#allocation44_spill] sm:$0xff] %v13729_v57 }
 0x577   : > { %v3380_v56 = vpop.permute.xlu1 %3379  ;;  %v13734_v31 = vpack.c.b16 %v3959_v2, %v3959_v2 }
 0x578   : > { %v2913_v25 = vpop.f32.mrf.mxu0 }
 0x579   : > { %18499 = vst [vmem:[#allocation78_spill] sm:$0xff] %v13734_v31  ;;  %v18502_v25 = vld [vmem:[#allocation47_spill] sm:$0xff] }
 0x57b   : > { %v3414_v14 = vpop.permute.xlu0 %3413 }
 0x57c   : > { %v3419_v27 = vsel %vm2283_vm10, %v3414_v14, 0  ;;  %v3815_v14 = vunpack.c.l.b16 %v18502_v25 }
 0x57d   : > { %3428 = vmatpush.bf16.xpose.msra.mxu1 %v3419_v27 }
 0x57e   : > { %v13743_v27 = vpack.c.b16 %v3815_v14, %v3815_v14  ;;  %v18506_v14 = vld [vmem:[#allocation58_spill] sm:$0xff] }
 0x57f   : > { %v3530_v6 = vpop.permute.xlu1 %3529  ;;  %v3129_v61 = vsel %vm2283_vm10, %v18506_v14, 0 }
 0x580   : > { %v3535_v53 = vsel %vm2283_vm10, %v3530_v6, 0  ;;  %v13718_v36 = vpop.f32.mrf.mxu0  ;;  %18503 = vst [vmem:[#allocation47_spill] sm:$0xff] %v13743_v27  ;;  %v13748_v6 = vpack.c.b16 %v4031_v12, %v4031_v12 }
 0x581   : > { %18494 = vst [vmem:[#allocation50_spill] sm:$0xff] %v13718_v36  ;;  %v13726_v48 = vpop.f32.mrf.mxu1 }
 0x582   : > { %18496 = vst [vmem:[#allocation77_spill] sm:$0xff] %v13726_v48 }
 0x583   : > { %18504 = vst [vmem:[#allocation81_spill] sm:$0xff] %v13748_v6 }
 0x584   : > { %10464 = vmatmul.msk.bf16.vlgmr.msrb.gmra.mxu0 %vm2283_vm10, %v3380_v56  ;;  %10465 = vmatmul.msk.bf16.vlgmr.msra.gmra.mxu1 %vm2283_vm10, %v3409_v51 }
 0x585   : > { %3544 = vmatpush.bf16.xpose.msrb.mxu1 %v3535_v53  ;;  %3524 = vrot.lane.b32.xlu0 %v13720_v35, %s12272_s27  ;;  %v3496_v53 = vpop.permute.xlu2 %3495  ;;  %v13902_v35 = vld [vmem:[%s18450_s16 + $0xd] ss:$0 sm:$0xff] }
 0x586   : > { %18525 = vst [vmem:[#allocation84_spill] sm:$0xff] %v13902_v35 }
 0x588   : > { %v2989_v1 = vpop.f32.mrf.mxu0 }
 0x589   : > { %v2932_v0 = vpop.f32.mrf.mxu1 }
 0x58d   : > { %3745 = vrot.lane.b32.xlu0 %v13729_v57, %s12272_s27  ;;  %v13754_v0 = vpop.permute.xlu2 %3865 }
 0x58f   : > { %v13736_v18 = vpop.f32.mrf.mxu2 }
 0x590   : > { %18500 = vst [vmem:[#allocation79_spill] sm:$0xff] %v13736_v18 }
 0x591   : > { %v13740_v56 = vpop.f32.mrf.mxu1 }
 0x592   : > { %18501 = vst [vmem:[#allocation80_spill] sm:$0xff] %v13740_v56 }
 0x595   : > { %3961 = vrot.lane.b32.xlu0 %v13734_v31, %s12272_s27  ;;  %v12148_v31 = vld [vmem:[%s18450_s16 + $0x5] ss:$0 sm:$0xff] }
 0x597   : > { %v2951_v24 = vpop.f32.mrf.mxu2 }
 0x599   : > { %v3008_v23 = vpop.f32.mrf.mxu1 }
 0x59a   : > { %v3794_v23 = vpop.permute.xlu2 %3793 }
 0x59d   : > { %3817 = vrot.lane.b32.xlu0 %v13743_v27, %s12272_s27 }
 0x59f   : > { %v13750_v51 = vpop.f32.mrf.mxu2 }
 0x5a0   : > { %18505 = vst [vmem:[#allocation82_spill] sm:$0xff] %v13750_v51 }
 0x5a5   : > { %4033 = vrot.lane.b32.xlu0 %v13748_v6, %s12272_s27 }
 0x5a6   : > { %v2714_v10 = vpop.xlane.xlu0 %2713 }
 0x5a7   : > { %11657 = vrcp.f32 %v2714_v10  ;;  %v3027_v15 = vpop.f32.mrf.mxu2  ;;  %v3799_v10 = vsel %vm2784_vm5, %v3794_v23, 0 }
 0x5ad   : > { %v11658_v1 = vpop.eup %11657 }
 0x5ae   : > { %v2758_v2 = vmul.f32 %v11658_v1, %v13661_v45 }
 0x5af   : > { %v3111_v24 = vpop.f32.mrf.mxu2 }
 0x5b0   : > { %v2774_v25 = vpack.c.bf16 %v2758_v2, %v2758_v2 }
 0x5b2   : > { %10447 = vmatmul.msk.bf16.vlgmr.msra.gmra.mxu3 %vm2588_vm4, %v2774_v25 }
 0x5b3   : > { %3138 = vmatpush.bf16.xpose.msra.mxu3 %v3129_v61 }
 0x5b7   : > { %v3113_v15 = vpop.f32.mrf.mxu2 }
 0x5b9   : > { %v3501_v12 = vpop.permute.xlu0 %3500 }
 0x5ba   : > { %v3506_v51 = vsel %vm2283_vm10, %v3501_v12, 0  ;;  %v18509_v12 = vld [vmem:[#allocation49_spill] sm:$0xff] }
 0x5bb   : > { %3515 = vmatpush.bf16.xpose.msra.mxu0 %v3506_v51 }
 0x5bf   : > { %v13763_v45 = vpop.f32.mrf.mxu2 }
 0x5c2   : > { %10468 = vmatmul.msk.bf16.vlgmr.msra.gmra.mxu0 %vm2283_vm10, %v3496_v53  ;;  %v12141_v53 = vld [vmem:[%s18450_s16] ss:$0 sm:$0xff] }
 0x5c3   : > { %3808 = vmatpush.bf16.msrb.mxu0 %v3799_v10  ;;  %v13777_v10 = vadd.f32 %v12141_v53, %v3111_v24 }
 0x5c7   : > { %v3229_v2 = vpop.f32.mrf.mxu2 }
 0x5c8   : > { %v13765_v1 = vpop.f32.mrf.mxu0  ;;  %v12142_v2 = vld [vmem:[%s18450_s16 + $0x3] ss:$0 sm:$0xff] }
 0x5c9   : > { %18507 = vst [vmem:[#allocation58_spill] sm:$0xff] %v13765_v1 }
 0x5d0   : > { %v3065_v25 = vpop.f32.mrf.mxu0 }
 0x5d1   : > { %v13767_v14 = vpop.f32.mrf.mxu1 }
 0x5d2   : > { %18508 = vst [vmem:[#allocation83_spill] sm:$0xff] %v13767_v14 }
 0x5d8   : > { %v3169_v36 = vpop.f32.mrf.mxu0 }
 0x5d9   : > { %v3084_v61 = vpop.f32.mrf.mxu1  ;;  %v13770_v56 = vadd.f32 %v18509_v12, %v3169_v36 }
 0x5da   : > { %v3550_v61 = vsel %vm2588_vm4, %v13777_v10, -inf }
 0x5db   : > { %v3556_v51 = vsel %vm2588_vm4, %v13770_v56, -inf }
 0x5dc   : > { %3557 = vmax.xlane.f32.xlu1 %v3556_v51 }
 0x5df   : > { %v13774_v23 = vpop.f32.mrf.mxu2 }
 0x5e0   : > { %v3171_v15 = vpop.f32.mrf.mxu0 }
 0x5e1   : > { %v3198_v1 = vpop.f32.mrf.mxu1 }
 0x5e2   : > { %v13780_v25 = vadd.f32 %v12142_v2, %v3198_v1  ;;  %v18510_v1 = vld [vmem:[#allocation57_spill] sm:$0xff] }
 0x5e3   : > { %v3245_v2 = vsel %vm2283_vm10, %v18510_v1, 0 }
 0x5e4   : > { %v2726_v14 = vpop.xlane.xlu0 %2725  ;;  %v3559_v36 = vsel %vm2588_vm4, %v13780_v25, -inf  ;;  %3551 = vmax.xlane.f32.xlu1 %v3550_v61  ;;  %v18511_v61 = vld [vmem:[#allocation51_spill] sm:$0xff] }
 0x5e5   : > { %11659 = vrcp.f32 %v2726_v14  ;;  %3560 = vmax.xlane.f32.xlu2 %v3559_v36 }
 0x5e7   : > { %v3345_v12 = vpop.f32.mrf.mxu2 }
 0x5e8   : > { %v3770_v12 = vpop.permute.xlu1 %3769 }
 0x5e9   : > { %v3200_v51 = vpop.f32.mrf.mxu1 }
 0x5eb   : > { %v11660_v24 = vpop.eup %11659 }
 0x5ec   : > { %v2762_v53 = vmul.f32 %v11660_v24, %v13703_v59 }
 0x5ee   : > { %v2778_v15 = vpack.c.bf16 %v2762_v53, %v2762_v53 }
 0x5ef   : > { %v13787_v18 = vpop.f32.mrf.mxu2 }
 0x5f0   : > { %10451 = vmatmul.msk.bf16.vlgmr.msrb.gmra.mxu3 %vm2588_vm4, %v2778_v15  ;;  %v18512_v15 = vld [vmem:[#allocation46_spill] sm:$0xff] }
 0x5f1   : > { %3254 = vmatpush.bf16.xpose.msrb.mxu3 %v3245_v2  ;;  %v3285_v26 = vpop.f32.mrf.mxu0  ;;  %v3314_v48 = vpop.f32.mrf.mxu1  ;;  %v3887_v1 = vunpack.c.l.b16 %v18512_v15 }
 0x5f2   : > { %v13793_v14 = vadd.f32 %v12143_v5, %v3285_v26  ;;  %v13796_v36 = vadd.f32 %v18511_v61, %v3314_v48  ;;  %v3842_v2 = vpop.permute.xlu1 %3841 }
 0x5f3   : > { %v13804_v48 = vpack.c.b16 %v3887_v1, %v3887_v1  ;;  %v3847_v15 = vsel %vm2784_vm5, %v3842_v2, 0  ;;  %v12144_v1 = vld [vmem:[%s18450_s16 + $0xa] ss:$0 sm:$0xff] }
 0x5f4   : > { %v3571_v59 = vsel %vm2588_vm4, %v13796_v36, -inf  ;;  %v3568_v51 = vsel %vm2588_vm4, %v13793_v14, -inf }
 0x5f5   : > { %3572 = vmax.xlane.f32.xlu0 %v3571_v59  ;;  %3569 = vmax.xlane.f32.xlu2 %v3568_v51  ;;  %18513 = vst [vmem:[#allocation49_spill] sm:$0xff] %v13804_v48  ;;  %v3361_v59 = vsel %vm2283_vm10, %v18514_v17, 0 }
 0x5f7   : > { %v3461_v24 = vpop.f32.mrf.mxu2  ;;  %v3525_v53 = vpop.permute.xlu0 %3524 }
 0x5f8   : > { %10469 = vmatmul.msk.bf16.vlgmr.msrb.gmra.mxu1 %vm2283_vm10, %v3525_v53  ;;  %v18515_v24 = vld [vmem:[#allocation55_spill] sm:$0xff] }
 0x5f9   : > { %v3287_v5 = vpop.f32.mrf.mxu0  ;;  %v3316_v26 = vpop.f32.mrf.mxu1 }
 0x5fd   : > { %3889 = vrot.lane.b32.xlu1 %v13804_v48, %s12272_s27 }
 0x5ff   : > { %v3746_v61 = vpop.permute.xlu0 %3745 }
 0x600   : > { %v3751_v51 = vsel %vm2784_vm5, %v3746_v61, 0  ;;  %10455 = vmatmul.msk.bf16.vlgmr.msra.gmra.mxu3 %vm2283_vm10, %v18515_v24  ;;  %v13824_v24 = vpack.c.b16 %v3911_v50, %v3911_v50  ;;  %v3775_v50 = vsel %vm2784_vm5, %v3770_v12, 0 }
 0x601   : > { %3370 = vmatpush.bf16.xpose.msra.mxu3 %v3361_v59  ;;  %v3401_v53 = vpop.f32.mrf.mxu0  ;;  %v13814_v5 = vpop.f32.mrf.mxu1  ;;  %3760 = vmatpush.bf16.msra.mxu2 %v3751_v51 }
 0x602   : > { %v13817_v26 = vadd.f32 %v12144_v1, %v3401_v53  ;;  %18517 = vst [vmem:[#allocation57_spill] sm:$0xff] %v13824_v24  ;;  %v18518_v53 = vld [vmem:[#allocation54_spill] sm:$0xff]  ;;  %v12145_v1 = vld [vmem:[%s18450_s16 + $0x4] ss:$0 sm:$0xff] }
 0x604   : > { %v3580_v17 = vsel %vm2588_vm4, %v13817_v26, -inf }
 0x605   : > { %3856 = vmatpush.bf16.msrb.mxu2 %v3847_v15  ;;  %3581 = vmax.xlane.f32.xlu2 %v3580_v17  ;;  %v3477_v15 = vsel %vm2283_vm10, %v13695_v20, 0  ;;  %v3228_v17 = vadd.f32 %v12145_v1, %v13763_v45  ;;  %v3871_v20 = vsel %vm2784_vm5, %v13754_v0, 0  ;;  %v13850_v0 = vpop.permute.xlu1 %3937 }
 0x607   : > { %v13822_v61 = vpop.permute.xlu0 %3961 }
 0x609   : > { %3913 = vrot.lane.b32.xlu0 %v13824_v24, %s12272_s27  ;;  %v3403_v2 = vpop.f32.mrf.mxu0  ;;  %v3432_v59 = vpop.f32.mrf.mxu1 }
 0x60a   : > { %v3562_v2 = vsel %vm2588_vm4, %v3228_v17, -inf }
 0x60f   : > { %v3818_v51 = vpop.permute.xlu0 %3817 }
 0x610   : > { %v3823_v7 = vsel %vm2784_vm5, %v3818_v51, 0  ;;  %10459 = vmatmul.msk.bf16.vlgmr.msrb.gmra.mxu3 %vm2283_vm10, %v18518_v53 }
 0x611   : > { %3486 = vmatpush.bf16.xpose.msrb.mxu3 %v3477_v15  ;;  %3832 = vmatpush.bf16.msra.mxu1 %v3823_v7  ;;  %v12146_v15 = vld [vmem:[%s18450_s16 + $0xe] ss:$0 sm:$0xff] }
 0x620   : > { %10463 = vmatmul.msk.bf16.vlgmr.msra.gmra.mxu3 %vm2283_vm10, %v13659_v46 }
 0x621   : > { %3784 = vmatpush.bf16.msra.mxu3 %v3775_v50  ;;  %v13852_v50 = vpop.permute.xlu0 %4033 }
 0x630   : > { %10467 = vmatmul.msk.bf16.vlgmr.msrb.gmra.mxu3 %vm2283_vm10, %v13679_v38 }
 0x631   : > { %3880 = vmatpush.bf16.msrb.mxu3 %v3871_v20 }
 0x633   : > { %3563 = vmax.xlane.f32.xlu0 %v3562_v2 }
 0x635   : > { %v13843_v59 = vpop.f32.mrf.mxu3 }
 0x636   : > { %18519 = vst [vmem:[#allocation51_spill] sm:$0xff] %v13843_v59 }
 0x63d   : > { %v2970_v12 = vpop.f32.mrf.mxu3 }
 0x63f   : > { %v3517_v51 = vpop.f32.mrf.mxu0 }
 0x640   : > { %v13846_v46 = vadd.f32 %v12146_v15, %v3517_v51 }
 0x642   : > { %v3592_v45 = vsel %vm2588_vm4, %v13846_v46, -inf }
 0x643   : > { %3593 = vmax.xlane.f32.xlu1 %v3592_v45 }
 0x647   : > { %v3519_v7 = vpop.f32.mrf.mxu0 }
 0x64f   : > { %v3558_v38 = vpop.xlane.xlu1 %3557 }
 0x650   : > { %v3600_v52 = vsub.f32 %v13770_v56, %v3558_v38 }
 0x657   : > { %v3552_v53 = vpop.xlane.xlu1 %3551 }
 0x668   : > { %v13855_v2 = vpop.xlane.xlu0 %3572 }
 0x66f   : > { %v3890_v1 = vpop.permute.xlu1 %3889 }
 0x670   : > { %v3895_v20 = vsel %vm2784_vm5, %v3890_v1, 0 }
 0x671   : > { %3904 = vmatpush.bf16.msra.mxu0 %v3895_v20 }
 0x673   : > { %v13857_v12 = vpop.f32.mrf.mxu3 }
 0x674   : > { %18520 = vst [vmem:[#allocation46_spill] sm:$0xff] %v13857_v12 }
 0x675   : > { %v13859_v51 = vpop.f32.mrf.mxu1 }
 0x67b   : > { %v3046_v15 = vpop.f32.mrf.mxu3  ;;  %v3914_v45 = vpop.permute.xlu0 %3913 }
 0x67c   : > { %v3919_v7 = vsel %vm2784_vm5, %v3914_v45, 0  ;;  %v4055_v45 = vunpack.c.l.b16 %v13544_v29 }
 0x67d   : > { %v3548_v59 = vpop.f32.mrf.mxu1  ;;  %3928 = vmatpush.bf16.msrb.mxu1 %v3919_v7 }
 0x67e   : > { %v13876_v27 = vpack.c.b16 %v4055_v45, %v4055_v45 }
 0x680   : > { %18522 = vst [vmem:[#allocation55_spill] sm:$0xff] %v13876_v27 }
 0x683   : > { %v3140_v11 = vpop.f32.mrf.mxu3 }
 0x684   : > { %v13866_v1 = vadd.f32 %v13863_v34, %v3140_v11  ;;  %v3561_v11 = vpop.xlane.xlu2 %3560 }
 0x686   : > { %v3553_v20 = vsel %vm2588_vm4, %v13866_v1, -inf }
 0x687   : > { %3554 = vmax.xlane.f32.xlu2 %v3553_v20 }
 0x68b   : > { %v3142_v12 = vpop.f32.mrf.mxu3 }
 0x68c   : > { %v13881_v12 = vld [vmem:[%s18450_s16 + $0x9] ss:$0 sm:$0xff] }
 0x68d   : > { %18523 = vst [vmem:[#allocation48_spill] sm:$0xff] %v13881_v12 }
 0x693   : > { %v3256_v48 = vpop.f32.mrf.mxu3 }
 0x694   : > { %v13871_v15 = vadd.f32 %v12148_v31, %v3256_v48  ;;  %v3601_v31 = vsub.f32 %v13780_v25, %v3561_v11  ;;  %v3618_v11 = vmul.f32 1.442695, %v3600_v52 }
 0x696   : > { %v3565_v59 = vsel %vm2588_vm4, %v13871_v15, -inf  ;;  %v3620_v29 = vmul.f32 1.442695, %v3601_v31 }
 0x697   : > { %3566 = vmax.xlane.f32.xlu1 %v3565_v59  ;;  %v13890_v59 = vld [vmem:[%s18450_s16 + $0xc] ss:$0 sm:$0xff] }
 0x698   : > { %18524 = vst [vmem:[#allocation54_spill] sm:$0xff] %v13890_v59  ;;  %v13894_v45 = vadd.f32 %v13890_v59, %v13787_v18  ;;  %11661 = vpow2.f32 %v3620_v29 }
 0x699   : > { %11663 = vpow2.f32 %v3618_v11 }
 0x69a   : > { %v3586_v25 = vsel %vm2588_vm4, %v13894_v45, -inf }
 0x69b   : > { %v3258_v7 = vpop.f32.mrf.mxu3 }
 0x69f   : > { %4057 = vrot.lane.b32.xlu2 %v13876_v27, %s12272_s27 }
 0x6a3   : > { %v3372_v20 = vpop.f32.mrf.mxu3 }
 0x6a4   : > { %v13884_v34 = vadd.f32 %v13881_v12, %v3372_v20  ;;  %v13899_v12 = vpop.eup %11661 }
 0x6a5   : > { %v3655_v56 = vsel %vm2588_vm4, %v13899_v12, 0.0  ;;  %v13912_v38 = vpop.eup %11663 }
 0x6a6   : > { %v3577_v48 = vsel %vm2588_vm4, %v13884_v34, -inf  ;;  %v3564_v7 = vpop.xlane.xlu0 %3563 }
 0x6a7   : > { %3578 = vmax.xlane.f32.xlu0 %v3577_v48  ;;  %v3602_v20 = vsub.f32 %v3228_v17, %v3564_v7 }
 0x6a9   : > { %v3622_v48 = vmul.f32 1.442695, %v3602_v20 }
 0x6ab   : > { %v3374_v27 = vpop.f32.mrf.mxu3  ;;  %11665 = vpow2.f32 %v3622_v48  ;;  %v13925_v48 = vld [vmem:[%s18450_s16 + $0xb] ss:$0 sm:$0xff] }
 0x6ac   : > { %v3598_v27 = vsub.f32 %v13777_v10, %v3552_v53  ;;  %v3605_v10 = vsub.f32 %v13796_v36, %v13855_v2  ;;  %v3652_v53 = vsel %vm2588_vm4, %v13912_v38, 0.0  ;;  %18526 = vst [vmem:[#allocation85_spill] sm:$0xff] %v13925_v48 }
 0x6ae   : > { %v3614_v17 = vmul.f32 1.442695, %v3598_v27 }
 0x6af   : > { %3587 = vmax.xlane.f32.xlu0 %v3586_v25  ;;  %v3628_v25 = vmul.f32 1.442695, %v3605_v10 }
 0x6b0   : > { %11667 = vpow2.f32 %v3614_v17 }
 0x6b1   : > { %v13914_v29 = vpop.eup %11665  ;;  %11669 = vpow2.f32 %v3628_v25 }
 0x6b2   : > { %v3658_v20 = vsel %vm2588_vm4, %v13914_v29, 0.0 }
 0x6b3   : > { %v3488_v31 = vpop.f32.mrf.mxu3 }
 0x6b4   : > { %v13905_v18 = vadd.f32 %v13902_v35, %v3488_v31  ;;  %v13929_v31 = vadd.f32 %v13925_v48, %v13814_v5  ;;  %v3570_v5 = vpop.xlane.xlu2 %3569 }
 0x6b5   : > { %v3604_v17 = vsub.f32 %v13793_v14, %v3570_v5  ;;  %v18530_v5 = vld [vmem:[#allocation36_spill] sm:$0xff] }
 0x6b6   : > { %v3589_v52 = vsel %vm2588_vm4, %v13905_v18, -inf  ;;  %v13922_v11 = vpop.eup %11667  ;;  %v3583_v2 = vsel %vm2588_vm4, %v13929_v31, -inf }
 0x6b7   : > { %3656 = vadd.xlane.f32.xlu0 %v3655_v56  ;;  %3590 = vmax.xlane.f32.xlu1 %v3589_v52  ;;  %v3646_v36 = vsel %vm2588_vm4, %v13922_v11, 0.0  ;;  %v13935_v27 = vpop.eup %11669  ;;  %v13938_v56 = vld [vmem:[%s18450_s16 + $0x8] ss:$0 sm:$0xff] }
 0x6b8   : > { %18527 = vst [vmem:[#allocation86_spill] sm:$0xff] %v13938_v56  ;;  %v13942_v52 = vadd.f32 %v13938_v56, %v13774_v23 }
 0x6ba   : > { %v3574_v10 = vsel %vm2588_vm4, %v13942_v52, -inf }
 0x6bb   : > { %v3490_v7 = vpop.f32.mrf.mxu3 }
 0x6bc   : > { %v3667_v7 = vsel %vm2588_vm4, %v13935_v27, 0.0 }
 0x6bf   : > { %3653 = vadd.xlane.f32.xlu1 %v3652_v53  ;;  %3659 = vadd.xlane.f32.xlu0 %v3658_v20  ;;  %v3626_v53 = vmul.f32 1.442695, %v3604_v17  ;;  %v13950_v20 = vld [vmem:[%s18450_s16 + $0xf] ss:$0 sm:$0xff]  ;;  %v3582_v17 = vpop.xlane.xlu2 %3581 }
 0x6c0   : > { %18528 = vst [vmem:[#allocation87_spill] sm:$0xff] %v13950_v20  ;;  %v13954_v25 = vadd.f32 %v13950_v20, %v13859_v51  ;;  %v3983_v51 = vunpack.c.l.b16 %v13498_v22 }
 0x6c1   : > { %11671 = vpow2.f32 %v3626_v53 }
 0x6c2   : > { %v3595_v23 = vsel %vm2588_vm4, %v13954_v25, -inf }
 0x6c7   : > { %3647 = vadd.xlane.f32.xlu1 %v3646_v36  ;;  %v13958_v14 = vpop.eup %11671 }
 0x6c8   : > { %3584 = vmax.xlane.f32.xlu2 %v3583_v2  ;;  %v3664_v36 = vsel %vm2588_vm4, %v13958_v14, 0.0  ;;  %v18529_v2 = vld [vmem:[#allocation35_spill] sm:$0xff] }
 0x6cf   : > { %3668 = vadd.xlane.f32.xlu1 %v3667_v7  ;;  %v13967_v7 = vpack.c.b16 %v3983_v51, %v3983_v51  ;;  %v13978_v51 = vpop.xlane.xlu1 %3593 }
 0x6d0   : > { %3575 = vmax.xlane.f32.xlu2 %v3574_v10  ;;  %v4007_v10 = vunpack.c.l.b16 %v13520_v60 }
 0x6d1   : > { %18531 = vst [vmem:[#allocation35_spill] sm:$0xff] %v13967_v7 }
 0x6d2   : > { %v13974_v35 = vpack.c.b16 %v4007_v10, %v4007_v10 }
 0x6d4   : > { %18532 = vst [vmem:[#allocation88_spill] sm:$0xff] %v13974_v35 }
 0x6d8   : > { %3596 = vmax.xlane.f32.xlu2 %v3595_v23 }
 0x6e0   : > { %3665 = vadd.xlane.f32.xlu2 %v3664_v36  ;;  %v3608_v36 = vsub.f32 %v13817_v26, %v3582_v17 }
 0x6e2   : > { %v3634_v22 = vmul.f32 1.442695, %v3608_v36 }
 0x6e8   : > { %4128 = vrot.lane.b32.xlu1 %v18529_v2, %s12273_s18 }
 0x6f0   : > { %4151 = vrot.lane.b32.xlu1 %v18530_v5, %s12273_s18 }
 0x6f8   : > { %3985 = vrot.lane.b32.xlu1 %v13967_v7, %s12272_s27 }
 0x6fa   : > { %v3555_v53 = vpop.xlane.xlu2 %3554 }
 0x6fb   : > { %v3599_v23 = vsub.f32 %v13866_v1, %v3555_v53 }
 0x6fd   : > { %v3616_v56 = vmul.f32 1.442695, %v3599_v23 }
 0x6ff   : > { %11673 = vpow2.f32 %v3616_v56 }
 0x700   : > { %4009 = vrot.lane.b32.xlu1 %v13974_v35, %s12272_s27  ;;  %11675 = vpow2.f32 %v3634_v22 }
 0x705   : > { %v13980_v5 = vpop.eup %11673 }
 0x706   : > { %v3649_v60 = vsel %vm2588_vm4, %v13980_v5, 0.0  ;;  %v13984_v53 = vpop.eup %11675 }
 0x707   : > { %3650 = vadd.xlane.f32.xlu2 %v3649_v60  ;;  %v3676_v56 = vsel %vm2588_vm4, %v13984_v53, 0.0 }
 0x70a   : > { %v3567_v1 = vpop.xlane.xlu1 %3566 }
 0x70b   : > { %v3603_v26 = vsub.f32 %v13871_v15, %v3567_v1 }
 0x70d   : > { %v3624_v17 = vmul.f32 1.442695, %v3603_v26 }
 0x70f   : > { %11677 = vpow2.f32 %v3624_v17  ;;  %3677 = vadd.xlane.f32.xlu2 %v3676_v56  ;;  %v18533_v17 = vld [vmem:[#allocation37_spill] sm:$0xff] }
 0x715   : > { %v13989_v10 = vpop.eup %11677 }
 0x716   : > { %v3661_v23 = vsel %vm2588_vm4, %v13989_v10, 0.0 }
 0x717   : > { %3662 = vadd.xlane.f32.xlu2 %v3661_v23 }
 0x71a   : > { %v3579_v36 = vpop.xlane.xlu0 %3578 }
 0x722   : > { %v3588_v22 = vpop.xlane.xlu0 %3587 }
 0x723   : > { %v3610_v60 = vsub.f32 %v13894_v45, %v3588_v22  ;;  %v14003_v45 = vpop.permute.xlu2 %4057  ;;  %v18534_v22 = vld [vmem:[#allocation40_spill] sm:$0xff] }
 0x725   : > { %v3638_v20 = vmul.f32 1.442695, %v3610_v60 }
 0x727   : > { %11679 = vpow2.f32 %v3638_v20 }
 0x72a   : > { %v13994_v59 = vpop.xlane.xlu1 %3590  ;;  %v3657_v15 = vpop.xlane.xlu0 %3656 }
 0x72b   : > { %11681 = vrcp.f32 %v3657_v15  ;;  %v4103_v15 = vunpack.c.l.b16 %v13614_v39 }
 0x72d   : > { %v13996_v1 = vpop.eup %11679 }
 0x72e   : > { %v3682_v26 = vsel %vm2588_vm4, %v13996_v1, 0.0 }
 0x72f   : > { %4149 = vrot.lane.b32.xlu2 %v18533_v17, %s12273_s18  ;;  %3683 = vadd.xlane.f32.xlu1 %v3682_v26 }
 0x731   : > { %v11682_v56 = vpop.eup %11681 }
 0x732   : > { %v3713_v23 = vmul.f32 %v11682_v56, %v13899_v12  ;;  %v3654_v48 = vpop.xlane.xlu1 %3653  ;;  %v14011_v56 = vpack.c.b16 %v4103_v15, %v4103_v15  ;;  %v3943_v15 = vsel %vm2784_vm5, %v13850_v0, 0 }
 0x733   : > { %11683 = vrcp.f32 %v3654_v48 }
 0x734   : > { %v3729_v20 = vpack.c.bf16 %v3713_v23, %v3713_v23 }
 0x736   : > { %10473 = vmatmul.msk.bf16.vlgmr.msra.gmra.mxu1 %vm2588_vm4, %v3729_v20 }
 0x737   : > { %4243 = vrot.lane.b32.xlu2 %v18534_v22, %s12273_s18 }
 0x739   : > { %v11684_v60 = vpop.eup %11683 }
 0x73a   : > { %v3712_v3 = vmul.f32 %v11684_v60, %v13912_v38  ;;  %v3648_v17 = vpop.xlane.xlu1 %3647 }
 0x73b   : > { %11685 = vrcp.f32 %v3648_v17  ;;  %v3585_v26 = vpop.xlane.xlu2 %3584  ;;  %v3660_v17 = vpop.xlane.xlu0 %3659 }
 0x73c   : > { %v3728_v58 = vpack.c.bf16 %v3712_v3, %v3712_v3  ;;  %v3609_v12 = vsub.f32 %v13929_v31, %v3585_v26 }
 0x73e   : > { %v3636_v48 = vmul.f32 1.442695, %v3609_v12  ;;  %10472 = vmatmul.msk.bf16.vlgmr.msrb.gmra.mxu0 %vm2588_vm4, %v3728_v58  ;;  %v3607_v58 = vsub.f32 %v13884_v34, %v3579_v36 }
 0x73f   : > { %4105 = vrot.lane.b32.xlu2 %v14011_v56, %s12272_s27 }
 0x740   : > { %11687 = vpow2.f32 %v3636_v48  ;;  %v3632_v0 = vmul.f32 1.442695, %v3607_v58 }
 0x741   : > { %v11686_v23 = vpop.eup %11685 }
 0x742   : > { %v3710_v39 = vmul.f32 %v11686_v23, %v13922_v11  ;;  %v3669_v20 = vpop.xlane.xlu1 %3668  ;;  %v18535_v11 = vld [vmem:[#allocation41_spill] sm:$0xff] }
 0x743   : > { %11689 = vrcp.f32 %v3669_v20  ;;  %v3576_v38 = vpop.xlane.xlu2 %3575 }
 0x744   : > { %v3726_v60 = vpack.c.bf16 %v3710_v39, %v3710_v39  ;;  %v3606_v3 = vsub.f32 %v13942_v52, %v3576_v38  ;;  %11691 = vrcp.f32 %v3660_v17  ;;  %v18536_v52 = vld [vmem:[#allocation34_spill] sm:$0xff] }
 0x746   : > { %v14018_v31 = vpop.eup %11687  ;;  %v3630_v26 = vmul.f32 1.442695, %v3606_v3  ;;  %10470 = vmatmul.msk.bf16.vlgmr.msra.gmra.mxu2 %vm2588_vm4, %v3726_v60 }
 0x747   : > { %3952 = vmatpush.bf16.msra.mxu2 %v3943_v15  ;;  %4241 = vrot.lane.b32.xlu2 %v18535_v11, %s12273_s18  ;;  %v3679_v12 = vsel %vm2588_vm4, %v14018_v31, 0.0 }
 0x748   : > { %11693 = vpow2.f32 %v3630_v26  ;;  %3680 = vadd.xlane.f32.xlu0 %v3679_v12  ;;  %4126 = vrot.lane.b32.xlu1 %v18536_v52, %s12273_s18 }
 0x749   : > { %v11690_v48 = vpop.eup %11689  ;;  %11695 = vpow2.f32 %v3632_v0 }
 0x74a   : > { %v3717_v34 = vmul.f32 %v11690_v48, %v13935_v27  ;;  %v11692_v39 = vpop.eup %11691 }
 0x74b   : > { %v3597_v36 = vpop.xlane.xlu2 %3596  ;;  %v3714_v60 = vmul.f32 %v11692_v39, %v13914_v29 }
 0x74c   : > { %v3733_v23 = vpack.c.bf16 %v3717_v34, %v3717_v34  ;;  %v3613_v38 = vsub.f32 %v13954_v25, %v3597_v36  ;;  %v4039_v25 = vsel %vm2784_vm5, %v13852_v50, 0  ;;  %v3612_v36 = vsub.f32 %v13846_v46, %v13978_v51 }
 0x74d   : > { %v3730_v58 = vpack.c.bf16 %v3714_v60, %v3714_v60 }
 0x74e   : > { %v14031_v20 = vpop.eup %11693  ;;  %10477 = vmatmul.msk.bf16.vlgmr.msrb.gmra.mxu1 %vm2588_vm4, %v3733_v23  ;;  %v3644_v27 = vmul.f32 1.442695, %v3613_v38  ;;  %v3642_v39 = vmul.f32 1.442695, %v3612_v36 }
 0x74f   : > { %4174 = vrot.lane.b32.xlu2 %v13442_v54, %s12273_s18  ;;  %v3670_v17 = vsel %vm2588_vm4, %v14031_v20, 0.0  ;;  %v14040_v15 = vpop.eup %11695 }
 0x750   : > { %3671 = vadd.xlane.f32.xlu0 %v3670_v17  ;;  %v3673_v29 = vsel %vm2588_vm4, %v14040_v15, 0.0 }
 0x753   : > { %v3666_v3 = vpop.xlane.xlu2 %3665 }
 0x754   : > { %11697 = vrcp.f32 %v3666_v3  ;;  %v4079_v3 = vunpack.c.l.b16 %v13570_v62  ;;  %v18538_v62 = vld [vmem:[#allocation39_spill] sm:$0xff] }
 0x755   : > { %11699 = vpow2.f32 %v3644_v27  ;;  %v18537_v27 = vld [vmem:[#allocation38_spill] sm:$0xff] }
 0x756   : > { %10474 = vmatmul.msk.bf16.vlgmr.msrb.gmra.mxu2 %vm2588_vm4, %v3730_v58  ;;  %11701 = vpow2.f32 %v3642_v39  ;;  %v14078_v58 = vpack.c.b16 %v4079_v3, %v4079_v3  ;;  %v4063_v3 = vsel %vm2784_vm5, %v14003_v45, 0  ;;  %v3611_v45 = vsub.f32 %v13905_v18, %v13994_v59 }
 0x757   : > { %4048 = vmatpush.bf16.msrb.mxu2 %v4039_v25  ;;  %4310 = vrot.lane.b32.xlu2 %v13541_v41, %s12273_s18 }
 0x758   : > { %3674 = vadd.xlane.f32.xlu0 %v3673_v29 }
 0x75a   : > { %v11698_v26 = vpop.eup %11697  ;;  %v14049_v12 = vpop.permute.xlu1 %4128 }
 0x75b   : > { %v3716_v48 = vmul.f32 %v11698_v26, %v13958_v14  ;;  %v14052_v0 = vpop.eup %11699 }
 0x75c   : > { %v3691_v50 = vsel %vm2588_vm4, %v14052_v0, 0.0  ;;  %v14066_v17 = vpop.eup %11701 }
 0x75d   : > { %v3732_v34 = vpack.c.bf16 %v3716_v48, %v3716_v48  ;;  %v3688_v46 = vsel %vm2588_vm4, %v14066_v17, 0.0 }
 0x75f   : > { %4172 = vrot.lane.b32.xlu2 %v13452_v8, %s12273_s18  ;;  %10476 = vmatmul.msk.bf16.vlgmr.msra.gmra.mxu0 %vm2588_vm4, %v3732_v34 }
 0x760   : > { %3692 = vadd.xlane.f32.xlu0 %v3691_v50  ;;  %v3967_v50 = vsel %vm2784_vm5, %v13822_v61, 0 }
 0x762   : > { %v14061_v23 = vpop.permute.xlu1 %4151 }
 0x767   : > { %4427 = vrot.lane.b32.xlu2 %v13563_v40, %s12273_s18 }
 0x76a   : > { %v3986_v14 = vpop.permute.xlu1 %3985 }
 0x76b   : > { %v3991_v38 = vsel %vm2784_vm5, %v3986_v14, 0 }
 0x76c   : > { %4000 = vmatpush.bf16.msrb.mxu0 %v3991_v38 }
 0x76f   : > { %4402 = vrot.lane.b32.xlu2 %v13584_v44, %s12273_s18 }
 0x772   : > { %v4010_v51 = vpop.permute.xlu1 %4009  ;;  %3689 = vadd.xlane.f32.xlu1 %v3688_v46  ;;  %v18540_v46 = vld [vmem:[#allocation43_spill] sm:$0xff] }
 0x773   : > { %v4015_v60 = vsel %vm2784_vm5, %v4010_v51, 0 }
 0x774   : > { %4220 = vrot.lane.b32.xlu0 %v18537_v27, %s12273_s18  ;;  %4024 = vmatpush.bf16.msra.mxu1 %v4015_v60 }
 0x777   : > { %4287 = vrot.lane.b32.xlu2 %v13598_v28, %s12273_s18 }
 0x77a   : > { %v3651_v25 = vpop.xlane.xlu2 %3650 }
 0x77b   : > { %11703 = vrcp.f32 %v3651_v25 }
 0x77c   : > { %4081 = vrot.lane.b32.xlu0 %v14078_v58, %s12272_s27 }
 0x77f   : > { %4356 = vrot.lane.b32.xlu2 %v13612_v43, %s12273_s18 }
 0x781   : > { %v11704_v29 = vpop.eup %11703 }
 0x782   : > { %v3711_v26 = vmul.f32 %v11704_v29, %v13980_v5  ;;  %v3678_v48 = vpop.xlane.xlu2 %3677  ;;  %v18539_v5 = vld [vmem:[#allocation42_spill] sm:$0xff] }
 0x783   : > { %11705 = vrcp.f32 %v3678_v48 }
 0x784   : > { %v3727_v34 = vpack.c.bf16 %v3711_v26, %v3711_v26  ;;  %4218 = vrot.lane.b32.xlu0 %v18538_v62, %s12273_s18  ;;  %v3640_v26 = vmul.f32 1.442695, %v3611_v45 }
 0x786   : > { %10471 = vmatmul.msk.bf16.vlgmr.msra.gmra.mxu3 %vm2588_vm4, %v3727_v34 }
 0x787   : > { %3976 = vmatpush.bf16.msra.mxu3 %v3967_v50  ;;  %4473 = vrot.lane.b32.xlu2 %v13627_v16, %s12273_s18 }
 0x789   : > { %v11706_v36 = vpop.eup %11705 }
 0x78a   : > { %v3720_v39 = vmul.f32 %v11706_v36, %v13984_v53  ;;  %v3663_v14 = vpop.xlane.xlu2 %3662  ;;  %v18556_v36 = vld [vmem:[#allocation78_spill] sm:$0xff] }
 0x78b   : > { %11707 = vrcp.f32 %v3663_v14  ;;  %4312 = vrot.lane.b32.xlu1 %v18539_v5, %s12273_s18 }
 0x78c   : > { %v3736_v38 = vpack.c.bf16 %v3720_v39, %v3720_v39  ;;  %4335 = vrot.lane.b32.xlu0 %v18540_v46, %s12273_s18  ;;  %11709 = vpow2.f32 %v3640_v26 }
 0x78e   : > { %10480 = vmatmul.msk.bf16.vlgmr.msrb.gmra.mxu0 %vm2588_vm4, %v3736_v38 }
 0x78f   : > { %4791 = vrot.lane.b32.xlu2 %v13573_v13, %s12273_s18 }
 0x791   : > { %v11708_v61 = vpop.eup %11707 }
 0x792   : > { %v3715_v51 = vmul.f32 %v11708_v61, %v13989_v10  ;;  %v14101_v60 = vpop.permute.xlu2 %4149  ;;  %v14127_v48 = vpop.eup %11709 }
 0x793   : > { %4195 = vrot.lane.b32.xlu1 %v13457_v49, %s12273_s18  ;;  %v3685_v59 = vsel %vm2588_vm4, %v14127_v48, 0.0 }
 0x794   : > { %v3731_v53 = vpack.c.bf16 %v3715_v51, %v3715_v51 }
 0x796   : > { %10475 = vmatmul.msk.bf16.vlgmr.msrb.gmra.mxu3 %vm2588_vm4, %v3731_v53 }
 0x797   : > { %4072 = vmatpush.bf16.msrb.mxu3 %v4063_v3  ;;  %4854 = vrot.lane.b32.xlu2 %v13655_v32, %s12273_s18 }
 0x79a   : > { %v14110_v25 = vpop.permute.xlu2 %4243 }
 0x79b   : > { %4266 = vrot.lane.b32.xlu1 %v13463_v4, %s12273_s18 }
 0x79f   : > { %4938 = vrot.lane.b32.xlu2 %v13748_v6, %s12273_s18 }
 0x7a2   : > { %v4106_v10 = vpop.permute.xlu2 %4105 }
 0x7a3   : > { %v4111_v29 = vsel %vm2784_vm5, %v4106_v10, 0  ;;  %4425 = vrot.lane.b32.xlu1 %v13482_v47, %s12273_s18 }
 0x7a4   : > { %4120 = vmatpush.bf16.msrb.mxu1 %v4111_v29 }
 0x7a7   : > { %4896 = vrot.lane.b32.xlu2 %v13967_v7, %s12273_s18 }
 0x7ab   : > { %4358 = vrot.lane.b32.xlu1 %v13503_v9, %s12273_s18 }
 0x7af   : > { %4917 = vrot.lane.b32.xlu2 %v13974_v35, %s12273_s18 }
 0x7b3   : > { %4379 = vrot.lane.b32.xlu1 %v13518_v55, %s12273_s18  ;;  %v14131_v34 = vpop.f32.mrf.mxu1 }
 0x7b4   : > { %18541 = vst [vmem:[#allocation40_spill] sm:$0xff] %v14131_v34 }
 0x7b6   : > { %3686 = vadd.xlane.f32.xlu0 %v3685_v59  ;;  %v4134_v59 = vsel %vm2283_vm10, %v14049_v12, 0  ;;  %v4157_v12 = vsel %vm2283_vm10, %v14061_v23, 0 }
 0x7b7   : > { %5024 = vrot.lane.b32.xlu2 %v18529_v2, %s12274_s7 }
 0x7bb   : > { %v14137_v18 = vpop.f32.mrf.mxu0  ;;  %4448 = vrot.lane.b32.xlu1 %v13547_v30, %s12273_s18  ;;  %v3836_v50 = vpop.f32.mrf.mxu1 }
 0x7bc   : > { %18542 = vst [vmem:[#allocation41_spill] sm:$0xff] %v14137_v18  ;;  %v3681_v39 = vpop.xlane.xlu0 %3680 }
 0x7bd   : > { %11711 = vrcp.f32 %v3681_v39  ;;  %v18545_v39 = vld [vmem:[#allocation60_spill] sm:$0xff] }
 0x7c3   : > { %v11712_v14 = vpop.eup %11711  ;;  %v3812_v38 = vpop.f32.mrf.mxu0  ;;  %4686 = vrot.lane.b32.xlu1 %v13729_v57, %s12273_s18 }
 0x7c4   : > { %v3721_v61 = vmul.f32 %v11712_v14, %v14018_v31  ;;  %v3672_v51 = vpop.xlane.xlu0 %3671  ;;  %v3684_v31 = vpop.xlane.xlu1 %3683 }
 0x7c5   : > { %11713 = vrcp.f32 %v3672_v51 }
 0x7c6   : > { %v3737_v2 = vpack.c.bf16 %v3721_v61, %v3721_v61 }
 0x7c8   : > { %10481 = vmatmul.msk.bf16.vlgmr.msra.gmra.mxu1 %vm2588_vm4, %v3737_v2 }
 0x7c9   : > { %v14147_v53 = vpop.f32.mrf.mxu2 }
 0x7ca   : > { %18543 = vst [vmem:[#allocation34_spill] sm:$0xff] %v14147_v53  ;;  %4197 = vrot.lane.b32.xlu0 %v13531_v42, %s12273_s18 }
 0x7cb   : > { %v11714_v3 = vpop.eup %11713  ;;  %4770 = vrot.lane.b32.xlu1 %v13645_v37, %s12273_s18  ;;  %v14153_v10 = vpop.f32.mrf.mxu1 }
 0x7cc   : > { %18544 = vst [vmem:[#allocation38_spill] sm:$0xff] %v14153_v10  ;;  %v3718_v29 = vmul.f32 %v11714_v3, %v14031_v20  ;;  %v3675_v45 = vpop.xlane.xlu0 %3674  ;;  %v18558_v10 = vld [vmem:[#allocation55_spill] sm:$0xff] }
 0x7cd   : > { %11715 = vrcp.f32 %v3675_v45 }
 0x7ce   : > { %v3734_v26 = vpack.c.bf16 %v3718_v29, %v3718_v29  ;;  %11717 = vrcp.f32 %v3684_v31 }
 0x7d0   : > { %10478 = vmatmul.msk.bf16.vlgmr.msra.gmra.mxu2 %vm2588_vm4, %v3734_v26  ;;  %v4127_v26 = vpop.permute.xlu1 %4126 }
 0x7d1   : > { %4143 = vmatpush.bf16.xpose.msra.mxu2 %v4134_v59  ;;  %v3764_v50 = vpop.f32.mrf.mxu2 }
 0x7d2   : > { %4333 = vrot.lane.b32.xlu0 %v18545_v39, %s12273_s18 }
 0x7d3   : > { %v11716_v14 = vpop.eup %11715  ;;  %4728 = vrot.lane.b32.xlu1 %v13590_v63, %s12273_s18  ;;  %v3932_v20 = vpop.f32.mrf.mxu1 }
 0x7d4   : > { %v3719_v38 = vmul.f32 %v11716_v14, %v14040_v15  ;;  %v3693_v61 = vpop.xlane.xlu0 %3692  ;;  %v11718_v2 = vpop.eup %11717 }
 0x7d5   : > { %11719 = vrcp.f32 %v3693_v61  ;;  %v3722_v29 = vmul.f32 %v11718_v2, %v13996_v1  ;;  %v14183_v14 = vpop.permute.xlu2 %4241 }
 0x7d6   : > { %v3735_v51 = vpack.c.bf16 %v3719_v38, %v3719_v38 }
 0x7d7   : > { %v3738_v59 = vpack.c.bf16 %v3722_v29, %v3722_v29 }
 0x7d8   : > { %10479 = vmatmul.msk.bf16.vlgmr.msra.gmra.mxu3 %vm2588_vm4, %v3735_v51 }
 0x7d9   : > { %4166 = vmatpush.bf16.xpose.msra.mxu3 %v4157_v12  ;;  %v14167_v3 = vpop.f32.mrf.mxu2 }
 0x7da   : > { %18546 = vst [vmem:[#allocation39_spill] sm:$0xff] %v14167_v3  ;;  %4404 = vrot.lane.b32.xlu0 %v13567_v21, %s12273_s18  ;;  %v4249_v3 = vsel %vm2283_vm10, %v14110_v25, 0 }
 0x7db   : > { %v11720_v45 = vpop.eup %11719  ;;  %4833 = vrot.lane.b32.xlu1 %v13824_v24, %s12273_s18  ;;  %v18571_v24 = vld [vmem:[#allocation48_spill] sm:$0xff] }
 0x7dc   : > { %v3725_v15 = vmul.f32 %v11720_v45, %v14052_v0  ;;  %v14175_v31 = vpop.f32.mrf.mxu0 }
 0x7dd   : > { %18547 = vst [vmem:[#allocation42_spill] sm:$0xff] %v14175_v31  ;;  %v4175_v2 = vpop.permute.xlu2 %4174 }
 0x7de   : > { %v3741_v50 = vpack.c.bf16 %v3725_v15, %v3725_v15  ;;  %v4180_v15 = vsel %vm2283_vm10, %v4175_v2, 0 }
 0x7e0   : > { %10482 = vmatmul.msk.bf16.vlgmr.msrb.gmra.mxu2 %vm2588_vm4, %v3738_v59  ;;  %10485 = vmatmul.msk.bf16.vlgmr.msrb.gmra.mxu1 %vm2588_vm4, %v3741_v50  ;;  %v18548_v50 = vld [vmem:[#allocation67_spill] sm:$0xff] }
 0x7e1   : > { %v3860_v1 = vpop.f32.mrf.mxu2 }
 0x7e2   : > { %4289 = vrot.lane.b32.xlu0 %v13588_v33, %s12273_s18 }
 0x7e4   : > { %v3908_v20 = vpop.f32.mrf.mxu0 }
 0x7e5   : > { %v3690_v0 = vpop.xlane.xlu1 %3689  ;;  %v4311_v1 = vpop.permute.xlu2 %4310  ;;  %v18549_v20 = vld [vmem:[#allocation52_spill] sm:$0xff] }
 0x7e6   : > { %11721 = vrcp.f32 %v3690_v0  ;;  %v4221_v38 = vpop.permute.xlu0 %4220 }
 0x7e7   : > { %v4226_v61 = vsel %vm2283_vm10, %v4221_v38, 0 }
 0x7e8   : > { %4235 = vmatpush.bf16.xpose.msrb.mxu2 %v4226_v61  ;;  %v18550_v61 = vld [vmem:[#allocation76_spill] sm:$0xff] }
 0x7ea   : > { %4264 = vrot.lane.b32.xlu0 %v13603_v19, %s12273_s18 }
 0x7ec   : > { %v11722_v51 = vpop.eup %11721 }
 0x7ed   : > { %v3724_v12 = vmul.f32 %v11722_v51, %v14066_v17 }
 0x7ee   : > { %v4082_v29 = vpop.permute.xlu0 %4081 }
 0x7ef   : > { %v4087_v45 = vsel %vm2784_vm5, %v4082_v29, 0  ;;  %v3740_v59 = vpack.c.bf16 %v3724_v12, %v3724_v12  ;;  %v18552_v29 = vld [vmem:[#allocation69_spill] sm:$0xff] }
 0x7f0   : > { %10486 = vmatmul.msk.bf16.vlgmr.msra.gmra.mxu2 %vm2283_vm10, %v4127_v26  ;;  %4096 = vmatpush.bf16.msra.mxu0 %v4087_v45  ;;  %v4173_v26 = vpop.permute.xlu2 %4172 }
 0x7f2   : > { %4381 = vrot.lane.b32.xlu0 %v18548_v50, %s12273_s18 }
 0x7f3   : > { %10484 = vmatmul.msk.bf16.vlgmr.msra.gmra.mxu0 %vm2588_vm4, %v3740_v59 }
 0x7f4   : > { %4189 = vmatpush.bf16.xpose.msrb.mxu0 %v4180_v15 }
 0x7f6   : > { %v4219_v38 = vpop.permute.xlu0 %4218 }
 0x7fa   : > { %4450 = vrot.lane.b32.xlu0 %v18549_v20, %s12273_s18 }
 0x7fd   : > { %v4313_v17 = vpop.permute.xlu1 %4312 }
 0x7fe   : > { %v4318_v0 = vsel %vm2283_vm10, %v4313_v17, 0 }
 0x7ff   : > { %4327 = vmatpush.bf16.xpose.msra.mxu2 %v4318_v0  ;;  %v18554_v0 = vld [vmem:[#allocation47_spill] sm:$0xff] }
 0x800   : > { %10490 = vmatmul.msk.bf16.vlgmr.msrb.gmra.mxu2 %vm2283_vm10, %v4219_v38 }
 0x802   : > { %4471 = vrot.lane.b32.xlu0 %v18550_v61, %s12273_s18 }
 0x803   : > { %10488 = vmatmul.msk.bf16.vlgmr.msrb.gmra.mxu0 %vm2283_vm10, %v4173_v26 }
 0x805   : > { %v4196_v51 = vpop.permute.xlu1 %4195 }
 0x809   : > { %v14202_v2 = vpop.f32.mrf.mxu3 }
 0x80a   : > { %18551 = vst [vmem:[#allocation43_spill] sm:$0xff] %v14202_v2  ;;  %4707 = vrot.lane.b32.xlu0 %v18552_v29, %s12273_s18 }
 0x80b   : > { %v14208_v45 = vpop.f32.mrf.mxu0 }
 0x80c   : > { %18553 = vst [vmem:[#allocation60_spill] sm:$0xff] %v14208_v45 }
 0x80d   : > { %v4267_v15 = vpop.permute.xlu1 %4266 }
 0x80e   : > { %v4272_v59 = vsel %vm2283_vm10, %v4267_v15, 0 }
 0x80f   : > { %4281 = vmatpush.bf16.xpose.msra.mxu0 %v4272_v59 }
 0x810   : > { %10494 = vmatmul.msk.bf16.vlgmr.msra.gmra.mxu2 %vm2283_vm10, %v4311_v1  ;;  %v4336_v1 = vpop.permute.xlu0 %4335 }
 0x811   : > { %v3788_v17 = vpop.f32.mrf.mxu3  ;;  %v4341_v34 = vsel %vm2283_vm10, %v4336_v1, 0 }
 0x812   : > { %4749 = vrot.lane.b32.xlu0 %v18554_v0, %s12273_s18  ;;  %v18557_v17 = vld [vmem:[#allocation49_spill] sm:$0xff] }
 0x813   : > { %v4004_v38 = vpop.f32.mrf.mxu0 }
 0x815   : > { %v14214_v26 = vpop.permute.xlu1 %4425 }
 0x819   : > { %v14216_v23 = vpop.f32.mrf.mxu3 }
 0x81a   : > { %18555 = vst [vmem:[#allocation67_spill] sm:$0xff] %v14216_v23  ;;  %4875 = vrot.lane.b32.xlu0 %v18556_v36, %s12273_s18 }
 0x81d   : > { %v4359_v31 = vpop.permute.xlu1 %4358 }
 0x81e   : > { %v4364_v15 = vsel %vm2283_vm10, %v4359_v31, 0  ;;  %v4428_v31 = vpop.permute.xlu2 %4427 }
 0x81f   : > { %4373 = vmatpush.bf16.xpose.msrb.mxu0 %v4364_v15 }
 0x821   : > { %v3884_v59 = vpop.f32.mrf.mxu3 }
 0x822   : > { %4812 = vrot.lane.b32.xlu0 %v18557_v17, %s12273_s18 }
 0x825   : > { %v4380_v23 = vpop.permute.xlu1 %4379 }
 0x826   : > { %v4403_v18 = vpop.permute.xlu2 %4402 }
 0x829   : > { %v3687_v38 = vpop.xlane.xlu0 %3686 }
 0x82a   : > { %11723 = vrcp.f32 %v3687_v38  ;;  %4959 = vrot.lane.b32.xlu0 %v18558_v10, %s12273_s18 }
 0x82d   : > { %v14232_v38 = vpop.permute.xlu1 %4448 }
 0x830   : > { %v11724_v53 = vpop.eup %11723 }
 0x831   : > { %v3723_v12 = vmul.f32 %v11724_v53, %v14127_v48 }
 0x833   : > { %v3739_v2 = vpack.c.bf16 %v3723_v12, %v3723_v12 }
 0x835   : > { %10483 = vmatmul.msk.bf16.vlgmr.msrb.gmra.mxu3 %vm2588_vm4, %v3739_v2  ;;  %v4687_v53 = vpop.permute.xlu1 %4686 }
 0x836   : > { %4258 = vmatpush.bf16.xpose.msrb.mxu3 %v4249_v3 }
 0x83c   : > { %v4198_v15 = vpop.permute.xlu0 %4197 }
 0x83d   : > { %v4203_v59 = vsel %vm2283_vm10, %v4198_v15, 0  ;;  %v4288_v15 = vpop.permute.xlu2 %4287  ;;  %v4771_v1 = vpop.permute.xlu1 %4770 }
 0x83e   : > { %4212 = vmatpush.bf16.xpose.msra.mxu1 %v4203_v59  ;;  %v4692_v59 = vsel %vm2784_vm5, %v4687_v53, 0 }
 0x844   : > { %v4334_v10 = vpop.permute.xlu0 %4333 }
 0x845   : > { %v14235_v48 = vpop.f32.mrf.mxu1  ;;  %10487 = vmatmul.msk.bf16.vlgmr.msra.gmra.mxu3 %vm2283_vm10, %v14101_v60  ;;  %10489 = vmatmul.msk.bf16.vlgmr.msra.gmra.mxu1 %vm2283_vm10, %v4196_v51  ;;  %v4433_v51 = vsel %vm2283_vm10, %v4428_v31, 0  ;;  %v4357_v53 = vpop.permute.xlu2 %4356 }
 0x846   : > { %18559 = vst [vmem:[#allocation52_spill] sm:$0xff] %v14235_v48  ;;  %4350 = vmatpush.bf16.xpose.msra.mxu3 %v4341_v34  ;;  %v4776_v34 = vsel %vm2784_vm5, %v4771_v1, 0 }
 0x84c   : > { %v4405_v3 = vpop.permute.xlu0 %4404 }
 0x84d   : > { %v4028_v2 = vpop.f32.mrf.mxu1  ;;  %v4410_v12 = vsel %vm2283_vm10, %v4405_v3, 0 }
 0x84e   : > { %4419 = vmatpush.bf16.xpose.msrb.mxu2 %v4410_v12 }
 0x853   : > { %v14244_v35 = vpop.f32.mrf.mxu2 }
 0x854   : > { %18560 = vst [vmem:[#allocation76_spill] sm:$0xff] %v14244_v35  ;;  %v4290_v60 = vpop.permute.xlu0 %4289 }
 0x855   : > { %v4295_v6 = vsel %vm2283_vm10, %v4290_v60, 0  ;;  %10491 = vmatmul.msk.bf16.vlgmr.msrb.gmra.mxu3 %vm2283_vm10, %v14183_v14  ;;  %10498 = vmatmul.msk.bf16.vlgmr.msrb.gmra.mxu2 %vm2283_vm10, %v4403_v18  ;;  %v4474_v18 = vpop.permute.xlu2 %4473 }
 0x856   : > { %4701 = vmatpush.bf16.msra.mxu2 %v4692_v59  ;;  %4442 = vmatpush.bf16.xpose.msrb.mxu3 %v4433_v51 }
 0x857   : > { %4304 = vmatpush.bf16.xpose.msrb.mxu1 %v4295_v6 }
 0x85a   : > { %4785 = vmatpush.bf16.msrb.mxu2 %v4776_v34  ;;  %v4479_v34 = vsel %vm2283_vm10, %v4474_v18, 0 }
 0x85b   : > { %v3956_v3 = vpop.f32.mrf.mxu2  ;;  %v14252_v2 = vpop.f32.mrf.mxu3 }
 0x85c   : > { %18561 = vst [vmem:[#allocation89_spill] sm:$0xff] %v14252_v2  ;;  %v4265_v31 = vpop.permute.xlu0 %4264  ;;  %v4729_v3 = vpop.permute.xlu1 %4728 }
 0x85d   : > { %v14256_v59 = vpop.f32.mrf.mxu1  ;;  %10492 = vmatmul.msk.bf16.vlgmr.msra.gmra.mxu0 %vm2283_vm10, %v4265_v31 }
 0x85e   : > { %18562 = vst [vmem:[#allocation90_spill] sm:$0xff] %v14256_v59  ;;  %10493 = vmatmul.msk.bf16.vlgmr.msrb.gmra.mxu1 %vm2283_vm10, %v4288_v15 }
 0x863   : > { %v3980_v14 = vpop.f32.mrf.mxu3  ;;  %v14260_v1 = vpop.f32.mrf.mxu2 }
 0x864   : > { %18563 = vst [vmem:[#allocation91_spill] sm:$0xff] %v14260_v1  ;;  %v4382_v6 = vpop.permute.xlu0 %4381  ;;  %v4734_v14 = vsel %vm2784_vm5, %v4729_v3, 0  ;;  %v14303_v1 = vld [vmem:[%s18450_s16 + $0x3] ss:$0 sm:$0xff] }
 0x865   : > { %v4124_v60 = vpop.f32.mrf.mxu1  ;;  %v4387_v51 = vsel %vm2283_vm10, %v4382_v6, 0  ;;  %10495 = vmatmul.msk.bf16.vlgmr.msra.gmra.mxu3 %vm2283_vm10, %v4334_v10  ;;  %18567 = vst [vmem:[#allocation95_spill] sm:$0xff] %v14303_v1 }
 0x866   : > { %4396 = vmatpush.bf16.xpose.msra.mxu1 %v4387_v51  ;;  %v12155_v60 = vld [vmem:[%s18450_s16] ss:$0 sm:$0xff] }
 0x86b   : > { %v4052_v25 = vpop.f32.mrf.mxu2 }
 0x86c   : > { %v4451_v31 = vpop.permute.xlu0 %4450 }
 0x86d   : > { %v4456_v15 = vsel %vm2283_vm10, %v4451_v31, 0  ;;  %10496 = vmatmul.msk.bf16.vlgmr.msrb.gmra.mxu0 %vm2283_vm10, %v4357_v53 }
 0x86e   : > { %4488 = vmatpush.bf16.xpose.msrb.mxu1 %v4479_v34  ;;  %4465 = vmatpush.bf16.xpose.msra.mxu0 %v4456_v15  ;;  %v4792_v34 = vpop.permute.xlu2 %4791 }
 0x86f   : > { %10497 = vmatmul.msk.bf16.vlgmr.msra.gmra.mxu1 %vm2283_vm10, %v4380_v23 }
 0x870   : > { %v14269_v6 = vpop.f32.mrf.mxu0 }
 0x871   : > { %18564 = vst [vmem:[#allocation92_spill] sm:$0xff] %v14269_v6 }
 0x873   : > { %v4145_v18 = vpop.f32.mrf.mxu2 }
 0x874   : > { %v14274_v51 = vadd.f32 %v12155_v60, %v4145_v18  ;;  %v4472_v25 = vpop.permute.xlu0 %4471  ;;  %v14286_v18 = vld [vmem:[%s18450_s16 + $0x2] ss:$0 sm:$0xff] }
 0x875   : > { %10499 = vmatmul.msk.bf16.vlgmr.msrb.gmra.mxu3 %vm2283_vm10, %v14214_v26  ;;  %18565 = vst [vmem:[#allocation93_spill] sm:$0xff] %v14286_v18 }
 0x876   : > { %4743 = vmatpush.bf16.msrb.mxu0 %v4734_v14  ;;  %v4494_v23 = vsel %vm2588_vm4, %v14274_v51, -inf  ;;  %v4797_v14 = vsel %vm2784_vm5, %v4792_v34, 0 }
 0x877   : > { %4495 = vmax.xlane.f32.xlu2 %v4494_v23  ;;  %v4834_v23 = vpop.permute.xlu1 %4833 }
 0x878   : > { %v4100_v53 = vpop.f32.mrf.mxu0 }
 0x87b   : > { %v4147_v3 = vpop.f32.mrf.mxu2 }
 0x87c   : > { %v4708_v31 = vpop.permute.xlu0 %4707 }
 0x87d   : > { %v4713_v15 = vsel %vm2784_vm5, %v4708_v31, 0  ;;  %10500 = vmatmul.msk.bf16.vlgmr.msra.gmra.mxu0 %vm2283_vm10, %v14232_v38 }
 0x87e   : > { %4722 = vmatpush.bf16.msra.mxu3 %v4713_v15 }
 0x87f   : > { %10501 = vmatmul.msk.bf16.vlgmr.msrb.gmra.mxu1 %vm2283_vm10, %v4472_v25  ;;  %v4839_v25 = vsel %vm2784_vm5, %v4834_v23, 0 }
 0x880   : > { %v4191_v26 = vpop.f32.mrf.mxu0 }
 0x881   : > { %v14289_v60 = vadd.f32 %v14286_v18, %v4191_v26  ;;  %v14364_v18 = vld [vmem:[%s18450_s16 + $0xe] ss:$0 sm:$0xff] }
 0x882   : > { %4806 = vmatpush.bf16.msrb.mxu3 %v4797_v14 }
 0x883   : > { %v4237_v53 = vpop.f32.mrf.mxu2  ;;  %v4500_v3 = vsel %vm2588_vm4, %v14289_v60, -inf }
 0x884   : > { %4501 = vmax.xlane.f32.xlu1 %v4500_v3  ;;  %v4750_v31 = vpop.permute.xlu0 %4749 }
 0x885   : > { %v4755_v38 = vsel %vm2784_vm5, %v4750_v31, 0 }
 0x886   : > { %4764 = vmatpush.bf16.msra.mxu1 %v4755_v38 }
 0x888   : > { %v4193_v34 = vpop.f32.mrf.mxu0 }
 0x889   : > { %v18568_v34 = vld [vmem:[#allocation56_spill] sm:$0xff] }
 0x88a   : > { %4848 = vmatpush.bf16.msrb.mxu1 %v4839_v25 }
 0x88b   : > { %v4239_v15 = vpop.f32.mrf.mxu2 }
 0x88c   : > { %v14295_v14 = vpop.permute.xlu0 %4875 }
 0x893   : > { %v14297_v26 = vpop.f32.mrf.mxu2 }
 0x894   : > { %v4813_v10 = vpop.permute.xlu0 %4812 }
 0x895   : > { %v4818_v12 = vsel %vm2784_vm5, %v4813_v10, 0 }
 0x896   : > { %4827 = vmatpush.bf16.msra.mxu0 %v4818_v12 }
 0x89b   : > { %v4331_v6 = vpop.f32.mrf.mxu2 }
 0x89c   : > { %v14409_v17 = vpop.permute.xlu0 %4959 }
 0x8b8   : > { %v14300_v3 = vpop.f32.mrf.mxu3 }
 0x8b9   : > { %18566 = vst [vmem:[#allocation94_spill] sm:$0xff] %v14300_v3 }
 0x8c0   : > { %v4076_v59 = vpop.f32.mrf.mxu3 }
 0x8c2   : > { %v4214_v31 = vpop.f32.mrf.mxu1 }
 0x8c3   : > { %v14306_v23 = vadd.f32 %v14303_v1, %v4214_v31  ;;  %v14316_v31 = vld [vmem:[%s18450_s16 + $0x6] ss:$0 sm:$0xff] }
 0x8c4   : > { %18569 = vst [vmem:[#allocation56_spill] sm:$0xff] %v14316_v31 }
 0x8c5   : > { %v4503_v38 = vsel %vm2588_vm4, %v14306_v23, -inf }
 0x8c6   : > { %4504 = vmax.xlane.f32.xlu0 %v4503_v38  ;;  %v14322_v38 = vld [vmem:[%s18450_s16 + $0x7] ss:$0 sm:$0xff] }
 0x8c7   : > { %18570 = vst [vmem:[#allocation96_spill] sm:$0xff] %v14322_v38 }
 0x8c8   : > { %v4168_v25 = vpop.f32.mrf.mxu3 }
 0x8c9   : > { %v14311_v10 = vadd.f32 %v18568_v34, %v4168_v25 }
 0x8ca   : > { %v4216_v12 = vpop.f32.mrf.mxu1 }
 0x8cb   : > { %v4497_v59 = vsel %vm2588_vm4, %v14311_v10, -inf }
 0x8cc   : > { %4498 = vmax.xlane.f32.xlu1 %v4497_v59 }
 0x8d0   : > { %v4170_v6 = vpop.f32.mrf.mxu3 }
 0x8d8   : > { %v4260_v15 = vpop.f32.mrf.mxu3  ;;  %v4421_v3 = vpop.f32.mrf.mxu2 }
 0x8da   : > { %v4283_v45 = vpop.f32.mrf.mxu0 }
 0x8db   : > { %v4306_v48 = vpop.f32.mrf.mxu1  ;;  %v14319_v35 = vadd.f32 %v14316_v31, %v4283_v45 }
 0x8dc   : > { %v14325_v25 = vadd.f32 %v14322_v38, %v4306_v48  ;;  %v14335_v48 = vld [vmem:[%s18450_s16 + $0xa] ss:$0 sm:$0xff] }
 0x8dd   : > { %v4512_v12 = vsel %vm2588_vm4, %v14319_v35, -inf  ;;  %18572 = vst [vmem:[#allocation48_spill] sm:$0xff] %v14335_v48 }
 0x8de   : > { %v4515_v34 = vsel %vm2588_vm4, %v14325_v25, -inf  ;;  %4513 = vmax.xlane.f32.xlu0 %v4512_v12  ;;  %v18573_v12 = vld [vmem:[#allocation85_spill] sm:$0xff] }
 0x8df   : > { %4516 = vmax.xlane.f32.xlu2 %v4515_v34 }
 0x8e0   : > { %v4262_v59 = vpop.f32.mrf.mxu3  ;;  %v4423_v6 = vpop.f32.mrf.mxu2 }
 0x8e2   : > { %v4285_v2 = vpop.f32.mrf.mxu0 }
 0x8e3   : > { %v4308_v7 = vpop.f32.mrf.mxu1  ;;  %v18574_v2 = vld [vmem:[#allocation54_spill] sm:$0xff] }
 0x8e4   : > { %v14350_v6 = vadd.f32 %v18574_v2, %v4421_v3  ;;  %18576 = vst [vmem:[#allocation54_spill] sm:$0xff] %v14364_v18 }
 0x8e8   : > { %v4352_v45 = vpop.f32.mrf.mxu3 }
 0x8e9   : > { %v14332_v32 = vadd.f32 %v18571_v24, %v4352_v45  ;;  %v14353_v45 = vld [vmem:[%s18450_s16 + $0x4] ss:$0 sm:$0xff] }
 0x8ea   : > { %v4375_v36 = vpop.f32.mrf.mxu0  ;;  %18575 = vst [vmem:[#allocation85_spill] sm:$0xff] %v14353_v45 }
 0x8eb   : > { %v14338_v38 = vadd.f32 %v14335_v48, %v4375_v36  ;;  %v4521_v34 = vsel %vm2588_vm4, %v14332_v32, -inf  ;;  %v14356_v48 = vadd.f32 %v14353_v45, %v4237_v53 }
 0x8ec   : > { %v4398_v31 = vpop.f32.mrf.mxu1  ;;  %4522 = vmax.xlane.f32.xlu1 %v4521_v34 }
 0x8ed   : > { %v14343_v59 = vadd.f32 %v18573_v12, %v4398_v31  ;;  %v4524_v7 = vsel %vm2588_vm4, %v14338_v38, -inf  ;;  %v4530_v12 = vsel %vm2588_vm4, %v14350_v6, -inf }
 0x8ee   : > { %4525 = vmax.xlane.f32.xlu0 %v4524_v7  ;;  %v4506_v7 = vsel %vm2588_vm4, %v14356_v48, -inf }
 0x8ef   : > { %v4527_v24 = vsel %vm2588_vm4, %v14343_v59, -inf }
 0x8f0   : > { %4528 = vmax.xlane.f32.xlu2 %v4527_v24  ;;  %v4354_v36 = vpop.f32.mrf.mxu3 }
 0x8f2   : > { %v4377_v31 = vpop.f32.mrf.mxu0 }
 0x8f4   : > { %v4400_v34 = vpop.f32.mrf.mxu1  ;;  %4531 = vmax.xlane.f32.xlu1 %v4530_v12 }
 0x8f5   : > { %v18577_v34 = vld [vmem:[#allocation87_spill] sm:$0xff] }
 0x8f6   : > { %4507 = vmax.xlane.f32.xlu0 %v4506_v7 }
 0x8f7   : > { %v4502_v3 = vpop.xlane.xlu1 %4501 }
 0x8f8   : > { %v4544_v24 = vsub.f32 %v14289_v60, %v4502_v3  ;;  %v4444_v2 = vpop.f32.mrf.mxu3 }
 0x8fa   : > { %v4562_v36 = vmul.f32 1.442695, %v4544_v24  ;;  %v4467_v1 = vpop.f32.mrf.mxu0  ;;  %v14377_v24 = vld [vmem:[%s18450_s16 + $0x5] ss:$0 sm:$0xff] }
 0x8fb   : > { %v14367_v53 = vadd.f32 %v14364_v18, %v4467_v1  ;;  %18578 = vst [vmem:[#allocation87_spill] sm:$0xff] %v14377_v24  ;;  %v14380_v45 = vadd.f32 %v14377_v24, %v4260_v15  ;;  %v14393_v15 = vpop.permute.xlu2 %4854  ;;  %v18580_v24 = vld [vmem:[#allocation86_spill] sm:$0xff] }
 0x8fc   : > { %v4490_v31 = vpop.f32.mrf.mxu1  ;;  %11725 = vpow2.f32 %v4562_v36  ;;  %v18579_v36 = vld [vmem:[#allocation84_spill] sm:$0xff] }
 0x8fd   : > { %v14370_v12 = vadd.f32 %v18577_v34, %v4490_v31  ;;  %v4536_v7 = vsel %vm2588_vm4, %v14367_v53, -inf  ;;  %v14385_v18 = vadd.f32 %v18579_v36, %v4444_v2  ;;  %v14397_v2 = vadd.f32 %v18580_v24, %v14297_v26 }
 0x8fe   : > { %4537 = vmax.xlane.f32.xlu2 %v4536_v7 }
 0x8ff   : > { %v4539_v60 = vsel %vm2588_vm4, %v14370_v12, -inf  ;;  %v4518_v36 = vsel %vm2588_vm4, %v14397_v2, -inf }
 0x900   : > { %4540 = vmax.xlane.f32.xlu0 %v4539_v60  ;;  %v4446_v3 = vpop.f32.mrf.mxu3  ;;  %v4509_v60 = vsel %vm2588_vm4, %v14380_v45, -inf }
 0x901   : > { %v4533_v3 = vsel %vm2588_vm4, %v14385_v18, -inf }
 0x902   : > { %v14382_v1 = vpop.eup %11725  ;;  %v4469_v31 = vpop.f32.mrf.mxu0 }
 0x903   : > { %v4596_v7 = vsel %vm2588_vm4, %v14382_v1, 0.0  ;;  %v14401_v31 = vpop.permute.xlu2 %4938 }
 0x904   : > { %v4492_v34 = vpop.f32.mrf.mxu1  ;;  %4597 = vadd.xlane.f32.xlu1 %v4596_v7 }
 0x906   : > { %4510 = vmax.xlane.f32.xlu2 %v4509_v60 }
 0x908   : > { %4534 = vmax.xlane.f32.xlu0 %v4533_v3 }
 0x90b   : > { %v14403_v34 = vpop.permute.xlu2 %4896 }
 0x90e   : > { %4519 = vmax.xlane.f32.xlu2 %v4518_v36 }
 0x913   : > { %v14405_v7 = vpop.permute.xlu2 %4917 }
 0x91b   : > { %v14407_v60 = vpop.permute.xlu2 %5024 }
 0x923   : > { %v4496_v3 = vpop.xlane.xlu2 %4495 }
 0x924   : > { %v4542_v26 = vsub.f32 %v14274_v51, %v4496_v3 }
 0x926   : > { %v4558_v29 = vmul.f32 1.442695, %v4542_v26 }
 0x939   : > { %v4505_v13 = vpop.xlane.xlu0 %4504 }
 0x93a   : > { %v4545_v57 = vsub.f32 %v14306_v23, %v4505_v13 }
 0x93c   : > { %v4564_v24 = vmul.f32 1.442695, %v4545_v57 }
 0x93e   : > { %11727 = vpow2.f32 %v4564_v24 }
 0x93f   : > { %11729 = vpow2.f32 %v4558_v29 }
 0x944   : > { %v14413_v36 = vpop.eup %11727 }
 0x945   : > { %v4599_v16 = vsel %vm2588_vm4, %v14413_v36, 0.0  ;;  %v14417_v37 = vpop.eup %11729 }
 0x946   : > { %4600 = vadd.xlane.f32.xlu2 %v4599_v16  ;;  %v4590_v30 = vsel %vm2588_vm4, %v14417_v37, 0.0  ;;  %v4499_v16 = vpop.xlane.xlu1 %4498 }
 0x94e   : > { %4591 = vadd.xlane.f32.xlu2 %v4590_v30 }
 0x951   : > { %v4514_v13 = vpop.xlane.xlu0 %4513 }
 0x952   : > { %v4517_v44 = vpop.xlane.xlu2 %4516  ;;  %v4548_v57 = vsub.f32 %v14319_v35, %v4514_v13 }
 0x953   : > { %v4549_v51 = vsub.f32 %v14325_v25, %v4517_v44 }
 0x954   : > { %v4570_v3 = vmul.f32 1.442695, %v4548_v57 }
 0x955   : > { %v4572_v23 = vmul.f32 1.442695, %v4549_v51  ;;  %v4543_v51 = vsub.f32 %v14311_v10, %v4499_v16 }
 0x957   : > { %11731 = vpow2.f32 %v4572_v23  ;;  %v4560_v0 = vmul.f32 1.442695, %v4543_v51 }
 0x958   : > { %11733 = vpow2.f32 %v4570_v3 }
 0x95d   : > { %v14423_v29 = vpop.eup %11731 }
 0x95e   : > { %v14425_v26 = vpop.eup %11733  ;;  %v4611_v24 = vsel %vm2588_vm4, %v14423_v29, 0.0 }
 0x95f   : > { %4612 = vadd.xlane.f32.xlu0 %v4611_v24  ;;  %v4608_v30 = vsel %vm2588_vm4, %v14425_v26, 0.0  ;;  %v4523_v23 = vpop.xlane.xlu1 %4522 }
 0x960   : > { %4609 = vadd.xlane.f32.xlu1 %v4608_v30 }
 0x961   : > { %v4526_v44 = vpop.xlane.xlu0 %4525 }
 0x962   : > { %v4552_v35 = vsub.f32 %v14338_v38, %v4526_v44 }
 0x963   : > { %v4529_v25 = vpop.xlane.xlu2 %4528 }
 0x964   : > { %v4553_v13 = vsub.f32 %v14343_v59, %v4529_v25  ;;  %v4578_v57 = vmul.f32 1.442695, %v4552_v35 }
 0x966   : > { %v4580_v3 = vmul.f32 1.442695, %v4553_v13  ;;  %11735 = vpow2.f32 %v4578_v57 }
 0x967   : > { %v4532_v59 = vpop.xlane.xlu1 %4531 }
 0x968   : > { %11737 = vpow2.f32 %v4580_v3 }
 0x969   : > { %v4508_v47 = vpop.xlane.xlu0 %4507  ;;  %11739 = vpow2.f32 %v4560_v0 }
 0x96a   : > { %v4546_v24 = vsub.f32 %v14356_v48, %v4508_v47 }
 0x96c   : > { %v14435_v40 = vpop.eup %11735  ;;  %v4566_v30 = vmul.f32 1.442695, %v4546_v24 }
 0x96d   : > { %v4620_v38 = vsel %vm2588_vm4, %v14435_v40, 0.0 }
 0x96e   : > { %v14437_v63 = vpop.eup %11737  ;;  %11741 = vpow2.f32 %v4566_v30  ;;  %4621 = vadd.xlane.f32.xlu1 %v4620_v38 }
 0x96f   : > { %v4623_v10 = vsel %vm2588_vm4, %v14437_v63, 0.0  ;;  %v14443_v44 = vpop.eup %11739 }
 0x970   : > { %4624 = vadd.xlane.f32.xlu0 %v4623_v10  ;;  %v4593_v35 = vsel %vm2588_vm4, %v14443_v44, 0.0 }
 0x971   : > { %v4538_v16 = vpop.xlane.xlu2 %4537 }
 0x973   : > { %v4541_v47 = vpop.xlane.xlu0 %4540 }
 0x974   : > { %v4557_v48 = vsub.f32 %v14370_v12, %v4541_v47  ;;  %v14446_v0 = vpop.eup %11741 }
 0x975   : > { %v4602_v13 = vsel %vm2588_vm4, %v14446_v0, 0.0 }
 0x976   : > { %v4588_v25 = vmul.f32 1.442695, %v4557_v48  ;;  %4594 = vadd.xlane.f32.xlu1 %v4593_v35  ;;  %4603 = vadd.xlane.f32.xlu2 %v4602_v13  ;;  %v4902_v35 = vsel %vm2784_vm5, %v14403_v34, 0  ;;  %v4551_v13 = vsub.f32 %v14332_v32, %v4523_v23  ;;  %v18581_v23 = vld [vmem:[#allocation37_spill] sm:$0xff] }
 0x977   : > { %v4598_v51 = vpop.xlane.xlu1 %4597 }
 0x978   : > { %11743 = vpow2.f32 %v4588_v25 }
 0x979   : > { %11745 = vrcp.f32 %v4598_v51  ;;  %v4511_v57 = vpop.xlane.xlu2 %4510 }
 0x97a   : > { %v4547_v3 = vsub.f32 %v14380_v45, %v4511_v57 }
 0x97c   : > { %v4568_v24 = vmul.f32 1.442695, %v4547_v3 }
 0x97e   : > { %v14453_v30 = vpop.eup %11743  ;;  %11747 = vpow2.f32 %v4568_v24  ;;  %v18582_v24 = vld [vmem:[#allocation36_spill] sm:$0xff] }
 0x97f   : > { %v11746_v12 = vpop.eup %11745  ;;  %v4635_v38 = vsel %vm2588_vm4, %v14453_v30, 0.0 }
 0x980   : > { %v4656_v10 = vmul.f32 %v11746_v12, %v14382_v1  ;;  %4636 = vadd.xlane.f32.xlu1 %v4635_v38  ;;  %v4576_v1 = vmul.f32 1.442695, %v4551_v13  ;;  %v4554_v12 = vsub.f32 %v14350_v6, %v4532_v59  ;;  %v4535_v38 = vpop.xlane.xlu0 %4534  ;;  %v4923_v59 = vsel %vm2784_vm5, %v14405_v7, 0 }
 0x981   : > { %v4520_v48 = vpop.xlane.xlu2 %4519 }
 0x982   : > { %v4672_v47 = vpack.c.bf16 %v4656_v10, %v4656_v10  ;;  %v4550_v25 = vsub.f32 %v14397_v2, %v4520_v48  ;;  %v4555_v10 = vsub.f32 %v14385_v18, %v4535_v38 }
 0x984   : > { %10504 = vmatmul.msk.bf16.vlgmr.msrb.gmra.mxu0 %vm2588_vm4, %v4672_v47  ;;  %v14462_v45 = vpop.eup %11747  ;;  %v4574_v51 = vmul.f32 1.442695, %v4550_v25  ;;  %v4582_v47 = vmul.f32 1.442695, %v4554_v12  ;;  %v4584_v25 = vmul.f32 1.442695, %v4555_v10 }
 0x985   : > { %4911 = vmatpush.bf16.msrb.mxu0 %v4902_v35  ;;  %v4605_v57 = vsel %vm2588_vm4, %v14462_v45, 0.0 }
 0x986   : > { %11749 = vpow2.f32 %v4574_v51  ;;  %4606 = vadd.xlane.f32.xlu2 %v4605_v57 }
 0x987   : > { %11751 = vpow2.f32 %v4576_v1 }
 0x98c   : > { %v14467_v3 = vpop.eup %11749 }
 0x98d   : > { %v4614_v2 = vsel %vm2588_vm4, %v14467_v3, 0.0  ;;  %v14471_v34 = vpop.eup %11751 }
 0x98e   : > { %4615 = vadd.xlane.f32.xlu0 %v4614_v2  ;;  %v4617_v32 = vsel %vm2588_vm4, %v14471_v34, 0.0  ;;  %v4860_v2 = vsel %vm2784_vm5, %v14393_v15, 0 }
 0x996   : > { %4618 = vadd.xlane.f32.xlu0 %v4617_v32 }
 0x999   : > { %5045 = vrot.lane.b32.xlu1 %v18581_v23, %s12274_s7 }
 0x99e   : > { %5047 = vrot.lane.b32.xlu2 %v18582_v24, %s12274_s7 }
 0x9a1   : > { %5116 = vrot.lane.b32.xlu1 %v18537_v27, %s12274_s7  ;;  %v4556_v27 = vsub.f32 %v14367_v53, %v4538_v16 }
 0x9aa   : > { %5022 = vrot.lane.b32.xlu0 %v18536_v52, %s12274_s7  ;;  %v4586_v52 = vmul.f32 1.442695, %v4556_v27 }
 0x9b2   : > { %4980 = vrot.lane.b32.xlu0 %v14078_v58, %s12273_s18 }
 0x9b9   : > { %v4601_v48 = vpop.xlane.xlu2 %4600 }
 0x9ba   : > { %11753 = vrcp.f32 %v4601_v48  ;;  %5001 = vrot.lane.b32.xlu0 %v14011_v56, %s12273_s18 }
 0x9bb   : > { %11755 = vpow2.f32 %v4582_v47 }
 0x9bc   : > { %11757 = vpow2.f32 %v4584_v25 }
 0x9c0   : > { %v11754_v35 = vpop.eup %11753 }
 0x9c1   : > { %v4657_v13 = vmul.f32 %v11754_v35, %v14413_v36  ;;  %v4592_v51 = vpop.xlane.xlu2 %4591  ;;  %v14493_v18 = vpop.eup %11755 }
 0x9c2   : > { %11759 = vrcp.f32 %v4592_v51  ;;  %5070 = vrot.lane.b32.xlu0 %v13442_v54, %s12274_s7  ;;  %v14498_v53 = vpop.eup %11757  ;;  %v4626_v36 = vsel %vm2588_vm4, %v14493_v18, 0.0  ;;  %v18584_v51 = vld [vmem:[#allocation63_spill] sm:$0xff] }
 0x9c3   : > { %v4673_v6 = vpack.c.bf16 %v4657_v13, %v4657_v13  ;;  %11761 = vpow2.f32 %v4586_v52  ;;  %v4629_v54 = vsel %vm2588_vm4, %v14498_v53, 0.0  ;;  %v4881_v52 = vsel %vm2784_vm5, %v14295_v14, 0  ;;  %v18583_v13 = vld [vmem:[#allocation66_spill] sm:$0xff] }
 0x9c5   : > { %10505 = vmatmul.msk.bf16.vlgmr.msra.gmra.mxu1 %vm2588_vm4, %v4673_v6 }
 0x9c6   : > { %4932 = vmatpush.bf16.msra.mxu1 %v4923_v59 }
 0x9c7   : > { %4627 = vadd.xlane.f32.xlu2 %v4626_v36  ;;  %v18588_v36 = vld [vmem:[#allocation62_spill] sm:$0xff] }
 0x9c8   : > { %v11760_v16 = vpop.eup %11759 }
 0x9c9   : > { %v4654_v57 = vmul.f32 %v11760_v16, %v14417_v37  ;;  %v14507_v7 = vpop.eup %11761  ;;  %v18589_v16 = vld [vmem:[#allocation70_spill] sm:$0xff] }
 0x9ca   : > { %5114 = vrot.lane.b32.xlu0 %v18538_v62, %s12274_s7  ;;  %v4632_v32 = vsel %vm2588_vm4, %v14507_v7, 0.0 }
 0x9cb   : > { %4630 = vadd.xlane.f32.xlu1 %v4629_v54  ;;  %v4670_v1 = vpack.c.bf16 %v4654_v57, %v4654_v57  ;;  %v18590_v57 = vld [vmem:[#allocation68_spill] sm:$0xff] }
 0x9cd   : > { %10502 = vmatmul.msk.bf16.vlgmr.msra.gmra.mxu2 %vm2588_vm4, %v4670_v1 }
 0x9ce   : > { %4869 = vmatpush.bf16.msra.mxu2 %v4860_v2  ;;  %v18591_v2 = vld [vmem:[#allocation69_spill] sm:$0xff] }
 0x9cf   : > { %4633 = vadd.xlane.f32.xlu2 %v4632_v32 }
 0x9d2   : > { %v4613_v37 = vpop.xlane.xlu0 %4612  ;;  %5068 = vrot.lane.b32.xlu0 %v13452_v8, %s12274_s7 }
 0x9d3   : > { %v4610_v23 = vpop.xlane.xlu1 %4609  ;;  %11763 = vrcp.f32 %v4613_v37 }
 0x9d4   : > { %11765 = vrcp.f32 %v4610_v23 }
 0x9d9   : > { %v11764_v62 = vpop.eup %11763 }
 0x9da   : > { %v11766_v24 = vpop.eup %11765  ;;  %v4661_v12 = vmul.f32 %v11764_v62, %v14423_v29  ;;  %5185 = vrot.lane.b32.xlu0 %v13588_v33, %s12274_s7  ;;  %v18592_v62 = vld [vmem:[#allocation44_spill] sm:$0xff] }
 0x9db   : > { %v4660_v15 = vmul.f32 %v11766_v24, %v14425_v26 }
 0x9dc   : > { %v4677_v38 = vpack.c.bf16 %v4661_v12, %v4661_v12 }
 0x9dd   : > { %v4676_v10 = vpack.c.bf16 %v4660_v15, %v4660_v15 }
 0x9de   : > { %10509 = vmatmul.msk.bf16.vlgmr.msrb.gmra.mxu1 %vm2588_vm4, %v4677_v38  ;;  %v18593_v38 = vld [vmem:[#allocation64_spill] sm:$0xff] }
 0x9df   : > { %10508 = vmatmul.msk.bf16.vlgmr.msra.gmra.mxu0 %vm2588_vm4, %v4676_v10 }
 0x9e1   : > { %v4622_v47 = vpop.xlane.xlu1 %4621 }
 0x9e2   : > { %11767 = vrcp.f32 %v4622_v47  ;;  %5160 = vrot.lane.b32.xlu0 %v13603_v19, %s12274_s7 }
 0x9e3   : > { %v4625_v48 = vpop.xlane.xlu0 %4624 }
 0x9e4   : > { %11769 = vrcp.f32 %v4625_v48  ;;  %5093 = vrot.lane.b32.xlu1 %v13531_v42, %s12274_s7 }
 0x9e7   : > { %5139 = vrot.lane.b32.xlu2 %v18534_v22, %s12274_s7 }
 0x9e8   : > { %v11768_v8 = vpop.eup %11767 }
 0x9e9   : > { %v4664_v29 = vmul.f32 %v11768_v8, %v14435_v40  ;;  %v4595_v26 = vpop.xlane.xlu1 %4594  ;;  %v4604_v25 = vpop.xlane.xlu2 %4603  ;;  %v18594_v8 = vld [vmem:[#allocation49_spill] sm:$0xff] }
 0x9ea   : > { %v11770_v33 = vpop.eup %11769  ;;  %11771 = vrcp.f32 %v4595_v26  ;;  %5229 = vrot.lane.b32.xlu0 %v18545_v39, %s12274_s7 }
 0x9eb   : > { %v4665_v27 = vmul.f32 %v11770_v33, %v14437_v63  ;;  %v4680_v19 = vpack.c.bf16 %v4664_v29, %v4664_v29  ;;  %11773 = vrcp.f32 %v4604_v25 }
 0x9ec   : > { %5137 = vrot.lane.b32.xlu1 %v18535_v11, %s12274_s7 }
 0x9ed   : > { %v4681_v42 = vpack.c.bf16 %v4665_v27, %v4665_v27 }
 0x9ef   : > { %10512 = vmatmul.msk.bf16.vlgmr.msrb.gmra.mxu0 %vm2588_vm4, %v4680_v19  ;;  %10513 = vmatmul.msk.bf16.vlgmr.msra.gmra.mxu1 %vm2588_vm4, %v4681_v42 }
 0x9f0   : > { %5162 = vrot.lane.b32.xlu2 %v13463_v4, %s12274_s7  ;;  %v11772_v40 = vpop.eup %11771  ;;  %v4944_v4 = vsel %vm2784_vm5, %v14401_v31, 0 }
 0x9f1   : > { %v11774_v22 = vpop.eup %11773  ;;  %v4655_v63 = vmul.f32 %v11772_v40, %v14443_v44 }
 0x9f2   : > { %v4658_v35 = vmul.f32 %v11774_v22, %v14446_v0  ;;  %5300 = vrot.lane.b32.xlu0 %v13567_v21, %s12274_s7 }
 0x9f3   : > { %v4671_v39 = vpack.c.bf16 %v4655_v63, %v4655_v63  ;;  %v4637_v59 = vpop.xlane.xlu1 %4636 }
 0x9f4   : > { %5091 = vrot.lane.b32.xlu1 %v13457_v49, %s12274_s7  ;;  %v4674_v11 = vpack.c.bf16 %v4658_v35, %v4658_v35 }
 0x9f5   : > { %10503 = vmatmul.msk.bf16.vlgmr.msra.gmra.mxu3 %vm2588_vm4, %v4671_v39 }
 0x9f6   : > { %10506 = vmatmul.msk.bf16.vlgmr.msrb.gmra.mxu2 %vm2588_vm4, %v4674_v11  ;;  %4890 = vmatpush.bf16.msra.mxu3 %v4881_v52 }
 0x9f7   : > { %4953 = vmatpush.bf16.msrb.mxu2 %v4944_v4 }
 0x9f8   : > { %5231 = vrot.lane.b32.xlu2 %v18540_v46, %s12274_s7 }
 0x9f9   : > { %v4607_v21 = vpop.xlane.xlu2 %4606 }
 0x9fa   : > { %11775 = vrcp.f32 %v4607_v21  ;;  %5275 = vrot.lane.b32.xlu0 %v13518_v55, %s12274_s7  ;;  %v4965_v55 = vsel %vm2784_vm5, %v14409_v17, 0 }
 0x9fc   : > { %5208 = vrot.lane.b32.xlu1 %v18539_v5, %s12274_s7 }
 0xa00   : > { %5206 = vrot.lane.b32.xlu2 %v13541_v41, %s12274_s7  ;;  %v11776_v49 = vpop.eup %11775 }
 0xa01   : > { %v14558_v14 = vpop.f32.mrf.mxu0  ;;  %v4659_v31 = vmul.f32 %v11776_v49, %v14462_v45  ;;  %v4616_v44 = vpop.xlane.xlu0 %4615 }
 0xa02   : > { %11777 = vrcp.f32 %v4616_v44  ;;  %5346 = vrot.lane.b32.xlu0 %v18549_v20, %s12274_s7 }
 0xa03   : > { %v4675_v46 = vpack.c.bf16 %v4659_v31, %v4659_v31 }
 0xa04   : > { %5183 = vrot.lane.b32.xlu1 %v13598_v28, %s12274_s7  ;;  %v5030_v28 = vsel %vm2283_vm10, %v14407_v60, 0  ;;  %v18585_v60 = vld [vmem:[#allocation61_spill] sm:$0xff] }
 0xa05   : > { %10507 = vmatmul.msk.bf16.vlgmr.msrb.gmra.mxu3 %vm2588_vm4, %v4675_v46 }
 0xa06   : > { %4974 = vmatpush.bf16.msrb.mxu3 %v4965_v55 }
 0xa08   : > { %5277 = vrot.lane.b32.xlu2 %v18548_v50, %s12274_s7  ;;  %v11778_v41 = vpop.eup %11777 }
 0xa09   : > { %v4747_v5 = vpop.f32.mrf.mxu0  ;;  %v4662_v0 = vmul.f32 %v11778_v41, %v14467_v3  ;;  %v4619_v45 = vpop.xlane.xlu0 %4618 }
 0xa0a   : > { %11779 = vrcp.f32 %v4619_v45  ;;  %5367 = vrot.lane.b32.xlu0 %v18550_v61, %s12274_s7  ;;  %v5048_v3 = vpop.permute.xlu2 %5047 }
 0xa0b   : > { %v4678_v20 = vpack.c.bf16 %v4662_v0, %v4662_v0  ;;  %11781 = vrcp.f32 %v4637_v59  ;;  %v5046_v23 = vpop.permute.xlu1 %5045 }
 0xa0c   : > { %5254 = vrot.lane.b32.xlu1 %v13503_v9, %s12274_s7  ;;  %v5053_v9 = vsel %vm2283_vm10, %v5048_v3, 0 }
 0xa0d   : > { %10510 = vmatmul.msk.bf16.vlgmr.msra.gmra.mxu2 %vm2588_vm4, %v4678_v20 }
 0xa0e   : > { %5039 = vmatpush.bf16.xpose.msra.mxu2 %v5030_v28 }
 0xa10   : > { %5252 = vrot.lane.b32.xlu2 %v13612_v43, %s12274_s7  ;;  %v11780_v50 = vpop.eup %11779  ;;  %v18586_v43 = vld [vmem:[#allocation47_spill] sm:$0xff] }
 0xa11   : > { %v4663_v17 = vmul.f32 %v11780_v50, %v14471_v34  ;;  %v18587_v34 = vld [vmem:[#allocation65_spill] sm:$0xff]  ;;  %v11782_v32 = vpop.eup %11781 }
 0xa12   : > { %5624 = vrot.lane.b32.xlu0 %v18583_v13, %s12274_s7  ;;  %v4669_v37 = vmul.f32 %v11782_v32, %v14453_v30 }
 0xa13   : > { %v4679_v61 = vpack.c.bf16 %v4663_v17, %v4663_v17  ;;  %v5117_v47 = vpop.permute.xlu1 %5116 }
 0xa14   : > { %5323 = vrot.lane.b32.xlu1 %v18584_v51, %s12274_s7  ;;  %v4685_v15 = vpack.c.bf16 %v4669_v37, %v4669_v37  ;;  %v5122_v39 = vsel %vm2283_vm10, %v5117_v47, 0 }
 0xa15   : > { %10511 = vmatmul.msk.bf16.vlgmr.msra.gmra.mxu3 %vm2588_vm4, %v4679_v61 }
 0xa16   : > { %5062 = vmatpush.bf16.xpose.msra.mxu3 %v5053_v9 }
 0xa18   : > { %5321 = vrot.lane.b32.xlu2 %v18585_v60, %s12274_s7 }
 0xa1a   : > { %5645 = vrot.lane.b32.xlu0 %v18586_v43, %s12274_s7 }
 0xa1c   : > { %5298 = vrot.lane.b32.xlu1 %v18587_v34, %s12274_s7  ;;  %v5023_v6 = vpop.permute.xlu0 %5022 }
 0xa20   : > { %5344 = vrot.lane.b32.xlu2 %v18588_v36, %s12274_s7 }
 0xa22   : > { %5666 = vrot.lane.b32.xlu0 %v18589_v16, %s12274_s7 }
 0xa24   : > { %5369 = vrot.lane.b32.xlu1 %v18590_v57, %s12274_s7  ;;  %v4981_v54 = vpop.permute.xlu0 %4980 }
 0xa25   : > { %v4986_v1 = vsel %vm2784_vm5, %v4981_v54, 0 }
 0xa26   : > { %4995 = vmatpush.bf16.msra.mxu0 %v4986_v1 }
 0xa28   : > { %5603 = vrot.lane.b32.xlu2 %v18591_v2, %s12274_s7 }
 0xa2c   : > { %5582 = vrot.lane.b32.xlu1 %v18592_v62, %s12274_s7  ;;  %v5002_v24 = vpop.permute.xlu0 %5001 }
 0xa2d   : > { %v5007_v12 = vsel %vm2784_vm5, %v5002_v24, 0 }
 0xa2e   : > { %5016 = vmatpush.bf16.msrb.mxu1 %v5007_v12 }
 0xa31   : > { %10517 = vmatmul.msk.bf16.vlgmr.msrb.gmra.mxu1 %vm2588_vm4, %v4685_v15 }
 0xa34   : > { %5687 = vrot.lane.b32.xlu1 %v18593_v38, %s12274_s7  ;;  %v5071_v10 = vpop.permute.xlu0 %5070 }
 0xa35   : > { %v5076_v48 = vsel %vm2283_vm10, %v5071_v10, 0 }
 0xa36   : > { %5085 = vmatpush.bf16.xpose.msrb.mxu0 %v5076_v48 }
 0xa3a   : > { %v4628_v30 = vpop.xlane.xlu2 %4627 }
 0xa3b   : > { %11783 = vrcp.f32 %v4628_v30 }
 0xa3c   : > { %5708 = vrot.lane.b32.xlu1 %v18594_v8, %s12274_s7  ;;  %v5115_v33 = vpop.permute.xlu0 %5114 }
 0xa3e   : > { %v4631_v29 = vpop.xlane.xlu1 %4630 }
 0xa3f   : > { %11785 = vrcp.f32 %v4631_v29 }
 0xa41   : > { %v11784_v26 = vpop.eup %11783 }
 0xa42   : > { %v4666_v25 = vmul.f32 %v11784_v26, %v14493_v18  ;;  %v14613_v27 = vpop.f32.mrf.mxu1  ;;  %v4634_v19 = vpop.xlane.xlu2 %4633 }
 0xa43   : > { %v11441_v42 = vpack.i.bf16 %v14613_v27, %v14558_v14  ;;  %11787 = vrcp.f32 %v4634_v19 }
 0xa44   : > { %v4682_v22 = vpack.c.bf16 %v4666_v25, %v4666_v25  ;;  %v5069_v63 = vpop.permute.xlu0 %5068 }
 0xa45   : > { %v11786_v40 = vpop.eup %11785 }
 0xa46   : > { %v4667_v35 = vmul.f32 %v11786_v40, %v14498_v53  ;;  %10514 = vmatmul.msk.bf16.vlgmr.msrb.gmra.mxu2 %vm2588_vm4, %v4682_v22 }
 0xa47   : > { %5131 = vmatpush.bf16.xpose.msrb.mxu2 %v5122_v39 }
 0xa48   : > { %v4683_v11 = vpack.c.bf16 %v4667_v35, %v4667_v35 }
 0xa49   : > { %v11788_v52 = vpop.eup %11787 }
 0xa4a   : > { %10515 = vmatmul.msk.bf16.vlgmr.msrb.gmra.mxu3 %vm2588_vm4, %v4683_v11  ;;  %v4668_v18 = vmul.f32 %v11788_v52, %v14507_v7  ;;  %v4768_v4 = vpop.f32.mrf.mxu1  ;;  %v5140_v21 = vpop.permute.xlu2 %5139 }
 0xa4b   : > { %v5145_v49 = vsel %vm2283_vm10, %v5140_v21, 0 }
 0xa4c   : > { %v4684_v31 = vpack.c.bf16 %v4668_v18, %v4668_v18  ;;  %5154 = vmatpush.bf16.xpose.msrb.mxu3 %v5145_v49  ;;  %v5186_v44 = vpop.permute.xlu0 %5185 }
 0xa4d   : > { %v5191_v7 = vsel %vm2283_vm10, %v5186_v44, 0 }
 0xa4e   : > { %10516 = vmatmul.msk.bf16.vlgmr.msra.gmra.mxu0 %vm2588_vm4, %v4684_v31 }
 0xa50   : > { %v14624_v53 = vpop.f32.mrf.mxu2 }
 0xa52   : > { %v5163_v46 = vpop.permute.xlu2 %5162 }
 0xa53   : > { %v5168_v55 = vsel %vm2283_vm10, %v5163_v46, 0 }
 0xa54   : > { %5177 = vmatpush.bf16.xpose.msra.mxu0 %v5168_v55  ;;  %v5161_v41 = vpop.permute.xlu0 %5160 }
 0xa56   : > { %v5094_v5 = vpop.permute.xlu1 %5093  ;;  %10518 = vmatmul.msk.bf16.vlgmr.msra.gmra.mxu2 %vm2283_vm10, %v5023_v6 }
 0xa57   : > { %v5099_v0 = vsel %vm2283_vm10, %v5094_v5, 0 }
 0xa58   : > { %5108 = vmatpush.bf16.xpose.msra.mxu1 %v5099_v0  ;;  %v4705_v45 = vpop.f32.mrf.mxu2 }
 0xa5a   : > { %10519 = vmatmul.msk.bf16.vlgmr.msra.gmra.mxu3 %vm2283_vm10, %v5046_v23  ;;  %v5232_v20 = vpop.permute.xlu2 %5231 }
 0xa5b   : > { %v14631_v28 = vpop.f32.mrf.mxu1  ;;  %v5237_v17 = vsel %vm2283_vm10, %v5232_v20, 0 }
 0xa5c   : > { %v14633_v50 = vpop.f32.mrf.mxu0  ;;  %5246 = vmatpush.bf16.xpose.msra.mxu3 %v5237_v17  ;;  %v5230_v13 = vpop.permute.xlu0 %5229 }
 0xa5d   : > { %v11471_v3 = vpack.i.bf16 %v14631_v28, %v14633_v50 }
 0xa5e   : > { %v5138_v61 = vpop.permute.xlu1 %5137  ;;  %10520 = vmatmul.msk.bf16.vlgmr.msrb.gmra.mxu0 %vm2283_vm10, %v5069_v63 }
 0xa60   : > { %5200 = vmatpush.bf16.xpose.msrb.mxu1 %v5191_v7 }
 0xa62   : > { %v5207_v51 = vpop.permute.xlu2 %5206 }
 0xa63   : > { %v4852_v9 = vpop.f32.mrf.mxu1 }
 0xa64   : > { %v4831_v60 = vpop.f32.mrf.mxu0  ;;  %v5301_v43 = vpop.permute.xlu0 %5300 }
 0xa65   : > { %v5306_v32 = vsel %vm2283_vm10, %v5301_v43, 0 }
 0xa66   : > { %v5092_v34 = vpop.permute.xlu1 %5091  ;;  %10522 = vmatmul.msk.bf16.vlgmr.msrb.gmra.mxu2 %vm2283_vm10, %v5115_v33 }
 0xa67   : > { %10521 = vmatmul.msk.bf16.vlgmr.msra.gmra.mxu1 %vm2283_vm10, %v5092_v34 }
 0xa6a   : > { %10523 = vmatmul.msk.bf16.vlgmr.msrb.gmra.mxu3 %vm2283_vm10, %v5138_v61  ;;  %v5278_v6 = vpop.permute.xlu2 %5277 }
 0xa6b   : > { %v5283_v36 = vsel %vm2283_vm10, %v5278_v6, 0 }
 0xa6c   : > { %v14642_v59 = vpop.f32.mrf.mxu0  ;;  %v14645_v16 = vpop.f32.mrf.mxu1  ;;  %5292 = vmatpush.bf16.xpose.msra.mxu1 %v5283_v36 }
 0xa6d   : > { %v11501_v57 = vpack.i.bf16 %v14645_v16, %v14642_v59  ;;  %v5276_v54 = vpop.permute.xlu0 %5275 }
 0xa6e   : > { %v5209_v1 = vpop.permute.xlu1 %5208  ;;  %10524 = vmatmul.msk.bf16.vlgmr.msra.gmra.mxu0 %vm2283_vm10, %v5161_v41 }
 0xa6f   : > { %v5214_v2 = vsel %vm2283_vm10, %v5209_v1, 0 }
 0xa70   : > { %5223 = vmatpush.bf16.xpose.msra.mxu2 %v5214_v2 }
 0xa72   : > { %v5253_v37 = vpop.permute.xlu2 %5252 }
 0xa74   : > { %v4915_v23 = vpop.f32.mrf.mxu0  ;;  %v4936_v62 = vpop.f32.mrf.mxu1 }
 0xa75   : > { %v5347_v24 = vpop.permute.xlu0 %5346 }
 0xa76   : > { %v5184_v12 = vpop.permute.xlu1 %5183  ;;  %v5352_v33 = vsel %vm2283_vm10, %v5347_v24, 0 }
 0xa77   : > { %10525 = vmatmul.msk.bf16.vlgmr.msrb.gmra.mxu1 %vm2283_vm10, %v5184_v12  ;;  %10526 = vmatmul.msk.bf16.vlgmr.msra.gmra.mxu2 %vm2283_vm10, %v5207_v51  ;;  %v18595_v12 = vld [vmem:[#allocation93_spill] sm:$0xff] }
 0xa78   : > { %5315 = vmatpush.bf16.xpose.msrb.mxu2 %v5306_v32  ;;  %v14654_v15 = vpop.f32.mrf.mxu3 }
 0xa79   : > { %v11426_v38 = vpack.i.bf16 %v14654_v15, %v14624_v53  ;;  %v14658_v10 = vpop.f32.mrf.mxu2 }
 0xa7a   : > { %10527 = vmatmul.msk.bf16.vlgmr.msra.gmra.mxu3 %vm2283_vm10, %v5230_v13  ;;  %v5322_v47 = vpop.permute.xlu2 %5321 }
 0xa7d   : > { %v5368_v48 = vpop.permute.xlu0 %5367 }
 0xa7e   : > { %v5255_v30 = vpop.permute.xlu1 %5254 }
 0xa7f   : > { %v5260_v8 = vsel %vm2283_vm10, %v5255_v30, 0 }
 0xa80   : > { %5269 = vmatpush.bf16.xpose.msrb.mxu0 %v5260_v8  ;;  %v4726_v29 = vpop.f32.mrf.mxu3 }
 0xa81   : > { %v4789_v26 = vpop.f32.mrf.mxu2  ;;  %v18596_v29 = vld [vmem:[#allocation95_spill] sm:$0xff] }
 0xa82   : > { %v5345_v25 = vpop.permute.xlu2 %5344 }
 0xa85   : > { %v5625_v19 = vpop.permute.xlu0 %5624 }
 0xa86   : > { %v5324_v40 = vpop.permute.xlu1 %5323  ;;  %v5630_v22 = vsel %vm2784_vm5, %v5625_v19, 0 }
 0xa87   : > { %v5329_v63 = vsel %vm2283_vm10, %v5324_v40, 0  ;;  %10528 = vmatmul.msk.bf16.vlgmr.msrb.gmra.mxu0 %vm2283_vm10, %v5253_v37  ;;  %10529 = vmatmul.msk.bf16.vlgmr.msra.gmra.mxu1 %vm2283_vm10, %v5276_v54 }
 0xa88   : > { %5361 = vmatpush.bf16.xpose.msra.mxu0 %v5352_v33  ;;  %5338 = vmatpush.bf16.xpose.msrb.mxu3 %v5329_v63  ;;  %v14667_v35 = vpop.f32.mrf.mxu3 }
 0xa89   : > { %v11456_v39 = vpack.i.bf16 %v14667_v35, %v14658_v10  ;;  %v18622_v10 = vld [vmem:[#allocation89_spill] sm:$0xff]  ;;  %v18623_v35 = vld [vmem:[#allocation76_spill] sm:$0xff] }
 0xa8a   : > { %v5604_v11 = vpop.permute.xlu2 %5603 }
 0xa8b   : > { %v5609_v52 = vsel %vm2784_vm5, %v5604_v11, 0 }
 0xa8d   : > { %v5646_v49 = vpop.permute.xlu0 %5645 }
 0xa8e   : > { %v5299_v18 = vpop.permute.xlu1 %5298  ;;  %v5651_v46 = vsel %vm2784_vm5, %v5646_v49, 0 }
 0xa8f   : > { %10530 = vmatmul.msk.bf16.vlgmr.msrb.gmra.mxu2 %vm2283_vm10, %v5299_v18  ;;  %10531 = vmatmul.msk.bf16.vlgmr.msrb.gmra.mxu3 %vm2283_vm10, %v5322_v47 }
 0xa90   : > { %5639 = vmatpush.bf16.msrb.mxu0 %v5630_v22  ;;  %5618 = vmatpush.bf16.msra.mxu3 %v5609_v52  ;;  %v4810_v4 = vpop.f32.mrf.mxu3  ;;  %v14674_v21 = vpop.f32.mrf.mxu2  ;;  %v18597_v52 = vld [vmem:[#allocation56_spill] sm:$0xff] }
 0xa95   : > { %v5667_v0 = vpop.permute.xlu0 %5666 }
 0xa96   : > { %v5370_v31 = vpop.permute.xlu1 %5369  ;;  %v5672_v20 = vsel %vm2784_vm5, %v5667_v0, 0  ;;  %v18598_v0 = vld [vmem:[#allocation96_spill] sm:$0xff] }
 0xa97   : > { %v5375_v44 = vsel %vm2283_vm10, %v5370_v31, 0  ;;  %10532 = vmatmul.msk.bf16.vlgmr.msra.gmra.mxu0 %vm2283_vm10, %v5345_v25  ;;  %v12164_v31 = vld [vmem:[%s18450_s16] ss:$0 sm:$0xff] }
 0xa98   : > { %5384 = vmatpush.bf16.xpose.msrb.mxu1 %v5375_v44  ;;  %v4873_v55 = vpop.f32.mrf.mxu2  ;;  %v14679_v41 = vpop.f32.mrf.mxu3 }
 0xa99   : > { %v11486_v5 = vpack.i.bf16 %v14679_v41, %v14674_v21 }
 0xa9e   : > { %v5583_v7 = vpop.permute.xlu1 %5582 }
 0xa9f   : > { %v5588_v45 = vsel %vm2784_vm5, %v5583_v7, 0  ;;  %10533 = vmatmul.msk.bf16.vlgmr.msrb.gmra.mxu1 %vm2283_vm10, %v5368_v48 }
 0xaa0   : > { %5660 = vmatpush.bf16.msra.mxu1 %v5651_v46  ;;  %5597 = vmatpush.bf16.msra.mxu2 %v5588_v45  ;;  %v4894_v17 = vpop.f32.mrf.mxu3 }
 0xaa4   : > { %5681 = vmatpush.bf16.msrb.mxu2 %v5672_v20 }
 0xaa6   : > { %v5688_v13 = vpop.permute.xlu1 %5687 }
 0xaa7   : > { %v5693_v61 = vsel %vm2784_vm5, %v5688_v13, 0 }
 0xaa8   : > { %5702 = vmatpush.bf16.msrb.mxu3 %v5693_v61 }
 0xaae   : > { %v5709_v51 = vpop.permute.xlu1 %5708  ;;  %v14688_v60 = vpop.f32.mrf.mxu1 }
 0xaaf   : > { %v5714_v9 = vsel %vm2784_vm5, %v5709_v51, 0 }
 0xab0   : > { %5723 = vmatpush.bf16.msra.mxu0 %v5714_v9 }
 0xab6   : > { %v5020_v43 = vpop.f32.mrf.mxu1 }
 0xac9   : > { %v14690_v34 = vpop.f32.mrf.mxu2 }
 0xacb   : > { %v14692_v6 = vpop.f32.mrf.mxu0 }
 0xacc   : > { %v11531_v54 = vpack.i.bf16 %v14688_v60, %v14692_v6 }
 0xacd   : > { %v14694_v36 = vpop.f32.mrf.mxu3 }
 0xace   : > { %v11516_v1 = vpack.i.bf16 %v14694_v36, %v14690_v34 }
 0xad1   : > { %v4957_v2 = vpop.f32.mrf.mxu2 }
 0xad3   : > { %v4999_v32 = vpop.f32.mrf.mxu0 }
 0xad4   : > { %v18599_v32 = vld [vmem:[#allocation48_spill] sm:$0xff] }
 0xad5   : > { %v4978_v37 = vpop.f32.mrf.mxu3 }
 0xad9   : > { %v5041_v23 = vpop.f32.mrf.mxu2 }
 0xada   : > { %v14716_v44 = vadd.f32 %v12164_v31, %v5041_v23  ;;  %v12165_v23 = vld [vmem:[%s18450_s16 + $0xb] ss:$0 sm:$0xff] }
 0xadb   : > { %v5087_v62 = vpop.f32.mrf.mxu0 }
 0xadc   : > { %v14701_v47 = vadd.f32 %v18595_v12, %v5087_v62  ;;  %v5390_v17 = vsel %vm2588_vm4, %v14716_v44, -inf }
 0xadd   : > { %v5064_v24 = vpop.f32.mrf.mxu3 }
 0xade   : > { %v5396_v48 = vsel %vm2588_vm4, %v14701_v47, -inf }
 0xadf   : > { %5397 = vmax.xlane.f32.xlu0 %v5396_v48 }
 0xae1   : > { %v5043_v30 = vpop.f32.mrf.mxu2 }
 0xae3   : > { %v5089_v33 = vpop.f32.mrf.mxu0 }
 0xae4   : > { %v5110_v8 = vpop.f32.mrf.mxu1 }
 0xae5   : > { %v14706_v26 = vadd.f32 %v18596_v29, %v5110_v8  ;;  %v5066_v25 = vpop.f32.mrf.mxu3  ;;  %v12166_v8 = vld [vmem:[%s18450_s16 + $0x1] ss:$0 sm:$0xff] }
 0xae6   : > { %v14736_v33 = vadd.f32 %v12166_v8, %v5064_v24 }
 0xae7   : > { %v5399_v19 = vsel %vm2588_vm4, %v14706_v26, -inf }
 0xae8   : > { %5400 = vmax.xlane.f32.xlu1 %v5399_v19  ;;  %v5393_v19 = vsel %vm2588_vm4, %v14736_v33, -inf }
 0xae9   : > { %v5133_v40 = vpop.f32.mrf.mxu2 }
 0xaeb   : > { %v5179_v63 = vpop.f32.mrf.mxu0 }
 0xaec   : > { %v5112_v22 = vpop.f32.mrf.mxu1  ;;  %v14711_v18 = vadd.f32 %v18597_v52, %v5179_v63 }
 0xaed   : > { %v5156_v11 = vpop.f32.mrf.mxu3  ;;  %v18600_v22 = vld [vmem:[#allocation78_spill] sm:$0xff] }
 0xaee   : > { %v5408_v4 = vsel %vm2588_vm4, %v14711_v18, -inf }
 0xaf0   : > { %5409 = vmax.xlane.f32.xlu1 %v5408_v4 }
 0xaf1   : > { %v5135_v49 = vpop.f32.mrf.mxu2 }
 0xaf3   : > { %v5181_v55 = vpop.f32.mrf.mxu0 }
 0xaf4   : > { %v5202_v46 = vpop.f32.mrf.mxu1 }
 0xaf5   : > { %v14719_v7 = vadd.f32 %v18598_v0, %v5202_v46  ;;  %v5158_v45 = vpop.f32.mrf.mxu3  ;;  %v18601_v46 = vld [vmem:[#allocation71_spill] sm:$0xff] }
 0xaf6   : > { %v18602_v45 = vld [vmem:[#allocation57_spill] sm:$0xff] }
 0xaf7   : > { %v5411_v20 = vsel %vm2588_vm4, %v14719_v7, -inf }
 0xaf8   : > { %5412 = vmax.xlane.f32.xlu2 %v5411_v20  ;;  %5391 = vmax.xlane.f32.xlu1 %v5390_v17  ;;  %v12167_v20 = vld [vmem:[%s18450_s16 + $0xf] ss:$0 sm:$0xff] }
 0xafa   : > { %v5225_v13 = vpop.f32.mrf.mxu2 }
 0xafc   : > { %v5204_v61 = vpop.f32.mrf.mxu1 }
 0xafd   : > { %v5248_v51 = vpop.f32.mrf.mxu3 }
 0xb02   : > { %v5227_v9 = vpop.f32.mrf.mxu2 }
 0xb03   : > { %v18603_v9 = vld [vmem:[#allocation87_spill] sm:$0xff] }
 0xb04   : > { %v5271_v43 = vpop.f32.mrf.mxu0  ;;  %v5294_v2 = vpop.f32.mrf.mxu1 }
 0xb05   : > { %v14726_v37 = vadd.f32 %v18599_v32, %v5271_v43  ;;  %v14729_v62 = vadd.f32 %v12165_v23, %v5294_v2  ;;  %v5250_v12 = vpop.f32.mrf.mxu3  ;;  %v14752_v43 = vadd.f32 %v18603_v9, %v5156_v11  ;;  %v18604_v2 = vld [vmem:[#allocation54_spill] sm:$0xff] }
 0xb07   : > { %v5420_v48 = vsel %vm2588_vm4, %v14726_v37, -inf  ;;  %v5423_v30 = vsel %vm2588_vm4, %v14729_v62, -inf  ;;  %v5405_v23 = vsel %vm2588_vm4, %v14752_v43, -inf }
 0xb08   : > { %5421 = vmax.xlane.f32.xlu2 %v5420_v48  ;;  %5424 = vmax.xlane.f32.xlu0 %v5423_v30  ;;  %v12168_v48 = vld [vmem:[%s18450_s16 + $0x9] ss:$0 sm:$0xff] }
 0xb09   : > { %v14762_v30 = vadd.f32 %v12168_v48, %v5248_v51 }
 0xb0c   : > { %v5273_v29 = vpop.f32.mrf.mxu0  ;;  %v5296_v25 = vpop.f32.mrf.mxu1 }
 0xb0d   : > { %v18605_v29 = vld [vmem:[#allocation85_spill] sm:$0xff] }
 0xb0e   : > { %v14765_v25 = vadd.f32 %v18605_v29, %v5133_v40 }
 0xb10   : > { %5394 = vmax.xlane.f32.xlu2 %v5393_v19  ;;  %v5417_v19 = vsel %vm2588_vm4, %v14762_v30, -inf }
 0xb11   : > { %5771 = vrot.lane.b32.xlu1 %v18600_v22, %s12274_s7 }
 0xb12   : > { %v5317_v63 = vpop.f32.mrf.mxu2  ;;  %v5340_v52 = vpop.f32.mrf.mxu3 }
 0xb14   : > { %v5363_v4 = vpop.f32.mrf.mxu0 }
 0xb15   : > { %v14755_v32 = vadd.f32 %v18604_v2, %v5363_v4  ;;  %v5402_v4 = vsel %vm2588_vm4, %v14765_v25, -inf }
 0xb17   : > { %v5432_v12 = vsel %vm2588_vm4, %v14755_v32, -inf }
 0xb1a   : > { %v5319_v49 = vpop.f32.mrf.mxu2  ;;  %v5342_v31 = vpop.f32.mrf.mxu3 }
 0xb1b   : > { %v12169_v49 = vld [vmem:[%s18450_s16 + $0xd] ss:$0 sm:$0xff] }
 0xb1c   : > { %5750 = vrot.lane.b32.xlu0 %v18601_v46, %s12274_s7  ;;  %v5365_v24 = vpop.f32.mrf.mxu0  ;;  %v5386_v55 = vpop.f32.mrf.mxu1  ;;  %v14773_v31 = vadd.f32 %v12169_v49, %v5340_v52  ;;  %v12170_v46 = vld [vmem:[%s18450_s16 + $0x8] ss:$0 sm:$0xff] }
 0xb1d   : > { %v14747_v17 = vadd.f32 %v12167_v20, %v5386_v55  ;;  %v14776_v24 = vadd.f32 %v12170_v46, %v5225_v13  ;;  %v12171_v20 = vld [vmem:[%s18450_s16 + $0xc] ss:$0 sm:$0xff]  ;;  %s18982_s16 = sld [smem:[#allocation32_spill]] (!%p10902_p9) }
 0xb1e   : > { %v5429_v40 = vsel %vm2588_vm4, %v14773_v31, -inf }
 0xb1f   : > { %v5435_v61 = vsel %vm2588_vm4, %v14747_v17, -inf }
 0xb24   : > { %v5388_v0 = vpop.f32.mrf.mxu1 }
 0xb25   : > { %v5414_v0 = vsel %vm2588_vm4, %v14776_v24, -inf }
 0xb28   : > { %5729 = vrot.lane.b32.xlu2 %v18602_v45, %s12274_s7 }
 0xb46   : > { %5436 = vmax.xlane.f32.xlu0 %v5435_v61  ;;  %v14786_v61 = vadd.f32 %v12171_v20, %v5317_v63 }
 0xb48   : > { %v5426_v2 = vsel %vm2588_vm4, %v14786_v61, -inf }
 0xb4e   : > { %5406 = vmax.xlane.f32.xlu0 %v5405_v23 }
 0xb51   : > { %5433 = vmax.xlane.f32.xlu2 %v5432_v12 }
 0xb52   : > { %v5398_v8 = vpop.xlane.xlu0 %5397 }
 0xb53   : > { %v5440_v11 = vsub.f32 %v14701_v47, %v5398_v8 }
 0xb55   : > { %v5458_v22 = vmul.f32 1.442695, %v5440_v11 }
 0xb56   : > { %5418 = vmax.xlane.f32.xlu0 %v5417_v19 }
 0xb57   : > { %11789 = vpow2.f32 %v5458_v22 }
 0xb59   : > { %5403 = vmax.xlane.f32.xlu2 %v5402_v4 }
 0xb5b   : > { %v5401_v51 = vpop.xlane.xlu1 %5400 }
 0xb5c   : > { %v5441_v47 = vsub.f32 %v14706_v26, %v5401_v51 }
 0xb5d   : > { %v14783_v45 = vpop.eup %11789 }
 0xb5e   : > { %5430 = vmax.xlane.f32.xlu0 %v5429_v40  ;;  %v5460_v55 = vmul.f32 1.442695, %v5441_v47  ;;  %v5492_v26 = vsel %vm2588_vm4, %v14783_v45, 0.0 }
 0xb60   : > { %11791 = vpow2.f32 %v5460_v55 }
 0xb61   : > { %5415 = vmax.xlane.f32.xlu2 %v5414_v0 }
 0xb63   : > { %v5410_v52 = vpop.xlane.xlu1 %5409 }
 0xb64   : > { %v5444_v13 = vsub.f32 %v14711_v18, %v5410_v52 }
 0xb66   : > { %v5466_v9 = vmul.f32 1.442695, %v5444_v13  ;;  %5493 = vadd.xlane.f32.xlu0 %v5492_v26  ;;  %v14793_v23 = vpop.eup %11791 }
 0xb67   : > { %v5495_v63 = vsel %vm2588_vm4, %v14793_v23, 0.0 }
 0xb68   : > { %11793 = vpow2.f32 %v5466_v9  ;;  %v18606_v9 = vld [vmem:[#allocation35_spill] sm:$0xff] }
 0xb69   : > { %5427 = vmax.xlane.f32.xlu2 %v5426_v2 }
 0xb6b   : > { %v5413_v12 = vpop.xlane.xlu2 %5412  ;;  %v5392_v22 = vpop.xlane.xlu1 %5391 }
 0xb6c   : > { %v5445_v48 = vsub.f32 %v14719_v7, %v5413_v12  ;;  %v5438_v49 = vsub.f32 %v14716_v44, %v5392_v22 }
 0xb6e   : > { %v14798_v8 = vpop.eup %11793  ;;  %v5468_v18 = vmul.f32 1.442695, %v5445_v48  ;;  %5496 = vadd.xlane.f32.xlu0 %v5495_v63  ;;  %v5454_v46 = vmul.f32 1.442695, %v5438_v49 }
 0xb6f   : > { %v5504_v29 = vsel %vm2588_vm4, %v14798_v8, 0.0 }
 0xb70   : > { %11795 = vpow2.f32 %v5468_v18 }
 0xb71   : > { %5505 = vadd.xlane.f32.xlu2 %v5504_v29 }
 0xb76   : > { %v14802_v11 = vpop.eup %11795 }
 0xb77   : > { %v5507_v19 = vsel %vm2588_vm4, %v14802_v11, 0.0 }
 0xb79   : > { %5508 = vadd.xlane.f32.xlu2 %v5507_v19 }
 0xb7b   : > { %v5422_v7 = vpop.xlane.xlu2 %5421  ;;  %v5425_v2 = vpop.xlane.xlu0 %5424 }
 0xb7c   : > { %v5448_v4 = vsub.f32 %v14726_v37, %v5422_v7  ;;  %v5449_v12 = vsub.f32 %v14729_v62, %v5425_v2 }
 0xb7e   : > { %v5474_v51 = vmul.f32 1.442695, %v5448_v4  ;;  %v5476_v48 = vmul.f32 1.442695, %v5449_v12 }
 0xb80   : > { %11797 = vpow2.f32 %v5474_v51 }
 0xb81   : > { %11799 = vpow2.f32 %v5454_v46 }
 0xb83   : > { %v5395_v47 = vpop.xlane.xlu2 %5394 }
 0xb84   : > { %v5439_v40 = vsub.f32 %v14736_v33, %v5395_v47 }
 0xb86   : > { %v14809_v55 = vpop.eup %11797  ;;  %v5456_v0 = vmul.f32 1.442695, %v5439_v40 }
 0xb87   : > { %v5516_v52 = vsel %vm2588_vm4, %v14809_v55, 0.0  ;;  %v14813_v13 = vpop.eup %11799 }
 0xb88   : > { %11801 = vpow2.f32 %v5456_v0  ;;  %5517 = vadd.xlane.f32.xlu0 %v5516_v52  ;;  %v5486_v26 = vsel %vm2588_vm4, %v14813_v13, 0.0 }
 0xb89   : > { %11803 = vpow2.f32 %v5476_v48 }
 0xb8b   : > { %v5730_v20 = vpop.permute.xlu2 %5729 }
 0xb8c   : > { %v5735_v44 = vsel %vm2784_vm5, %v5730_v20, 0 }
 0xb8d   : > { %5744 = vmatpush.bf16.msrb.mxu1 %v5735_v44 }
 0xb8e   : > { %v14816_v37 = vpop.eup %11801  ;;  %v14825_v63 = vpop.permute.xlu0 %5750 }
 0xb8f   : > { %v5489_v33 = vsel %vm2588_vm4, %v14816_v37, 0.0  ;;  %v14827_v18 = vpop.eup %11803 }
 0xb90   : > { %5490 = vadd.xlane.f32.xlu1 %v5489_v33  ;;  %5487 = vadd.xlane.f32.xlu0 %v5486_v26  ;;  %v5519_v19 = vsel %vm2588_vm4, %v14827_v18, 0.0 }
 0xb91   : > { %5792 = vrot.lane.b32.xlu2 %v18606_v9, %s12274_s7 }
 0xbb9   : > { %v14829_v29 = vpop.xlane.xlu0 %5436 }
 0xbba   : > { %5520 = vadd.xlane.f32.xlu2 %v5519_v19 }
 0xbc1   : > { %v5407_v22 = vpop.xlane.xlu0 %5406 }
 0xbc2   : > { %v5443_v7 = vsub.f32 %v14752_v43, %v5407_v22 }
 0xbc4   : > { %v5464_v4 = vmul.f32 1.442695, %v5443_v7  ;;  %v14834_v49 = vpop.xlane.xlu2 %5433 }
 0xbc6   : > { %11805 = vpow2.f32 %v5464_v4 }
 0xbc9   : > { %v14836_v62 = vpop.xlane.xlu0 %5418 }
 0xbcc   : > { %v14838_v51 = vpop.eup %11805  ;;  %v5404_v46 = vpop.xlane.xlu2 %5403 }
 0xbcd   : > { %v5442_v47 = vsub.f32 %v14765_v25, %v5404_v46  ;;  %v5501_v40 = vsel %vm2588_vm4, %v14838_v51, 0.0 }
 0xbce   : > { %5502 = vadd.xlane.f32.xlu1 %v5501_v40 }
 0xbcf   : > { %v5462_v0 = vmul.f32 1.442695, %v5442_v47 }
 0xbd1   : > { %11807 = vpow2.f32 %v5462_v0  ;;  %v5431_v52 = vpop.xlane.xlu0 %5430 }
 0xbd2   : > { %v5451_v43 = vsub.f32 %v14773_v31, %v5431_v52 }
 0xbd4   : > { %v5480_v20 = vmul.f32 1.442695, %v5451_v43  ;;  %v5416_v44 = vpop.xlane.xlu2 %5415 }
 0xbd5   : > { %v5446_v33 = vsub.f32 %v14776_v24, %v5416_v44  ;;  %v18607_v44 = vld [vmem:[#allocation81_spill] sm:$0xff] }
 0xbd6   : > { %11809 = vpow2.f32 %v5480_v20 }
 0xbd7   : > { %v14845_v26 = vpop.eup %11807  ;;  %v5470_v9 = vmul.f32 1.442695, %v5446_v33 }
 0xbd8   : > { %v5498_v25 = vsel %vm2588_vm4, %v14845_v26, 0.0 }
 0xbd9   : > { %11811 = vpow2.f32 %v5470_v9  ;;  %5499 = vadd.xlane.f32.xlu0 %v5498_v25  ;;  %v5494_v2 = vpop.xlane.xlu0 %5493 }
 0xbda   : > { %11813 = vrcp.f32 %v5494_v2 }
 0xbdc   : > { %v14849_v12 = vpop.eup %11809  ;;  %v14851_v48 = vpop.xlane.xlu2 %5427 }
 0xbdd   : > { %v5525_v31 = vsel %vm2588_vm4, %v14849_v12, 0.0 }
 0xbde   : > { %5526 = vadd.xlane.f32.xlu2 %v5525_v31  ;;  %v18608_v31 = vld [vmem:[#allocation88_spill] sm:$0xff] }
 0xbdf   : > { %v14855_v24 = vpop.eup %11811 }
 0xbe0   : > { %v11814_v19 = vpop.eup %11813  ;;  %v5510_v22 = vsel %vm2588_vm4, %v14855_v24, 0.0 }
 0xbe1   : > { %v5552_v7 = vmul.f32 %v11814_v19, %v14783_v45  ;;  %5511 = vadd.xlane.f32.xlu1 %v5510_v22  ;;  %v5497_v4 = vpop.xlane.xlu0 %5496  ;;  %v5772_v19 = vpop.permute.xlu1 %5771 }
 0xbe2   : > { %11815 = vrcp.f32 %v5497_v4 }
 0xbe3   : > { %v5568_v46 = vpack.c.bf16 %v5552_v7, %v5552_v7 }
 0xbe4   : > { %v5506_v47 = vpop.xlane.xlu2 %5505 }
 0xbe5   : > { %10536 = vmatmul.msk.bf16.vlgmr.msrb.gmra.mxu0 %vm2588_vm4, %v5568_v46  ;;  %11817 = vrcp.f32 %v5506_v47 }
 0xbe8   : > { %v11816_v40 = vpop.eup %11815 }
 0xbe9   : > { %v5553_v0 = vmul.f32 %v11816_v40, %v14793_v23  ;;  %v18609_v40 = vld [vmem:[#allocation40_spill] sm:$0xff] }
 0xbeb   : > { %v5569_v52 = vpack.c.bf16 %v5553_v0, %v5553_v0  ;;  %v11818_v43 = vpop.eup %11817  ;;  %v18610_v0 = vld [vmem:[#allocation41_spill] sm:$0xff] }
 0xbec   : > { %v5509_v20 = vpop.xlane.xlu2 %5508  ;;  %v5556_v45 = vmul.f32 %v11818_v43, %v14798_v8 }
 0xbed   : > { %5834 = vrot.lane.b32.xlu0 %v18607_v44, %s12274_s7  ;;  %10537 = vmatmul.msk.bf16.vlgmr.msra.gmra.mxu1 %vm2588_vm4, %v5569_v52  ;;  %11819 = vrcp.f32 %v5509_v20  ;;  %v18611_v52 = vpack.i.bf16 %v18609_v40, %v18610_v0 }
 0xbee   : > { %v5572_v33 = vpack.c.bf16 %v5556_v45, %v5556_v45 }
 0xbf3   : > { %v11820_v9 = vpop.eup %11819 }
 0xbf4   : > { %v5793_v25 = vpop.permute.xlu2 %5792  ;;  %v5557_v23 = vmul.f32 %v11820_v9, %v14802_v11  ;;  %v5447_v11 = vsub.f32 %v14762_v30, %v14836_v62  ;;  %v18612_v30 = vld [vmem:[#allocation67_spill] sm:$0xff]  ;;  %v5756_v9 = vsel %vm2784_vm5, %v14825_v63, 0 }
 0xbf5   : > { %v5798_v2 = vsel %vm2784_vm5, %v5793_v25, 0  ;;  %10540 = vmatmul.msk.bf16.vlgmr.msra.gmra.mxu0 %vm2588_vm4, %v5572_v33  ;;  %v18613_v62 = vld [vmem:[#allocation39_spill] sm:$0xff]  ;;  %v5777_v33 = vsel %vm2784_vm5, %v5772_v19, 0 }
 0xbf6   : > { %5897 = vrot.lane.b32.xlu2 %v14011_v56, %s12274_s7  ;;  %5807 = vmatpush.bf16.msrb.mxu0 %v5798_v2  ;;  %v5573_v22 = vpack.c.bf16 %v5557_v23, %v5557_v23  ;;  %v5472_v53 = vmul.f32 1.442695, %v5447_v11  ;;  %v18614_v45 = vpack.i.bf16 %v18612_v30, %v18613_v62  ;;  %v5450_v23 = vsub.f32 %v14786_v61, %v14851_v48  ;;  %v18616_v11 = vld [vmem:[#allocation43_spill] sm:$0xff] }
 0xbf7   : > { %v5453_v61 = vsub.f32 %v14747_v17, %v14829_v29 }
 0xbf9   : > { %v5484_v48 = vmul.f32 1.442695, %v5453_v61 }
 0xbfa   : > { %5813 = vrot.lane.b32.xlu1 %v18608_v31, %s12274_s7  ;;  %v5478_v31 = vmul.f32 1.442695, %v5450_v23 }
 0xbfb   : > { %v5518_v7 = vpop.xlane.xlu0 %5517 }
 0xbfc   : > { %11821 = vrcp.f32 %v5518_v7 }
 0xbfd   : > { %10541 = vmatmul.msk.bf16.vlgmr.msrb.gmra.mxu1 %vm2588_vm4, %v5573_v22 }
 0xbfe   : > { %11427 = vrot.lane.b32.xlu2 %v11426_v38, %s12273_s18 }
 0xc02   : > { %v11822_v8 = vpop.eup %11821 }
 0xc03   : > { %v5560_v56 = vmul.f32 %v11822_v8, %v14809_v55  ;;  %v5491_v4 = vpop.xlane.xlu1 %5490  ;;  %v5488_v46 = vpop.xlane.xlu0 %5487 }
 0xc04   : > { %11823 = vrcp.f32 %v5491_v4 }
 0xc05   : > { %v5576_v47 = vpack.c.bf16 %v5560_v56, %v5560_v56  ;;  %11825 = vrcp.f32 %v5488_v46 }
 0xc06   : > { %11437 = vrot.lane.b32.xlu2 %v18611_v52, %s12274_s7  ;;  %11827 = vpow2.f32 %v5472_v53 }
 0xc07   : > { %10544 = vmatmul.msk.bf16.vlgmr.msrb.gmra.mxu0 %vm2588_vm4, %v5576_v47  ;;  %v18617_v47 = vld [vmem:[#allocation34_spill] sm:$0xff] }
 0xc08   : > { %v18618_v40 = vpack.i.bf16 %v18616_v11, %v18617_v47 }
 0xc0a   : > { %v11824_v15 = vpop.eup %11823 }
 0xc0b   : > { %v11826_v38 = vpop.eup %11825  ;;  %v5551_v55 = vmul.f32 %v11824_v15, %v14816_v37 }
 0xc0c   : > { %v5550_v43 = vmul.f32 %v11826_v38, %v14813_v13  ;;  %v5452_v13 = vsub.f32 %v14755_v32, %v14834_v49  ;;  %v14899_v37 = vpop.eup %11827  ;;  %v18615_v49 = vld [vmem:[#allocation55_spill] sm:$0xff] }
 0xc0d   : > { %v5567_v20 = vpack.c.bf16 %v5551_v55, %v5551_v55  ;;  %v5513_v2 = vsel %vm2588_vm4, %v14899_v37, 0.0 }
 0xc0e   : > { %v5566_v44 = vpack.c.bf16 %v5550_v43, %v5550_v43  ;;  %11452 = vrot.lane.b32.xlu2 %v18614_v45, %s12274_s7  ;;  %v5482_v25 = vmul.f32 1.442695, %v5452_v13 }
 0xc0f   : > { %10535 = vmatmul.msk.bf16.vlgmr.msra.gmra.mxu3 %vm2588_vm4, %v5567_v20 }
 0xc10   : > { %10534 = vmatmul.msk.bf16.vlgmr.msra.gmra.mxu2 %vm2588_vm4, %v5566_v44  ;;  %5786 = vmatpush.bf16.msra.mxu3 %v5777_v33  ;;  %11829 = vpow2.f32 %v5482_v25 }
 0xc11   : > { %5765 = vmatpush.bf16.msra.mxu2 %v5756_v9  ;;  %11831 = vpow2.f32 %v5478_v31 }
 0xc16   : > { %v14905_v63 = vpop.eup %11829 }
 0xc17   : > { %5514 = vadd.xlane.f32.xlu0 %v5513_v2  ;;  %v5528_v19 = vsel %vm2588_vm4, %v14905_v63, 0.0  ;;  %v14909_v32 = vpop.eup %11831 }
 0xc18   : > { %v5522_v22 = vsel %vm2588_vm4, %v14909_v32, 0.0 }
 0xc24   : > { %5529 = vadd.xlane.f32.xlu1 %v5528_v19 }
 0xc2b   : > { %5855 = vrot.lane.b32.xlu0 %v18615_v49, %s12274_s7 }
 0xc2c   : > { %5523 = vadd.xlane.f32.xlu1 %v5522_v22 }
 0xc2d   : > { %v5521_v53 = vpop.xlane.xlu2 %5520 }
 0xc41   : > { %v5503_v7 = vpop.xlane.xlu1 %5502 }
 0xc42   : > { %11833 = vrcp.f32 %v5503_v7 }
 0xc43   : > { %11835 = vpow2.f32 %v5484_v48 }
 0xc45   : > { %5876 = vrot.lane.b32.xlu1 %v14078_v58, %s12274_s7 }
 0xc48   : > { %v11834_v8 = vpop.eup %11833 }
 0xc49   : > { %v5555_v56 = vmul.f32 %v11834_v8, %v14838_v51  ;;  %v14925_v0 = vpop.eup %11835  ;;  %v18619_v8 = vld [vmem:[#allocation38_spill] sm:$0xff] }
 0xc4a   : > { %v5531_v29 = vsel %vm2588_vm4, %v14925_v0, 0.0 }
 0xc4b   : > { %v5571_v4 = vpack.c.bf16 %v5555_v56, %v5555_v56  ;;  %v18620_v56 = vld [vmem:[#allocation42_spill] sm:$0xff] }
 0xc4c   : > { %v5500_v46 = vpop.xlane.xlu0 %5499 }
 0xc4d   : > { %11837 = vrcp.f32 %v5500_v46  ;;  %11422 = vrot.lane.b32.xlu1 %v18618_v40, %s12274_s7  ;;  %10539 = vmatmul.msk.bf16.vlgmr.msrb.gmra.mxu3 %vm2588_vm4, %v5571_v4  ;;  %v18625_v40 = vld [vmem:[#allocation52_spill] sm:$0xff] }
 0xc51   : > { %v5527_v43 = vpop.xlane.xlu2 %5526 }
 0xc53   : > { %v11838_v17 = vpop.eup %11837 }
 0xc54   : > { %v5554_v58 = vmul.f32 %v11838_v17, %v14845_v26  ;;  %v5512_v52 = vpop.xlane.xlu1 %5511  ;;  %v18626_v17 = vld [vmem:[#allocation60_spill] sm:$0xff] }
 0xc55   : > { %5532 = vadd.xlane.f32.xlu0 %v5531_v29  ;;  %11839 = vrcp.f32 %v5512_v52  ;;  %v18628_v29 = vld [vmem:[#allocation91_spill] sm:$0xff] }
 0xc56   : > { %v5570_v51 = vpack.c.bf16 %v5554_v58, %v5554_v58  ;;  %11841 = vrcp.f32 %v5521_v53  ;;  %v18627_v58 = vpack.i.bf16 %v18625_v40, %v18626_v17  ;;  %v18630_v53 = vld [vmem:[#allocation90_spill] sm:$0xff] }
 0xc58   : > { %10538 = vmatmul.msk.bf16.vlgmr.msrb.gmra.mxu2 %vm2588_vm4, %v5570_v51 }
 0xc59   : > { %v5898_v9 = vpop.permute.xlu2 %5897 }
 0xc5b   : > { %v11840_v15 = vpop.eup %11839 }
 0xc5c   : > { %v5558_v20 = vmul.f32 %v11840_v15, %v14855_v24  ;;  %v11842_v30 = vpop.eup %11841  ;;  %v5903_v24 = vsel %vm2784_vm5, %v5898_v9, 0  ;;  %v18631_v15 = vld [vmem:[#allocation92_spill] sm:$0xff] }
 0xc5d   : > { %v5561_v33 = vmul.f32 %v11842_v30, %v14827_v18 }
 0xc5e   : > { %v5574_v44 = vpack.c.bf16 %v5558_v20, %v5558_v20 }
 0xc5f   : > { %v5835_v38 = vpop.permute.xlu0 %5834  ;;  %v5577_v2 = vpack.c.bf16 %v5561_v33, %v5561_v33  ;;  %v11188_v33 = vld [vmem:[%s12500_s26 + $0x20] sm:$0xff] }
 0xc60   : > { %v5840_v55 = vsel %vm2784_vm5, %v5835_v38, 0  ;;  %v18632_v38 = vpack.i.bf16 %v18630_v53, %v18631_v15 }
 0xc61   : > { %5849 = vmatpush.bf16.msrb.mxu2 %v5840_v55 }
 0xc62   : > { %v5641_v26 = vpop.f32.mrf.mxu0 }
 0xc68   : > { %10542 = vmatmul.msk.bf16.vlgmr.msra.gmra.mxu2 %vm2588_vm4, %v5574_v44  ;;  %v11190_v44 = vld [vmem:[%s12500_s26 + $0x30] sm:$0xff] }
 0xc69   : > { %11442 = vrot.lane.b32.xlu0 %v11441_v42, %s12273_s18 }
 0xc6a   : > { %v5643_v62 = vpop.f32.mrf.mxu0  ;;  %v5662_v45 = vpop.f32.mrf.mxu1 }
 0xc6b   : > { %v11446_v19 = vpack.i.bf16 %v5662_v45, %v5641_v26  ;;  %v11189_v62 = vld [vmem:[%s12500_s26 + $0x28] sm:$0xff] }
 0xc6c   : > { %v5814_v13 = vpop.permute.xlu1 %5813 }
 0xc6d   : > { %v5819_v25 = vsel %vm2784_vm5, %v5814_v13, 0  ;;  %v11187_v13 = vld [vmem:[%s12500_s26 + $0x18] sm:$0xff] }
 0xc6e   : > { %5828 = vmatpush.bf16.msra.mxu1 %v5819_v25  ;;  %v11186_v25 = vld [vmem:[%s12500_s26 + $0x10] sm:$0xff] }
 0xc71   : > { %11472 = vrot.lane.b32.xlu0 %v11471_v3, %s12273_s18  ;;  %10545 = vmatmul.msk.bf16.vlgmr.msra.gmra.mxu1 %vm2588_vm4, %v5577_v2  ;;  %v11185_v2 = vld [vmem:[%s12500_s26 + $0x8] sm:$0xff] }
 0xc72   : > { %5912 = vmatpush.bf16.msrb.mxu1 %v5903_v24  ;;  %v5664_v14 = vpop.f32.mrf.mxu1  ;;  %v14946_v27 = vpop.f32.mrf.mxu0 }
 0xc79   : > { %11487 = vrot.lane.b32.xlu0 %v11486_v5, %s12273_s18 }
 0xc7a   : > { %v5727_v42 = vpop.f32.mrf.mxu0  ;;  %v14952_v18 = vpop.f32.mrf.mxu1 }
 0xc7b   : > { %v11476_v23 = vpack.i.bf16 %v14952_v18, %v14946_v27  ;;  %v11184_v42 = vld [vmem:[%s12500_s26] sm:$0xff] }
 0xc7c   : > { %v18634_v18 = vld [vmem:[#allocation45_spill] sm:$0xff] }
 0xc81   : > { %11502 = vrot.lane.b32.xlu0 %v11501_v57, %s12273_s18 }
 0xc82   : > { %v5748_v28 = vpop.f32.mrf.mxu1 }
 0xc84   : > { %v14960_v50 = vpop.f32.mrf.mxu0 }
 0xc89   : > { %11517 = vrot.lane.b32.xlu0 %v11516_v1, %s12273_s18 }
 0xc8a   : > { %v5515_v3 = vpop.xlane.xlu0 %5514 }
 0xc8b   : > { %11843 = vrcp.f32 %v5515_v3 }
 0xc8c   : > { %v5811_v21 = vpop.f32.mrf.mxu0  ;;  %11845 = vrcp.f32 %v5527_v43  ;;  %v11191_v43 = vld [vmem:[%s12500_s26 + $0x38] sm:$0xff]  ;;  %s18970_s26 = sld [smem:[#allocation17_spill]] (!%p10902_p9) }
 0xc8d   : > { %11326 = vmatpush.bf16.msra.mxu2 %v11191_v43 }
 0xc91   : > { %v11844_v41 = vpop.eup %11843  ;;  %11532 = vrot.lane.b32.xlu0 %v11531_v54, %s12273_s18  ;;  %11328 = vmatpush.bf16.msra.mxu2 %v11190_v44 }
 0xc92   : > { %v5559_v59 = vmul.f32 %v11844_v41, %v14899_v37  ;;  %v5620_v16 = vpop.f32.mrf.mxu3  ;;  %v11846_v49 = vpop.eup %11845 }
 0xc93   : > { %v5599_v57 = vpop.f32.mrf.mxu2  ;;  %v5563_v54 = vmul.f32 %v11846_v49, %v14849_v12  ;;  %v18621_v12 = vpack.i.bf16 %v18619_v8, %v18620_v56 }
 0xc94   : > { %v5575_v5 = vpack.c.bf16 %v5559_v59, %v5559_v59  ;;  %v11431_v31 = vpack.i.bf16 %v5620_v16, %v5599_v57  ;;  %v11428_v57 = vpop.permute.xlu2 %11427 }
 0xc95   : > { %v5579_v37 = vpack.c.bf16 %v5563_v54, %v5563_v54  ;;  %11330 = vmatpush.bf16.msra.mxu2 %v11189_v62 }
 0xc96   : > { %11432 = vrot.lane.b32.xlu1 %v11431_v31, %s12272_s27  ;;  %10543 = vmatmul.msk.bf16.vlgmr.msra.gmra.mxu3 %vm2588_vm4, %v5575_v5  ;;  %v18633_v5 = vld [vmem:[#allocation59_spill] sm:$0xff]  ;;  %v11430_v31 = vunpack.i.h.bf16 %v11428_v57 }
 0xc97   : > { %v5530_v34 = vpop.xlane.xlu1 %5529 }
 0xc99   : > { %11332 = vmatpush.bf16.msra.mxu2 %v11188_v33 }
 0xc9a   : > { %v5622_v36 = vpop.f32.mrf.mxu3 }
 0xc9b   : > { %v5601_v1 = vpop.f32.mrf.mxu2 }
 0xc9d   : > { %v5856_v22 = vpop.permute.xlu0 %5855  ;;  %11334 = vmatpush.bf16.msra.mxu2 %v11187_v13 }
 0xc9e   : > { %11447 = vrot.lane.b32.xlu1 %v11446_v19, %s12272_s27  ;;  %v5861_v60 = vsel %vm2784_vm5, %v5856_v22, 0 }
 0xc9f   : > { %v5524_v6 = vpop.xlane.xlu1 %5523  ;;  %5870 = vmatpush.bf16.msrb.mxu3 %v5861_v60 }
 0xca0   : > { %11847 = vrcp.f32 %v5524_v6 }
 0xca1   : > { %11849 = vrcp.f32 %v5530_v34  ;;  %11336 = vmatpush.bf16.msra.mxu2 %v11186_v25  ;;  %v11429_v34 = vunpack.i.l.bf16 %v11428_v57 }
 0xca3   : > { %11327 = vmatpush.bf16.msra.mxu3 %v11191_v43 }
 0xca5   : > { %11338 = vmatpush.bf16.msra.mxu2 %v11185_v2 }
 0xca6   : > { %v11848_v7 = vpop.eup %11847  ;;  %11457 = vrot.lane.b32.xlu1 %v11456_v39, %s12273_s18  ;;  %10547 = vmatmul.msk.bf16.vlgmr.msrb.gmra.mxu3 %vm2588_vm4, %v5579_v37  ;;  %v18624_v39 = vpack.i.bf16 %v18622_v10, %v18623_v35  ;;  %v11438_v37 = vpop.permute.xlu2 %11437  ;;  %v18635_v10 = vld [vmem:[#allocation72_spill] sm:$0xff] }
 0xca7   : > { %v5562_v61 = vmul.f32 %v11848_v7, %v14909_v32  ;;  %v11850_v4 = vpop.eup %11849  ;;  %11329 = vmatpush.bf16.msra.mxu3 %v11190_v44  ;;  %v11439_v8 = vunpack.i.l.bf16 %v11438_v37 }
 0xca8   : > { %v5564_v46 = vmul.f32 %v11850_v4, %v14905_v63  ;;  %v18629_v63 = vld [vmem:[#allocation94_spill] sm:$0xff] }
 0xca9   : > { %v5578_v48 = vpack.c.bf16 %v5562_v61, %v5562_v61  ;;  %v11511_v51 = vpack.i.bf16 %v18629_v63, %v18628_v29  ;;  %11340 = vmatpush.bf16.msra.mxu2 %v11184_v42 }
 0xcaa   : > { %v5580_v47 = vpack.c.bf16 %v5564_v46, %v5564_v46 }
 0xcab   : > { %10546 = vmatmul.msk.bf16.vlgmr.msrb.gmra.mxu2 %vm2588_vm4, %v5578_v48  ;;  %11331 = vmatpush.bf16.msra.mxu3 %v11189_v62  ;;  %v11440_v48 = vunpack.i.h.bf16 %v11438_v37 }
 0xcad   : > { %v6113_v35 = vsel %vm2283_vm10, %v18635_v10, %v11440_v48 }
 0xcae   : > { %11467 = vrot.lane.b32.xlu1 %v18621_v12, %s12274_s7 }
 0xcaf   : > { %11333 = vmatpush.bf16.msra.mxu3 %v11188_v33 }
 0xcb3   : > { %11335 = vmatpush.bf16.msra.mxu3 %v11187_v13 }
 0xcb6   : > { %11482 = vrot.lane.b32.xlu1 %v18624_v39, %s12274_s7  ;;  %v18636_v39 = vld [vmem:[#allocation53_spill] sm:$0xff] }
 0xcb7   : > { %v5877_v11 = vpop.permute.xlu1 %5876  ;;  %11337 = vmatpush.bf16.msra.mxu3 %v11186_v25 }
 0xcb8   : > { %v5882_v32 = vsel %vm2784_vm5, %v5877_v11, 0  ;;  %v6112_v11 = vsel %vm2283_vm10, %v18636_v39, %v11439_v8 }
 0xcb9   : > { %5891 = vmatpush.bf16.msra.mxu0 %v5882_v32 }
 0xcbb   : > { %11339 = vmatpush.bf16.msra.mxu3 %v11185_v2 }
 0xcbc   : > { %10548 = vmatmul.msk.bf16.vlgmr.msra.gmra.mxu0 %vm2588_vm4, %v5580_v47 }
 0xcbd   : > { %6236 = vmatpush.bf16.msrb.mxu0 %v11191_v43 }
 0xcbe   : > { %11497 = vrot.lane.b32.xlu1 %v18627_v58, %s12274_s7 }
 0xcbf   : > { %11341 = vmatpush.bf16.msra.mxu3 %v11184_v42  ;;  %v11423_v41 = vpop.permute.xlu1 %11422 }
 0xcc0   : > { %v11425_v59 = vunpack.i.h.bf16 %v11423_v41  ;;  %v11424_v16 = vunpack.i.l.bf16 %v11423_v41 }
 0xcc1   : > { %6237 = vmatpush.bf16.msrb.mxu0 %v11190_v44 }
 0xcc2   : > { %v6111_v27 = vsel %vm2283_vm10, %v18633_v5, %v11425_v59 }
 0xcc3   : > { %v6128_v22 = vsel %vm6126_vm6, %v6111_v27, %v11430_v31  ;;  %v18640_v31 = vld [vmem:[#allocation75_spill] sm:$0xff] }
 0xcc5   : > { %6238 = vmatpush.bf16.msrb.mxu0 %v11189_v62 }
 0xcc6   : > { %11512 = vrot.lane.b32.xlu1 %v11511_v51, %s12274_s7 }
 0xcc8   : > { %v5533_v52 = vpop.xlane.xlu0 %5532 }
 0xcc9   : > { %11851 = vrcp.f32 %v5533_v52  ;;  %6239 = vmatpush.bf16.msrb.mxu0 %v11188_v33 }
 0xccd   : > { %6240 = vmatpush.bf16.msrb.mxu0 %v11187_v13 }
 0xcce   : > { %11527 = vrot.lane.b32.xlu1 %v18632_v38, %s12274_s7 }
 0xccf   : > { %v11852_v55 = vpop.eup %11851 }
 0xcd0   : > { %v5565_v20 = vmul.f32 %v11852_v55, %v14925_v0  ;;  %v5704_v26 = vpop.f32.mrf.mxu3  ;;  %v11453_v55 = vpop.permute.xlu2 %11452 }
 0xcd1   : > { %6241 = vmatpush.bf16.msrb.mxu0 %v11186_v25  ;;  %v11454_v44 = vunpack.i.l.bf16 %v11453_v55 }
 0xcd2   : > { %v5581_v30 = vpack.c.bf16 %v5565_v20, %v5565_v20 }
 0xcd4   : > { %10549 = vmatmul.msk.bf16.vlgmr.msrb.gmra.mxu1 %vm2588_vm4, %v5581_v30 }
 0xcd5   : > { %6242 = vmatpush.bf16.msrb.mxu0 %v11185_v2 }
 0xcd8   : > { %v5706_v45 = vpop.f32.mrf.mxu3 }
 0xcd9   : > { %6243 = vmatpush.bf16.msrb.mxu0 %v11184_v42 }
 0xcdb   : > { %v5683_v0 = vpop.f32.mrf.mxu2  ;;  %v11443_v7 = vpop.permute.xlu0 %11442 }
 0xcdc   : > { %v11461_v9 = vpack.i.bf16 %v5704_v26, %v5683_v0  ;;  %v11445_v56 = vunpack.i.h.bf16 %v11443_v7  ;;  %v11444_v12 = vunpack.i.l.bf16 %v11443_v7  ;;  %v11455_v26 = vunpack.i.h.bf16 %v11453_v55  ;;  %v18637_v0 = vld [vmem:[#allocation74_spill] sm:$0xff] }
 0xcde   : > { %11462 = vrot.lane.b32.xlu2 %v11461_v9, %s12272_s27  ;;  %v6130_v32 = vsel %vm6126_vm6, %v6113_v35, %v11445_v56  ;;  %v6129_v47 = vsel %vm6126_vm6, %v6112_v11, %v11444_v12  ;;  %v6115_v9 = vsel %vm2283_vm10, %v18637_v0, %v11455_v26  ;;  %v18642_v35 = vld [vmem:[#allocation79_spill] sm:$0xff]  ;;  %v18644_v26 = vld [vmem:[#allocation50_spill] sm:$0xff] }
 0xce3   : > { %v5685_v24 = vpop.f32.mrf.mxu2  ;;  %v11473_v27 = vpop.permute.xlu0 %11472 }
 0xce6   : > { %11477 = vrot.lane.b32.xlu2 %v11476_v23, %s12272_s27  ;;  %v6110_v23 = vsel %vm2283_vm10, %v18634_v18, %v11424_v16  ;;  %v18639_v18 = vld [vmem:[#allocation77_spill] sm:$0xff] }
 0xce7   : > { %v6127_v49 = vsel %vm6126_vm6, %v6110_v23, %v11429_v34 }
 0xceb   : > { %v5767_v14 = vpop.f32.mrf.mxu2  ;;  %v11488_v56 = vpop.permute.xlu0 %11487 }
 0xcec   : > { %v11490_v11 = vunpack.i.h.bf16 %v11488_v56 }
 0xcee   : > { %v5830_v28 = vpop.f32.mrf.mxu1 }
 0xcef   : > { %v11506_v52 = vpack.i.bf16 %v5830_v28, %v14960_v50  ;;  %v18638_v50 = vld [vmem:[#allocation73_spill] sm:$0xff] }
 0xcf0   : > { %v6114_v13 = vsel %vm2283_vm10, %v18638_v50, %v11454_v44 }
 0xcf3   : > { %v5769_v3 = vpop.f32.mrf.mxu2  ;;  %v11503_v55 = vpop.permute.xlu0 %11502 }
 0xcf6   : > { %v5832_v21 = vpop.f32.mrf.mxu1 }
 0xd08   : > { %v11433_v36 = vpop.permute.xlu1 %11432 }
 0xd09   : > { %v11435_v1 = vunpack.i.h.bf16 %v11433_v36  ;;  %v11434_v19 = vunpack.i.l.bf16 %v11433_v36 }
 0xd0b   : > { %v6145_v60 = vsel %vm6143_vm7, %v6128_v22, %v11435_v1  ;;  %v6144_v6 = vsel %vm6143_vm7, %v6127_v49, %v11434_v19  ;;  %v11475_v19 = vunpack.i.h.bf16 %v11473_v27  ;;  %v11474_v49 = vunpack.i.l.bf16 %v11473_v27 }
 0xd0c   : > { %v6160_v54 = vpack.c.bf16 %v6145_v60, %v6144_v6 }
 0xd0e   : > { %6244 = vmatmul.bf16.vlgmr.msrb.gmra.mxu0 %v6160_v54 }
 0xd10   : > { %v11448_v61 = vpop.permute.xlu1 %11447 }
 0xd11   : > { %v11450_v4 = vunpack.i.h.bf16 %v11448_v61  ;;  %v11449_v46 = vunpack.i.l.bf16 %v11448_v61 }
 0xd13   : > { %v6146_v17 = vsel %vm6143_vm7, %v6129_v47, %v11449_v46  ;;  %v6147_v58 = vsel %vm6143_vm7, %v6130_v32, %v11450_v4  ;;  %v18641_v46 = vld [vmem:[#allocation51_spill] sm:$0xff]  ;;  %v11489_v32 = vunpack.i.l.bf16 %v11488_v56  ;;  %v12174_v56 = vld [vmem:[#allocation2 + $0x58] sm:$0xff] }
 0xd14   : > { %v6161_v63 = vpack.c.bf16 %v6147_v58, %v6146_v17 }
 0xd18   : > { %v11458_v20 = vpop.permute.xlu1 %11457 }
 0xd19   : > { %v5788_v40 = vpop.f32.mrf.mxu3  ;;  %v11460_v30 = vunpack.i.h.bf16 %v11458_v20  ;;  %v11459_v62 = vunpack.i.l.bf16 %v11458_v20 }
 0xd1a   : > { %v11491_v29 = vpack.i.bf16 %v5788_v40, %v5767_v14 }
 0xd1b   : > { %v6132_v14 = vsel %vm6126_vm6, %v6115_v9, %v11460_v30  ;;  %v6131_v42 = vsel %vm6126_vm6, %v6114_v13, %v11459_v62  ;;  %v11505_v30 = vunpack.i.h.bf16 %v11503_v55  ;;  %v11504_v62 = vunpack.i.l.bf16 %v11503_v55 }
 0xd1c   : > { %11492 = vrot.lane.b32.xlu2 %v11491_v29, %s12272_s27 }
 0xd1e   : > { %6249 = vmatmul.bf16.gmra.mxu0 %v6161_v63 }
 0xd20   : > { %v11468_v41 = vpop.permute.xlu1 %11467 }
 0xd21   : > { %v5790_v51 = vpop.f32.mrf.mxu3  ;;  %v11470_v59 = vunpack.i.h.bf16 %v11468_v41  ;;  %v11469_v16 = vunpack.i.l.bf16 %v11468_v41  ;;  %v18645_v41 = vld [vmem:[#allocation46_spill] sm:$0xff] }
 0xd23   : > { %v6117_v23 = vsel %vm2283_vm10, %v18639_v18, %v11470_v59  ;;  %v6116_v34 = vsel %vm2283_vm10, %v18640_v31, %v11469_v16  ;;  %v18646_v16 = vld [vmem:[#allocation82_spill] sm:$0xff] }
 0xd24   : > { %11507 = vrot.lane.b32.xlu2 %v11506_v52, %s12272_s27  ;;  %v6133_v22 = vsel %vm6126_vm6, %v6116_v34, %v11474_v49  ;;  %v6134_v60 = vsel %vm6126_vm6, %v6117_v23, %v11475_v19 }
 0xd28   : > { %v11483_v8 = vpop.permute.xlu1 %11482 }
 0xd29   : > { %v5872_v53 = vpop.f32.mrf.mxu3  ;;  %v11485_v12 = vunpack.i.h.bf16 %v11483_v8  ;;  %v11484_v4 = vunpack.i.l.bf16 %v11483_v8 }
 0xd2b   : > { %v6119_v10 = vsel %vm2283_vm10, %v18641_v46, %v11485_v12  ;;  %v6118_v39 = vsel %vm2283_vm10, %v18642_v35, %v11484_v4  ;;  %v12175_v35 = vld [vmem:[#allocation2 + $0x18] sm:$0xff] }
 0xd2c   : > { %v6135_v29 = vsel %vm6126_vm6, %v6118_v39, %v11489_v32  ;;  %v6136_v63 = vsel %vm6126_vm6, %v6119_v10, %v11490_v11 }
 0xd2e   : > { %v5851_v15 = vpop.f32.mrf.mxu2 }
 0xd2f   : > { %v11521_v38 = vpack.i.bf16 %v5872_v53, %v5851_v15 }
 0xd30   : > { %v11498_v47 = vpop.permute.xlu1 %11497 }
 0xd31   : > { %11522 = vrot.lane.b32.xlu2 %v11521_v38, %s12272_s27  ;;  %v5874_v43 = vpop.f32.mrf.mxu3  ;;  %v11500_v51 = vunpack.i.h.bf16 %v11498_v47  ;;  %v11499_v52 = vunpack.i.l.bf16 %v11498_v47 }
 0xd32   : > { %v18643_v43 = vld [vmem:[#allocation80_spill] sm:$0xff] }
 0xd33   : > { %v6121_v20 = vsel %vm2283_vm10, %v18643_v43, %v11500_v51  ;;  %v6120_v44 = vsel %vm2283_vm10, %v18644_v26, %v11499_v52 }
 0xd34   : > { %v6137_v9 = vsel %vm6126_vm6, %v6120_v44, %v11504_v62  ;;  %v6138_v50 = vsel %vm6126_vm6, %v6121_v20, %v11505_v30  ;;  %v12176_v62 = vld [vmem:[#allocation2 + $0x50] sm:$0xff] }
 0xd36   : > { %v5853_v45 = vpop.f32.mrf.mxu2 }
 0xd38   : > { %v11463_v33 = vpop.permute.xlu2 %11462 }
 0xd39   : > { %v11465_v25 = vunpack.i.h.bf16 %v11463_v33  ;;  %v11464_v24 = vunpack.i.l.bf16 %v11463_v33  ;;  %v5893_v2 = vpop.f32.mrf.mxu0 }
 0xd3b   : > { %v6149_v28 = vsel %vm6143_vm7, %v6132_v14, %v11465_v25  ;;  %v6148_v3 = vsel %vm6143_vm7, %v6131_v42, %v11464_v24 }
 0xd3c   : > { %v6162_v21 = vpack.c.bf16 %v6149_v28, %v6148_v3  ;;  %v11518_v28 = vpop.permute.xlu0 %11517  ;;  %v15076_v3 = vld [vmem:[%s1201_s12] ss:$0 sm:$0xff]  ;;  %s18965_s12 = sld [smem:[#allocation13_spill]] (!%p10902_p9) }
 0xd3d   : > { %v11519_v18 = vunpack.i.l.bf16 %v11518_v28 }
 0xd3e   : > { %6254 = vmatmul.bf16.vlgmr.msra.gmra.mxu2 %v6162_v21  ;;  %v11520_v21 = vunpack.i.h.bf16 %v11518_v28 }
 0xd40   : > { %v11478_v5 = vpop.permute.xlu2 %11477 }
 0xd41   : > { %v5895_v57 = vpop.f32.mrf.mxu0  ;;  %v11480_v36 = vunpack.i.h.bf16 %v11478_v5  ;;  %v11479_v1 = vunpack.i.l.bf16 %v11478_v5 }
 0xd43   : > { %v6150_v6 = vsel %vm6143_vm7, %v6133_v22, %v11479_v1  ;;  %v6151_v54 = vsel %vm6143_vm7, %v6134_v60, %v11480_v36  ;;  %v12172_v36 = vld [vmem:[#allocation2 + $0x30] sm:$0xff] }
 0xd44   : > { %v6163_v37 = vpack.c.bf16 %v6151_v54, %v6150_v6  ;;  %v11533_v47 = vpop.permute.xlu0 %11532 }
 0xd45   : > { %v11534_v51 = vunpack.i.l.bf16 %v11533_v47 }
 0xd4e   : > { %6259 = vmatmul.bf16.gmra.mxu2 %v6163_v37 }
 0xd51   : > { %v5914_v7 = vpop.f32.mrf.mxu1 }
 0xd52   : > { %v11536_v61 = vpack.i.bf16 %v5914_v7, %v5893_v2  ;;  %v11513_v2 = vpop.permute.xlu1 %11512  ;;  %v12173_v7 = vld [vmem:[#allocation2] sm:$0xff] }
 0xd53   : > { %v11515_v14 = vunpack.i.h.bf16 %v11513_v2  ;;  %v11514_v42 = vunpack.i.l.bf16 %v11513_v2 }
 0xd54   : > { %11537 = vrot.lane.b32.xlu2 %v11536_v61, %s12272_s27  ;;  %s18981_s27 = sld [smem:[#allocation23_spill]] (!%p10902_p9) }
 0xd55   : > { %v6123_v59 = vsel %vm2283_vm10, %v18645_v41, %v11515_v14  ;;  %v6122_v57 = vsel %vm2283_vm10, %v18646_v16, %v11514_v42  ;;  %v18656_v42 = vld [vmem:[#allocation33_spill] sm:$0xff] }
 0xd56   : > { %v6139_v19 = vsel %vm6126_vm6, %v6122_v57, %v11519_v18  ;;  %v6140_v49 = vsel %vm6126_vm6, %v6123_v59, %v11520_v21 }
 0xd59   : > { %v5916_v48 = vpop.f32.mrf.mxu1 }
 0xd5a   : > { %v11528_v10 = vpop.permute.xlu1 %11527 }
 0xd5b   : > { %v11530_v11 = vunpack.i.h.bf16 %v11528_v10  ;;  %v11529_v32 = vunpack.i.l.bf16 %v11528_v10 }
 0xd76   : > { %v11493_v40 = vpop.permute.xlu2 %11492 }
 0xd77   : > { %v11495_v17 = vunpack.i.h.bf16 %v11493_v40  ;;  %v11494_v58 = vunpack.i.l.bf16 %v11493_v40  ;;  %v18651_v40 = vld [vmem:[#allocation83_spill] sm:$0xff] }
 0xd79   : > { %v6152_v53 = vsel %vm6143_vm7, %v6135_v29, %v11494_v58  ;;  %v6153_v15 = vsel %vm6143_vm7, %v6136_v63, %v11495_v17  ;;  %v6125_v17 = vsel %vm2283_vm10, %v18651_v40, %v11530_v11  ;;  %v18652_v58 = vld [vmem:[#allocation58_spill] sm:$0xff]  ;;  %v11535_v63 = vunpack.i.h.bf16 %v11533_v47 }
 0xd7a   : > { %v6164_v38 = vpack.c.bf16 %v6153_v15, %v6152_v53  ;;  %v6124_v29 = vsel %vm2283_vm10, %v18652_v58, %v11529_v32  ;;  %v12182_v32 = vld [vmem:[#allocation2 + $0x10] sm:$0xff] }
 0xd7b   : > { %v6142_v55 = vsel %vm6126_vm6, %v6125_v17, %v11535_v63 }
 0xd7c   : > { %6264 = vmatmul.bf16.gmra.mxu2 %v6164_v38  ;;  %v6141_v38 = vsel %vm6126_vm6, %v6124_v29, %v11534_v51 }
 0xd7e   : > { %v11508_v45 = vpop.permute.xlu2 %11507 }
 0xd7f   : > { %v11510_v33 = vunpack.i.h.bf16 %v11508_v45  ;;  %v11509_v0 = vunpack.i.l.bf16 %v11508_v45 }
 0xd81   : > { %v6154_v13 = vsel %vm6143_vm7, %v6137_v9, %v11509_v0  ;;  %v6155_v25 = vsel %vm6143_vm7, %v6138_v50, %v11510_v33  ;;  %v12177_v9 = vld [vmem:[#allocation2 + $0x68] sm:$0xff] }
 0xd82   : > { %v6165_v24 = vpack.c.bf16 %v6155_v25, %v6154_v13 }
 0xd84   : > { %6269 = vmatmul.bf16.vlgmr.msra.gmra.mxu3 %v6165_v24  ;;  %v12178_v24 = vld [vmem:[#allocation2 + $0x8] sm:$0xff] }
 0xd8b   : > { %v6245_v5 = vpop.f32.mrf.mxu0  ;;  %v11523_v27 = vpop.permute.xlu2 %11522 }
 0xd8c   : > { %v6246_v23 = vadd.f32 %v15076_v3, %v6245_v5  ;;  %v11525_v31 = vunpack.i.h.bf16 %v11523_v27  ;;  %v11524_v34 = vunpack.i.l.bf16 %v11523_v27 }
 0xd8e   : > { %v15083_v1 = vadd.f32 %v12172_v36, %v6246_v23  ;;  %v6156_v22 = vsel %vm6143_vm7, %v6139_v19, %v11524_v34  ;;  %v6157_v60 = vsel %vm6143_vm7, %v6140_v49, %v11525_v31  ;;  %v12179_v23 = vld [vmem:[#allocation2 + $0x48] sm:$0xff] }
 0xd8f   : > { %v6166_v6 = vpack.c.bf16 %v6157_v60, %v6156_v22  ;;  %v12180_v60 = vld [vmem:[#allocation2 + $0x40] sm:$0xff] }
 0xd90   : > { %18647 = vst [vmem:[#allocation84_spill] sm:$0xff] %v15083_v1  ;;  %6303 = vadd.xlane.f32.xlu1 %v15083_v1 }
 0xd93   : > { %v6247_v54 = vpop.f32.mrf.mxu0 }
 0xd94   : > { %v6248_v37 = vadd.f32 %v15076_v3, %v6247_v54  ;;  %6274 = vmatmul.bf16.gmra.mxu3 %v6166_v6 }
 0xd96   : > { %v15091_v61 = vadd.f32 %v12173_v7, %v6248_v37 }
 0xd98   : > { %18648 = vst [vmem:[#allocation86_spill] sm:$0xff] %v15091_v61  ;;  %6305 = vadd.xlane.f32.xlu0 %v15091_v61 }
 0xd9b   : > { %v6250_v48 = vpop.f32.mrf.mxu0 }
 0xd9c   : > { %v6251_v8 = vadd.f32 %v15076_v3, %v6250_v48 }
 0xd9e   : > { %v15095_v12 = vadd.f32 %v12174_v56, %v6251_v8 }
 0xda0   : > { %18649 = vst [vmem:[#allocation37_spill] sm:$0xff] %v15095_v12  ;;  %6307 = vadd.xlane.f32.xlu2 %v15095_v12 }
 0xda3   : > { %v6252_v4 = vpop.f32.mrf.mxu0 }
 0xda4   : > { %v6253_v46 = vadd.f32 %v15076_v3, %v6252_v4  ;;  %v12181_v4 = vld [vmem:[#allocation2 + $0x20] sm:$0xff] }
 0xda6   : > { %v15099_v39 = vadd.f32 %v12175_v35, %v6253_v46 }
 0xda8   : > { %18650 = vst [vmem:[#allocation36_spill] sm:$0xff] %v15099_v39  ;;  %6309 = vadd.xlane.f32.xlu1 %v15099_v39 }
 0xdae   : > { %v11538_v52 = vpop.permute.xlu2 %11537 }
 0xdaf   : > { %v11540_v53 = vunpack.i.h.bf16 %v11538_v52  ;;  %v11539_v15 = vunpack.i.l.bf16 %v11538_v52 }
 0xdb1   : > { %v6158_v43 = vsel %vm6143_vm7, %v6141_v38, %v11539_v15  ;;  %v6159_v20 = vsel %vm6143_vm7, %v6142_v55, %v11540_v53  ;;  %v12183_v55 = vld [vmem:[#allocation2 + $0x38] sm:$0xff] }
 0xdb2   : > { %v6167_v26 = vpack.c.bf16 %v6159_v20, %v6158_v43 }
 0xdb4   : > { %6279 = vmatmul.bf16.gmra.mxu3 %v6167_v26 }
 0xdc1   : > { %v6255_v44 = vpop.f32.mrf.mxu2 }
 0xdc2   : > { %v6256_v30 = vadd.f32 %v15076_v3, %v6255_v44 }
 0xdc4   : > { %v15111_v45 = vadd.f32 %v12176_v62, %v6256_v30 }
 0xdc6   : > { %18653 = vst [vmem:[#allocation66_spill] sm:$0xff] %v15111_v45  ;;  %6311 = vadd.xlane.f32.xlu0 %v15111_v45 }
 0xdc9   : > { %v6257_v33 = vpop.f32.mrf.mxu2 }
 0xdca   : > { %v6258_v0 = vadd.f32 %v15076_v3, %v6257_v33  ;;  %v12184_v33 = vld [vmem:[#allocation2 + $0x60] sm:$0xff] }
 0xdcc   : > { %v15115_v50 = vadd.f32 %v12177_v9, %v6258_v0 }
 0xdce   : > { %18654 = vst [vmem:[#allocation63_spill] sm:$0xff] %v15115_v50  ;;  %6313 = vadd.xlane.f32.xlu2 %v15115_v50 }
 0xdd1   : > { %v6260_v13 = vpop.f32.mrf.mxu2 }
 0xdd2   : > { %v6261_v25 = vadd.f32 %v15076_v3, %v6260_v13 }
 0xdd4   : > { %v15119_v2 = vadd.f32 %v12178_v24, %v6261_v25  ;;  %v12185_v24 = vld [vmem:[#allocation2 + $0x70] sm:$0xff] }
 0xdd6   : > { %18655 = vst [vmem:[#allocation61_spill] sm:$0xff] %v15119_v2  ;;  %6315 = vadd.xlane.f32.xlu2 %v15119_v2 }
 0xdd9   : > { %v6262_v41 = vpop.f32.mrf.mxu2 }
 0xdda   : > { %v6263_v57 = vadd.f32 %v15076_v3, %v6262_v41 }
 0xddc   : > { %v15133_v31 = vadd.f32 %v12179_v23, %v6263_v57  ;;  %v10696_v57 = vld [vmem:[%s12520_s20 + $0xe0] sm:$0xf] }
 0xdde   : > { %18657 = vst [vmem:[#allocation47_spill] sm:$0xff] %v15133_v31 }
 0xdff   : > { %v6265_v18 = vpop.f32.mrf.mxu2 }
 0xe00   : > { %v6266_v19 = vadd.f32 %v15076_v3, %v6265_v18  ;;  %v11220_v18 = vld [vmem:[%s12520_s20 + $0xe4] sm:$0xf] }
 0xe02   : > { %v15143_v6 = vadd.f32 %v12180_v60, %v6266_v19  ;;  %v11223_v19 = vld [vmem:[%s12520_s20 + $0xf4] sm:$0xf0] }
 0xe03   : > { %v6304_v14 = vpop.xlane.xlu1 %6303 }
 0xe04   : > { %v6335_v28 = vmul.f32 %v6304_v14, %v18656_v42  ;;  %18658 = vst [vmem:[#allocation65_spill] sm:$0xff] %v15143_v6 }
 0xe06   : > { %v15124_v21 = vsub.f32 %v15083_v1, %v6335_v28 }
 0xe07   : > { %v6267_v37 = vpop.f32.mrf.mxu2  ;;  %v6270_v35 = vpop.f32.mrf.mxu3 }
 0xe08   : > { %v6367_v59 = vmul.f32 %v15124_v21, %v15124_v21  ;;  %v6268_v48 = vadd.f32 %v15076_v3, %v6267_v37  ;;  %v6271_v11 = vadd.f32 %v15076_v3, %v6270_v35  ;;  %v10706_v37 = vld [vmem:[%s12520_s20 + $0xf8] sm:$0xf0]  ;;  %v10682_v35 = vld [vmem:[%s12520_s20 + $0xd0] sm:$0xf0] }
 0xe0a   : > { %6383 = vadd.xlane.f32.xlu1 %v6367_v59  ;;  %v15153_v46 = vadd.f32 %v12181_v4, %v6268_v48  ;;  %v15159_v47 = vadd.f32 %v12182_v32, %v6271_v11  ;;  %v12186_v59 = vld [vmem:[#allocation2 + $0x78] sm:$0xff]  ;;  %v10680_v48 = vld [vmem:[%s12520_s20 + $0xc0] sm:$0xf]  ;;  %v11216_v4 = vld [vmem:[%s12520_s20 + $0xc4] sm:$0xf] }
 0xe0b   : > { %v6306_v16 = vpop.xlane.xlu0 %6305  ;;  %v10688_v11 = vld [vmem:[%s12520_s20 + $0xc8] sm:$0xf]  ;;  %v11219_v32 = vld [vmem:[%s12520_s20 + $0xd4] sm:$0xf0] }
 0xe0c   : > { %v6336_v5 = vmul.f32 %v6306_v16, %v18656_v42  ;;  %18659 = vst [vmem:[#allocation62_spill] sm:$0xff] %v15153_v46 }
 0xe0d   : > { %18660 = vst [vmem:[#allocation70_spill] sm:$0xff] %v15159_v47 }
 0xe0e   : > { %v15131_v27 = vsub.f32 %v15091_v61, %v6336_v5  ;;  %v11222_v5 = vld [vmem:[%s12520_s20 + $0xec] sm:$0xf0] }
 0xe0f   : > { %v6272_v58 = vpop.f32.mrf.mxu3  ;;  %v10697_v23 = vor.u32 %v11222_v5, %v10696_v57  ;;  %v10650_v57 = vld [vmem:[%s12520_s20 + $0x90] sm:$0xf0]  ;;  %v10656_v5 = vld [vmem:[%s12520_s20 + $0x88] sm:$0xf] }
 0xe10   : > { %v6368_v34 = vmul.f32 %v15131_v27, %v15131_v27  ;;  %v6273_v52 = vadd.f32 %v15076_v3, %v6272_v58  ;;  %v11217_v58 = vld [vmem:[%s12520_s20 + $0xcc] sm:$0xf] }
 0xe11   : > { %6871 = vmatpush.bf16.msrb.mxu3 %v10697_v23 }
 0xe12   : > { %6385 = vadd.xlane.f32.xlu0 %v6368_v34  ;;  %6317 = vadd.xlane.f32.xlu1 %v15133_v31  ;;  %v15173_v43 = vadd.f32 %v12183_v55, %v6273_v52  ;;  %v10698_v34 = vld [vmem:[%s12520_s20 + $0xf0] sm:$0xf0]  ;;  %v10664_v52 = vld [vmem:[%s12520_s20 + $0xa0] sm:$0xf] }
 0xe13   : > { %v6308_v36 = vpop.xlane.xlu2 %6307 }
 0xe14   : > { %v6337_v49 = vmul.f32 %v6308_v36, %v18656_v42  ;;  %18661 = vst [vmem:[#allocation68_spill] sm:$0xff] %v15173_v43  ;;  %v10704_v36 = vld [vmem:[%s12520_s20 + $0xe8] sm:$0xf] }
 0xe15   : > { %v10705_v60 = vor.u32 %v11223_v19, %v10704_v36  ;;  %v11209_v36 = vld [vmem:[%s12520_s20 + $0x8c] sm:$0xf]  ;;  %v10658_v19 = vld [vmem:[%s12520_s20 + $0x98] sm:$0xf0] }
 0xe16   : > { %v15141_v22 = vsub.f32 %v15095_v12, %v6337_v49  ;;  %v10701_v49 = vor.u32 %v11220_v18, %v10698_v34  ;;  %v11211_v18 = vld [vmem:[%s12520_s20 + $0x94] sm:$0xf0] }
 0xe17   : > { %v6275_v38 = vpop.f32.mrf.mxu3  ;;  %6969 = vmatpush.bf16.msra.mxu1 %v10705_v60  ;;  %v10657_v34 = vor.u32 %v11211_v18, %v10656_v5 }
 0xe18   : > { %v6369_v54 = vmul.f32 %v15141_v22, %v15141_v22  ;;  %v6276_v44 = vadd.f32 %v15076_v3, %v6275_v38  ;;  %6920 = vmatpush.bf16.msra.mxu0 %v10701_v49  ;;  %v11212_v38 = vld [vmem:[%s12520_s20 + $0xa4] sm:$0xf]  ;;  %v10661_v49 = vor.u32 %v11209_v36, %v10658_v19  ;;  %v11199_v36 = vld [vmem:[%s12520_s20 + $0x34] sm:$0xf0] }
 0xe1a   : > { %6319 = vadd.xlane.f32.xlu1 %v15143_v6  ;;  %6387 = vadd.xlane.f32.xlu0 %v6369_v54  ;;  %v15183_v0 = vadd.f32 %v12184_v33, %v6276_v44  ;;  %v11221_v54 = vld [vmem:[%s12520_s20 + $0xec] sm:$0xf]  ;;  %v11215_v44 = vld [vmem:[%s12520_s20 + $0xb4] sm:$0xf0] }
 0xe1b   : > { %v6310_v7 = vpop.xlane.xlu1 %6309 }
 0xe1c   : > { %v6338_v8 = vmul.f32 %v6310_v7, %v18656_v42  ;;  %18662 = vst [vmem:[#allocation69_spill] sm:$0xff] %v15183_v0  ;;  %v10709_v7 = vor.u32 %v11221_v54, %v10706_v37  ;;  %v10632_v54 = vld [vmem:[%s12520_s20 + $0x60] sm:$0xf]  ;;  %v11206_v37 = vld [vmem:[%s12520_s20 + $0x6c] sm:$0xf0] }
 0xe1e   : > { %v15151_v56 = vsub.f32 %v15099_v39, %v6338_v8  ;;  %v11218_v8 = vld [vmem:[%s12520_s20 + $0xcc] sm:$0xf0]  ;;  %7018 = vmatpush.bf16.msrb.mxu2 %v10709_v7  ;;  %v11204_v7 = vld [vmem:[%s12520_s20 + $0x64] sm:$0xf] }
 0xe1f   : > { %v6277_v13 = vpop.f32.mrf.mxu3 }
 0xe20   : > { %v6370_v10 = vmul.f32 %v15151_v56, %v15151_v56  ;;  %v6278_v25 = vadd.f32 %v15076_v3, %v6277_v13  ;;  %v10674_v13 = vld [vmem:[%s12520_s20 + $0xb8] sm:$0xf0] }
 0xe22   : > { %6389 = vadd.xlane.f32.xlu2 %v6370_v10  ;;  %6321 = vadd.xlane.f32.xlu0 %v15153_v46  ;;  %v15189_v14 = vadd.f32 %v12185_v24, %v6278_v25  ;;  %v10681_v10 = vor.u32 %v11218_v8, %v10680_v48  ;;  %v10648_v24 = vld [vmem:[%s12520_s20 + $0x80] sm:$0xf]  ;;  %v10633_v8 = vor.u32 %v11206_v37, %v10632_v54  ;;  %v10610_v54 = vld [vmem:[%s12520_s20 + $0x38] sm:$0xf0] }
 0xe24   : > { %18663 = vst [vmem:[#allocation44_spill] sm:$0xff] %v15189_v14  ;;  %6872 = vmatpush.bf16.msrb.mxu3 %v10681_v10  ;;  %v10640_v10 = vld [vmem:[%s12520_s20 + $0x68] sm:$0xf] }
 0xe2a   : > { %6323 = vadd.xlane.f32.xlu0 %v15159_v47 }
 0xe37   : > { %v6280_v28 = vpop.f32.mrf.mxu3 }
 0xe38   : > { %v6281_v41 = vadd.f32 %v15076_v3, %v6280_v28  ;;  %v11210_v28 = vld [vmem:[%s12520_s20 + $0x8c] sm:$0xf0] }
 0xe39   : > { %v6312_v40 = vpop.xlane.xlu0 %6311 }
 0xe3a   : > { %v6339_v17 = vmul.f32 %v6312_v40, %v18656_v42  ;;  %v15193_v16 = vadd.f32 %v12186_v59, %v6281_v41  ;;  %v10685_v40 = vor.u32 %v11216_v4, %v10682_v35  ;;  %v11208_v41 = vld [vmem:[%s12520_s20 + $0x84] sm:$0xf]  ;;  %v10649_v59 = vor.u32 %v11210_v28, %v10648_v24  ;;  %v10634_v4 = vld [vmem:[%s12520_s20 + $0x70] sm:$0xf0]  ;;  %v11207_v35 = vld [vmem:[%s12520_s20 + $0x74] sm:$0xf0] }
 0xe3b   : > { %v10653_v23 = vor.u32 %v11208_v41, %v10650_v57  ;;  %v10600_v28 = vld [vmem:[%s12520_s20 + $0x20] sm:$0xf]  ;;  %v11198_v41 = vld [vmem:[%s12520_s20 + $0x2c] sm:$0xf0] }
 0xe3c   : > { %v15164_v29 = vsub.f32 %v15111_v45, %v6339_v17  ;;  %18664 = vst [vmem:[#allocation64_spill] sm:$0xff] %v15193_v16  ;;  %v10689_v17 = vor.u32 %v11219_v32, %v10688_v11  ;;  %6921 = vmatpush.bf16.msra.mxu0 %v10685_v40  ;;  %v10637_v11 = vor.u32 %v11204_v7, %v10634_v4  ;;  %v11205_v40 = vld [vmem:[%s12520_s20 + $0x6c] sm:$0xf] }
 0xe3d   : > { %v10641_v32 = vor.u32 %v11207_v35, %v10640_v10  ;;  %v10601_v18 = vor.u32 %v11198_v41, %v10600_v28  ;;  %v10584_v10 = vld [vmem:[%s12520_s20] sm:$0xf]  ;;  %v11194_v35 = vld [vmem:[%s12520_s20 + $0xc] sm:$0xf0] }
 0xe3e   : > { %v6371_v63 = vmul.f32 %v15164_v29, %v15164_v29  ;;  %6970 = vmatpush.bf16.msra.mxu1 %v10689_v17  ;;  %v10642_v17 = vld [vmem:[%s12520_s20 + $0x78] sm:$0xf0] }
 0xe40   : > { %6391 = vadd.xlane.f32.xlu2 %v6371_v63  ;;  %v10690_v63 = vld [vmem:[%s12520_s20 + $0xd8] sm:$0xf0] }
 0xe41   : > { %v6314_v51 = vpop.xlane.xlu2 %6313 }
 0xe42   : > { %v6340_v53 = vmul.f32 %v6314_v51, %v18656_v42  ;;  %v10693_v51 = vor.u32 %v11217_v58, %v10690_v63  ;;  %v10645_v63 = vor.u32 %v11205_v40, %v10642_v17  ;;  %v10585_v40 = vor.u32 %v11194_v35, %v10584_v10  ;;  %v10586_v17 = vld [vmem:[%s12520_s20 + $0x10] sm:$0xf0]  ;;  %v15288_v35 = vld [vmem:[%s12512_s4] ss:$0 sm:$0xff] }
 0xe44   : > { %v15171_v15 = vsub.f32 %v15115_v50, %v6340_v53  ;;  %v11214_v53 = vld [vmem:[%s12520_s20 + $0xac] sm:$0xf0]  ;;  %7019 = vmatpush.bf16.msrb.mxu2 %v10693_v51  ;;  %v10616_v51 = vld [vmem:[%s12520_s20 + $0x40] sm:$0xf] }
 0xe45   : > { %v10665_v55 = vor.u32 %v11214_v53, %v10664_v52  ;;  %v11202_v52 = vld [vmem:[%s12520_s20 + $0x4c] sm:$0xf0]  ;;  %v11200_v53 = vld [vmem:[%s12520_s20 + $0x44] sm:$0xf] }
 0xe46   : > { %v6372_v20 = vmul.f32 %v15171_v15, %v15171_v15 }
 0xe47   : > { %6873 = vmatpush.bf16.msrb.mxu3 %v10665_v55  ;;  %v10618_v55 = vld [vmem:[%s12520_s20 + $0x50] sm:$0xf0] }
 0xe48   : > { %6325 = vadd.xlane.f32.xlu2 %v15173_v43  ;;  %6393 = vadd.xlane.f32.xlu1 %v6372_v20  ;;  %v10666_v20 = vld [vmem:[%s12520_s20 + $0xb0] sm:$0xf0] }
 0xe49   : > { %v6316_v26 = vpop.xlane.xlu2 %6315 }
 0xe4a   : > { %v6341_v30 = vmul.f32 %v6316_v26, %v18656_v42  ;;  %v10672_v26 = vld [vmem:[%s12520_s20 + $0xa8] sm:$0xf] }
 0xe4b   : > { %v10673_v33 = vor.u32 %v11215_v44, %v10672_v26  ;;  %6874 = vmatpush.bf16.msrb.mxu3 %v10649_v59  ;;  %v11203_v26 = vld [vmem:[%s12520_s20 + $0x54] sm:$0xf0]  ;;  %v10621_v44 = vor.u32 %v11200_v53, %v10618_v55  ;;  %v11196_v59 = vld [vmem:[%s12520_s20 + $0x24] sm:$0xf]  ;;  %v10594_v55 = vld [vmem:[%s12520_s20 + $0x18] sm:$0xf0] }
 0xe4c   : > { %v15181_v62 = vsub.f32 %v15119_v2, %v6341_v30  ;;  %v10669_v30 = vor.u32 %v11212_v38, %v10666_v20  ;;  %v10617_v38 = vor.u32 %v11202_v52, %v10616_v51  ;;  %v10624_v20 = vld [vmem:[%s12520_s20 + $0x48] sm:$0xf]  ;;  %v11195_v53 = vld [vmem:[%s12520_s20 + $0x14] sm:$0xf0] }
 0xe4d   : > { %6971 = vmatpush.bf16.msra.mxu1 %v10673_v33  ;;  %v11201_v33 = vld [vmem:[%s12520_s20 + $0x4c] sm:$0xf] }
 0xe4e   : > { %v6373_v9 = vmul.f32 %v15181_v62, %v15181_v62  ;;  %6922 = vmatpush.bf16.msra.mxu0 %v10669_v30  ;;  %v10625_v30 = vor.u32 %v11203_v26, %v10624_v20 }
 0xe4f   : > { %6875 = vmatpush.bf16.msrb.mxu3 %v10633_v8 }
 0xe50   : > { %6327 = vadd.xlane.f32.xlu2 %v15183_v0  ;;  %6395 = vadd.xlane.f32.xlu1 %v6373_v9  ;;  %v11213_v9 = vld [vmem:[%s12520_s20 + $0xac] sm:$0xf] }
 0xe51   : > { %v10677_v25 = vor.u32 %v11213_v9, %v10674_v13  ;;  %6972 = vmatpush.bf16.msra.mxu1 %v10657_v34  ;;  %v10626_v9 = vld [vmem:[%s12520_s20 + $0x58] sm:$0xf0]  ;;  %v10608_v34 = vld [vmem:[%s12520_s20 + $0x28] sm:$0xf] }
 0xe52   : > { %6923 = vmatpush.bf16.msra.mxu0 %v10653_v23  ;;  %v10629_v13 = vor.u32 %v11201_v33, %v10626_v9  ;;  %v10602_v23 = vld [vmem:[%s12520_s20 + $0x30] sm:$0xf0] }
 0xe53   : > { %7020 = vmatpush.bf16.msrb.mxu2 %v10677_v25  ;;  %6876 = vmatpush.bf16.msrb.mxu3 %v10617_v38  ;;  %v10605_v19 = vor.u32 %v11196_v59, %v10602_v23  ;;  %v11193_v38 = vld [vmem:[%s12520_s20 + $0xc] sm:$0xf] }
 0xe54   : > { %v10597_v26 = vor.u32 %v11193_v38, %v10594_v55 }
 0xe55   : > { %6973 = vmatpush.bf16.msra.mxu1 %v10641_v32 }
 0xe56   : > { %6924 = vmatpush.bf16.msra.mxu0 %v10637_v11  ;;  %v11192_v11 = vld [vmem:[%s12520_s20 + $0x4] sm:$0xf] }
 0xe57   : > { %7021 = vmatpush.bf16.msrb.mxu2 %v10661_v49  ;;  %v10609_v49 = vor.u32 %v11199_v36, %v10608_v34  ;;  %6877 = vmatpush.bf16.msrb.mxu3 %v10601_v18  ;;  %v10589_v52 = vor.u32 %v11192_v11, %v10586_v17  ;;  %v6282_v18 = vpop.f32.mrf.mxu3 }
 0xe58   : > { %6329 = vadd.xlane.f32.xlu1 %v15189_v14 }
 0xe59   : > { %6974 = vmatpush.bf16.msra.mxu1 %v10625_v30 }
 0xe5a   : > { %6925 = vmatpush.bf16.msra.mxu0 %v10621_v44 }
 0xe5b   : > { %7022 = vmatpush.bf16.msrb.mxu2 %v10645_v63  ;;  %v10592_v63 = vld [vmem:[%s12520_s20 + $0x8] sm:$0xf]  ;;  %6878 = vmatpush.bf16.msrb.mxu3 %v10585_v40 }
 0xe5c   : > { %v10593_v20 = vor.u32 %v11195_v53, %v10592_v63  ;;  %v12187_v40 = vld [vmem:[#allocation2 + $0x28] sm:$0xff]  ;;  %v15300_v53 = vld [vmem:[%s12516_s0] ss:$0 sm:$0xff] }
 0xe5d   : > { %6975 = vmatpush.bf16.msra.mxu1 %v10609_v49 }
 0xe5e   : > { %6926 = vmatpush.bf16.msra.mxu0 %v10605_v19 }
 0xe5f   : > { %7023 = vmatpush.bf16.msrb.mxu2 %v10629_v13 }
 0xe60   : > { %6331 = vadd.xlane.f32.xlu1 %v15193_v16 }
 0xe61   : > { %6976 = vmatpush.bf16.msra.mxu1 %v10593_v20 }
 0xe62   : > { %6927 = vmatpush.bf16.msra.mxu0 %v10589_v52 }
 0xe7d   : > { %v6384_v60 = vpop.xlane.xlu1 %6383 }
 0xe7e   : > { %v6415_v48 = vmul.f32 %v6384_v60, %v18656_v42  ;;  %v11197_v60 = vld [vmem:[%s12520_s20 + $0x2c] sm:$0xf]  ;;  %s18966_s20 = sld [smem:[#allocation31_spill]] (!%p10902_p9) }
 0xe7f   : > { %v10613_v8 = vor.u32 %v11197_v60, %v10610_v54  ;;  %v6283_v60 = vadd.f32 %v15076_v3, %v6282_v18 }
 0xe80   : > { %v15237_v58 = vadd.f32 1e-05, %v6415_v48 }
 0xe81   : > { %7024 = vmatpush.bf16.msrb.mxu2 %v10613_v8  ;;  %v15295_v17 = vadd.f32 %v12187_v40, %v6283_v60 }
 0xe82   : > { %11853 = vrsqrt.f32 %v15237_v58  ;;  %vm6453_vm8 = vweird.f32 %v15237_v58 }
 0xe83   : > { %18665 = vst [vmem:[#allocation49_spill] sm:$0xff] %v15295_v17 }
 0xe85   : > { %v6386_v25 = vpop.xlane.xlu0 %6385  ;;  %v6318_v24 = vpop.xlane.xlu1 %6317  ;;  %7025 = vmatpush.bf16.msrb.mxu2 %v10597_v26 }
 0xe86   : > { %v6416_v57 = vmul.f32 %v6386_v25, %v18656_v42  ;;  %v6342_v5 = vmul.f32 %v6318_v24, %v18656_v42 }
 0xe88   : > { %v11854_v37 = vpop.eup %11853  ;;  %v15258_v7 = vadd.f32 1e-05, %v6416_v57  ;;  %v15261_v48 = vsub.f32 %v15133_v31, %v6342_v5 }
 0xe89   : > { %v6448_v4 = vmul.f32 %v11854_v37, %v15237_v58  ;;  %vm6454_vm10 = vweird.f32 %v11854_v37 }
 0xe8a   : > { %11855 = vrsqrt.f32 %v15258_v7  ;;  %v6374_v32 = vmul.f32 %v15261_v48, %v15261_v48  ;;  %vm6455_vm9 = vmor %vm6453_vm8, %vm6454_vm10  ;;  %vm6463_vm12 = vweird.f32 %v15258_v7 }
 0xe8b   : > { %v6449_v51 = vmul.f32 %v11854_v37, %v6448_v4 }
 0xe8c   : > { %6397 = vadd.xlane.f32.xlu0 %v6374_v32 }
 0xe8d   : > { %v6450_v44 = vmul.f32 0.5, %v6449_v51  ;;  %v6320_v30 = vpop.xlane.xlu1 %6319  ;;  %v6388_v33 = vpop.xlane.xlu0 %6387 }
 0xe8e   : > { %v6343_v9 = vmul.f32 %v6320_v30, %v18656_v42  ;;  %v6417_v13 = vmul.f32 %v6388_v33, %v18656_v42 }
 0xe8f   : > { %v6451_v25 = vsub.f32 1.5, %v6450_v44 }
 0xe90   : > { %v11856_v24 = vpop.eup %11855  ;;  %v15278_v28 = vsub.f32 %v15143_v6, %v6343_v9  ;;  %v6433_v41 = vadd.f32 1e-05, %v6417_v13 }
 0xe91   : > { %v6452_v59 = vmul.f32 %v11854_v37, %v6451_v25  ;;  %v6458_v57 = vmul.f32 %v11856_v24, %v15258_v7  ;;  %vm6464_vm11 = vweird.f32 %v11856_v24 }
 0xe92   : > { %11857 = vrsqrt.f32 %v6433_v41  ;;  %v6375_v5 = vmul.f32 %v15278_v28, %v15278_v28  ;;  %vm6465_vm13 = vmor %vm6463_vm12, %vm6464_vm11  ;;  %vm6473_vm15 = vweird.f32 %v6433_v41 }
 0xe93   : > { %v6459_v23 = vmul.f32 %v11856_v24, %v6458_v57  ;;  %v6456_v34 = vsel %vm6455_vm9, %v11854_v37, %v6452_v59 }
 0xe94   : > { %6399 = vadd.xlane.f32.xlu0 %v6375_v5  ;;  %v6607_v58 = vmul.f32 %v6456_v34, %v15124_v21 }
 0xe95   : > { %v6460_v36 = vmul.f32 0.5, %v6459_v23  ;;  %v6322_v19 = vpop.xlane.xlu0 %6321  ;;  %v6390_v49 = vpop.xlane.xlu2 %6389 }
 0xe96   : > { %v6344_v54 = vmul.f32 %v6322_v19, %v18656_v42  ;;  %v6418_v8 = vmul.f32 %v6390_v49, %v18656_v42  ;;  %v6626_v21 = vmul.f32 %v15288_v35, %v6607_v58 }
 0xe97   : > { %v6461_v4 = vsub.f32 1.5, %v6460_v36 }
 0xe98   : > { %v11858_v10 = vpop.eup %11857  ;;  %v15292_v11 = vsub.f32 %v15153_v46, %v6344_v54  ;;  %v6434_v37 = vadd.f32 1e-05, %v6418_v8  ;;  %v6645_v33 = vadd.f32 %v15300_v53, %v6626_v21 }
 0xe99   : > { %v6462_v32 = vmul.f32 %v11856_v24, %v6461_v4  ;;  %v6468_v3 = vmul.f32 %v11858_v10, %v6433_v41  ;;  %vm6474_vm14 = vweird.f32 %v11858_v10 }
 0xe9a   : > { %11859 = vrsqrt.f32 %v6434_v37  ;;  %v6376_v63 = vmul.f32 %v15292_v11, %v15292_v11  ;;  %vm6475_vm0 = vmor %vm6473_vm15, %vm6474_vm14  ;;  %vm6483_vm2 = vweird.f32 %v6434_v37 }
 0xe9b   : > { %v6466_v51 = vsel %vm6465_vm13, %v11856_v24, %v6462_v32  ;;  %v6469_v52 = vmul.f32 %v11858_v10, %v6468_v3 }
 0xe9c   : > { %v6608_v38 = vmul.f32 %v6466_v51, %v15131_v27  ;;  %6333 = vadd.xlane.f32.xlu0 %v15295_v17  ;;  %6401 = vadd.xlane.f32.xlu2 %v6376_v63 }
 0xe9d   : > { %v6470_v7 = vmul.f32 0.5, %v6469_v52  ;;  %v6324_v55 = vpop.xlane.xlu0 %6323 }
 0xe9e   : > { %v6627_v20 = vmul.f32 %v15288_v35, %v6608_v38  ;;  %v6345_v26 = vmul.f32 %v6324_v55, %v18656_v42 }
 0xe9f   : > { %v6471_v44 = vsub.f32 1.5, %v6470_v7 }
 0xea0   : > { %v11860_v30 = vpop.eup %11859  ;;  %v6646_v9 = vadd.f32 %v15300_v53, %v6627_v20  ;;  %v15310_v13 = vsub.f32 %v15159_v47, %v6345_v26 }
 0xea1   : > { %v6472_v25 = vmul.f32 %v11858_v10, %v6471_v44  ;;  %v6478_v27 = vmul.f32 %v11860_v30, %v6434_v37  ;;  %vm6484_vm1 = vweird.f32 %v11860_v30 }
 0xea2   : > { %v6661_v24 = vpack.c.bf16 %v6646_v9, %v6645_v33  ;;  %v6377_v59 = vmul.f32 %v15310_v13, %v15310_v13  ;;  %vm6485_vm3 = vmor %vm6483_vm2, %vm6484_vm1 }
 0xea3   : > { %v6479_v57 = vmul.f32 %v11860_v30, %v6478_v27  ;;  %v6476_v5 = vsel %vm6475_vm0, %v11858_v10, %v6472_v25 }
 0xea4   : > { %6879 = vmatmul.bf16.vlgmr.msrb.gmra.mxu3 %v6661_v24  ;;  %6928 = vmatmul.bf16.vlgmr.msra.gmra.mxu0 %v6661_v24  ;;  %v6609_v34 = vmul.f32 %v6476_v5, %v15141_v22 }
 0xea5   : > { %v6480_v18 = vmul.f32 0.5, %v6479_v57  ;;  %6977 = vmatmul.bf16.vlgmr.msra.gmra.mxu1 %v6661_v24  ;;  %7026 = vmatmul.bf16.vlgmr.msrb.gmra.mxu2 %v6661_v24 }
 0xea6   : > { %6403 = vadd.xlane.f32.xlu2 %v6377_v59  ;;  %v6628_v41 = vmul.f32 %v15288_v35, %v6609_v34 }
 0xea7   : > { %v6481_v23 = vsub.f32 1.5, %v6480_v18 }
 0xea8   : > { %v6647_v54 = vadd.f32 %v15300_v53, %v6628_v41 }
 0xea9   : > { %v6482_v36 = vmul.f32 %v11860_v30, %v6481_v23 }
 0xeab   : > { %v6486_v19 = vsel %vm6485_vm3, %v11860_v30, %v6482_v36 }
 0xeac   : > { %v6610_v49 = vmul.f32 %v6486_v19, %v15151_v56 }
 0xeae   : > { %v6629_v60 = vmul.f32 %v15288_v35, %v6610_v49 }
 0xeb0   : > { %v6648_v8 = vadd.f32 %v15300_v53, %v6629_v60 }
 0xeb2   : > { %v6662_v4 = vpack.c.bf16 %v6648_v8, %v6647_v54 }
 0xeb3   : > { %v6392_v10 = vpop.xlane.xlu2 %6391 }
 0xeb4   : > { %6884 = vmatmul.bf16.gmra.mxu3 %v6662_v4  ;;  %6933 = vmatmul.bf16.gmra.mxu0 %v6662_v4  ;;  %v6419_v22 = vmul.f32 %v6392_v10, %v18656_v42 }
 0xeb5   : > { %6982 = vmatmul.bf16.gmra.mxu1 %v6662_v4  ;;  %7031 = vmatmul.bf16.gmra.mxu2 %v6662_v4 }
 0xeb6   : > { %v6435_v58 = vadd.f32 1e-05, %v6419_v22 }
 0xeb8   : > { %11861 = vrsqrt.f32 %v6435_v58  ;;  %vm6493_vm5 = vweird.f32 %v6435_v58 }
 0xebb   : > { %v6394_v37 = vpop.xlane.xlu1 %6393  ;;  %v6326_v56 = vpop.xlane.xlu2 %6325 }
 0xebc   : > { %v6420_v32 = vmul.f32 %v6394_v37, %v18656_v42  ;;  %v6346_v3 = vmul.f32 %v6326_v56, %v18656_v42 }
 0xebe   : > { %v11862_v40 = vpop.eup %11861  ;;  %v6436_v63 = vadd.f32 1e-05, %v6420_v32  ;;  %v15324_v51 = vsub.f32 %v15173_v43, %v6346_v3 }
 0xebf   : > { %v6488_v52 = vmul.f32 %v11862_v40, %v6435_v58  ;;  %vm6494_vm4 = vweird.f32 %v11862_v40 }
 0xec0   : > { %11863 = vrsqrt.f32 %v6436_v63  ;;  %v6378_v21 = vmul.f32 %v15324_v51, %v15324_v51  ;;  %vm6495_vm6 = vmor %vm6493_vm5, %vm6494_vm4  ;;  %vm6503_vm10 = vweird.f32 %v6436_v63 }
 0xec1   : > { %v6489_v38 = vmul.f32 %v11862_v40, %v6488_v52 }
 0xec2   : > { %6405 = vadd.xlane.f32.xlu1 %v6378_v21 }
 0xec3   : > { %v6490_v7 = vmul.f32 0.5, %v6489_v38  ;;  %v6396_v55 = vpop.xlane.xlu1 %6395  ;;  %v6328_v20 = vpop.xlane.xlu2 %6327 }
 0xec4   : > { %v6347_v26 = vmul.f32 %v6328_v20, %v18656_v42 }
 0xec5   : > { %v6491_v44 = vsub.f32 1.5, %v6490_v7 }
 0xec6   : > { %v11864_v30 = vpop.eup %11863  ;;  %v15330_v33 = vsub.f32 %v15183_v0, %v6347_v26 }
 0xec7   : > { %v6492_v9 = vmul.f32 %v11862_v40, %v6491_v44  ;;  %v6498_v25 = vmul.f32 %v11864_v30, %v6436_v63  ;;  %vm6504_vm7 = vweird.f32 %v11864_v30 }
 0xec8   : > { %v6379_v27 = vmul.f32 %v15330_v33, %v15330_v33  ;;  %vm6505_vm8 = vmor %vm6503_vm10, %vm6504_vm7 }
 0xec9   : > { %v6499_v24 = vmul.f32 %v11864_v30, %v6498_v25  ;;  %v6496_v59 = vsel %vm6495_vm6, %v11862_v40, %v6492_v9 }
 0xeca   : > { %6407 = vadd.xlane.f32.xlu0 %v6379_v27  ;;  %v6611_v34 = vmul.f32 %v6496_v59, %v15164_v29 }
 0xecb   : > { %v6500_v57 = vmul.f32 0.5, %v6499_v24  ;;  %v6330_v5 = vpop.xlane.xlu1 %6329 }
 0xecc   : > { %v6348_v18 = vmul.f32 %v6330_v5, %v18656_v42  ;;  %v6630_v54 = vmul.f32 %v15288_v35, %v6611_v34 }
 0xecd   : > { %v6501_v23 = vsub.f32 1.5, %v6500_v57 }
 0xece   : > { %v15337_v36 = vsub.f32 %v15189_v14, %v6348_v18  ;;  %v6649_v22 = vadd.f32 %v15300_v53, %v6630_v54 }
 0xecf   : > { %v6502_v19 = vmul.f32 %v11864_v30, %v6501_v23 }
 0xed0   : > { %v6380_v49 = vmul.f32 %v15337_v36, %v15337_v36 }
 0xed1   : > { %v6506_v41 = vsel %vm6505_vm8, %v11864_v30, %v6502_v19 }
 0xed2   : > { %v6612_v60 = vmul.f32 %v6506_v41, %v15171_v15  ;;  %6409 = vadd.xlane.f32.xlu2 %v6380_v49  ;;  %v6421_v15 = vmul.f32 %v6396_v55, %v18656_v42 }
 0xed3   : > { %v6332_v8 = vpop.xlane.xlu1 %6331 }
 0xed4   : > { %v6349_v4 = vmul.f32 %v6332_v8, %v18656_v42  ;;  %v6631_v29 = vmul.f32 %v15288_v35, %v6612_v60  ;;  %v6437_v32 = vadd.f32 1e-05, %v6421_v15 }
 0xed6   : > { %v15346_v10 = vsub.f32 %v15193_v16, %v6349_v4  ;;  %v6650_v58 = vadd.f32 %v15300_v53, %v6631_v29  ;;  %11865 = vrsqrt.f32 %v6437_v32  ;;  %vm6513_vm11 = vweird.f32 %v6437_v32 }
 0xed8   : > { %18666 = vst [vmem:[#allocation93_spill] sm:$0xff] %v15346_v10  ;;  %v6663_v37 = vpack.c.bf16 %v6650_v58, %v6649_v22  ;;  %v6381_v56 = vmul.f32 %v15346_v10, %v15346_v10 }
 0xeda   : > { %6889 = vmatmul.bf16.gmra.mxu3 %v6663_v37  ;;  %6938 = vmatmul.bf16.gmra.mxu0 %v6663_v37 }
 0xedb   : > { %6987 = vmatmul.bf16.gmra.mxu1 %v6663_v37  ;;  %7036 = vmatmul.bf16.gmra.mxu2 %v6663_v37 }
 0xedc   : > { %6411 = vadd.xlane.f32.xlu1 %v6381_v56  ;;  %v11866_v3 = vpop.eup %11865 }
 0xedd   : > { %v6508_v40 = vmul.f32 %v11866_v3, %v6437_v32  ;;  %vm6514_vm9 = vweird.f32 %v11866_v3 }
 0xede   : > { %vm6515_vm12 = vmor %vm6513_vm11, %vm6514_vm9 }
 0xedf   : > { %v6509_v63 = vmul.f32 %v11866_v3, %v6508_v40 }
 0xee1   : > { %v6510_v7 = vmul.f32 0.5, %v6509_v63 }
 0xee3   : > { %v6511_v20 = vsub.f32 1.5, %v6510_v7 }
 0xee5   : > { %v6512_v25 = vmul.f32 %v11866_v3, %v6511_v20  ;;  %v6701_v20 = vld [vmem:[%s12524_s23] sm:$0xf]  ;;  %s18974_s23 = sld [smem:[#allocation16_spill]] (!%p10902_p9) }
 0xee7   : > { %v6516_v24 = vsel %vm6515_vm12, %v11866_v3, %v6512_v25 }
 0xee8   : > { %v6613_v49 = vmul.f32 %v6516_v24, %v15181_v62 }
 0xeea   : > { %v6632_v37 = vmul.f32 %v15288_v35, %v6613_v49 }
 0xeec   : > { %v6651_v3 = vadd.f32 %v15300_v53, %v6632_v37 }
 0xeff   : > { %v6398_v52 = vpop.xlane.xlu0 %6397 }
 0xf00   : > { %v6422_v21 = vmul.f32 %v6398_v52, %v18656_v42 }
 0xf02   : > { %v6438_v38 = vadd.f32 1e-05, %v6422_v21 }
 0xf04   : > { %11867 = vrsqrt.f32 %v6438_v38  ;;  %vm6523_vm14 = vweird.f32 %v6438_v38 }
 0xf07   : > { %v6400_v26 = vpop.xlane.xlu0 %6399 }
 0xf08   : > { %v6423_v44 = vmul.f32 %v6400_v26, %v18656_v42 }
 0xf0a   : > { %v11868_v30 = vpop.eup %11867  ;;  %v6439_v9 = vadd.f32 1e-05, %v6423_v44 }
 0xf0b   : > { %v6518_v55 = vmul.f32 %v11868_v30, %v6438_v38  ;;  %vm6524_vm13 = vweird.f32 %v11868_v30 }
 0xf0c   : > { %11869 = vrsqrt.f32 %v6439_v9  ;;  %vm6525_vm15 = vmor %vm6523_vm14, %vm6524_vm13  ;;  %vm6533_vm1 = vweird.f32 %v6439_v9 }
 0xf0d   : > { %v6519_v27 = vmul.f32 %v11868_v30, %v6518_v55 }
 0xf0f   : > { %v6520_v59 = vmul.f32 0.5, %v6519_v27  ;;  %v6334_v57 = vpop.xlane.xlu0 %6333  ;;  %v6402_v5 = vpop.xlane.xlu2 %6401 }
 0xf10   : > { %v6350_v18 = vmul.f32 %v6334_v57, %v18656_v42  ;;  %v6424_v23 = vmul.f32 %v6402_v5, %v18656_v42  ;;  %v15376_v57 = vperm.slane %v6701_v20, 2 }
 0xf11   : > { %v6521_v34 = vsub.f32 1.5, %v6520_v59 }
 0xf12   : > { %v11870_v19 = vpop.eup %11869  ;;  %v15359_v41 = vsub.f32 %v15295_v17, %v6350_v18  ;;  %v6440_v60 = vadd.f32 1e-05, %v6424_v23 }
 0xf13   : > { %v6522_v54 = vmul.f32 %v11868_v30, %v6521_v34  ;;  %v6528_v8 = vmul.f32 %v11870_v19, %v6439_v9  ;;  %vm6534_vm0 = vweird.f32 %v11870_v19  ;;  %v15381_v34 = vperm.slane %v6701_v20, 0 }
 0xf14   : > { %18667 = vst [vmem:[#allocation95_spill] sm:$0xff] %v15359_v41  ;;  %11871 = vrsqrt.f32 %v6440_v60  ;;  %v6382_v4 = vmul.f32 %v15359_v41, %v15359_v41  ;;  %vm6535_vm2 = vmor %vm6533_vm1, %vm6534_vm0  ;;  %vm6543_vm4 = vweird.f32 %v6440_v60 }
 0xf15   : > { %v6526_v29 = vsel %vm6525_vm15, %v11868_v30, %v6522_v54  ;;  %v6529_v22 = vmul.f32 %v11870_v19, %v6528_v8  ;;  %v15370_v30 = vperm.slane %v6701_v20, 1 }
 0xf16   : > { %v6614_v58 = vmul.f32 %v6526_v29, %v15261_v48  ;;  %6413 = vadd.xlane.f32.xlu0 %v6382_v4  ;;  %v15391_v29 = vperm.slane %v6701_v20, 3 }
 0xf17   : > { %v6530_v62 = vmul.f32 0.5, %v6529_v22 }
 0xf18   : > { %v6633_v56 = vmul.f32 %v15288_v35, %v6614_v58 }
 0xf19   : > { %v6531_v15 = vsub.f32 1.5, %v6530_v62  ;;  %v6404_v27 = vpop.xlane.xlu2 %6403 }
 0xf1a   : > { %v11872_v32 = vpop.eup %11871  ;;  %v6652_v40 = vadd.f32 %v15300_v53, %v6633_v56 }
 0xf1b   : > { %v6532_v63 = vmul.f32 %v11870_v19, %v6531_v15  ;;  %v6538_v52 = vmul.f32 %v11872_v32, %v6440_v60  ;;  %vm6544_vm3 = vweird.f32 %v11872_v32 }
 0xf1c   : > { %v6664_v21 = vpack.c.bf16 %v6652_v40, %v6651_v3  ;;  %vm6545_vm5 = vmor %vm6543_vm4, %vm6544_vm3 }
 0xf1d   : > { %v6539_v38 = vmul.f32 %v11872_v32, %v6538_v52  ;;  %v6536_v48 = vsel %vm6535_vm2, %v11870_v19, %v6532_v63 }
 0xf1e   : > { %6894 = vmatmul.bf16.gmra.mxu3 %v6664_v21  ;;  %6943 = vmatmul.bf16.gmra.mxu0 %v6664_v21  ;;  %v6615_v44 = vmul.f32 %v6536_v48, %v15278_v28  ;;  %v6425_v28 = vmul.f32 %v6404_v27, %v18656_v42 }
 0xf1f   : > { %v6540_v7 = vmul.f32 0.5, %v6539_v38  ;;  %6992 = vmatmul.bf16.gmra.mxu1 %v6664_v21  ;;  %7041 = vmatmul.bf16.gmra.mxu2 %v6664_v21 }
 0xf20   : > { %v6634_v5 = vmul.f32 %v15288_v35, %v6615_v44  ;;  %v15389_v8 = vadd.f32 1e-05, %v6425_v28 }
 0xf21   : > { %v6541_v26 = vsub.f32 1.5, %v6540_v7  ;;  %v6929_v55 = vpop.f32.mrf.mxu0 }
 0xf22   : > { %v15374_v59 = vadd.f32 %v6929_v55, %v15370_v30  ;;  %v6978_v18 = vpop.f32.mrf.mxu1  ;;  %11873 = vrsqrt.f32 %v15389_v8  ;;  %vm6553_vm7 = vweird.f32 %v15389_v8 }
 0xf23   : > { %v6542_v25 = vmul.f32 %v11872_v32, %v6541_v26  ;;  %v15385_v49 = vadd.f32 %v6978_v18, %v15376_v57 }
 0xf24   : > { %v10711_v19 = vmul.f32 -1.702, %v15374_v59 }
 0xf25   : > { %v6546_v9 = vsel %vm6545_vm5, %v11872_v32, %v6542_v25  ;;  %v10712_v58 = vmul.f32 -1.702, %v15385_v49 }
 0xf26   : > { %v6616_v24 = vmul.f32 %v6546_v9, %v15292_v11  ;;  %v6653_v11 = vadd.f32 %v15300_v53, %v6634_v5  ;;  %v7197_v22 = vmul.f32 1.442695, %v10711_v19 }
 0xf27   : > { %v6880_v54 = vpop.f32.mrf.mxu3  ;;  %v7199_v3 = vmul.f32 1.442695, %v10712_v58 }
 0xf28   : > { %v6635_v23 = vmul.f32 %v15288_v35, %v6616_v24  ;;  %v15395_v37 = vadd.f32 %v6880_v54, %v15381_v34  ;;  %v7027_v62 = vpop.f32.mrf.mxu2  ;;  %11875 = vpow2.f32 %v7197_v22  ;;  %v15409_v38 = vpop.eup %11873 }
 0xf29   : > { %v6931_v56 = vpop.f32.mrf.mxu0  ;;  %v15399_v15 = vadd.f32 %v7027_v62, %v15391_v29  ;;  %11877 = vpow2.f32 %v7199_v3  ;;  %v6548_v44 = vmul.f32 %v15409_v38, %v15389_v8  ;;  %vm6554_vm6 = vweird.f32 %v15409_v38 }
 0xf2a   : > { %v6654_v60 = vadd.f32 %v15300_v53, %v6635_v23  ;;  %v6980_v32 = vpop.f32.mrf.mxu1  ;;  %v10710_v40 = vmul.f32 -1.702, %v15395_v37  ;;  %v15403_v63 = vadd.f32 %v6931_v56, %v15370_v30  ;;  %vm6555_vm10 = vmor %vm6553_vm7, %vm6554_vm6 }
 0xf2b   : > { %v15406_v52 = vadd.f32 %v6980_v32, %v15376_v57  ;;  %v10713_v21 = vmul.f32 -1.702, %v15399_v15  ;;  %v6549_v28 = vmul.f32 %v15409_v38, %v6548_v44 }
 0xf2c   : > { %v6665_v4 = vpack.c.bf16 %v6654_v60, %v6653_v11  ;;  %v7195_v48 = vmul.f32 1.442695, %v10710_v40  ;;  %v10715_v7 = vmul.f32 -1.702, %v15403_v63 }
 0xf2d   : > { %v10716_v26 = vmul.f32 -1.702, %v15406_v52  ;;  %v7201_v25 = vmul.f32 1.442695, %v10713_v21  ;;  %v6550_v60 = vmul.f32 0.5, %v6549_v28 }
 0xf2e   : > { %6899 = vmatmul.bf16.gmra.mxu3 %v6665_v4  ;;  %6948 = vmatmul.bf16.gmra.mxu0 %v6665_v4  ;;  %v11876_v20 = vpop.eup %11875  ;;  %11879 = vpow2.f32 %v7195_v48  ;;  %v7205_v9 = vmul.f32 1.442695, %v10715_v7 }
 0xf2f   : > { %6997 = vmatmul.bf16.gmra.mxu1 %v6665_v4  ;;  %7046 = vmatmul.bf16.gmra.mxu2 %v6665_v4  ;;  %v6882_v55 = vpop.f32.mrf.mxu3  ;;  %v15415_v27 = vadd.f32 1.0, %v11876_v20  ;;  %v11878_v24 = vpop.eup %11877  ;;  %v7207_v5 = vmul.f32 1.442695, %v10716_v26  ;;  %11881 = vpow2.f32 %v7201_v25  ;;  %v6551_v32 = vsub.f32 1.5, %v6550_v60 }
 0xf30   : > { %v15418_v18 = vadd.f32 %v6882_v55, %v15381_v34  ;;  %11883 = vpow2.f32 %v7205_v9  ;;  %v15422_v23 = vadd.f32 1.0, %v11878_v24  ;;  %v7029_v62 = vpop.f32.mrf.mxu2 }
 0xf31   : > { %11885 = vrcp.f32 %v15415_v27  ;;  %v15434_v21 = vadd.f32 %v7029_v62, %v15391_v29  ;;  %v6552_v44 = vmul.f32 %v15409_v38, %v6551_v32  ;;  %v6934_v55 = vpop.f32.mrf.mxu0  ;;  %v7411_v62 = vand.u32 2147483647, %v15415_v27 }
 0xf32   : > { %11887 = vpow2.f32 %v7207_v5  ;;  %v10714_v11 = vmul.f32 -1.702, %v15418_v18  ;;  %vm7407_vm8 = vweird.f32 %v15415_v27  ;;  %vm7422_vm9 = vweird.f32 %v15422_v23 }
 0xf33   : > { %11889 = vrcp.f32 %v15422_v23  ;;  %v10717_v24 = vmul.f32 -1.702, %v15434_v21  ;;  %v6556_v60 = vsel %vm6555_vm10, %v15409_v38, %v6552_v44  ;;  %vm15488_vm12 = vcmp.eq.f32.partialorder %v7411_v62, 8.507059e+37 }
 0xf34   : > { %v11880_v19 = vpop.eup %11879  ;;  %v7203_v58 = vmul.f32 1.442695, %v10714_v11 }
 0xf35   : > { %v11882_v54 = vpop.eup %11881  ;;  %v15426_v4 = vadd.f32 1.0, %v11880_v19  ;;  %v6406_v48 = vpop.xlane.xlu1 %6405  ;;  %v15454_v19 = vadd.f32 %v6934_v55, %v15370_v30  ;;  %v7209_v32 = vmul.f32 1.442695, %v10717_v24 }
 0xf36   : > { %v11884_v22 = vpop.eup %11883  ;;  %v15431_v40 = vadd.f32 1.0, %v11882_v54  ;;  %v6426_v9 = vmul.f32 %v6406_v48, %v18656_v42  ;;  %v7413_v54 = vand.u32 2147483648, %v15415_v27 }
 0xf37   : > { %v15428_v56 = vpop.eup %11885  ;;  %11891 = vrcp.f32 %v15426_v4  ;;  %v15438_v20 = vadd.f32 1.0, %v11884_v22  ;;  %v6983_v22 = vpop.f32.mrf.mxu1  ;;  %v10719_v55 = vmul.f32 -1.702, %v15454_v19  ;;  %vm7392_vm15 = vweird.f32 %v15426_v4 }
 0xf38   : > { %v11888_v3 = vpop.eup %11887  ;;  %v7403_v7 = vmul.f32 %v15428_v56, %v15415_v27  ;;  %11893 = vpow2.f32 %v7203_v58  ;;  %v15461_v58 = vadd.f32 1e-05, %v6426_v9  ;;  %v6885_v38 = vpop.f32.mrf.mxu3  ;;  %v15477_v24 = vadd.f32 %v6983_v22, %v15376_v57 }
 0xf39   : > { %v15440_v26 = vpop.eup %11889  ;;  %v15444_v25 = vadd.f32 1.0, %v11888_v3  ;;  %11895 = vrcp.f32 %v15431_v40  ;;  %v15465_v3 = vmul.f32 %v6556_v60, %v15310_v13  ;;  %v7414_v60 = vor.u32 1.1754944e-38, %v7413_v54 }
 0xf3a   : > { %v7404_v5 = vsub.f32 1.0, %v7403_v7  ;;  %v7418_v28 = vmul.f32 %v15440_v26, %v15422_v23  ;;  %11897 = vrcp.f32 %v15438_v20  ;;  %vm7408_vm11 = vweird.f32 %v15428_v56 }
 0xf3b   : > { %11899 = vrcp.f32 %v15444_v25  ;;  %v7398_v22 = vand.u32 2147483648, %v15426_v4  ;;  %v15494_v54 = vadd.f32 %v6885_v38, %v15381_v34  ;;  %v7213_v47 = vmul.f32 1.442695, %v10719_v55  ;;  %vm15523_vm0 = vmor %vm7407_vm8, %vm7408_vm11 }
 0xf3c   : > { %v7405_v48 = vmul.f32 %v15428_v56, %v7404_v5  ;;  %v7419_v7 = vsub.f32 1.0, %v7418_v28  ;;  %v7426_v5 = vand.u32 2147483647, %v15422_v23  ;;  %v7428_v28 = vand.u32 2147483648, %v15422_v23 }
 0xf3d   : > { %v15456_v11 = vpop.eup %11891  ;;  %11901 = vrsqrt.f32 %v15461_v58  ;;  %18670 = vst [vmem:[#allocation56_spill] sm:$0xff] %v15494_v54  ;;  %v10720_v6 = vmul.f32 -1.702, %v15477_v24  ;;  %vm7423_vm14 = vweird.f32 %v15440_v26  ;;  %v7396_v55 = vand.u32 2147483647, %v15426_v4 }
 0xf3e   : > { %v11894_v8 = vpop.eup %11893  ;;  %v7388_v9 = vmul.f32 %v15456_v11, %v15426_v4  ;;  %11903 = vpow2.f32 %v7209_v32  ;;  %v7406_v14 = vadd.f32 %v15428_v56, %v7405_v48  ;;  %v7420_v0 = vmul.f32 %v15440_v26, %v7419_v7  ;;  %vm15544_vm2 = vmor %vm7422_vm9, %vm7423_vm14 }
 0xf3f   : > { %v15469_v44 = vpop.eup %11895  ;;  %v15474_v17 = vadd.f32 1.0, %v11894_v8  ;;  %vm15504_vm13 = vcmp.eq.f32.partialorder %v7426_v5, 8.507059e+37  ;;  %v7429_v38 = vor.u32 1.1754944e-38, %v7428_v28  ;;  %v7443_v48 = vand.u32 2147483648, %v15431_v40 }
 0xf40   : > { %v15479_v13 = vpop.eup %11897  ;;  %v7433_v43 = vmul.f32 %v15469_v44, %v15431_v40  ;;  %v7389_v46 = vsub.f32 1.0, %v7388_v9  ;;  %v15514_v9 = vor.u32 1.1754944e-38, %v7398_v22  ;;  %v10718_v31 = vmul.f32 -1.702, %v15494_v54 }
 0xf41   : > { %v15485_v16 = vpop.eup %11899  ;;  %v7463_v62 = vmul.f32 %v15479_v13, %v15438_v20  ;;  %11905 = vrcp.f32 %v15474_v17  ;;  %v7421_v2 = vadd.f32 %v15440_v26, %v7420_v0  ;;  %v7473_v45 = vand.u32 2147483648, %v15438_v20 }
 0xf42   : > { %v7478_v7 = vmul.f32 %v15485_v16, %v15444_v25  ;;  %v7434_v50 = vsub.f32 1.0, %v7433_v43  ;;  %11907 = vpow2.f32 %v7213_v47  ;;  %v7410_v39 = vsel %vm15523_vm0, %v15428_v56, %v7406_v14 }
 0xf43   : > { %v15517_v5 = vpop.eup %11901  ;;  %v7390_v12 = vmul.f32 %v15456_v11, %v7389_v46  ;;  %v7464_v61 = vsub.f32 1.0, %v7463_v62  ;;  %v7215_v1 = vmul.f32 1.442695, %v10720_v6  ;;  %vm7437_vm1 = vweird.f32 %v15431_v40 }
 0xf44   : > { %v11904_v22 = vpop.eup %11903  ;;  %v7441_v27 = vand.u32 2147483647, %v15431_v40  ;;  %v15535_v41 = vor.u32 1.1754944e-38, %v7443_v48  ;;  %v7471_v43 = vand.u32 2147483647, %v15438_v20  ;;  %v7479_v0 = vsub.f32 1.0, %v7478_v7 }
 0xf45   : > { %vm7393_vm3 = vweird.f32 %v15456_v11  ;;  %vm15549_vm4 = vcmp.eq.f32.partialorder %v7396_v55, 8.507059e+37  ;;  %vm7438_vm5 = vweird.f32 %v15469_v44  ;;  %vm7467_vm6 = vweird.f32 %v15438_v20  ;;  %v6410_v40 = vpop.xlane.xlu2 %6409 }
 0xf46   : > { %v6558_v46 = vmul.f32 %v15517_v5, %v15461_v58  ;;  %v7211_v14 = vmul.f32 1.442695, %v10718_v31  ;;  %v7415_v23 = vsel %vm15488_vm12, %v7414_v60, %v7410_v39  ;;  %v7425_v56 = vsel %vm15544_vm2, %v15440_v26, %v7421_v2  ;;  %v6408_v26 = vpop.xlane.xlu0 %6407  ;;  %v7032_v60 = vpop.f32.mrf.mxu2  ;;  %vm15590_vm9 = vmor %vm7392_vm15, %vm7393_vm3 }
 0xf47   : > { %v15538_v10 = vpop.eup %11905  ;;  %v7435_v62 = vmul.f32 %v15469_v44, %v7434_v50  ;;  %v15563_v48 = vadd.f32 1.0, %v11904_v22  ;;  %v7391_v7 = vadd.f32 %v15456_v11, %v7390_v12  ;;  %v7465_v55 = vmul.f32 %v15479_v13, %v7464_v61 }
 0xf48   : > { %v7474_v28 = vor.u32 1.1754944e-38, %v7473_v45  ;;  %11909 = vpow2.f32 %v7215_v1  ;;  %v11908_v54 = vpop.eup %11907  ;;  %v7480_v31 = vmul.f32 %v15485_v16, %v7479_v0  ;;  %vm7482_vm7 = vweird.f32 %v15444_v25 }
 0xf49   : > { %v7486_v39 = vand.u32 2147483647, %v15444_v25  ;;  %v7448_v2 = vmul.f32 %v15538_v10, %v15474_v17  ;;  %v15573_v50 = vmul.f32 %v7415_v23, %v15374_v59  ;;  %v7430_v12 = vsel %vm15504_vm13, %v7429_v38, %v7425_v56  ;;  %v6936_v38 = vpop.f32.mrf.mxu0  ;;  %vm15617_vm13 = vmor %vm7437_vm1, %vm7438_vm5 }
 0xf4a   : > { %vm15577_vm10 = vcmp.eq.f32.partialorder %v7441_v27, 8.507059e+37  ;;  %vm15581_vm8 = vcmp.eq.f32.partialorder %v7471_v43, 8.507059e+37  ;;  %v6559_v45 = vmul.f32 %v15517_v5, %v6558_v46  ;;  %11911 = vpow2.f32 %v7211_v14 }
 0xf4b   : > { %18679 = vst [vmem:[#allocation96_spill] sm:$0xff] %v15573_v50  ;;  %v7436_v8 = vadd.f32 %v15469_v44, %v7435_v62  ;;  %vm7468_vm11 = vweird.f32 %v15479_v13  ;;  %v7488_v32 = vand.u32 2147483648, %v15444_v25  ;;  %11913 = vrcp.f32 %v15563_v48 }
 0xf4c   : > { %v7395_v22 = vsel %vm15590_vm9, %v15456_v11, %v7391_v7  ;;  %v7466_v27 = vadd.f32 %v15479_v13, %v7465_v55  ;;  %v15602_v4 = vadd.f32 1.0, %v11908_v54  ;;  %v6427_v43 = vmul.f32 %v6408_v26, %v18656_v42  ;;  %vm15635_vm15 = vmor %vm7467_vm6, %vm7468_vm11 }
 0xf4d   : > { %v7481_v0 = vadd.f32 %v15485_v16, %v7480_v31  ;;  %vm7483_vm12 = vweird.f32 %v15485_v16  ;;  %v7449_v47 = vsub.f32 1.0, %v7448_v2  ;;  %v15608_v46 = vadd.f32 %v7032_v60, %v15391_v29  ;;  %v6985_v31 = vpop.f32.mrf.mxu1 }
 0xf4e   : > { %v11910_v14 = vpop.eup %11909  ;;  %v15611_v23 = vmul.f32 %v7430_v12, %v15385_v49  ;;  %vm15621_vm14 = vcmp.eq.f32.partialorder %v7486_v39, 8.507059e+37  ;;  %v6560_v56 = vmul.f32 0.5, %v6559_v45  ;;  %v15626_v62 = vadd.f32 %v6936_v38, %v15370_v30  ;;  %vm15651_vm1 = vmor %vm7482_vm7, %vm7483_vm12 }
 0xf4f   : > { %v7400_v49 = vsel %vm15549_vm4, %v15514_v9, %v7395_v22  ;;  %v7489_v7 = vor.u32 1.1754944e-38, %v7488_v32  ;;  %vm7452_vm0 = vweird.f32 %v15474_v17  ;;  %v7456_v55 = vand.u32 2147483647, %v15474_v17 }
 0xf50   : > { %18686 = vst [vmem:[#allocation48_spill] sm:$0xff] %v15611_v23  ;;  %v11912_v39 = vpop.eup %11911  ;;  %v7440_v6 = vsel %vm15617_vm13, %v15469_v44, %v7436_v8  ;;  %v7470_v9 = vsel %vm15635_vm15, %v15479_v13, %v7466_v27  ;;  %11915 = vrcp.f32 %v15602_v4  ;;  %v15656_v2 = vadd.f32 1e-05, %v6427_v43 }
 0xf51   : > { %v15658_v26 = vpop.eup %11913  ;;  %v7485_v44 = vsel %vm15651_vm1, %v15485_v16, %v7481_v0  ;;  %v7450_v13 = vmul.f32 %v15538_v10, %v7449_v47  ;;  %v15664_v12 = vadd.f32 1.0, %v11910_v14  ;;  %v10721_v25 = vmul.f32 -1.702, %v15608_v46  ;;  %v6887_v14 = vpop.f32.mrf.mxu3 }
 0xf52   : > { %v15668_v45 = vmul.f32 %v7400_v49, %v15395_v37  ;;  %v6561_v60 = vsub.f32 1.5, %v6560_v56  ;;  %v10723_v59 = vmul.f32 -1.702, %v15626_v62  ;;  %v15672_v8 = vadd.f32 %v6985_v31, %v15376_v57 }
 0xf53   : > { %v7445_v32 = vsel %vm15577_vm10, %v15535_v41, %v7440_v6  ;;  %v7475_v16 = vsel %vm15581_vm8, %v7474_v28, %v7470_v9  ;;  %vm15679_vm2 = vcmp.eq.f32.partialorder %v7456_v55, 8.507059e+37  ;;  %v7458_v37 = vand.u32 2147483648, %v15474_v17 }
 0xf54   : > { %v7490_v22 = vsel %vm15621_vm14, %v7489_v7, %v7485_v44  ;;  %v7493_v27 = vmul.f32 %v15658_v26, %v15563_v48  ;;  %v15688_v43 = vadd.f32 1.0, %v11912_v39  ;;  %11917 = vrsqrt.f32 %v15656_v2 }
 0xf55   : > { %v7451_v41 = vadd.f32 %v15538_v10, %v7450_v13  ;;  %vm7453_vm3 = vweird.f32 %v15538_v10  ;;  %11919 = vrcp.f32 %v15664_v12  ;;  %v7217_v28 = vmul.f32 1.442695, %v10721_v25 }
 0xf56   : > { %v15694_v61 = vpop.eup %11915  ;;  %v6562_v1 = vmul.f32 %v15517_v5, %v6561_v60  ;;  %vm6564_vm4 = vweird.f32 %v15517_v5  ;;  %v7221_v0 = vmul.f32 1.442695, %v10723_v59  ;;  %v10724_v47 = vmul.f32 -1.702, %v15672_v8  ;;  %vm15710_vm5 = vmor %vm7452_vm0, %vm7453_vm3 }
 0xf57   : > { %v15700_v11 = vmul.f32 %v7445_v32, %v15399_v15  ;;  %v15703_v54 = vmul.f32 %v7475_v16, %v15403_v63  ;;  %v15706_v56 = vmul.f32 %v7490_v22, %v15406_v52  ;;  %v7459_v49 = vor.u32 1.1754944e-38, %v7458_v37 }
 0xf58   : > { %v7494_v55 = vsub.f32 1.0, %v7493_v27  ;;  %v7501_v31 = vand.u32 2147483647, %v15563_v48  ;;  %vm6563_vm6 = vweird.f32 %v15461_v58  ;;  %11921 = vrcp.f32 %v15688_v43  ;;  %v7034_v58 = vpop.f32.mrf.mxu2 }
 0xf59   : > { %18697 = vst [vmem:[#allocation78_spill] sm:$0xff] %v15700_v11  ;;  %v7455_v15 = vsel %vm15710_vm5, %v15538_v10, %v7451_v41  ;;  %v7523_v63 = vmul.f32 %v15694_v61, %v15602_v4  ;;  %vm15724_vm7 = vmor %vm6563_vm6, %vm6564_vm4  ;;  %11923 = vpow2.f32 %v7217_v28  ;;  %v15729_v52 = vadd.f32 %v6887_v14, %v15381_v34 }
 0xf5a   : > { %18698 = vst [vmem:[#allocation71_spill] sm:$0xff] %v15703_v54  ;;  %v15731_v39 = vpop.eup %11917  ;;  %v6566_v10 = vsel %vm15724_vm7, %v15517_v5, %v6562_v1  ;;  %11925 = vpow2.f32 %v7221_v0  ;;  %v7223_v6 = vmul.f32 1.442695, %v10724_v47  ;;  %v6428_v9 = vmul.f32 %v6410_v40, %v18656_v42 }
 0xf5b   : > { %18699 = vst [vmem:[#allocation57_spill] sm:$0xff] %v15706_v56  ;;  %v15737_v20 = vpop.eup %11919  ;;  %vm7497_vm10 = vweird.f32 %v15563_v48  ;;  %v7503_v25 = vand.u32 2147483648, %v15563_v48  ;;  %v7460_v60 = vsel %vm15679_vm2, %v7459_v49, %v7455_v15  ;;  %v7495_v5 = vmul.f32 %v15658_v26, %v7494_v55 }
 0xf5c   : > { %v15749_v59 = vadd.f32 %v7034_v58, %v15391_v29  ;;  %v15751_v32 = vadd.f32 1e-05, %v6428_v9  ;;  %v7533_v16 = vand.u32 2147483648, %v15602_v4  ;;  %v6618_v37 = vmul.f32 %v6566_v10, %v15324_v51 }
 0xf5d   : > { %v6568_v22 = vmul.f32 %v15731_v39, %v15656_v2  ;;  %v10722_v27 = vmul.f32 -1.702, %v15729_v52  ;;  %vm15760_vm8 = vcmp.eq.f32.partialorder %v7501_v31, 8.507059e+37  ;;  %v7524_v28 = vsub.f32 1.0, %v7523_v63 }
 0xf5e   : > { %v15758_v41 = vpop.eup %11921  ;;  %v7538_v1 = vmul.f32 %v15737_v20, %v15664_v12  ;;  %11927 = vpow2.f32 %v7223_v6  ;;  %v15767_v47 = vmul.f32 %v7460_v60, %v15418_v18  ;;  %v7504_v51 = vor.u32 1.1754944e-38, %v7503_v25 }
 0xf5f   : > { %v11924_v0 = vpop.eup %11923  ;;  %v7531_v14 = vand.u32 2147483647, %v15602_v4  ;;  %11929 = vrsqrt.f32 %v15751_v32  ;;  %v7496_v40 = vadd.f32 %v15658_v26, %v7495_v5  ;;  %vm7498_vm9 = vweird.f32 %v15658_v26 }
 0xf60   : > { %v11926_v49 = vpop.eup %11925  ;;  %vm7527_vm11 = vweird.f32 %v15602_v4  ;;  %v7548_v7 = vand.u32 2147483648, %v15664_v12  ;;  %v10725_v55 = vmul.f32 -1.702, %v15749_v59  ;;  %v15776_v31 = vor.u32 1.1754944e-38, %v7533_v16  ;;  %vm15788_vm12 = vmor %vm7497_vm10, %vm7498_vm9 }
 0xf61   : > { %v6569_v18 = vmul.f32 %v15731_v39, %v6568_v22  ;;  %v7219_v15 = vmul.f32 1.442695, %v10722_v27  ;;  %v6637_v63 = vmul.f32 %v15288_v35, %v6618_v37  ;;  %v7525_v17 = vmul.f32 %v15694_v61, %v7524_v28  ;;  %v6890_v27 = vpop.f32.mrf.mxu3 }
 0xf62   : > { %v7539_v58 = vsub.f32 1.0, %v7538_v1  ;;  %v7546_v10 = vand.u32 2147483647, %v15664_v12  ;;  %v15782_v6 = vadd.f32 1.0, %v11924_v0  ;;  %v7508_v60 = vmul.f32 %v15758_v41, %v15688_v43 }
 0xf63   : > { %v15794_v5 = vadd.f32 1.0, %v11926_v49  ;;  %v6636_v16 = vmul.f32 %v15288_v35, %v15465_v3  ;;  %v7500_v22 = vsel %vm15788_vm12, %v15658_v26, %v7496_v40  ;;  %vm15801_vm13 = vcmp.eq.f32.partialorder %v7531_v14, 8.507059e+37  ;;  %v6412_v3 = vpop.xlane.xlu1 %6411 }
 0xf64   : > { %v11928_v37 = vpop.eup %11927  ;;  %vm7542_vm14 = vweird.f32 %v15664_v12  ;;  %v15806_v48 = vor.u32 1.1754944e-38, %v7548_v7  ;;  %v7518_v28 = vand.u32 2147483648, %v15688_v43  ;;  %v7225_v1 = vmul.f32 1.442695, %v10725_v55 }
 0xf65   : > { %v15809_v0 = vpop.eup %11929  ;;  %vm7528_vm15 = vweird.f32 %v15694_v61  ;;  %v6570_v35 = vmul.f32 0.5, %v6569_v18  ;;  %11931 = vpow2.f32 %v7219_v15  ;;  %v6656_v26 = vadd.f32 %v15300_v53, %v6637_v63 }
 0xf66   : > { %v7526_v14 = vadd.f32 %v15694_v61, %v7525_v17  ;;  %v7540_v49 = vmul.f32 %v15737_v20, %v7539_v58  ;;  %11933 = vrcp.f32 %v15782_v6  ;;  %v6578_v40 = vmul.f32 %v15809_v0, %v15751_v32  ;;  %v6939_v58 = vpop.f32.mrf.mxu0  ;;  %vm15830_vm0 = vmor %vm7527_vm11, %vm7528_vm15 }
 0xf67   : > { %v7505_v7 = vsel %vm15760_vm8, %v7504_v51, %v7500_v22  ;;  %v7509_v55 = vsub.f32 1.0, %v7508_v60  ;;  %11935 = vrcp.f32 %v15794_v5  ;;  %v6655_v18 = vadd.f32 %v15300_v53, %v6636_v16 }
 0xf68   : > { %v15822_v15 = vadd.f32 1.0, %v11928_v37  ;;  %11937 = vpow2.f32 %v7225_v1  ;;  %v6579_v63 = vmul.f32 %v15809_v0, %v6578_v40  ;;  %v6429_v17 = vmul.f32 %v6412_v3, %v18656_v42 }
 0xf69   : > { %vm15834_vm1 = vcmp.eq.f32.partialorder %v7546_v10, 8.507059e+37  ;;  %vm7512_vm2 = vweird.f32 %v15688_v43  ;;  %v7516_v53 = vand.u32 2147483647, %v15688_v43  ;;  %v15840_v25 = vor.u32 1.1754944e-38, %v7518_v28 }
 0xf6a   : > { %v6571_v60 = vsub.f32 1.5, %v6570_v35  ;;  %v6666_v16 = vpack.c.bf16 %v6656_v26, %v6655_v18  ;;  %v7530_v4 = vsel %vm15830_vm0, %v15694_v61, %v7526_v14  ;;  %v7541_v37 = vadd.f32 %v15737_v20, %v7540_v49 }
 0xf6b   : > { %vm7543_vm3 = vweird.f32 %v15737_v20  ;;  %v6580_v10 = vmul.f32 0.5, %v6579_v63  ;;  %v11932_v22 = vpop.eup %11931  ;;  %v15848_v1 = vmul.f32 %v7505_v7, %v15434_v21  ;;  %v7510_v3 = vmul.f32 %v15758_v41, %v7509_v55  ;;  %v6988_v21 = vpop.f32.mrf.mxu1 }
 0xf6c   : > { %vm6573_vm4 = vweird.f32 %v15656_v2  ;;  %6904 = vmatmul.bf16.gmra.mxu3 %v6666_v16  ;;  %6953 = vmatmul.bf16.gmra.mxu0 %v6666_v16  ;;  %v15853_v28 = vadd.f32 %v6939_v58, %v15370_v30  ;;  %v15855_v35 = vpop.eup %11933  ;;  %11939 = vrcp.f32 %v15822_v15  ;;  %vm6584_vm5 = vweird.f32 %v15809_v0  ;;  %vm15870_vm6 = vmor %vm7542_vm14, %vm7543_vm3 }
 0xf6d   : > { %18714 = vst [vmem:[#allocation87_spill] sm:$0xff] %v15848_v1  ;;  %v6581_v61 = vsub.f32 1.5, %v6580_v10  ;;  %v15859_v26 = vadd.f32 1e-05, %v6429_v17  ;;  %7002 = vmatmul.bf16.gmra.mxu1 %v6666_v16  ;;  %7051 = vmatmul.bf16.gmra.mxu2 %v6666_v16  ;;  %v15861_v14 = vpop.eup %11935  ;;  %v7535_v49 = vsel %vm15801_vm13, %v15776_v31, %v7530_v4  ;;  %vm7513_vm7 = vweird.f32 %v15758_v41  ;;  %v11230_v1 = vld [vmem:[%s12527_s5 + $0x30] sm:$0xff] }
 0xf6e   : > { %vm15875_vm10 = vcmp.eq.f32.partialorder %v7516_v53, 8.507059e+37  ;;  %v6572_v55 = vmul.f32 %v15731_v39, %v6571_v60  ;;  %vm6574_vm8 = vweird.f32 %v15731_v39  ;;  %v11938_v31 = vpop.eup %11937  ;;  %v7545_v12 = vsel %vm15870_vm6, %v15737_v20, %v7541_v37  ;;  %vm15935_vm13 = vmor %vm7512_vm2, %vm7513_vm7 }
 0xf6f   : > { %v15884_v18 = vadd.f32 1.0, %v11932_v22  ;;  %v6582_v63 = vmul.f32 %v15809_v0, %v6581_v61  ;;  %vm6583_vm9 = vweird.f32 %v15751_v32  ;;  %v7511_v17 = vadd.f32 %v15758_v41, %v7510_v3  ;;  %vm15905_vm12 = vmor %vm6573_vm4, %vm6574_vm8  ;;  %v7037_v3 = vpop.f32.mrf.mxu2 }
 0xf70   : > { %v7553_v58 = vmul.f32 %v15855_v35, %v15782_v6  ;;  %vm15893_vm11 = vmor %vm6583_vm9, %vm6584_vm5  ;;  %v10727_v53 = vmul.f32 -1.702, %v15853_v28  ;;  %v15899_v20 = vadd.f32 %v6988_v21, %v15376_v57  ;;  %11941 = vrsqrt.f32 %v15859_v26 }
 0xf71   : > { %v6586_v16 = vsel %vm15893_vm11, %v15809_v0, %v6582_v63  ;;  %v15914_v4 = vadd.f32 %v6890_v27, %v15381_v34  ;;  %v15917_v37 = vmul.f32 %v7535_v49, %v15454_v19  ;;  %v7583_v10 = vmul.f32 %v15861_v14, %v15794_v5  ;;  %v6941_v49 = vpop.f32.mrf.mxu0 }
 0xf72   : > { %v6576_v2 = vsel %vm15905_vm12, %v15731_v39, %v6572_v55  ;;  %v15924_v22 = vadd.f32 1.0, %v11938_v31  ;;  %v15926_v61 = vpop.eup %11939  ;;  %v7550_v0 = vsel %vm15834_vm1, %v15806_v48, %v7545_v12  ;;  %v7563_v21 = vand.u32 2147483648, %v15782_v6 }
 0xf73   : > { %18723 = vst [vmem:[#allocation54_spill] sm:$0xff] %v15917_v37  ;;  %11943 = vrcp.f32 %v15884_v18  ;;  %v6620_v39 = vmul.f32 %v6586_v16, %v15337_v36  ;;  %v7515_v51 = vsel %vm15935_vm13, %v15758_v41, %v7511_v17  ;;  %v7554_v48 = vsub.f32 1.0, %v7553_v58 }
 0xf74   : > { %v7229_v40 = vmul.f32 1.442695, %v10727_v53  ;;  %v10728_v43 = vmul.f32 -1.702, %v15899_v20  ;;  %v7561_v55 = vand.u32 2147483647, %v15782_v6  ;;  %v6619_v27 = vmul.f32 %v6576_v2, %v15330_v33  ;;  %v6990_v2 = vpop.f32.mrf.mxu1 }
 0xf75   : > { %v10726_v31 = vmul.f32 -1.702, %v15914_v4  ;;  %v15950_v12 = vadd.f32 %v7037_v3, %v15391_v29  ;;  %vm7557_vm14 = vweird.f32 %v15782_v6  ;;  %v7584_v36 = vsub.f32 1.0, %v7583_v10  ;;  %v15970_v53 = vld [vmem:[%s12512_s4] ss:$0 sm:$0xff]  ;;  %s18967_s4 = sld [smem:[#allocation15_spill]] (!%p10902_p9) }
 0xf76   : > { %v7598_v41 = vmul.f32 %v15926_v61, %v15822_v15  ;;  %11945 = vrcp.f32 %v15924_v22  ;;  %v15957_v63 = vadd.f32 %v6941_v49, %v15370_v30  ;;  %v15959_v17 = vpop.eup %11941  ;;  %v15962_v33 = vmul.f32 %v7550_v0, %v15477_v24 }
 0xf77   : > { %v7520_v58 = vsel %vm15875_vm10, %v15840_v25, %v7515_v51  ;;  %v15967_v38 = vor.u32 1.1754944e-38, %v7563_v21  ;;  %v6639_v32 = vmul.f32 %v15970_v53, %v6620_v39  ;;  %v7555_v16 = vmul.f32 %v15855_v35, %v7554_v48  ;;  %v18728_v48 = vld [vmem:[#allocation56_spill] sm:$0xff] }
 0xf78   : > { %vm7587_vm15 = vweird.f32 %v15794_v5  ;;  %11947 = vpow2.f32 %v7229_v40  ;;  %v7231_v10 = vmul.f32 1.442695, %v10728_v43  ;;  %v7591_v3 = vand.u32 2147483647, %v15794_v5 }
 0xf79   : > { %v15975_v24 = vpop.eup %11943  ;;  %v7227_v7 = vmul.f32 1.442695, %v10726_v31  ;;  %v10729_v25 = vmul.f32 -1.702, %v15950_v12  ;;  %v6638_v0 = vmul.f32 %v15970_v53, %v6619_v27  ;;  %vm15980_vm0 = vcmp.eq.f32.partialorder %v7561_v55, 8.507059e+37 }
 0xf7a   : > { %v7585_v21 = vmul.f32 %v15861_v14, %v7584_v36  ;;  %v7599_v39 = vsub.f32 1.0, %v7598_v41  ;;  %v6588_v49 = vmul.f32 %v15959_v17, %v15859_v26  ;;  %v10731_v51 = vmul.f32 -1.702, %v15957_v63  ;;  %v15996_v55 = vld [vmem:[%s12516_s0] ss:$0 sm:$0xff]  ;;  %s18971_s0 = smov (!%p10902_p9), %s18970_s26 }
 0xf7b   : > { %v15989_v40 = vmul.f32 %v7520_v58, %v18728_v48  ;;  %v7593_v43 = vand.u32 2147483648, %v15794_v5  ;;  %v15993_v31 = vadd.f32 %v6990_v2, %v15376_v57  ;;  %v6658_v27 = vadd.f32 %v15996_v55, %v6639_v32 }
 0xf7c   : > { %v15999_v60 = vpop.eup %11945  ;;  %v7556_v36 = vadd.f32 %v15855_v35, %v7555_v16  ;;  %vm7558_vm1 = vweird.f32 %v15855_v35  ;;  %v7568_v41 = vmul.f32 %v15975_v24, %v15884_v18  ;;  %11949 = vpow2.f32 %v7231_v10 }
 0xf7d   : > { %vm7588_vm2 = vweird.f32 %v15861_v14  ;;  %11951 = vpow2.f32 %v7227_v7  ;;  %v7233_v58 = vmul.f32 1.442695, %v10729_v25  ;;  %v6657_v2 = vadd.f32 %v15996_v55, %v6638_v0  ;;  %vm16012_vm3 = vmor %vm7557_vm14, %vm7558_vm1 }
 0xf7e   : > { %v11948_v48 = vpop.eup %11947  ;;  %v7586_v13 = vadd.f32 %v15861_v14, %v7585_v21  ;;  %v7600_v32 = vmul.f32 %v15926_v61, %v7599_v39  ;;  %v6589_v44 = vmul.f32 %v15959_v17, %v6588_v49  ;;  %v7237_v16 = vmul.f32 1.442695, %v10731_v51  ;;  %vm16029_vm5 = vmor %vm7587_vm15, %vm7588_vm2  ;;  %v11255_v49 = vld [vmem:[%s12527_s5 + $0xf8] sm:$0xff] }
 0xf7f   : > { %vm7602_vm4 = vweird.f32 %v15822_v15  ;;  %v7613_v10 = vmul.f32 %v15999_v60, %v15924_v22  ;;  %v10732_v7 = vmul.f32 -1.702, %v15993_v31  ;;  %v6667_v25 = vpack.c.bf16 %v6658_v27, %v6657_v2  ;;  %8850 = vmatpush.bf16.msra.mxu2 %v11255_v49 }
 0xf80   : > { %v7560_v0 = vsel %vm16012_vm3, %v15855_v35, %v7556_v36  ;;  %v7606_v21 = vand.u32 2147483647, %v15822_v15  ;;  %v7608_v6 = vand.u32 2147483648, %v15822_v15  ;;  %v7569_v39 = vsub.f32 1.0, %v7568_v41 }
 0xf81   : > { %vm16033_vm6 = vcmp.eq.f32.partialorder %v7591_v3, 8.507059e+37  ;;  %vm7603_vm7 = vweird.f32 %v15926_v61  ;;  %v16038_v9 = vadd.f32 1.0, %v11948_v48  ;;  %11953 = vpow2.f32 %v7233_v58  ;;  %6909 = vmatmul.bf16.gmra.mxu3 %v6667_v25  ;;  %6958 = vmatmul.bf16.gmra.mxu0 %v6667_v25  ;;  %v6892_v3 = vpop.f32.mrf.mxu3 }
 0xf82   : > { %v11950_v35 = vpop.eup %11949  ;;  %v7590_v5 = vsel %vm16029_vm5, %v15861_v14, %v7586_v13  ;;  %v7601_v27 = vadd.f32 %v15926_v61, %v7600_v32  ;;  %v6590_v36 = vmul.f32 0.5, %v6589_v44  ;;  %11955 = vpow2.f32 %v7237_v16  ;;  %7007 = vmatmul.bf16.gmra.mxu1 %v6667_v25  ;;  %7056 = vmatmul.bf16.gmra.mxu2 %v6667_v25  ;;  %vm16059_vm9 = vmor %vm7602_vm4, %vm7603_vm7 }
 0xf83   : > { %v11952_v41 = vpop.eup %11951  ;;  %v7565_v2 = vsel %vm15980_vm0, %v15967_v38, %v7560_v0  ;;  %v7594_v58 = vor.u32 1.1754944e-38, %v7593_v43  ;;  %v7614_v48 = vsub.f32 1.0, %v7613_v10  ;;  %v7239_v11 = vmul.f32 1.442695, %v10732_v7  ;;  %v11238_v38 = vld [vmem:[%s12527_s5 + $0x70] sm:$0xff] }
 0xf84   : > { %vm16047_vm10 = vcmp.eq.f32.partialorder %v7606_v21, 8.507059e+37  ;;  %v7609_v13 = vor.u32 1.1754944e-38, %v7608_v6  ;;  %v7570_v14 = vmul.f32 %v15975_v24, %v7569_v39  ;;  %vm6593_vm8 = vweird.f32 %v15859_v26  ;;  %v11231_v39 = vld [vmem:[%s12527_s5 + $0x38] sm:$0xff] }
 0xf85   : > { %v7595_v44 = vsel %vm16033_vm6, %v7594_v58, %v7590_v5  ;;  %11957 = vrcp.f32 %v16038_v9  ;;  %v16064_v19 = vadd.f32 1.0, %v11950_v35  ;;  %v16067_v43 = vadd.f32 %v6892_v3, %v15381_v34  ;;  %v11239_v5 = vld [vmem:[%s12527_s5 + $0x78] sm:$0xff]  ;;  %8703 = vmatpush.bf16.msra.mxu3 %v11231_v39 }
 0xf86   : > { %v16070_v32 = vmul.f32 %v7565_v2, %v15608_v46  ;;  %v7605_v15 = vsel %vm16059_vm9, %v15926_v61, %v7601_v27  ;;  %v6591_v16 = vsub.f32 1.5, %v6590_v36  ;;  %v16075_v10 = vadd.f32 1.0, %v11952_v41  ;;  %v11247_v27 = vld [vmem:[%s12527_s5 + $0xb8] sm:$0xff]  ;;  %v11254_v41 = vld [vmem:[%s12527_s5 + $0xf0] sm:$0xff]  ;;  %8752 = vmatpush.bf16.msrb.mxu0 %v11239_v5 }
 0xf87   : > { %v11954_v7 = vpop.eup %11953  ;;  %vm7572_vm11 = vweird.f32 %v15884_v18  ;;  %v7576_v25 = vand.u32 2147483647, %v15884_v18  ;;  %v7615_v0 = vmul.f32 %v15999_v60, %v7614_v48  ;;  %11959 = vpow2.f32 %v7239_v11  ;;  %v7039_v11 = vpop.f32.mrf.mxu2  ;;  %8801 = vmatpush.bf16.msrb.mxu1 %v11247_v27  ;;  %8851 = vmatpush.bf16.msra.mxu2 %v11254_v41  ;;  %v18751_v48 = vld [vmem:[#allocation93_spill] sm:$0xff] }
 0xf88   : > { %v11956_v21 = vpop.eup %11955  ;;  %v16081_v46 = vmul.f32 %v7595_v44, %v15626_v62  ;;  %v7571_v6 = vadd.f32 %v15975_v24, %v7570_v14  ;;  %vm7573_vm12 = vweird.f32 %v15975_v24  ;;  %v7578_v61 = vand.u32 2147483648, %v15884_v18 }
 0xf89   : > { %v7610_v51 = vsel %vm16047_vm10, %v7609_v13, %v7605_v15  ;;  %v7621_v35 = vand.u32 2147483647, %v15924_v22  ;;  %11961 = vrcp.f32 %v16064_v19  ;;  %v10730_v62 = vmul.f32 -1.702, %v16067_v43  ;;  %v6414_v2 = vpop.xlane.xlu0 %6413  ;;  %vm16108_vm14 = vmor %vm7572_vm11, %vm7573_vm12  ;;  %v11246_v15 = vld [vmem:[%s12527_s5 + $0xb0] sm:$0xff]  ;;  %8704 = vmatpush.bf16.msra.mxu3 %v11230_v1 }
 0xf8a   : > { %18739 = vst [vmem:[#allocation85_spill] sm:$0xff] %v16081_v46  ;;  %v6592_v36 = vmul.f32 %v15959_v17, %v6591_v16  ;;  %vm6594_vm13 = vweird.f32 %v15959_v17  ;;  %11963 = vrcp.f32 %v16075_v10  ;;  %v16098_v3 = vadd.f32 1.0, %v11954_v7  ;;  %8753 = vmatpush.bf16.msrb.mxu0 %v11238_v38 }
 0xf8b   : > { %v16102_v58 = vpop.eup %11957  ;;  %v7616_v13 = vadd.f32 %v15999_v60, %v7615_v0  ;;  %vm7618_vm15 = vweird.f32 %v15999_v60  ;;  %v7623_v14 = vand.u32 2147483648, %v15924_v22  ;;  %v16115_v44 = vadd.f32 1.0, %v11956_v21  ;;  %vm16137_vm2 = vmor %vm6593_vm8, %vm6594_vm13  ;;  %8802 = vmatpush.bf16.msrb.mxu1 %v11246_v15 }
 0xf8c   : > { %v16120_v16 = vmul.f32 %v7610_v51, %v15672_v8  ;;  %v7575_v18 = vsel %vm16108_vm14, %v15975_v24, %v7571_v6  ;;  %vm16125_vm0 = vcmp.eq.f32.partialorder %v7576_v25, 8.507059e+37  ;;  %v16130_v0 = vadd.f32 %v7039_v11, %v15391_v29  ;;  %v11253_v51 = vld [vmem:[%s12527_s5 + $0xe8] sm:$0xff] }
 0xf8d   : > { %v11960_v21 = vpop.eup %11959  ;;  %v7579_v39 = vor.u32 1.1754944e-38, %v7578_v61  ;;  %vm7617_vm1 = vweird.f32 %v15924_v22  ;;  %v7235_v24 = vmul.f32 1.442695, %v10730_v62  ;;  %v6430_v25 = vmul.f32 %v6414_v2, %v18656_v42  ;;  %v11229_v42 = vld [vmem:[%s12527_s5 + $0x28] sm:$0xff]  ;;  %8852 = vmatpush.bf16.msra.mxu2 %v11253_v51 }
 0xf8e   : > { %vm16144_vm3 = vmor %vm7617_vm1, %vm7618_vm15  ;;  %vm16148_vm4 = vcmp.eq.f32.partialorder %v7621_v35, 8.507059e+37  ;;  %v6596_v26 = vsel %vm16137_vm2, %v15959_v17, %v6592_v36  ;;  %v7643_v61 = vmul.f32 %v16102_v58, %v16038_v9  ;;  %11965 = vrcp.f32 %v16098_v3  ;;  %v11237_v17 = vld [vmem:[%s12527_s5 + $0x68] sm:$0xff]  ;;  %8705 = vmatpush.bf16.msra.mxu3 %v11229_v42 }
 0xf8f   : > { %v16160_v62 = vpop.eup %11961  ;;  %v7580_v35 = vsel %vm16125_vm0, %v7579_v39, %v7575_v18  ;;  %v7620_v11 = vsel %vm16144_vm3, %v15999_v60, %v7616_v13  ;;  %v7624_v5 = vor.u32 1.1754944e-38, %v7623_v14  ;;  %11967 = vrcp.f32 %v16115_v44  ;;  %8754 = vmatpush.bf16.msrb.mxu0 %v11237_v17 }
 0xf90   : > { %v16169_v27 = vpop.eup %11963  ;;  %v16171_v36 = vadd.f32 1.0, %v11960_v21  ;;  %v10733_v1 = vmul.f32 -1.702, %v16130_v0  ;;  %v16174_v41 = vadd.f32 1e-05, %v6430_v25  ;;  %v6621_v18 = vmul.f32 %v6596_v26, %v18751_v48  ;;  %v11245_v25 = vld [vmem:[%s12527_s5 + $0xa8] sm:$0xff] }
 0xf91   : > { %v7653_v60 = vand.u32 2147483648, %v16038_v9  ;;  %11969 = vpow2.f32 %v7235_v24  ;;  %v7625_v38 = vsel %vm16148_vm4, %v7624_v5, %v7620_v11  ;;  %v7644_v15 = vsub.f32 1.0, %v7643_v61  ;;  %8803 = vmatpush.bf16.msrb.mxu1 %v11245_v25 }
 0xf92   : > { %v7668_v7 = vand.u32 2147483648, %v16064_v19  ;;  %11971 = vrsqrt.f32 %v16174_v41  ;;  %v16188_v21 = vmul.f32 %v7580_v35, %v15729_v52  ;;  %v7651_v39 = vand.u32 2147483647, %v16038_v9 }
 0xf93   : > { %v7658_v8 = vmul.f32 %v16160_v62, %v16064_v19  ;;  %v7628_v24 = vmul.f32 %v16169_v27, %v16075_v10  ;;  %vm7647_vm5 = vweird.f32 %v16038_v9  ;;  %11973 = vrcp.f32 %v16171_v36 }
 0xf94   : > { %v16196_v49 = vpop.eup %11965  ;;  %v7241_v22 = vmul.f32 1.442695, %v10733_v1  ;;  %v16207_v42 = vmul.f32 %v7625_v38, %v15749_v59  ;;  %v16209_v51 = vor.u32 1.1754944e-38, %v7653_v60  ;;  %v7666_v35 = vand.u32 2147483647, %v16064_v19 }
 0xf95   : > { %v16204_v61 = vpop.eup %11967  ;;  %v7638_v11 = vand.u32 2147483648, %v16075_v10  ;;  %v7645_v5 = vmul.f32 %v16102_v58, %v7644_v15  ;;  %v16214_v17 = vor.u32 1.1754944e-38, %v7668_v7  ;;  %v16220_v48 = vmul.f32 %v15970_v53, %v6621_v18 }
 0xf96   : > { %v7659_v59 = vsub.f32 1.0, %v7658_v8  ;;  %v7629_v38 = vsub.f32 1.0, %v7628_v24  ;;  %v7636_v60 = vand.u32 2147483647, %v16075_v10  ;;  %v7673_v14 = vmul.f32 %v16196_v49, %v16098_v3 }
 0xf97   : > { %vm7662_vm6 = vweird.f32 %v16064_v19  ;;  %v7703_v15 = vmul.f32 %v16204_v61, %v16115_v44  ;;  %11975 = vpow2.f32 %v7241_v22  ;;  %vm7648_vm7 = vweird.f32 %v16102_v58 }
 0xf98   : > { %vm7632_vm10 = vweird.f32 %v16075_v10  ;;  %v16233_v8 = vor.u32 1.1754944e-38, %v7638_v11  ;;  %v7646_v46 = vadd.f32 %v16102_v58, %v7645_v5  ;;  %vm16241_vm8 = vcmp.eq.f32.partialorder %v7651_v39, 8.507059e+37  ;;  %vm16257_vm11 = vmor %vm7647_vm5, %vm7648_vm7 }
 0xf99   : > { %vm7663_vm9 = vweird.f32 %v16160_v62  ;;  %v7683_v11 = vand.u32 2147483648, %v16098_v3  ;;  %v7630_v23 = vmul.f32 %v16169_v27, %v7629_v38  ;;  %v7674_v5 = vsub.f32 1.0, %v7673_v14 }
 0xf9a   : > { %v7704_v39 = vsub.f32 1.0, %v7703_v15  ;;  %vm16261_vm12 = vcmp.eq.f32.partialorder %v7666_v35, 8.507059e+37  ;;  %vm7677_vm13 = vweird.f32 %v16098_v3  ;;  %v7650_v9 = vsel %vm16257_vm11, %v16102_v58, %v7646_v46  ;;  %vm16291_vm1 = vmor %vm7662_vm6, %vm7663_vm9 }
 0xf9b   : > { %v6944_v6 = vpop.f32.mrf.mxu0  ;;  %vm7633_vm14 = vweird.f32 %v16169_v27  ;;  %vm16273_vm15 = vcmp.eq.f32.partialorder %v7636_v60, 8.507059e+37  ;;  %v7675_v46 = vmul.f32 %v16196_v49, %v7674_v5  ;;  %v11228_v5 = vld [vmem:[%s12527_s5 + $0x20] sm:$0xff]  ;;  %v7684_v19 = vor.u32 1.1754944e-38, %v7683_v11 }
 0xf9c   : > { %v16177_v2 = vadd.f32 %v6944_v6, %v15370_v30  ;;  %v6993_v13 = vpop.f32.mrf.mxu1  ;;  %v7705_v58 = vmul.f32 %v16204_v61, %v7704_v39  ;;  %vm16303_vm2 = vmor %vm7632_vm10, %vm7633_vm14  ;;  %vm7707_vm3 = vweird.f32 %v16115_v44  ;;  %vm6603_vm4 = vweird.f32 %v16174_v41  ;;  %8706 = vmatpush.bf16.msra.mxu3 %v11228_v5 }
 0xf9d   : > { %v16202_v26 = vadd.f32 %v6993_v13, %v15376_v57  ;;  %v11970_v13 = vpop.eup %11969  ;;  %vm7678_vm5 = vweird.f32 %v16196_v49  ;;  %vm7708_vm7 = vweird.f32 %v16204_v61 }
 0xf9e   : > { %18750 = vst [vmem:[#allocation35_spill] sm:$0xff] %v16177_v2  ;;  %v10735_v52 = vmul.f32 -1.702, %v16177_v2  ;;  %v16225_v37 = vpop.eup %11971  ;;  %v16250_v56 = vadd.f32 1.0, %v11970_v13  ;;  %v7711_v13 = vand.u32 2147483647, %v16115_v44  ;;  %v7706_v22 = vadd.f32 %v16204_v61, %v7705_v58  ;;  %vm16356_vm9 = vmor %vm7677_vm13, %vm7678_vm5 }
 0xf9f   : > { %18752 = vst [vmem:[#allocation81_spill] sm:$0xff] %v16202_v26  ;;  %v10736_v18 = vmul.f32 -1.702, %v16202_v26  ;;  %v6598_v24 = vmul.f32 %v16225_v37, %v16174_v41  ;;  %v7660_v26 = vmul.f32 %v16160_v62, %v7659_v59  ;;  %vm6604_vm0 = vweird.f32 %v16225_v37  ;;  %vm16369_vm11 = vmor %vm7707_vm3, %vm7708_vm7 }
 0xfa0   : > { %v7245_v7 = vmul.f32 1.442695, %v10735_v52  ;;  %v7681_v52 = vand.u32 2147483647, %v16098_v3  ;;  %vm16324_vm10 = vmor %vm6603_vm4, %vm6604_vm0  ;;  %v6659_v58 = vadd.f32 %v15996_v55, %v16220_v48  ;;  %v7726_v3 = vand.u32 2147483647, %v16171_v36 }
 0xfa1   : > { %v6895_v6 = vpop.f32.mrf.mxu3  ;;  %v7247_v50 = vmul.f32 1.442695, %v10736_v18  ;;  %v7713_v18 = vand.u32 2147483648, %v16115_v44  ;;  %v7728_v59 = vand.u32 2147483648, %v16171_v36  ;;  %vm7722_vm13 = vweird.f32 %v16171_v36 }
 0xfa2   : > { %v16217_v1 = vadd.f32 %v6895_v6, %v15381_v34  ;;  %v16238_v6 = vpop.eup %11973  ;;  %v7042_v2 = vpop.f32.mrf.mxu2  ;;  %11977 = vpow2.f32 %v7245_v7  ;;  %vm16317_vm6 = vcmp.eq.f32.partialorder %v7681_v52, 8.507059e+37  ;;  %vm16404_vm14 = vcmp.eq.f32.partialorder %v7726_v3, 8.507059e+37 }
 0xfa3   : > { %v7718_v14 = vmul.f32 %v16238_v6, %v16171_v36  ;;  %v11976_v7 = vpop.eup %11975  ;;  %11979 = vrcp.f32 %v16250_v56  ;;  %v7729_v36 = vor.u32 1.1754944e-38, %v7728_v59  ;;  %v7696_v59 = vand.u32 2147483647, %v16250_v56 }
 0xfa4   : > { %18753 = vst [vmem:[#allocation88_spill] sm:$0xff] %v16217_v1  ;;  %v10734_v25 = vmul.f32 -1.702, %v16217_v1  ;;  %v6599_v1 = vmul.f32 %v16225_v37, %v6598_v24  ;;  %v16279_v24 = vadd.f32 %v7042_v2, %v15391_v29  ;;  %11981 = vpow2.f32 %v7247_v50  ;;  %v6995_v35 = vpop.f32.mrf.mxu1 }
 0xfa5   : > { %vm7692_vm0 = vweird.f32 %v16250_v56 }
 0xfa6   : > { %v6600_v38 = vmul.f32 0.5, %v6599_v1  ;;  %v7243_v15 = vmul.f32 1.442695, %v10734_v25  ;;  %v7661_v1 = vadd.f32 %v16160_v62, %v7660_v26  ;;  %v7631_v25 = vadd.f32 %v16169_v27, %v7630_v23 }
 0xfa7   : > { %v7719_v26 = vsub.f32 1.0, %v7718_v14  ;;  %v16295_v23 = vadd.f32 1.0, %v11976_v7  ;;  %v10737_v39 = vmul.f32 -1.702, %v16279_v24  ;;  %v7655_v14 = vsel %vm16241_vm8, %v16209_v51, %v7650_v9 }
 0xfa8   : > { %v6601_v54 = vsub.f32 1.5, %v6600_v38  ;;  %11983 = vpow2.f32 %v7243_v15  ;;  %v11978_v38 = vpop.eup %11977  ;;  %v7665_v15 = vsel %vm16291_vm1, %v16160_v62, %v7661_v1  ;;  %v7635_v51 = vsel %vm16303_vm2, %v16169_v27, %v7631_v25  ;;  %v6946_v25 = vpop.f32.mrf.mxu0 }
 0xfa9   : > { %v7676_v62 = vadd.f32 %v16196_v49, %v7675_v46  ;;  %vm16333_vm8 = vcmp.eq.f32.partialorder %v7711_v13, 8.507059e+37  ;;  %v16340_v7 = vpop.eup %11979  ;;  %v7714_v9 = vor.u32 1.1754944e-38, %v7713_v18  ;;  %v7720_v1 = vmul.f32 %v16238_v6, %v7719_v26  ;;  %v18776_v26 = vld [vmem:[#allocation95_spill] sm:$0xff] }
 0xfaa   : > { %v6602_v60 = vmul.f32 %v16225_v37, %v6601_v54  ;;  %11985 = vrcp.f32 %v16295_v23  ;;  %v16344_v27 = vadd.f32 1.0, %v11978_v38  ;;  %v11982_v54 = vpop.eup %11981  ;;  %v16347_v13 = vmul.f32 %v7655_v14, %v15853_v28 }
 0xfab   : > { %v7670_v46 = vsel %vm16261_vm12, %v16214_v17, %v7665_v15  ;;  %v7249_v18 = vmul.f32 1.442695, %v10737_v39  ;;  %v7640_v28 = vsel %vm16273_vm15, %v16233_v8, %v7635_v51  ;;  %v7680_v48 = vsel %vm16356_vm9, %v16196_v49, %v7676_v62  ;;  %v11236_v51 = vld [vmem:[%s12527_s5 + $0x60] sm:$0xff] }
 0xfac   : > { %v6606_v11 = vsel %vm16324_vm10, %v16225_v37, %v6602_v60  ;;  %v7710_v8 = vsel %vm16369_vm11, %v16204_v61, %v7706_v22  ;;  %vm7723_vm12 = vweird.f32 %v16238_v6  ;;  %v16384_v44 = vadd.f32 %v6946_v25, %v15370_v30  ;;  %v11244_v62 = vld [vmem:[%s12527_s5 + $0xa0] sm:$0xff]  ;;  %8755 = vmatpush.bf16.msrb.mxu0 %v11236_v51 }
 0xfad   : > { %v6622_v60 = vmul.f32 %v6606_v11, %v18776_v26  ;;  %v7721_v5 = vadd.f32 %v16238_v6, %v7720_v1  ;;  %v7688_v38 = vmul.f32 %v16340_v7, %v16250_v56  ;;  %11987 = vrcp.f32 %v16344_v27  ;;  %v11252_v22 = vld [vmem:[%s12527_s5 + $0xe0] sm:$0xff]  ;;  %v6897_v1 = vpop.f32.mrf.mxu3  ;;  %vm16419_vm15 = vmor %vm7722_vm13, %vm7723_vm12  ;;  %8804 = vmatpush.bf16.msrb.mxu1 %v11244_v62 }
 0xfae   : > { %v11984_v2 = vpop.eup %11983  ;;  %v16390_v49 = vadd.f32 1.0, %v11982_v54  ;;  %11989 = vpow2.f32 %v7249_v18  ;;  %v10739_v61 = vmul.f32 -1.702, %v16384_v44  ;;  %v16396_v39 = vadd.f32 %v6995_v35, %v15376_v57  ;;  %8853 = vmatpush.bf16.msra.mxu2 %v11252_v22 }
 0xfaf   : > { %v16392_v50 = vadd.f32 1.0, %v11984_v2  ;;  %v16401_v15 = vmul.f32 %v7670_v46, %v15899_v20  ;;  %v6641_v11 = vmul.f32 %v15970_v53, %v6622_v60  ;;  %v16413_v25 = vmul.f32 %v7640_v28, %v15914_v4  ;;  %v7044_v60 = vpop.f32.mrf.mxu2  ;;  %v11234_v28 = vld [vmem:[%s12527_s5 + $0x50] sm:$0xff] }
 0xfb0   : > { %v16398_v14 = vpop.eup %11985  ;;  %v7685_v54 = vsel %vm16317_vm6, %v7684_v19, %v7680_v48  ;;  %v10740_v46 = vmul.f32 -1.702, %v16396_v39  ;;  %v7715_v37 = vsel %vm16333_vm8, %v7714_v9, %v7710_v8  ;;  %v7725_v4 = vsel %vm16419_vm15, %v16238_v6, %v7721_v5 }
 0xfb1   : > { %11991 = vrcp.f32 %v16390_v49  ;;  %v7253_v53 = vmul.f32 1.442695, %v10739_v61  ;;  %v7689_v19 = vsub.f32 1.0, %v7688_v38  ;;  %v7733_v10 = vmul.f32 %v16398_v14, %v16295_v23 }
 0xfb2   : > { %11993 = vrcp.f32 %v16392_v50  ;;  %v16434_v18 = vadd.f32 %v6897_v1, %v15381_v34  ;;  %v16439_v9 = vmul.f32 %v7685_v54, %v15950_v12  ;;  %v7255_v6 = vmul.f32 1.442695, %v10740_v46  ;;  %v11235_v46 = vld [vmem:[%s12527_s5 + $0x58] sm:$0xff] }
 0xfb3   : > { %v16436_v52 = vpop.eup %11987  ;;  %v6660_v2 = vadd.f32 %v15996_v55, %v6641_v11  ;;  %v16445_v3 = vmul.f32 %v7715_v37, %v15957_v63  ;;  %v7698_v26 = vand.u32 2147483648, %v16250_v56  ;;  %v7730_v12 = vsel %vm16404_vm14, %v7729_v36, %v7725_v4  ;;  %v11227_v36 = vld [vmem:[%s12527_s5 + $0x18] sm:$0xff]  ;;  %v6949_v4 = vpop.f32.mrf.mxu0  ;;  %8756 = vmatpush.bf16.msrb.mxu0 %v11235_v46 }
 0xfb4   : > { %v11990_v17 = vpop.eup %11989  ;;  %v7743_v55 = vand.u32 2147483648, %v16295_v23  ;;  %11995 = vpow2.f32 %v7253_v53  ;;  %v7690_v35 = vmul.f32 %v16340_v7, %v7689_v19  ;;  %v7734_v63 = vsub.f32 1.0, %v7733_v10  ;;  %v11243_v37 = vld [vmem:[%s12527_s5 + $0x98] sm:$0xff]  ;;  %8707 = vmatpush.bf16.msra.mxu3 %v11227_v36 }
 0xfb5   : > { %v6668_v8 = vpack.c.bf16 %v6660_v2, %v6659_v58  ;;  %v10738_v5 = vmul.f32 -1.702, %v16434_v18  ;;  %v7763_v61 = vmul.f32 %v16436_v52, %v16344_v27  ;;  %v16461_v51 = vadd.f32 1.0, %v11990_v17  ;;  %v11251_v2 = vld [vmem:[%s12527_s5 + $0xd8] sm:$0xff]  ;;  %8805 = vmatpush.bf16.msrb.mxu1 %v11243_v37 }
 0xfb6   : > { %11997 = vpow2.f32 %v7255_v6  ;;  %v16464_v58 = vadd.f32 %v7044_v60, %v15391_v29  ;;  %v16469_v62 = vmul.f32 %v7730_v12, %v15993_v31  ;;  %vm16471_vm1 = vcmp.eq.f32.partialorder %v7696_v59, 8.507059e+37  ;;  %8854 = vmatpush.bf16.msra.mxu2 %v11251_v2 }
 0xfb7   : > { %v16457_v38 = vpop.eup %11991  ;;  %6914 = vmatmul.bf16.gmra.mxu3 %v6668_v8  ;;  %6963 = vmatmul.bf16.gmra.mxu0 %v6668_v8  ;;  %v7699_v11 = vor.u32 1.1754944e-38, %v7698_v26  ;;  %v7741_v1 = vand.u32 2147483647, %v16295_v23  ;;  %vm7693_vm2 = vweird.f32 %v16340_v7  ;;  %vm7737_vm3 = vweird.f32 %v16295_v23 }
 0xfb8   : > { %v16466_v41 = vpop.eup %11993  ;;  %7012 = vmatmul.bf16.gmra.mxu1 %v6668_v8  ;;  %7061 = vmatmul.bf16.gmra.mxu2 %v6668_v8  ;;  %v16480_v20 = vor.u32 1.1754944e-38, %v7743_v55  ;;  %v10741_v31 = vmul.f32 -1.702, %v16464_v58  ;;  %v7691_v19 = vadd.f32 %v16340_v7, %v7690_v35  ;;  %v7778_v10 = vmul.f32 %v16457_v38, %v16390_v49  ;;  %v6998_v35 = vpop.f32.mrf.mxu1  ;;  %vm16508_vm5 = vmor %vm7692_vm0, %vm7693_vm2 }
 0xfb9   : > { %v7251_v6 = vmul.f32 1.442695, %v10738_v5  ;;  %v16493_v17 = vadd.f32 %v6949_v4, %v15370_v30  ;;  %v7735_v26 = vmul.f32 %v16398_v14, %v7734_v63  ;;  %v7764_v60 = vsub.f32 1.0, %v7763_v61  ;;  %8757 = vmatpush.bf16.msrb.mxu0 %v11234_v28 }
 0xfba   : > { %v11996_v59 = vpop.eup %11995  ;;  %v7748_v12 = vmul.f32 %v16466_v41, %v16392_v50  ;;  %11999 = vrcp.f32 %v16461_v51  ;;  %vm7738_vm4 = vweird.f32 %v16398_v14  ;;  %v7771_v55 = vand.u32 2147483647, %v16344_v27 }
 0xfbb   : > { %18783 = vst [vmem:[#allocation40_spill] sm:$0xff] %v16493_v17  ;;  %v7773_v8 = vand.u32 2147483648, %v16344_v27  ;;  %vm16512_vm6 = vcmp.eq.f32.partialorder %v7741_v1, 8.507059e+37  ;;  %v7786_v46 = vand.u32 2147483647, %v16390_v49  ;;  %v16519_v2 = vadd.f32 %v6998_v35, %v15376_v57  ;;  %vm16551_vm8 = vmor %vm7737_vm3, %vm7738_vm4 }
 0xfbc   : > { %v11998_v5 = vpop.eup %11997  ;;  %v7257_v37 = vmul.f32 1.442695, %v10741_v31  ;;  %v10743_v4 = vmul.f32 -1.702, %v16493_v17  ;;  %v7695_v56 = vsel %vm16508_vm5, %v16340_v7, %v7691_v19  ;;  %v7779_v63 = vsub.f32 1.0, %v7778_v10  ;;  %v11226_v31 = vld [vmem:[%s12527_s5 + $0x10] sm:$0xff] }
 0xfbd   : > { %18788 = vst [vmem:[#allocation41_spill] sm:$0xff] %v16519_v2  ;;  %v16524_v53 = vadd.f32 1.0, %v11996_v59  ;;  %12001 = vpow2.f32 %v7251_v6  ;;  %v7736_v1 = vadd.f32 %v16398_v14, %v7735_v26  ;;  %v7765_v54 = vmul.f32 %v16436_v52, %v7764_v60  ;;  %v11242_v17 = vld [vmem:[%s12527_s5 + $0x90] sm:$0xff]  ;;  %8708 = vmatpush.bf16.msra.mxu3 %v11226_v31 }
 0xfbe   : > { %v7749_v48 = vsub.f32 1.0, %v7748_v12  ;;  %12003 = vpow2.f32 %v7257_v37  ;;  %vm7767_vm7 = vweird.f32 %v16344_v27  ;;  %v16532_v35 = vadd.f32 1.0, %v11998_v5  ;;  %v11250_v19 = vld [vmem:[%s12527_s5 + $0xd0] sm:$0xff]  ;;  %8806 = vmatpush.bf16.msrb.mxu1 %v11242_v17  ;;  %v11225_v5 = vld [vmem:[%s12527_s5 + $0x8] sm:$0xff]  ;;  %v11240_v12 = vld [vmem:[%s12527_s5 + $0x80] sm:$0xff] }
 0xfbf   : > { %v7261_v61 = vmul.f32 1.442695, %v10743_v4  ;;  %v10744_v7 = vmul.f32 -1.702, %v16519_v2  ;;  %v7700_v6 = vsel %vm16471_vm1, %v7699_v11, %v7695_v56  ;;  %vm16540_vm10 = vcmp.eq.f32.partialorder %v7771_v55, 8.507059e+37  ;;  %8855 = vmatpush.bf16.msra.mxu2 %v11250_v19  ;;  %v11233_v37 = vld [vmem:[%s12527_s5 + $0x48] sm:$0xff]  ;;  %v7047_v19 = vpop.f32.mrf.mxu2 }
 0xfc0   : > { %v16536_v10 = vpop.eup %11999  ;;  %v16544_v26 = vor.u32 1.1754944e-38, %v7773_v8  ;;  %v7788_v60 = vand.u32 2147483648, %v16390_v49  ;;  %vm7768_vm9 = vweird.f32 %v16436_v52  ;;  %v7780_v22 = vmul.f32 %v16457_v38, %v7779_v63  ;;  %v6900_v8 = vpop.f32.mrf.mxu3  ;;  %8758 = vmatpush.bf16.msrb.mxu0 %v11233_v37 }
 0xfc1   : > { %12005 = vrcp.f32 %v16524_v53  ;;  %v7263_v11 = vmul.f32 1.442695, %v10744_v7  ;;  %v7740_v28 = vsel %vm16551_vm8, %v16398_v14, %v7736_v1  ;;  %v7766_v23 = vadd.f32 %v16436_v52, %v7765_v54  ;;  %v11241_v14 = vld [vmem:[%s12527_s5 + $0x88] sm:$0xff]  ;;  %8709 = vmatpush.bf16.msra.mxu3 %v11225_v5  ;;  %vm16586_vm13 = vmor %vm7767_vm7, %vm7768_vm9 }
 0xfc2   : > { %v7750_v55 = vmul.f32 %v16466_v41, %v7749_v48  ;;  %12007 = vpow2.f32 %v7261_v61  ;;  %vm7782_vm11 = vweird.f32 %v16390_v49  ;;  %vm16566_vm12 = vcmp.eq.f32.partialorder %v7786_v46, 8.507059e+37  ;;  %v11249_v54 = vld [vmem:[%s12527_s5 + $0xc8] sm:$0xff]  ;;  %8807 = vmatpush.bf16.msrb.mxu1 %v11241_v14 }
 0xfc3   : > { %v12002_v63 = vpop.eup %12001  ;;  %v7793_v17 = vmul.f32 %v16536_v10, %v16461_v51  ;;  %12009 = vrcp.f32 %v16532_v35  ;;  %v16576_v48 = vmul.f32 %v7700_v6, %v16067_v43  ;;  %v7789_v1 = vor.u32 1.1754944e-38, %v7788_v60  ;;  %8856 = vmatpush.bf16.msra.mxu2 %v11249_v54  ;;  %v11224_v6 = vld [vmem:[%s12527_s5] sm:$0xff]  ;;  %v18814_v54 = vld [vmem:[#allocation78_spill] sm:$0xff] }
 0xfc4   : > { %v12004_v56 = vpop.eup %12003  ;;  %v7756_v31 = vand.u32 2147483647, %v16392_v50  ;;  %12011 = vpow2.f32 %v7263_v11  ;;  %v7745_v46 = vsel %vm16512_vm6, %v16480_v20, %v7740_v28  ;;  %v7781_v61 = vadd.f32 %v16457_v38, %v7780_v22  ;;  %v11232_v60 = vld [vmem:[%s12527_s5 + $0x40] sm:$0xff] }
 0xfc5   : > { %vm7783_vm14 = vweird.f32 %v16457_v38  ;;  %v16593_v7 = vadd.f32 %v6900_v8, %v15381_v34  ;;  %v7770_v20 = vsel %vm16586_vm13, %v16436_v52, %v7766_v23  ;;  %v7751_v27 = vadd.f32 %v16466_v41, %v7750_v55  ;;  %v11248_v52 = vld [vmem:[%s12527_s5 + $0xc0] sm:$0xff]  ;;  %8710 = vmatpush.bf16.msra.mxu3 %v11224_v6  ;;  %8759 = vmatpush.bf16.msrb.mxu0 %v11232_v60  ;;  %v18809_v6 = vld [vmem:[#allocation35_spill] sm:$0xff] }
 0xfc6   : > { %vm7753_vm15 = vweird.f32 %v16466_v41  ;;  %v16600_v36 = vadd.f32 1.0, %v12002_v63  ;;  %vm7752_vm0 = vweird.f32 %v16392_v50  ;;  %v7758_v11 = vand.u32 2147483648, %v16392_v50  ;;  %vm16619_vm1 = vmor %vm7782_vm11, %vm7783_vm14  ;;  %8808 = vmatpush.bf16.msrb.mxu1 %v11240_v12 }
 0xfc7   : > { %18797 = vst [vmem:[#allocation67_spill] sm:$0xff] %v16593_v7  ;;  %v16605_v22 = vpop.eup %12005  ;;  %v7794_v28 = vsub.f32 1.0, %v7793_v17  ;;  %v16609_v8 = vadd.f32 1.0, %v12004_v56  ;;  %v16613_v55 = vmul.f32 %v7745_v46, %v16130_v0  ;;  %vm16623_vm2 = vcmp.eq.f32.partialorder %v7756_v31, 8.507059e+37  ;;  %vm16642_vm3 = vmor %vm7752_vm0, %vm7753_vm15  ;;  %8857 = vmatpush.bf16.msra.mxu2 %v11248_v52  ;;  %v18811_v52 = vld [vmem:[#allocation48_spill] sm:$0xff] }
 0xfc8   : > { %v12008_v23 = vpop.eup %12007  ;;  %v10742_v63 = vmul.f32 -1.702, %v16593_v7  ;;  %v7775_v49 = vsel %vm16540_vm10, %v16544_v26, %v7770_v20  ;;  %v7785_v14 = vsel %vm16619_vm1, %v16457_v38, %v7781_v61  ;;  %v7801_v56 = vand.u32 2147483647, %v16461_v51 }
 0xfc9   : > { %v16630_v17 = vpop.eup %12009  ;;  %v16648_v31 = vadd.f32 %v7047_v19, %v15391_v29  ;;  %v7755_v38 = vsel %vm16642_vm3, %v16466_v41, %v7751_v27  ;;  %v7803_v26 = vand.u32 2147483648, %v16461_v51  ;;  %v7823_v50 = vmul.f32 %v16605_v22, %v16524_v53  ;;  %v18806_v19 = vld [vmem:[#allocation71_spill] sm:$0xff]  ;;  %v18807_v41 = vld [vmem:[#allocation96_spill] sm:$0xff] }
 0xfca   : > { %v12012_v59 = vpop.eup %12011  ;;  %12013 = vrcp.f32 %v16600_v36  ;;  %v7759_v46 = vor.u32 1.1754944e-38, %v7758_v11  ;;  %v7795_v43 = vmul.f32 %v16536_v10, %v7794_v28  ;;  %v16659_v61 = vadd.f32 1.0, %v12008_v23  ;;  %v18810_v28 = vld [vmem:[#allocation57_spill] sm:$0xff]  ;;  %v18813_v23 = vld [vmem:[#allocation87_spill] sm:$0xff] }
 0xfcb   : > { %18804 = vst [vmem:[#allocation39_spill] sm:$0xff] %v16648_v31  ;;  %12015 = vrcp.f32 %v16609_v8  ;;  %v18805_v20 = vpack.c.bf16 %v15767_v47, %v15668_v45  ;;  %v18808_v27 = vpack.c.bf16 %v18806_v19, %v18807_v41  ;;  %v16668_v60 = vmul.f32 %v7775_v49, %v18809_v6 }
 0xfcc   : > { %v7790_v12 = vsel %vm16566_vm12, %v7789_v1, %v7785_v14  ;;  %v7259_v11 = vmul.f32 1.442695, %v10742_v63  ;;  %v18812_v5 = vpack.c.bf16 %v18810_v28, %v18811_v52  ;;  %v18815_v0 = vpack.c.bf16 %v18813_v23, %v18814_v54  ;;  %v6902_v28 = vpop.f32.mrf.mxu3 }
 0xfcd   : > { %8711 = vmatmul.bf16.vlgmr.msra.gmra.mxu3 %v18805_v20  ;;  %8760 = vmatmul.bf16.vlgmr.msrb.gmra.mxu0 %v18808_v27  ;;  %v7760_v47 = vsel %vm16623_vm2, %v7759_v46, %v7755_v38  ;;  %v7838_v49 = vmul.f32 %v16630_v17, %v16532_v35  ;;  %v16684_v4 = vadd.f32 1.0, %v12012_v59  ;;  %v10745_v1 = vmul.f32 -1.702, %v16648_v31  ;;  %v18818_v20 = vld [vmem:[#allocation81_spill] sm:$0xff]  ;;  %v18819_v38 = vld [vmem:[#allocation88_spill] sm:$0xff] }
 0xfce   : > { %8809 = vmatmul.bf16.vlgmr.msrb.gmra.mxu1 %v18812_v5  ;;  %8858 = vmatmul.bf16.vlgmr.msra.gmra.mxu2 %v18815_v0  ;;  %vm7797_vm4 = vweird.f32 %v16461_v51  ;;  %vm16688_vm5 = vcmp.eq.f32.partialorder %v7801_v56, 8.507059e+37  ;;  %v7804_v0 = vor.u32 1.1754944e-38, %v7803_v26  ;;  %v7824_v14 = vsub.f32 1.0, %v7823_v50  ;;  %v6951_v26 = vpop.f32.mrf.mxu0  ;;  %v7000_v50 = vpop.f32.mrf.mxu1 }
 0xfcf   : > { %v16693_v19 = vmul.f32 %v7790_v12, %v18818_v20  ;;  %v7796_v37 = vadd.f32 %v16536_v10, %v7795_v43  ;;  %vm7798_vm6 = vweird.f32 %v16536_v10  ;;  %12017 = vrcp.f32 %v16659_v61  ;;  %v7049_v20 = vpop.f32.mrf.mxu2 }
 0xfd0   : > { %v16698_v59 = vpop.eup %12013  ;;  %v16701_v46 = vmul.f32 %v7760_v47, %v18819_v38  ;;  %v7833_v56 = vand.u32 2147483648, %v16524_v53  ;;  %12019 = vpow2.f32 %v7259_v11  ;;  %v7265_v41 = vmul.f32 1.442695, %v10745_v1  ;;  %vm16713_vm7 = vmor %vm7797_vm4, %vm7798_vm6 }
 0xfd1   : > { %v16704_v27 = vpop.eup %12015  ;;  %v7831_v6 = vand.u32 2147483647, %v16524_v53  ;;  %v7839_v43 = vsub.f32 1.0, %v7838_v49  ;;  %v7848_v12 = vand.u32 2147483648, %v16532_v35  ;;  %12021 = vrcp.f32 %v16684_v4 }
 0xfd2   : > { %v7825_v11 = vmul.f32 %v16605_v22, %v7824_v14  ;;  %vm7827_vm10 = vweird.f32 %v16524_v53  ;;  %v7846_v5 = vand.u32 2147483647, %v16532_v35  ;;  %12023 = vpow2.f32 %v7265_v41 }
 0xfd3   : > { %v7800_v23 = vsel %vm16713_vm7, %v16536_v10, %v7796_v37  ;;  %v7808_v54 = vmul.f32 %v16698_v59, %v16600_v36  ;;  %v16726_v51 = vadd.f32 %v6951_v26, %v15370_v30  ;;  %v16729_v47 = vadd.f32 %v7000_v50, %v15376_v57 }
 0xfd4   : > { %v7834_v49 = vor.u32 1.1754944e-38, %v7833_v56  ;;  %vm7842_vm8 = vweird.f32 %v16532_v35  ;;  %v7853_v1 = vmul.f32 %v16704_v27, %v16609_v8  ;;  %v16735_v14 = vadd.f32 %v6902_v28, %v15381_v34 }
 0xfd5   : > { %18822 = vst [vmem:[#allocation55_spill] sm:$0xff] %v16726_v51  ;;  %v16737_v10 = vpop.eup %12017  ;;  %vm16739_vm9 = vcmp.eq.f32.partialorder %v7831_v6, 8.507059e+37  ;;  %v7840_v38 = vmul.f32 %v16630_v17, %v7839_v43  ;;  %v7849_v41 = vor.u32 1.1754944e-38, %v7848_v12  ;;  %v10747_v56 = vmul.f32 -1.702, %v16726_v51  ;;  %v18834_v51 = vld [vmem:[#allocation54_spill] sm:$0xff] }
 0xfd6   : > { %18823 = vst [vmem:[#allocation43_spill] sm:$0xff] %v16729_v47  ;;  %v10748_v26 = vmul.f32 -1.702, %v16729_v47  ;;  %v12020_v50 = vpop.eup %12019  ;;  %v7805_v52 = vsel %vm16688_vm5, %v7804_v0, %v7800_v23  ;;  %v7826_v28 = vadd.f32 %v16605_v22, %v7825_v11  ;;  %vm7828_vm11 = vweird.f32 %v16605_v22 }
 0xfd7   : > { %18824 = vst [vmem:[#allocation34_spill] sm:$0xff] %v16735_v14  ;;  %v10746_v6 = vmul.f32 -1.702, %v16735_v14  ;;  %v16751_v45 = vpop.eup %12021  ;;  %vm16753_vm12 = vcmp.eq.f32.partialorder %v7846_v5, 8.507059e+37  ;;  %v7809_v43 = vsub.f32 1.0, %v7808_v54  ;;  %v16757_v12 = vadd.f32 1.0, %v12020_v50  ;;  %vm16777_vm15 = vmor %vm7827_vm10, %vm7828_vm11 }
 0xfd8   : > { %v7269_v2 = vmul.f32 1.442695, %v10747_v56  ;;  %v16760_v47 = vadd.f32 %v7049_v20, %v15391_v29  ;;  %v12024_v63 = vpop.eup %12023  ;;  %v7816_v0 = vand.u32 2147483647, %v16600_v36  ;;  %v7818_v11 = vand.u32 2147483648, %v16600_v36  ;;  %v18833_v14 = vld [vmem:[#allocation85_spill] sm:$0xff] }
 0xfd9   : > { %v7854_v23 = vsub.f32 1.0, %v7853_v1  ;;  %v7883_v7 = vmul.f32 %v16737_v10, %v16659_v61  ;;  %v7841_v5 = vadd.f32 %v16630_v17, %v7840_v38  ;;  %vm7843_vm13 = vweird.f32 %v16630_v17 }
 0xfda   : > { %vm7812_vm14 = vweird.f32 %v16600_v36  ;;  %12025 = vrcp.f32 %v16757_v12  ;;  %v7271_v54 = vmul.f32 1.442695, %v10748_v26  ;;  %v16771_v20 = vmul.f32 %v7805_v52, %v16279_v24  ;;  %vm16800_vm0 = vmor %vm7842_vm8, %vm7843_vm13 }
 0xfdb   : > { %v7898_v38 = vmul.f32 %v16751_v45, %v16684_v4  ;;  %v16783_v56 = vadd.f32 1.0, %v12024_v63  ;;  %v7267_v50 = vmul.f32 1.442695, %v10746_v6  ;;  %v7830_v26 = vsel %vm16777_vm15, %v16605_v22, %v7826_v28 }
 0xfdc   : > { %18829 = vst [vmem:[#allocation38_spill] sm:$0xff] %v16771_v20  ;;  %v7810_v24 = vmul.f32 %v16698_v59, %v7809_v43  ;;  %12027 = vpow2.f32 %v7269_v2  ;;  %v10749_v52 = vmul.f32 -1.702, %v16760_v47  ;;  %v18832_v53 = vpack.c.bf16 %v16188_v21, %v15989_v40 }
 0xfdd   : > { %v18835_v20 = vpack.c.bf16 %v18833_v14, %v18834_v51  ;;  %v7855_v2 = vmul.f32 %v16704_v27, %v7854_v23  ;;  %v7861_v22 = vand.u32 2147483647, %v16609_v8  ;;  %v7884_v28 = vsub.f32 1.0, %v7883_v7 }
 0xfde   : > { %8716 = vmatmul.bf16.gmra.mxu3 %v18832_v53  ;;  %12029 = vrcp.f32 %v16783_v56  ;;  %v18838_v40 = vpack.c.bf16 %v16120_v16, %v15962_v33  ;;  %v18839_v21 = vpack.c.bf16 %v16207_v42, %v16070_v32  ;;  %v7845_v35 = vsel %vm16800_vm0, %v16630_v17, %v7841_v5 }
 0xfdf   : > { %8765 = vmatmul.bf16.gmra.mxu0 %v18835_v20  ;;  %vm16816_vm1 = vcmp.eq.f32.partialorder %v7816_v0, 8.507059e+37  ;;  %v7863_v7 = vand.u32 2147483648, %v16609_v8  ;;  %12031 = vpow2.f32 %v7271_v54  ;;  %v7273_v14 = vmul.f32 1.442695, %v10749_v52 }
 0xfe0   : > { %8814 = vmatmul.bf16.gmra.mxu1 %v18838_v40  ;;  %8863 = vmatmul.bf16.gmra.mxu2 %v18839_v21  ;;  %v7835_v33 = vsel %vm16739_vm9, %v7834_v49, %v7830_v26  ;;  %v7819_v16 = vor.u32 1.1754944e-38, %v7818_v11  ;;  %v7899_v43 = vsub.f32 1.0, %v7898_v38  ;;  %12033 = vpow2.f32 %v7267_v50  ;;  %v16823_v32 = vpop.eup %12025 }
 0xfe1   : > { %v7811_v42 = vadd.f32 %v16698_v59, %v7810_v24  ;;  %vm7813_vm2 = vweird.f32 %v16698_v59  ;;  %v7891_v17 = vand.u32 2147483647, %v16659_v61  ;;  %12035 = vpow2.f32 %v7273_v14 }
 0xfe2   : > { %v7850_v63 = vsel %vm16753_vm12, %v7849_v41, %v7845_v35  ;;  %v7856_v0 = vadd.f32 %v16704_v27, %v7855_v2  ;;  %vm7858_vm3 = vweird.f32 %v16704_v27  ;;  %v7885_v49 = vmul.f32 %v16737_v10, %v7884_v28  ;;  %v12028_v37 = vpop.eup %12027  ;;  %vm16845_vm6 = vmor %vm7812_vm14, %vm7813_vm2 }
 0xfe3   : > { %v16834_v11 = vmul.f32 %v7835_v33, %v16384_v44  ;;  %vm7857_vm4 = vweird.f32 %v16609_v8  ;;  %vm16837_vm5 = vcmp.eq.f32.partialorder %v7861_v22, 8.507059e+37  ;;  %v7864_v5 = vor.u32 1.1754944e-38, %v7863_v7 }
 0xfe4   : > { %v16841_v54 = vpop.eup %12029  ;;  %vm7887_vm7 = vweird.f32 %v16659_v61  ;;  %v7900_v44 = vmul.f32 %v16751_v45, %v7899_v43  ;;  %v7868_v8 = vmul.f32 %v16823_v32, %v16757_v12  ;;  %v16853_v41 = vadd.f32 1.0, %v12028_v37  ;;  %vm16863_vm10 = vmor %vm7857_vm4, %vm7858_vm3 }
 0xfe5   : > { %v12032_v20 = vpop.eup %12031  ;;  %v16856_v1 = vmul.f32 %v7850_v63, %v16396_v39  ;;  %v7815_v36 = vsel %vm16845_vm6, %v16698_v59, %v7811_v42  ;;  %vm16867_vm8 = vcmp.eq.f32.partialorder %v7891_v17, 8.507059e+37  ;;  %v7893_v26 = vand.u32 2147483648, %v16659_v61 }
 0xfe6   : > { %v12034_v24 = vpop.eup %12033  ;;  %v7860_v39 = vsel %vm16863_vm10, %v16704_v27, %v7856_v0  ;;  %v7886_v52 = vadd.f32 %v16737_v10, %v7885_v49  ;;  %vm7888_vm9 = vweird.f32 %v16737_v10  ;;  %12037 = vrcp.f32 %v16853_v41 }
 0xfe7   : > { %v12036_v59 = vpop.eup %12035  ;;  %v7906_v53 = vand.u32 2147483647, %v16684_v4  ;;  %v7908_v6 = vand.u32 2147483648, %v16684_v4  ;;  %v16880_v2 = vadd.f32 1.0, %v12032_v20  ;;  %v16882_v22 = vadd.f32 1.0, %v12034_v24  ;;  %vm16892_vm12 = vmor %vm7887_vm7, %vm7888_vm9 }
 0xfe8   : > { %v7820_v28 = vsel %vm16816_vm1, %v7819_v16, %v7815_v36  ;;  %v7901_v27 = vadd.f32 %v16751_v45, %v7900_v44  ;;  %vm7903_vm11 = vweird.f32 %v16751_v45  ;;  %v7869_v40 = vsub.f32 1.0, %v7868_v8 }
 0xfe9   : > { %v7865_v21 = vsel %vm16837_vm5, %v7864_v5, %v7860_v39  ;;  %vm7902_vm13 = vweird.f32 %v16684_v4  ;;  %v7913_v51 = vmul.f32 %v16841_v54, %v16783_v56  ;;  %12039 = vrcp.f32 %v16880_v2  ;;  %v6954_v44 = vpop.f32.mrf.mxu0 }
 0xfea   : > { %v7890_v7 = vsel %vm16892_vm12, %v16737_v10, %v7886_v52  ;;  %v7878_v14 = vand.u32 2147483648, %v16757_v12  ;;  %12041 = vrcp.f32 %v16882_v22  ;;  %v16905_v61 = vadd.f32 1.0, %v12036_v59  ;;  %vm16910_vm14 = vmor %vm7902_vm13, %vm7903_vm11 }
 0xfeb   : > { %v16908_v33 = vmul.f32 %v7820_v28, %v16434_v18  ;;  %v7894_v16 = vor.u32 1.1754944e-38, %v7893_v26  ;;  %vm16914_vm15 = vcmp.eq.f32.partialorder %v7906_v53, 8.507059e+37  ;;  %v7909_v42 = vor.u32 1.1754944e-38, %v7908_v6 }
 0xfec   : > { %v16918_v10 = vpop.eup %12037  ;;  %v16921_v17 = vmul.f32 %v7865_v21, %v16464_v58  ;;  %v7905_v18 = vsel %vm16910_vm14, %v16751_v45, %v7901_v27  ;;  %v7870_v63 = vmul.f32 %v16823_v32, %v7869_v40  ;;  %vm7872_vm0 = vweird.f32 %v16757_v12 }
 0xfed   : > { %v16930_v0 = vsel %vm16867_vm8, %v7894_v16, %v7890_v7  ;;  %v7876_v49 = vand.u32 2147483647, %v16757_v12  ;;  %v7914_v37 = vsub.f32 1.0, %v7913_v51  ;;  %v7923_v23 = vand.u32 2147483648, %v16783_v56 }
 0xfee   : > { %v18856_v58 = vpack.c.bf16 %v16576_v48, %v16413_v25  ;;  %v18857_v45 = vpack.c.bf16 %v16445_v3, %v16347_v13  ;;  %v16940_v5 = vor.u32 1.1754944e-38, %v7878_v14  ;;  %v7921_v31 = vand.u32 2147483647, %v16783_v56 }
 0xfef   : > { %12043 = vrcp.f32 %v16905_v61  ;;  %v18858_v8 = vpack.c.bf16 %v16469_v62, %v16401_v15  ;;  %v18859_v20 = vpack.c.bf16 %v16613_v55, %v16439_v9  ;;  %v8424_v25 = vpack.c.bf16 %v16834_v11, %v16668_v60  ;;  %v16952_v13 = vpop.eup %12039  ;;  %v7003_v15 = vpop.f32.mrf.mxu1 }
 0xff0   : > { %8721 = vmatmul.bf16.gmra.mxu3 %v18856_v58  ;;  %8770 = vmatmul.bf16.gmra.mxu0 %v18857_v45  ;;  %v16956_v3 = vsel %vm16914_vm15, %v7909_v42, %v7905_v18  ;;  %v7943_v48 = vmul.f32 %v16918_v10, %v16853_v41  ;;  %v7953_v36 = vand.u32 2147483648, %v16853_v41  ;;  %v8425_v62 = vpack.c.bf16 %v16856_v1, %v16693_v19  ;;  %v16963_v9 = vpop.eup %12041  ;;  %v6905_v43 = vpop.f32.mrf.mxu3 }
 0xff1   : > { %8819 = vmatmul.bf16.gmra.mxu1 %v18858_v8  ;;  %8868 = vmatmul.bf16.gmra.mxu2 %v18859_v20  ;;  %v16966_v55 = vadd.f32 %v16823_v32, %v7870_v63  ;;  %vm7873_vm1 = vweird.f32 %v16823_v32  ;;  %v16970_v38 = vadd.f32 %v6954_v44, %v15370_v30  ;;  %v16973_v50 = vadd.f32 %v7003_v15, %v15376_v57  ;;  %v7052_v63 = vpop.f32.mrf.mxu2  ;;  %v6956_v58 = vpop.f32.mrf.mxu0 }
 0xff2   : > { %v7915_v26 = vmul.f32 %v16841_v54, %v7914_v37  ;;  %v16976_v24 = vor.u32 1.1754944e-38, %v7923_v23  ;;  %v7958_v39 = vmul.f32 %v16952_v13, %v16880_v2  ;;  %v7928_v52 = vmul.f32 %v16963_v9, %v16882_v22  ;;  %vm16988_vm3 = vmor %vm7872_vm0, %vm7873_vm1 }
 0xff3   : > { %vm7918_vm2 = vweird.f32 %v16841_v54  ;;  %v7951_v59 = vand.u32 2147483647, %v16853_v41  ;;  %v10751_v53 = vmul.f32 -1.702, %v16970_v38  ;;  %v10752_v6 = vmul.f32 -1.702, %v16973_v50 }
 0xff4   : > { %v7944_v27 = vsub.f32 1.0, %v7943_v48  ;;  %v16992_v40 = vor.u32 1.1754944e-38, %v7953_v36  ;;  %v7966_v21 = vand.u32 2147483647, %v16880_v2  ;;  %v8423_v35 = vpack.c.bf16 %v16908_v33, %v16701_v46 }
 0xff5   : > { %v16997_v51 = vpop.eup %12043  ;;  %v7875_v7 = vsel %vm16988_vm3, %v16823_v32, %v16966_v55  ;;  %vm7917_vm4 = vweird.f32 %v16783_v56  ;;  %v7929_v14 = vsub.f32 1.0, %v7928_v52  ;;  %v7277_v16 = vmul.f32 1.442695, %v10751_v53  ;;  %v18877_v55 = vld [vmem:[#allocation55_spill] sm:$0xff] }
 0xff6   : > { %v7279_v4 = vmul.f32 1.442695, %v10752_v6  ;;  %v17005_v42 = vadd.f32 %v16841_v54, %v7915_v26  ;;  %vm7947_vm5 = vweird.f32 %v16853_v41  ;;  %v7959_v18 = vsub.f32 1.0, %v7958_v39  ;;  %vm17057_vm14 = vmor %vm7917_vm4, %vm7918_vm2 }
 0xff7   : > { %v7968_v46 = vand.u32 2147483648, %v16880_v2  ;;  %v7973_v33 = vmul.f32 %v16997_v51, %v16905_v61  ;;  %vm7932_vm6 = vweird.f32 %v16882_v22  ;;  %v7936_v37 = vand.u32 2147483647, %v16882_v22  ;;  %v7005_v20 = vpop.f32.mrf.mxu1 }
 0xff8   : > { %12045 = vpow2.f32 %v7277_v16  ;;  %v17014_v23 = vadd.f32 %v6905_v43, %v15381_v34  ;;  %v7945_v45 = vmul.f32 %v16918_v10, %v7944_v27  ;;  %vm7962_vm7 = vweird.f32 %v16880_v2 }
 0xff9   : > { %v7938_v44 = vand.u32 2147483648, %v16882_v22  ;;  %v7974_v8 = vsub.f32 1.0, %v7973_v33  ;;  %12047 = vpow2.f32 %v7279_v4  ;;  %v7930_v48 = vmul.f32 %v16963_v9, %v7929_v14 }
 0xffa   : > { %v10750_v36 = vmul.f32 -1.702, %v17014_v23  ;;  %v17022_v15 = vadd.f32 %v7052_v63, %v15391_v29  ;;  %v17025_v26 = vadd.f32 %v6956_v58, %v15370_v30  ;;  %vm7948_vm10 = vweird.f32 %v16918_v10 }
 0xffb   : > { %v7960_v39 = vmul.f32 %v16952_v13, %v7959_v18  ;;  %v7975_v52 = vmul.f32 %v16997_v51, %v7974_v8  ;;  %v17031_v53 = vadd.f32 %v7005_v20, %v15376_v57  ;;  %vm17033_vm8 = vcmp.eq.f32.partialorder %v7951_v59, 8.507059e+37  ;;  %v18866_v18 = vld [vmem:[#allocation38_spill] sm:$0xff]  ;;  %vm17072_vm15 = vmor %vm7947_vm5, %vm7948_vm10 }
 0xffc   : > { %vm7963_vm9 = vweird.f32 %v16952_v13  ;;  %vm7933_vm11 = vweird.f32 %v16963_v9  ;;  %v7275_v27 = vmul.f32 1.442695, %v10750_v36  ;;  %v10753_v14 = vmul.f32 -1.702, %v17022_v15 }
 0xffd   : > { %vm17042_vm12 = vcmp.eq.f32.partialorder %v7876_v49, 8.507059e+37  ;;  %v7946_v4 = vadd.f32 %v16918_v10, %v7945_v45  ;;  %v10755_v59 = vmul.f32 -1.702, %v17025_v26  ;;  %v10756_v43 = vmul.f32 -1.702, %v17031_v53  ;;  %v6907_v49 = vpop.f32.mrf.mxu3  ;;  %vm17088_vm0 = vmor %vm7932_vm6, %vm7933_vm11 }
 0xffe   : > { %v8426_v33 = vpack.c.bf16 %v16921_v17, %v18866_v18  ;;  %v12046_v63 = vpop.eup %12045  ;;  %v7931_v58 = vadd.f32 %v16963_v9, %v7930_v48  ;;  %vm7978_vm13 = vweird.f32 %v16997_v51  ;;  %12049 = vpow2.f32 %v7275_v27  ;;  %vm17102_vm2 = vmor %vm7962_vm7, %vm7963_vm9 }
 0xfff   : > { %v7281_v12 = vmul.f32 1.442695, %v10753_v14  ;;  %v12048_v8 = vpop.eup %12047  ;;  %v7961_v20 = vadd.f32 %v16952_v13, %v7960_v39  ;;  %v7976_v17 = vadd.f32 %v16997_v51, %v7975_v52  ;;  %v17063_v36 = vadd.f32 1.0, %v12046_v63  ;;  %v18879_v63 = vld [vmem:[#allocation40_spill] sm:$0xff] }
0x1000   : > { %v7285_v48 = vmul.f32 1.442695, %v10755_v59  ;;  %8726 = vmatmul.bf16.gmra.mxu3 %v8423_v35  ;;  %8775 = vmatmul.bf16.gmra.mxu0 %v8424_v25  ;;  %v17076_v14 = vadd.f32 1.0, %v12048_v8  ;;  %v7287_v39 = vmul.f32 1.442695, %v10756_v43  ;;  %v17079_v52 = vadd.f32 %v6907_v49, %v15381_v34  ;;  %v18881_v8 = vld [vmem:[#allocation43_spill] sm:$0xff] }
0x1001   : > { %12051 = vpow2.f32 %v7281_v12  ;;  %8824 = vmatmul.bf16.gmra.mxu1 %v8425_v62  ;;  %8873 = vmatmul.bf16.gmra.mxu2 %v8426_v33  ;;  %v7969_v60 = vor.u32 1.1754944e-38, %v7968_v46  ;;  %vm7977_vm1 = vweird.f32 %v16905_v61  ;;  %v7983_v41 = vand.u32 2147483648, %v16905_v61  ;;  %v18880_v12 = vld [vmem:[#allocation67_spill] sm:$0xff] }
0x1002   : > { %12053 = vrcp.f32 %v17063_v36  ;;  %v7950_v19 = vsel %vm17072_vm15, %v16918_v10, %v7946_v4  ;;  %v7935_v25 = vsel %vm17088_vm0, %v16963_v9, %v7931_v58  ;;  %v7981_v62 = vand.u32 2147483647, %v16905_v61  ;;  %vm17117_vm4 = vmor %vm7977_vm1, %vm7978_vm13 }
0x1003   : > { %12055 = vrcp.f32 %v17076_v14  ;;  %v7920_v10 = vsel %vm17057_vm14, %v16841_v54, %v17005_v42  ;;  %v7939_v35 = vor.u32 1.1754944e-38, %v7938_v44  ;;  %v10754_v4 = vmul.f32 -1.702, %v17079_v52 }
0x1004   : > { %12057 = vpow2.f32 %v7285_v48  ;;  %v12050_v9 = vpop.eup %12049  ;;  %v7965_v61 = vsel %vm17102_vm2, %v16952_v13, %v7961_v20  ;;  %vm7937_vm5 = vcmp.eq.f32.partialorder %v7936_v37, 8.507059e+37  ;;  %v7980_v54 = vsel %vm17117_vm4, %v16997_v51, %v7976_v17  ;;  %v7054_v13 = vpop.f32.mrf.mxu2  ;;  %v18882_v48 = vld [vmem:[#allocation41_spill] sm:$0xff] }
0x1005   : > { %12059 = vpow2.f32 %v7287_v39  ;;  %v7955_v42 = vsel %vm17033_vm8, %v16992_v40, %v7950_v19  ;;  %v7940_v44 = vsel %vm7937_vm5, %v7939_v35, %v7935_v25  ;;  %v7984_v59 = vor.u32 1.1754944e-38, %v7983_v41  ;;  %v6959_v17 = vpop.f32.mrf.mxu0  ;;  %v18883_v39 = vld [vmem:[#allocation39_spill] sm:$0xff] }
0x1006   : > { %v17133_v43 = vadd.f32 1.0, %v12050_v9  ;;  %v7880_v22 = vsel %vm17042_vm12, %v16940_v5, %v7875_v7  ;;  %vm7922_vm6 = vcmp.eq.f32.partialorder %v7921_v31, 8.507059e+37  ;;  %vm7967_vm7 = vcmp.eq.f32.partialorder %v7966_v21, 8.507059e+37  ;;  %v18878_v5 = vld [vmem:[#allocation34_spill] sm:$0xff] }
0x1007   : > { %v12052_v18 = vpop.eup %12051  ;;  %vm7982_vm10 = vcmp.eq.f32.partialorder %v7981_v62, 8.507059e+37  ;;  %v7925_v51 = vsel %vm7922_vm6, %v16976_v24, %v7920_v10  ;;  %v7970_v28 = vsel %vm7967_vm7, %v7969_v60, %v7965_v61  ;;  %v7283_v6 = vmul.f32 1.442695, %v10754_v4 }
0x1008   : > { %v17147_v40 = vpop.eup %12053  ;;  %v7985_v37 = vsel %vm7982_vm10, %v7984_v59, %v7980_v54  ;;  %v8384_v16 = vmul.f32 %v7955_v42, %v18877_v55  ;;  %v8383_v7 = vmul.f32 %v7940_v44, %v18878_v5  ;;  %v17156_v2 = vadd.f32 1.0, %v12052_v18 }
0x1009   : > { %v17150_v32 = vpop.eup %12055  ;;  %v8003_v56 = vmul.f32 %v17147_v40, %v17063_v36  ;;  %12061 = vrcp.f32 %v17133_v43  ;;  %v17162_v24 = vadd.f32 %v7054_v13, %v15391_v29  ;;  %v8380_v58 = vmul.f32 %v16930_v0, %v18879_v63 }
0x100a   : > { %v12058_v31 = vpop.eup %12057  ;;  %v8018_v21 = vmul.f32 %v17150_v32, %v17076_v14  ;;  %v8379_v49 = vmul.f32 %v7880_v22, %v18880_v12  ;;  %v8385_v45 = vmul.f32 %v7970_v28, %v18881_v8  ;;  %v8386_v20 = vmul.f32 %v7985_v37, %v16760_v47 }
0x100b   : > { %v12060_v33 = vpop.eup %12059  ;;  %v8381_v27 = vmul.f32 %v16956_v3, %v18882_v48  ;;  %v8382_v60 = vmul.f32 %v7925_v51, %v18883_v39  ;;  %v17172_v11 = vadd.f32 1.0, %v12058_v31  ;;  %12063 = vpow2.f32 %v7283_v6 }
0x100c   : > { %v8004_v41 = vsub.f32 1.0, %v8003_v56  ;;  %12065 = vrcp.f32 %v17156_v2  ;;  %v8427_v19 = vpack.c.bf16 %v8383_v7, %v8379_v49  ;;  %v8428_v0 = vpack.c.bf16 %v8384_v16, %v8380_v58  ;;  %v7008_v58 = vpop.f32.mrf.mxu1 }
0x100d   : > { %v8019_v1 = vsub.f32 1.0, %v8018_v21  ;;  %v17175_v25 = vadd.f32 1.0, %v12060_v33  ;;  %v10757_v62 = vmul.f32 -1.702, %v17162_v24  ;;  %v17179_v47 = vadd.f32 %v6959_v17, %v15370_v30  ;;  %v6910_v17 = vpop.f32.mrf.mxu3 }
0x100e   : > { %v8429_v10 = vpack.c.bf16 %v8385_v45, %v8381_v27  ;;  %v8430_v3 = vpack.c.bf16 %v8386_v20, %v8382_v60  ;;  %v8011_v46 = vand.u32 2147483647, %v17063_v36  ;;  %12067 = vrcp.f32 %v17172_v11 }
0x100f   : > { %v17181_v35 = vpop.eup %12061  ;;  %v8005_v4 = vmul.f32 %v17147_v40, %v8004_v41  ;;  %vm8007_vm3 = vweird.f32 %v17063_v36  ;;  %v8020_v61 = vmul.f32 %v17150_v32, %v8019_v1  ;;  %12069 = vrcp.f32 %v17175_v25 }
0x1010   : > { %8731 = vmatmul.bf16.gmra.mxu3 %v8427_v19  ;;  %8780 = vmatmul.bf16.gmra.mxu0 %v8428_v0  ;;  %v7289_v54 = vmul.f32 1.442695, %v10757_v62  ;;  %v10759_v42 = vmul.f32 -1.702, %v17179_v47  ;;  %v8013_v59 = vand.u32 2147483648, %v17063_v36  ;;  %v8028_v22 = vand.u32 2147483648, %v17076_v14  ;;  %v7057_v62 = vpop.f32.mrf.mxu2 }
0x1011   : > { %8829 = vmatmul.bf16.gmra.mxu1 %v8429_v10  ;;  %8878 = vmatmul.bf16.gmra.mxu2 %v8430_v3  ;;  %v12064_v9 = vpop.eup %12063  ;;  %v8026_v18 = vand.u32 2147483647, %v17076_v14  ;;  %v7988_v13 = vmul.f32 %v17181_v35, %v17133_v43  ;;  %vm8008_vm8 = vweird.f32 %v17147_v40  ;;  %vm17198_vm9 = vcmp.eq.f32.partialorder %v8011_v46, 8.507059e+37 }
0x1012   : > { %v17190_v44 = vpop.eup %12065  ;;  %vm8022_vm11 = vweird.f32 %v17076_v14  ;;  %v7998_v28 = vand.u32 2147483648, %v17133_v43  ;;  %v8006_v37 = vadd.f32 %v17147_v40, %v8005_v4  ;;  %vm8023_vm12 = vweird.f32 %v17150_v32  ;;  %vm17224_vm14 = vmor %vm8007_vm3, %vm8008_vm8 }
0x1013   : > { %v8043_v6 = vand.u32 2147483648, %v17156_v2  ;;  %v17207_v55 = vadd.f32 1.0, %v12064_v9  ;;  %v8021_v5 = vadd.f32 %v17150_v32, %v8020_v61  ;;  %v8033_v7 = vmul.f32 %v17190_v44, %v17156_v2  ;;  %vm17240_vm15 = vmor %vm8022_vm11, %vm8023_vm12 }
0x1014   : > { %v17209_v16 = vpop.eup %12067  ;;  %12071 = vpow2.f32 %v7289_v54  ;;  %v7293_v56 = vmul.f32 1.442695, %v10759_v42  ;;  %v8014_v31 = vor.u32 1.1754944e-38, %v8013_v59  ;;  %vm17214_vm13 = vcmp.eq.f32.partialorder %v8026_v18, 8.507059e+37 }
0x1015   : > { %v8029_v33 = vor.u32 1.1754944e-38, %v8028_v22  ;;  %v7989_v63 = vsub.f32 1.0, %v7988_v13  ;;  %v17218_v12 = vpop.eup %12069  ;;  %v7996_v8 = vand.u32 2147483647, %v17133_v43  ;;  %v17229_v45 = vor.u32 1.1754944e-38, %v7998_v28  ;;  %v6961_v28 = vpop.f32.mrf.mxu0 }
0x1016   : > { %v8041_v20 = vand.u32 2147483647, %v17156_v2  ;;  %12073 = vrcp.f32 %v17207_v55  ;;  %v8010_v48 = vsel %vm17224_vm14, %v17147_v40, %v8006_v37  ;;  %vm7992_vm0 = vweird.f32 %v17133_v43  ;;  %v6912_v36 = vpop.f32.mrf.mxu3 }
0x1017   : > { %vm7993_vm1 = vweird.f32 %v17181_v35  ;;  %v17246_v27 = vor.u32 1.1754944e-38, %v8043_v6  ;;  %v8063_v39 = vmul.f32 %v17209_v16, %v17172_v11  ;;  %v8025_v40 = vsel %vm17240_vm15, %v17150_v32, %v8021_v5 }
0x1018   : > { %v8034_v60 = vsub.f32 1.0, %v8033_v7  ;;  %12075 = vpow2.f32 %v7293_v56  ;;  %v17254_v14 = vadd.f32 %v7008_v58, %v15376_v57  ;;  %v7990_v41 = vmul.f32 %v17181_v35, %v7989_v63  ;;  %vm17315_vm8 = vmor %vm7992_vm0, %vm7993_vm1 }
0x1019   : > { %v8071_v19 = vand.u32 2147483647, %v17172_v11  ;;  %v8073_v0 = vand.u32 2147483648, %v17172_v11  ;;  %v8078_v1 = vmul.f32 %v17218_v12, %v17175_v25  ;;  %v8015_v3 = vsel %vm17198_vm9, %v8014_v31, %v8010_v48  ;;  %v7010_v48 = vpop.f32.mrf.mxu1 }
0x101a   : > { %v12072_v10 = vpop.eup %12071  ;;  %vm8037_vm2 = vweird.f32 %v17156_v2  ;;  %v8086_v32 = vand.u32 2147483647, %v17175_v25  ;;  %v10760_v46 = vmul.f32 -1.702, %v17254_v14  ;;  %v17267_v4 = vadd.f32 %v6910_v17, %v15381_v34 }
0x101b   : > { %v8030_v9 = vsel %vm17214_vm13, %v8029_v33, %v8025_v40  ;;  %vm17271_vm4 = vcmp.eq.f32.partialorder %v7996_v8, 8.507059e+37  ;;  %vm8038_vm5 = vweird.f32 %v17190_v44  ;;  %v8064_v54 = vsub.f32 1.0, %v8063_v39 }
0x101c   : > { %v17276_v42 = vadd.f32 1.0, %v12072_v10  ;;  %v17278_v59 = vpop.eup %12073  ;;  %v8035_v18 = vmul.f32 %v17190_v44, %v8034_v60  ;;  %v7295_v22 = vmul.f32 1.442695, %v10760_v46  ;;  %v10758_v13 = vmul.f32 -1.702, %v17267_v4  ;;  %vm17335_vm12 = vmor %vm8037_vm2, %vm8038_vm5 }
0x101d   : > { %v17283_v51 = vadd.f32 %v7057_v62, %v15391_v29  ;;  %v17286_v37 = vmul.f32 %v8015_v3, %v16970_v38  ;;  %v7991_v6 = vadd.f32 %v17181_v35, %v7990_v41  ;;  %vm8067_vm6 = vweird.f32 %v17172_v11 }
0x101e   : > { %v8079_v5 = vsub.f32 1.0, %v8078_v1  ;;  %v8048_v7 = vmul.f32 %v17278_v59, %v17207_v55  ;;  %v12076_v56 = vpop.eup %12075  ;;  %v17293_v31 = vmul.f32 %v8030_v9, %v16973_v50  ;;  %vm17295_vm7 = vcmp.eq.f32.partialorder %v8041_v20, 8.507059e+37 }
0x101f   : > { %v17299_v33 = vor.u32 1.1754944e-38, %v8073_v0  ;;  %v8088_v38 = vand.u32 2147483648, %v17175_v25  ;;  %12077 = vrcp.f32 %v17276_v42  ;;  %v8065_v63 = vmul.f32 %v17209_v16, %v8064_v54 }
0x1020   : > { %vm8068_vm10 = vweird.f32 %v17209_v16  ;;  %vm8082_vm3 = vweird.f32 %v17175_v25  ;;  %v17306_v58 = vadd.f32 1.0, %v12076_v56  ;;  %v17309_v50 = vadd.f32 %v6961_v28, %v15370_v30 }
0x1021   : > { %v8036_v8 = vadd.f32 %v17190_v44, %v8035_v18  ;;  %12079 = vpow2.f32 %v7295_v22  ;;  %v7291_v20 = vmul.f32 1.442695, %v10758_v13  ;;  %v10761_v17 = vmul.f32 -1.702, %v17283_v51  ;;  %vm17368_vm14 = vmor %vm8067_vm6, %vm8068_vm10 }
0x1022   : > { %v7995_v39 = vsel %vm17315_vm8, %v17181_v35, %v7991_v6  ;;  %v8080_v40 = vmul.f32 %v17218_v12, %v8079_v5  ;;  %v8049_v60 = vsub.f32 1.0, %v8048_v7  ;;  %12081 = vrcp.f32 %v17306_v58 }
0x1023   : > { %vm17326_vm9 = vcmp.eq.f32.partialorder %v8071_v19, 8.507059e+37  ;;  %vm8083_vm11 = vweird.f32 %v17218_v12  ;;  %v8089_v41 = vor.u32 1.1754944e-38, %v8088_v38  ;;  %12083 = vpow2.f32 %v7291_v20 }
0x1024   : > { %v7297_v0 = vmul.f32 1.442695, %v10761_v17  ;;  %v8066_v1 = vadd.f32 %v17209_v16, %v8065_v63  ;;  %vm17340_vm13 = vcmp.eq.f32.partialorder %v8086_v32, 8.507059e+37  ;;  %v10763_v62 = vmul.f32 -1.702, %v17309_v50  ;;  %vm17390_vm0 = vmor %vm8082_vm3, %vm8083_vm11 }
0x1025   : > { %v17346_v10 = vadd.f32 %v7010_v48, %v15376_v57  ;;  %v17349_v3 = vadd.f32 %v6912_v36, %v15381_v34  ;;  %v17351_v46 = vpop.eup %12077  ;;  %v8000_v2 = vsel %vm17271_vm4, %v17229_v45, %v7995_v39  ;;  %v8040_v32 = vsel %vm17335_vm12, %v17190_v44, %v8036_v8 }
0x1026   : > { %v8056_v9 = vand.u32 2147483647, %v17207_v55  ;;  %12085 = vpow2.f32 %v7297_v0  ;;  %v8081_v54 = vadd.f32 %v17218_v12, %v8080_v40  ;;  %v8050_v18 = vmul.f32 %v17278_v59, %v8049_v60 }
0x1027   : > { %v8093_v22 = vmul.f32 %v17351_v46, %v17276_v42  ;;  %v7301_v13 = vmul.f32 1.442695, %v10763_v62  ;;  %v12080_v28 = vpop.eup %12079  ;;  %vm8052_vm15 = vweird.f32 %v17207_v55  ;;  %v8058_v44 = vand.u32 2147483648, %v17207_v55 }
0x1028   : > { %v10764_v61 = vmul.f32 -1.702, %v17346_v10  ;;  %v10762_v6 = vmul.f32 -1.702, %v17349_v3  ;;  %v17376_v5 = vpop.eup %12081  ;;  %v8045_v7 = vsel %vm17295_vm7, %v17246_v27, %v8040_v32  ;;  %v8070_v11 = vsel %vm17368_vm14, %v17209_v16, %v8066_v1 }
0x1029   : > { %v8094_v56 = vsub.f32 1.0, %v8093_v22  ;;  %v17384_v38 = vadd.f32 1.0, %v12080_v28  ;;  %v12084_v63 = vpop.eup %12083  ;;  %v8123_v21 = vmul.f32 %v17376_v5, %v17306_v58  ;;  %12087 = vpow2.f32 %v7301_v13 }
0x102a   : > { %v7303_v27 = vmul.f32 1.442695, %v10764_v61  ;;  %v7299_v8 = vmul.f32 1.442695, %v10762_v6  ;;  %v8085_v16 = vsel %vm17390_vm0, %v17218_v12, %v8081_v54  ;;  %v8051_v20 = vadd.f32 %v17278_v59, %v8050_v18 }
0x102b   : > { %vm8053_vm1 = vweird.f32 %v17278_v59  ;;  %12089 = vrcp.f32 %v17384_v38  ;;  %v17403_v17 = vmul.f32 %v8000_v2, %v17014_v23  ;;  %v8124_v48 = vsub.f32 1.0, %v8123_v21 }
0x102c   : > { %v12086_v25 = vpop.eup %12085  ;;  %v17405_v36 = vadd.f32 1.0, %v12084_v63  ;;  %12091 = vpow2.f32 %v7303_v27  ;;  %v8075_v39 = vsel %vm17326_vm9, %v17299_v33, %v8070_v11  ;;  %v8095_v12 = vmul.f32 %v17351_v46, %v8094_v56  ;;  %vm17420_vm2 = vmor %vm8052_vm15, %vm8053_vm1  ;;  %v7059_v33 = vpop.f32.mrf.mxu2 }
0x102d   : > { %v17411_v40 = vadd.f32 1.0, %v12086_v25  ;;  %12093 = vpow2.f32 %v7299_v8  ;;  %v17414_v60 = vmul.f32 %v8045_v7, %v17022_v15  ;;  %v8090_v23 = vsel %vm17340_vm13, %v8089_v41, %v8085_v16 }
0x102e   : > { %vm17424_vm4 = vcmp.eq.f32.partialorder %v8056_v9, 8.507059e+37  ;;  %12095 = vrcp.f32 %v17405_v36  ;;  %v8055_v15 = vsel %vm17420_vm2, %v17278_v59, %v8051_v20  ;;  %v8059_v35 = vor.u32 1.1754944e-38, %v8058_v44 }
0x102f   : > { %v8125_v41 = vmul.f32 %v17376_v5, %v8124_v48  ;;  %12097 = vrcp.f32 %v17411_v40  ;;  %v12088_v55 = vpop.eup %12087  ;;  %v17435_v1 = vmul.f32 %v8075_v39, %v17025_v26  ;;  %vm8097_vm5 = vweird.f32 %v17276_v42 }
0x1030   : > { %v8101_v19 = vand.u32 2147483647, %v17276_v42  ;;  %v8103_v62 = vand.u32 2147483648, %v17276_v42  ;;  %v17443_v32 = vmul.f32 %v8090_v23, %v17031_v53  ;;  %v8096_v59 = vadd.f32 %v17351_v46, %v8095_v12 }
0x1031   : > { %v17440_v2 = vpop.eup %12089  ;;  %vm8098_vm6 = vweird.f32 %v17351_v46  ;;  %v17448_v9 = vadd.f32 %v7059_v33, %v15391_v29  ;;  %v8060_v54 = vsel %vm17424_vm4, %v8059_v35, %v8055_v15  ;;  %v8131_v18 = vand.u32 2147483647, %v17306_v58 }
0x1032   : > { %v12092_v26 = vpop.eup %12091  ;;  %v8133_v22 = vand.u32 2147483648, %v17306_v58  ;;  %v8138_v13 = vmul.f32 %v17440_v2, %v17384_v38  ;;  %v8126_v28 = vadd.f32 %v17376_v5, %v8125_v41  ;;  %vm8128_vm7 = vweird.f32 %v17376_v5  ;;  %vm17466_vm10 = vmor %vm8097_vm5, %vm8098_vm6 }
0x1033   : > { %v12094_v53 = vpop.eup %12093  ;;  %v17458_v45 = vadd.f32 1.0, %v12088_v55  ;;  %v17460_v44 = vadd.f32 1.0, %v12092_v26  ;;  %vm17470_vm3 = vcmp.eq.f32.partialorder %v8101_v19, 8.507059e+37  ;;  %v8104_v11 = vor.u32 1.1754944e-38, %v8103_v62 }
0x1034   : > { %v17462_v61 = vpop.eup %12095  ;;  %vm8127_vm8 = vweird.f32 %v17306_v58  ;;  %v8139_v56 = vsub.f32 1.0, %v8138_v13  ;;  %v8100_v49 = vsel %vm17466_vm10, %v17351_v46, %v8096_v59  ;;  %v17481_v42 = vadd.f32 1.0, %v12094_v53 }
0x1035   : > { %v17475_v63 = vpop.eup %12097  ;;  %12099 = vrcp.f32 %v17458_v45  ;;  %v10765_v21 = vmul.f32 -1.702, %v17448_v9  ;;  %v17485_v27 = vmul.f32 %v8060_v54, %v17079_v52  ;;  %vm17489_vm9 = vmor %vm8127_vm8, %vm8128_vm7  ;;  %vm8132_vm11 = vcmp.eq.f32.partialorder %v8131_v18, 8.507059e+37 }
0x1036   : > { %v8134_v8 = vor.u32 1.1754944e-38, %v8133_v22  ;;  %v8148_v16 = vand.u32 2147483648, %v17384_v38  ;;  %v8130_v46 = vsel %vm17489_vm9, %v17376_v5, %v8126_v28  ;;  %v8140_v20 = vmul.f32 %v17440_v2, %v8139_v56 }
0x1037   : > { %v8108_v52 = vmul.f32 %v17462_v61, %v17405_v36  ;;  %12101 = vrcp.f32 %v17460_v44  ;;  %v8105_v25 = vsel %vm17470_vm3, %v8104_v11, %v8100_v49  ;;  %vm8142_vm12 = vweird.f32 %v17384_v38 }
0x1038   : > { %v8118_v48 = vand.u32 2147483648, %v17405_v36  ;;  %v8153_v39 = vmul.f32 %v17475_v63, %v17411_v40  ;;  %v8146_v12 = vand.u32 2147483647, %v17384_v38  ;;  %v8163_v5 = vand.u32 2147483648, %v17411_v40 }
0x1039   : > { %12103 = vrcp.f32 %v17481_v42  ;;  %v7305_v23 = vmul.f32 1.442695, %v10765_v21  ;;  %v8135_v0 = vsel %vm8132_vm11, %v8134_v8, %v8130_v46  ;;  %v17510_v43 = vor.u32 1.1754944e-38, %v8148_v16  ;;  %v6964_v16 = vpop.f32.mrf.mxu0 }
0x103a   : > { %v8116_v33 = vand.u32 2147483647, %v17405_v36  ;;  %v8161_v15 = vand.u32 2147483647, %v17411_v40  ;;  %v8394_v41 = vmul.f32 %v8105_v25, %v17162_v24  ;;  %v17518_v55 = vadd.f32 %v17440_v2, %v8140_v20 }
0x103b   : > { %v17514_v35 = vpop.eup %12099  ;;  %vm8143_vm13 = vweird.f32 %v17440_v2  ;;  %v8109_v19 = vsub.f32 1.0, %v8108_v52  ;;  %vm8112_vm14 = vweird.f32 %v17405_v36  ;;  %v17522_v62 = vor.u32 1.1754944e-38, %v8118_v48 }
0x103c   : > { %v8154_v59 = vsub.f32 1.0, %v8153_v39  ;;  %v8183_v26 = vmul.f32 %v17514_v35, %v17458_v45  ;;  %v8191_v54 = vand.u32 2147483647, %v17458_v45  ;;  %v17530_v24 = vmul.f32 %v8135_v0, %v17179_v47  ;;  %vm17537_vm0 = vmor %vm8142_vm12, %vm8143_vm13  ;;  %v7013_v0 = vpop.f32.mrf.mxu1 }
0x103d   : > { %v17527_v18 = vpop.eup %12101  ;;  %vm8113_vm15 = vweird.f32 %v17462_v61  ;;  %v17533_v22 = vor.u32 1.1754944e-38, %v8163_v5  ;;  %12105 = vpow2.f32 %v7305_v23  ;;  %vm17541_vm1 = vcmp.eq.f32.partialorder %v8146_v12, 8.507059e+37 }
0x103e   : > { %v8184_v28 = vsub.f32 1.0, %v8183_v26  ;;  %vm8187_vm2 = vweird.f32 %v17458_v45  ;;  %v8193_v47 = vand.u32 2147483648, %v17458_v45  ;;  %v8198_v6 = vmul.f32 %v17527_v18, %v17460_v44  ;;  %vm17592_vm9 = vmor %vm8112_vm14, %vm8113_vm15 }
0x103f   : > { %v17549_v7 = vpop.eup %12103  ;;  %v8145_v38 = vsel %vm17537_vm0, %v17440_v2, %v17518_v55  ;;  %v8110_v11 = vmul.f32 %v17462_v61, %v8109_v19  ;;  %vm8202_vm4 = vweird.f32 %v17460_v44  ;;  %v8206_v56 = vand.u32 2147483647, %v17460_v44 }
0x1040   : > { %v8155_v49 = vmul.f32 %v17475_v63, %v8154_v59  ;;  %vm8158_vm5 = vweird.f32 %v17475_v63  ;;  %v8185_v21 = vmul.f32 %v17514_v35, %v8184_v28  ;;  %vm17561_vm6 = vcmp.eq.f32.partialorder %v8191_v54, 8.507059e+37  ;;  %v6915_v28 = vpop.f32.mrf.mxu3 }
0x1041   : > { %v8199_v8 = vsub.f32 1.0, %v8198_v6  ;;  %v8168_v2 = vmul.f32 %v17549_v7, %v17481_v42  ;;  %vm8188_vm7 = vweird.f32 %v17514_v35  ;;  %v8431_v46 = vpack.c.bf16 %v17485_v27, %v17403_v17 }
0x1042   : > { %v8432_v20 = vpack.c.bf16 %v17435_v1, %v17286_v37  ;;  %v8433_v52 = vpack.c.bf16 %v17443_v32, %v17293_v31  ;;  %vm17574_vm10 = vcmp.eq.f32.partialorder %v8116_v33, 8.507059e+37  ;;  %vm8157_vm3 = vweird.f32 %v17411_v40  ;;  %vm17605_vm12 = vmor %vm8187_vm2, %vm8188_vm7 }
0x1043   : > { %v8186_v48 = vadd.f32 %v17514_v35, %v8185_v21  ;;  %v8200_v39 = vmul.f32 %v17527_v18, %v8199_v8  ;;  %v8169_v12 = vsub.f32 1.0, %v8168_v2  ;;  %v8434_v5 = vpack.c.bf16 %v8394_v41, %v17414_v60  ;;  %v12106_v17 = vpop.eup %12105  ;;  %8736 = vmatmul.bf16.gmra.mxu3 %v8431_v46 }
0x1044   : > { %v8111_v27 = vadd.f32 %v17462_v61, %v8110_v11  ;;  %vm8203_vm8 = vweird.f32 %v17527_v18  ;;  %v8178_v37 = vand.u32 2147483648, %v17481_v42  ;;  %8785 = vmatmul.bf16.gmra.mxu0 %v8432_v20  ;;  %v17586_v31 = vadd.f32 %v6964_v16, %v15370_v30  ;;  %8834 = vmatmul.bf16.gmra.mxu1 %v8433_v52  ;;  %v6966_v20 = vpop.f32.mrf.mxu0 }
0x1045   : > { %v8201_v60 = vadd.f32 %v17527_v18, %v8200_v39  ;;  %v8170_v32 = vmul.f32 %v17549_v7, %v8169_v12  ;;  %vm8173_vm11 = vweird.f32 %v17549_v7  ;;  %v17599_v23 = vadd.f32 1.0, %v12106_v17  ;;  %8883 = vmatmul.bf16.gmra.mxu2 %v8434_v5  ;;  %vm17622_vm13 = vmor %vm8202_vm4, %vm8203_vm8 }
0x1046   : > { %v8208_v33 = vand.u32 2147483648, %v17460_v44  ;;  %v8176_v41 = vand.u32 2147483647, %v17481_v42  ;;  %v10767_v55 = vmul.f32 -1.702, %v17586_v31  ;;  %v17613_v19 = vadd.f32 %v7013_v0, %v15376_v57  ;;  %vm17661_vm4 = vmor %vm8157_vm3, %vm8158_vm5 }
0x1047   : > { %v8190_v59 = vsel %vm17605_vm12, %v17514_v35, %v8186_v48  ;;  %v8171_v26 = vadd.f32 %v17549_v7, %v8170_v32  ;;  %vm8172_vm14 = vweird.f32 %v17481_v42  ;;  %12107 = vrcp.f32 %v17599_v23 }
0x1048   : > { %v8150_v54 = vsel %vm17541_vm1, %v17510_v43, %v8145_v38  ;;  %v8115_v35 = vsel %vm17592_vm9, %v17462_v61, %v8111_v27  ;;  %v8156_v44 = vadd.f32 %v17475_v63, %v8155_v49  ;;  %v8194_v13 = vor.u32 1.1754944e-38, %v8193_v47  ;;  %vm8174_vm15 = vmor %vm8172_vm14, %vm8173_vm11 }
0x1049   : > { %v8205_v42 = vsel %vm17622_vm13, %v17527_v18, %v8201_v60  ;;  %v8175_v6 = vsel %vm8174_vm15, %v17549_v7, %v8171_v26  ;;  %v8179_v11 = vor.u32 1.1754944e-38, %v8178_v37  ;;  %v7309_v53 = vmul.f32 1.442695, %v10767_v55  ;;  %v7062_v7 = vpop.f32.mrf.mxu2 }
0x104a   : > { %v8195_v43 = vsel %vm17561_vm6, %v8194_v13, %v8190_v59  ;;  %v8209_v38 = vor.u32 1.1754944e-38, %v8208_v33  ;;  %vm8177_vm0 = vcmp.eq.f32.partialorder %v8176_v41, 8.507059e+37  ;;  %v10768_v61 = vmul.f32 -1.702, %v17613_v19 }
0x104b   : > { %vm17647_vm1 = vcmp.eq.f32.partialorder %v8161_v15, 8.507059e+37  ;;  %vm8207_vm2 = vcmp.eq.f32.partialorder %v8206_v56, 8.507059e+37  ;;  %v8180_v49 = vsel %vm8177_vm0, %v8179_v11, %v8175_v6  ;;  %12109 = vpow2.f32 %v7309_v53 }
0x104c   : > { %v17652_v18 = vadd.f32 %v6915_v28, %v15381_v34  ;;  %v8120_v21 = vsel %vm17574_vm10, %v17522_v62, %v8115_v35  ;;  %v8210_v58 = vsel %vm8207_vm2, %v8209_v38, %v8205_v42  ;;  %v7311_v56 = vmul.f32 1.442695, %v10768_v61  ;;  %v6917_v28 = vpop.f32.mrf.mxu3 }
0x104d   : > { %v17666_v8 = vadd.f32 %v7062_v7, %v15391_v29  ;;  %v12108_v2 = vpop.eup %12107  ;;  %v8397_v16 = vmul.f32 %v8150_v54, %v17254_v14  ;;  %v8160_v62 = vsel %vm17661_vm4, %v17475_v63, %v8156_v44  ;;  %v8400_v46 = vmul.f32 %v8195_v43, %v17309_v50 }
0x104e   : > { %v10766_v40 = vmul.f32 -1.702, %v17652_v18  ;;  %v8399_v52 = vmul.f32 %v8180_v49, %v17349_v3  ;;  %v8213_v25 = vmul.f32 %v12108_v2, %v17599_v23  ;;  %12111 = vpow2.f32 %v7311_v56  ;;  %v7015_v3 = vpop.f32.mrf.mxu1  ;;  %v17718_v49 = vpop.f32.mrf.mxu0 }
0x104f   : > { %v10769_v48 = vmul.f32 -1.702, %v17666_v8  ;;  %v8395_v39 = vmul.f32 %v8120_v21, %v17267_v4  ;;  %v8401_v14 = vmul.f32 %v8210_v58, %v17346_v10  ;;  %v17680_v5 = vadd.f32 %v6966_v20, %v15370_v30 }
0x1050   : > { %v7307_v12 = vmul.f32 1.442695, %v10766_v40  ;;  %v8214_v63 = vsub.f32 1.0, %v8213_v25  ;;  %v8221_v50 = vand.u32 2147483647, %v17599_v23  ;;  %v8223_v17 = vand.u32 2147483648, %v17599_v23 }
0x1051   : > { %v7313_v27 = vmul.f32 1.442695, %v10769_v48  ;;  %v12110_v37 = vpop.eup %12109  ;;  %v8436_v1 = vpack.c.bf16 %v8400_v46, %v17530_v24  ;;  %v10771_v60 = vmul.f32 -1.702, %v17680_v5  ;;  %v17687_v4 = vadd.f32 %v7015_v3, %v15376_v57  ;;  %v7064_v43 = vpop.f32.mrf.mxu2 }
0x1052   : > { %12113 = vpow2.f32 %v7307_v12  ;;  %v8215_v10 = vmul.f32 %v12108_v2, %v8214_v63  ;;  %vm8218_vm5 = vweird.f32 %v12108_v2  ;;  %v8435_v30 = vpack.c.bf16 %v8399_v52, %v8395_v39 }
0x1053   : > { %v17689_v32 = vadd.f32 1.0, %v12110_v37  ;;  %v8437_v0 = vpack.c.bf16 %v8401_v14, %v8397_v16  ;;  %12115 = vpow2.f32 %v7313_v27  ;;  %v7317_v36 = vmul.f32 1.442695, %v10771_v60 }
0x1054   : > { %v10772_v33 = vmul.f32 -1.702, %v17687_v4  ;;  %v12112_v41 = vpop.eup %12111  ;;  %v8165_v24 = vsel %vm17647_vm1, %v17533_v22, %v8160_v62  ;;  %v8216_v55 = vadd.f32 %v12108_v2, %v8215_v10  ;;  %vm8217_vm6 = vweird.f32 %v17599_v23  ;;  %8741 = vmatmul.bf16.gmra.mxu3 %v8435_v30  ;;  %8790 = vmatmul.bf16.gmra.mxu0 %v8436_v1  ;;  %v8712_v48 = vpop.f32.mrf.mxu3 }
0x1055   : > { %12117 = vrcp.f32 %v17689_v32  ;;  %vm8219_vm7 = vmor %vm8217_vm6, %vm8218_vm5  ;;  %v8224_v57 = vor.u32 1.1754944e-38, %v8223_v17  ;;  %8839 = vmatmul.bf16.gmra.mxu1 %v8437_v0  ;;  %v17697_v59 = vadd.f32 1.0, %v12112_v41  ;;  %vm8222_vm10 = vcmp.eq.f32.partialorder %v8221_v50, 8.507059e+37 }
0x1056   : > { %12119 = vpow2.f32 %v7317_v36  ;;  %v7319_v45 = vmul.f32 1.442695, %v10772_v33  ;;  %v8220_v26 = vsel %vm8219_vm7, %v12108_v2, %v8216_v55  ;;  %v8398_v22 = vmul.f32 %v8165_v24, %v17283_v51  ;;  %v17720_v7 = vpop.f32.mrf.mxu1  ;;  %v8763_v3 = vpop.f32.mrf.mxu0 }
0x1057   : > { %v8225_v35 = vsel %vm8222_vm10, %v8224_v57, %v8220_v26  ;;  %12121 = vrcp.f32 %v17697_v59  ;;  %v17712_v51 = vadd.f32 %v6917_v28, %v15381_v34  ;;  %v8251_v2 = vand.u32 2147483647, %v17689_v32 }
0x1058   : > { %v12114_v54 = vpop.eup %12113  ;;  %v8402_v23 = vmul.f32 %v8225_v35, %v17448_v9  ;;  %12123 = vpow2.f32 %v7319_v45  ;;  %v8253_v46 = vand.u32 2147483648, %v17689_v32  ;;  %v8268_v40 = vand.u32 2147483648, %v17697_v59 }
0x1059   : > { %v17702_v44 = vadd.f32 1.0, %v12114_v54  ;;  %v12116_v13 = vpop.eup %12115  ;;  %v10770_v56 = vmul.f32 -1.702, %v17712_v51  ;;  %v8266_v20 = vand.u32 2147483647, %v17697_v59  ;;  %v17739_v39 = vpop.f32.mrf.mxu2  ;;  %vm8247_vm8 = vweird.f32 %v17689_v32 }
0x105a   : > { %v8438_v6 = vpack.c.bf16 %v8402_v23, %v8398_v22  ;;  %v17709_v38 = vadd.f32 1.0, %v12116_v13  ;;  %vm17744_vm9 = vcmp.eq.f32.partialorder %v8251_v2, 8.507059e+37  ;;  %v8254_v60 = vor.u32 1.1754944e-38, %v8253_v46 }
0x105b   : > { %v17704_v42 = vpop.eup %12117  ;;  %12125 = vrcp.f32 %v17702_v44  ;;  %v7315_v12 = vmul.f32 1.442695, %v10770_v56  ;;  %vm8262_vm11 = vweird.f32 %v17697_v59  ;;  %v8269_v10 = vor.u32 1.1754944e-38, %v8268_v40 }
0x105c   : > { %v12120_v11 = vpop.eup %12119  ;;  %v8243_v53 = vmul.f32 %v17704_v42, %v17689_v32  ;;  %8888 = vmatmul.bf16.gmra.mxu2 %v8438_v6  ;;  %vm8248_vm3 = vweird.f32 %v17704_v42  ;;  %v17760_v32 = vld [vmem:[%s1224_s2] ss:$0 sm:$0xff]  ;;  %vm17769_vm14 = vcmp.eq.f32.partialorder %v8266_v20, 8.507059e+37  ;;  %v17782_v45 = vadd.f32 %v7064_v43, %v15391_v29  ;;  %s18973_s2 = smov (!%p10902_p9), %s18972_s28 }
0x105d   : > { %v17714_v9 = vpop.eup %12121  ;;  %v17716_v47 = vadd.f32 1.0, %v12120_v11  ;;  %vm17764_vm12 = vmor %vm8247_vm8, %vm8248_vm3  ;;  %v8713_v28 = vadd.f32 %v17760_v32, %v8712_v48  ;;  %v8714_v11 = vpop.f32.mrf.mxu3  ;;  %vm8232_vm8 = vweird.f32 %v17702_v44 }
0x105e   : > { %v8244_v61 = vsub.f32 1.0, %v8243_v53  ;;  %v8258_v21 = vmul.f32 %v17714_v9, %v17697_v59  ;;  %v12124_v15 = vpop.eup %12123  ;;  %v17751_v37 = vpop.f32.mrf.mxu1  ;;  %vm8263_vm13 = vweird.f32 %v17714_v9  ;;  %v10773_v13 = vmul.f32 -1.702, %v17782_v45 }
0x105f   : > { %12127 = vrcp.f32 %v17716_v47  ;;  %v17727_v34 = vadd.f32 1.0, %v12124_v15  ;;  %v8311_v52 = vand.u32 2147483647, %v17716_v47  ;;  %v8313_v25 = vand.u32 2147483648, %v17716_v47  ;;  %vm17800_vm4 = vmor %vm8262_vm11, %vm8263_vm13 }
0x1060   : > { %v8245_v58 = vmul.f32 %v17704_v42, %v8244_v61  ;;  %12129 = vrcp.f32 %v17709_v38  ;;  %v8259_v16 = vsub.f32 1.0, %v8258_v21  ;;  %vm8307_vm15 = vweird.f32 %v17716_v47 }
0x1061   : > { %v17731_v62 = vpop.eup %12125  ;;  %12131 = vrcp.f32 %v17727_v34  ;;  %vm17774_vm0 = vcmp.eq.f32.partialorder %v8311_v52, 8.507059e+37  ;;  %v8314_v41 = vor.u32 1.1754944e-38, %v8313_v25  ;;  %vm8322_vm2 = vweird.f32 %v17727_v34  ;;  %v8861_v53 = vpop.f32.mrf.mxu2 }
0x1062   : > { %v8246_v14 = vadd.f32 %v17704_v42, %v8245_v58  ;;  %v8260_v17 = vmul.f32 %v17714_v9, %v8259_v16  ;;  %v8228_v27 = vmul.f32 %v17731_v62, %v17702_v44  ;;  %12133 = vpow2.f32 %v7315_v12  ;;  %v8766_v16 = vpop.f32.mrf.mxu0 }
0x1063   : > { %v8326_v6 = vand.u32 2147483647, %v17727_v34  ;;  %v8328_v21 = vand.u32 2147483648, %v17727_v34  ;;  %v7321_v15 = vmul.f32 1.442695, %v10773_v13  ;;  %v8762_v58 = vadd.f32 %v17718_v49, %v8713_v28 }
0x1064   : > { %v8250_v55 = vsel %vm17764_vm12, %v17704_v42, %v8246_v14  ;;  %v8261_v26 = vadd.f32 %v17714_v9, %v8260_v17  ;;  %v8229_v54 = vsub.f32 1.0, %v8228_v27  ;;  %v8715_v59 = vadd.f32 %v17760_v32, %v8714_v11 }
0x1065   : > { %v12128_v63 = vpop.eup %12127  ;;  %v8255_v42 = vsel %vm17744_vm9, %v8254_v60, %v8250_v55  ;;  %12135 = vpow2.f32 %v7321_v15  ;;  %v8811_v49 = vadd.f32 %v17720_v7, %v8762_v58  ;;  %vm8327_vm10 = vcmp.eq.f32.partialorder %v8326_v6, 8.507059e+37 }
0x1066   : > { %v17753_v1 = vpop.eup %12129  ;;  %v8303_v30 = vmul.f32 %v12128_v63, %v17716_v47  ;;  %vm8308_vm1 = vweird.f32 %v12128_v63  ;;  %v8265_v56 = vsel %vm17800_vm4, %v17714_v9, %v8261_v26  ;;  %v8815_v46 = vpop.f32.mrf.mxu1  ;;  %v8230_v20 = vmul.f32 %v17731_v62, %v8229_v54  ;;  %v18948_v54 = vld [vmem:[#allocation86_spill] sm:$0xff] }
0x1067   : > { %v12132_v24 = vpop.eup %12131  ;;  %v17787_v35 = vmul.f32 %v17753_v1, %v17709_v38  ;;  %vm8309_vm5 = vmor %vm8307_vm15, %vm8308_vm1  ;;  %v8764_v47 = vadd.f32 %v8763_v3, %v8715_v59  ;;  %v8270_v14 = vsel %vm17769_vm14, %v8269_v10, %v8265_v56  ;;  %v8860_v50 = vadd.f32 %v17739_v39, %v8811_v49  ;;  %v18947_v3 = vld [vmem:[#allocation84_spill] sm:$0xff] }
0x1068   : > { %v8304_v57 = vsub.f32 1.0, %v8303_v30  ;;  %v8318_v22 = vmul.f32 %v12132_v24, %v17727_v34  ;;  %vm8323_vm6 = vweird.f32 %v12132_v24  ;;  %v12134_v40 = vpop.eup %12133  ;;  %v8404_v7 = vmul.f32 %v8255_v42, %v17586_v31  ;;  %v8717_v30 = vpop.f32.mrf.mxu3 }
0x1069   : > { %v17817_v48 = vadd.f32 1.0, %v12134_v40  ;;  %vm8324_vm7 = vmor %vm8322_vm2, %vm8323_vm6  ;;  %v17829_v60 = vadd.f32 %v8860_v50, %v18947_v3  ;;  %v8813_v10 = vadd.f32 %v17751_v37, %v8764_v47  ;;  %v8864_v0 = vpop.f32.mrf.mxu2  ;;  %v8231_v31 = vadd.f32 %v17731_v62, %v8230_v20 }
0x106a   : > { %v8305_v23 = vmul.f32 %v12128_v63, %v8304_v57  ;;  %v8319_v29 = vsub.f32 1.0, %v8318_v22  ;;  %vm8233_vm3 = vweird.f32 %v17731_v62  ;;  %v8274_v37 = vsub.f32 1.0, %v17787_v35 }
0x106b   : > { %12137 = vrcp.f32 %v17817_v48  ;;  %v12136_v39 = vpop.eup %12135  ;;  %8915 = vst [vmem:[#allocation2 + $0x30] sm:$0xff] %v17829_v60  ;;  %v8862_v33 = vadd.f32 %v8861_v53, %v8813_v10  ;;  %v8236_v26 = vand.u32 2147483647, %v17702_v44  ;;  %vm8234_vm9 = vmor %vm8232_vm8, %vm8233_vm3  ;;  %v8296_v43 = vand.u32 2147483647, %v17817_v48 }
0x106c   : > { %v8306_v61 = vadd.f32 %v12128_v63, %v8305_v23  ;;  %v8320_v2 = vmul.f32 %v12132_v24, %v8319_v29  ;;  %v8235_v35 = vsel %vm8234_vm9, %v17731_v62, %v8231_v31  ;;  %v18949_v62 = vld [vmem:[#allocation37_spill] sm:$0xff]  ;;  %vm8277_vm13 = vweird.f32 %v17709_v38 }
0x106d   : > { %v17845_v22 = vadd.f32 %v8862_v33, %v18948_v54  ;;  %vm8237_vm11 = vcmp.eq.f32.partialorder %v8236_v26, 8.507059e+37  ;;  %vm8278_vm14 = vweird.f32 %v17753_v1  ;;  %vm8292_vm15 = vweird.f32 %v17817_v48 }
0x106e   : > { %v8310_v52 = vsel %vm8309_vm5, %v12128_v63, %v8306_v61  ;;  %v8321_v25 = vadd.f32 %v12132_v24, %v8320_v2  ;;  %v8329_v63 = vor.u32 1.1754944e-38, %v8328_v21  ;;  %v8817_v55 = vpop.f32.mrf.mxu1  ;;  %v8298_v61 = vand.u32 2147483648, %v17817_v48  ;;  %vm17870_vm1 = vmor %vm8277_vm13, %vm8278_vm14 }
0x106f   : > { %v8315_v9 = vsel %vm17774_vm0, %v8314_v41, %v8310_v52  ;;  %v8718_v41 = vadd.f32 %v17760_v32, %v8717_v30  ;;  %8916 = vst [vmem:[#allocation2] sm:$0xff] %v17845_v22  ;;  %v8283_v47 = vand.u32 2147483648, %v17709_v38  ;;  %vm8297_vm2 = vcmp.eq.f32.partialorder %v8296_v43, 8.507059e+37 }
0x1070   : > { %v8408_v12 = vmul.f32 %v8315_v9, %v17680_v5  ;;  %v8325_v17 = vsel %vm8324_vm7, %v12132_v24, %v8321_v25  ;;  %v8405_v5 = vmul.f32 %v8270_v14, %v17613_v19  ;;  %v8238_v24 = vand.u32 2147483648, %v17702_v44  ;;  %v8719_v21 = vpop.f32.mrf.mxu3 }
0x1071   : > { %v8330_v27 = vsel %vm8327_vm10, %v8329_v63, %v8325_v17  ;;  %v17840_v19 = vadd.f32 1.0, %v12136_v39  ;;  %v8767_v23 = vadd.f32 %v8766_v16, %v8718_v41  ;;  %v12138_v13 = vpop.eup %12137  ;;  %v8275_v44 = vmul.f32 %v17753_v1, %v8274_v37  ;;  %v8866_v15 = vpop.f32.mrf.mxu2 }
0x1072   : > { %v8409_v34 = vmul.f32 %v8330_v27, %v17687_v4  ;;  %v8440_v36 = vpack.c.bf16 %v8408_v12, %v8404_v7  ;;  %v8768_v4 = vpop.f32.mrf.mxu0  ;;  %v8288_v28 = vmul.f32 %v12138_v13, %v17817_v48  ;;  %v8239_v29 = vor.u32 1.1754944e-38, %v8238_v24 }
0x1073   : > { %12139 = vrcp.f32 %v17840_v19  ;;  %v8816_v42 = vadd.f32 %v8815_v46, %v8767_v23  ;;  %vm8293_vm12 = vweird.f32 %v12138_v13  ;;  %v8720_v2 = vadd.f32 %v17760_v32, %v8719_v21 }
0x1074   : > { %8795 = vmatmul.bf16.gmra.mxu0 %v8440_v36  ;;  %v8441_v57 = vpack.c.bf16 %v8409_v34, %v8405_v5  ;;  %v8289_v6 = vsub.f32 1.0, %v8288_v28  ;;  %v8240_v53 = vsel %vm8237_vm11, %v8239_v29, %v8235_v35  ;;  %v8276_v16 = vadd.f32 %v17753_v1, %v8275_v44  ;;  %vm8294_vm0 = vmor %vm8292_vm15, %vm8293_vm12  ;;  %v18952_v36 = vld [vmem:[#allocation36_spill] sm:$0xff]  ;;  %v18953_v28 = vld [vmem:[#allocation66_spill] sm:$0xff] }
0x1075   : > { %v8865_v11 = vadd.f32 %v8864_v0, %v8816_v42  ;;  %v8769_v49 = vadd.f32 %v8768_v4, %v8720_v2  ;;  %v8403_v9 = vmul.f32 %v8240_v53, %v17652_v18  ;;  %v8281_v25 = vand.u32 2147483647, %v17709_v38 }
0x1076   : > { %8844 = vmatmul.bf16.gmra.mxu1 %v8441_v57  ;;  %v8290_v58 = vmul.f32 %v12138_v13, %v8289_v6  ;;  %v8820_v40 = vpop.f32.mrf.mxu1  ;;  %v8299_v14 = vor.u32 1.1754944e-38, %v8298_v61  ;;  %v8280_v7 = vsel %vm17870_vm1, %v17753_v1, %v8276_v16  ;;  %v8341_v17 = vand.u32 2147483647, %v17840_v19  ;;  %v18954_v61 = vld [vmem:[#allocation63_spill] sm:$0xff] }
0x1077   : > { %v17857_v56 = vadd.f32 %v8865_v11, %v18949_v62  ;;  %v8818_v50 = vadd.f32 %v8817_v55, %v8769_v49  ;;  %v8343_v38 = vand.u32 2147483648, %v17840_v19  ;;  %vm8282_vm5 = vcmp.eq.f32.partialorder %v8281_v25, 8.507059e+37 }
0x1078   : > { %v8291_v20 = vadd.f32 %v12138_v13, %v8290_v58  ;;  %v8284_v5 = vor.u32 1.1754944e-38, %v8283_v47  ;;  %vm8337_vm6 = vweird.f32 %v17840_v19  ;;  %v8722_v34 = vpop.f32.mrf.mxu3  ;;  %vm8342_vm10 = vcmp.eq.f32.partialorder %v8341_v17, 8.507059e+37 }
0x1079   : > { %v12140_v59 = vpop.eup %12139  ;;  %8917 = vst [vmem:[#allocation2 + $0x58] sm:$0xff] %v17857_v56  ;;  %v8867_v10 = vadd.f32 %v8866_v15, %v8818_v50  ;;  %v8869_v30 = vpop.f32.mrf.mxu2  ;;  %v8723_v31 = vadd.f32 %v17760_v32, %v8722_v34  ;;  %v8344_v41 = vor.u32 1.1754944e-38, %v8343_v38 }
0x107a   : > { %v8771_v46 = vpop.f32.mrf.mxu0  ;;  %v8333_v52 = vmul.f32 %v12140_v59, %v17840_v19  ;;  %v8295_v63 = vsel %vm8294_vm0, %v12138_v13, %v8291_v20  ;;  %vm8338_vm4 = vweird.f32 %v12140_v59  ;;  %v8285_v33 = vsel %vm8282_vm5, %v8284_v5, %v8280_v7 }
0x107b   : > { %v8300_v18 = vsel %vm8297_vm2, %v8299_v14, %v8295_v63  ;;  %v17882_v39 = vadd.f32 %v8867_v10, %v18952_v36  ;;  %vm8339_vm7 = vmor %vm8337_vm6, %vm8338_vm4  ;;  %v8772_v37 = vadd.f32 %v8771_v46, %v8723_v31  ;;  %v8406_v55 = vmul.f32 %v8285_v33, %v17666_v8  ;;  %v18956_v63 = vld [vmem:[#allocation47_spill] sm:$0xff]  ;;  %v18957_v10 = vld [vmem:[#allocation65_spill] sm:$0xff] }
0x107c   : > { %v8334_v48 = vsub.f32 1.0, %v8333_v52  ;;  %v8407_v27 = vmul.f32 %v8300_v18, %v17712_v51 }
0x107d   : > { %8918 = vst [vmem:[#allocation2 + $0x18] sm:$0xff] %v17882_v39  ;;  %v8821_v26 = vadd.f32 %v8820_v40, %v8772_v37  ;;  %v18955_v40 = vld [vmem:[#allocation61_spill] sm:$0xff] }
0x107e   : > { %v8335_v3 = vmul.f32 %v12140_v59, %v8334_v48  ;;  %v8439_v1 = vpack.c.bf16 %v8407_v27, %v8403_v9  ;;  %v8822_v4 = vpop.f32.mrf.mxu1 }
0x107f   : > { %v8870_v23 = vadd.f32 %v8869_v30, %v8821_v26 }
0x1080   : > { %v8336_v0 = vadd.f32 %v12140_v59, %v8335_v3  ;;  %8746 = vmatmul.bf16.gmra.mxu3 %v8439_v1  ;;  %v8724_v13 = vpop.f32.mrf.mxu3 }
0x1081   : > { %v8871_v35 = vpop.f32.mrf.mxu2  ;;  %v17889_v42 = vadd.f32 %v8870_v23, %v18953_v28  ;;  %v8725_v29 = vadd.f32 %v17760_v32, %v8724_v13  ;;  %v18959_v28 = vld [vmem:[#allocation70_spill] sm:$0xff] }
0x1082   : > { %v8773_v51 = vpop.f32.mrf.mxu0  ;;  %v8340_v24 = vsel %vm8339_vm7, %v12140_v59, %v8336_v0 }
0x1083   : > { %v8345_v19 = vsel %vm8342_vm10, %v8344_v41, %v8340_v24  ;;  %8919 = vst [vmem:[#allocation2 + $0x50] sm:$0xff] %v17889_v42  ;;  %v8774_v44 = vadd.f32 %v8773_v51, %v8725_v29  ;;  %v18958_v41 = vld [vmem:[#allocation62_spill] sm:$0xff] }
0x1084   : > { %v8410_v57 = vmul.f32 %v8345_v19, %v17782_v45 }
0x1085   : > { %v8823_v11 = vadd.f32 %v8822_v4, %v8774_v44 }
0x1086   : > { %v8442_v54 = vpack.c.bf16 %v8410_v57, %v8406_v55  ;;  %v8825_v53 = vpop.f32.mrf.mxu1 }
0x1087   : > { %v8872_v8 = vadd.f32 %v8871_v35, %v8823_v11 }
0x1088   : > { %8893 = vmatmul.bf16.gmra.mxu2 %v8442_v54  ;;  %v8727_v43 = vpop.f32.mrf.mxu3 }
0x1089   : > { %v8874_v45 = vpop.f32.mrf.mxu2  ;;  %v17894_v21 = vadd.f32 %v8872_v8, %v18954_v61  ;;  %v8728_v15 = vadd.f32 %v17760_v32, %v8727_v43  ;;  %v18960_v61 = vld [vmem:[#allocation68_spill] sm:$0xff] }
0x108a   : > { %v8776_v6 = vpop.f32.mrf.mxu0 }
0x108b   : > { %8920 = vst [vmem:[#allocation2 + $0x68] sm:$0xff] %v17894_v21  ;;  %v8777_v58 = vadd.f32 %v8776_v6, %v8728_v15 }
0x108d   : > { %v8826_v62 = vadd.f32 %v8825_v53, %v8777_v58 }
0x108e   : > { %v8827_v16 = vpop.f32.mrf.mxu1 }
0x108f   : > { %v8875_v59 = vadd.f32 %v8874_v45, %v8826_v62 }
0x1090   : > { %v8729_v46 = vpop.f32.mrf.mxu3 }
0x1091   : > { %v17899_v20 = vadd.f32 %v8875_v59, %v18955_v40  ;;  %v8730_v52 = vadd.f32 %v17760_v32, %v8729_v46  ;;  %v8876_v49 = vpop.f32.mrf.mxu2 }
0x1092   : > { %v8778_v2 = vpop.f32.mrf.mxu0 }
0x1093   : > { %8921 = vst [vmem:[#allocation2 + $0x8] sm:$0xff] %v17899_v20  ;;  %v8779_v9 = vadd.f32 %v8778_v2, %v8730_v52 }
0x1095   : > { %v8828_v25 = vadd.f32 %v8827_v16, %v8779_v9  ;;  %v18961_v9 = vld [vmem:[#allocation69_spill] sm:$0xff] }
0x1096   : > { %v8830_v7 = vpop.f32.mrf.mxu1 }
0x1097   : > { %v8877_v47 = vadd.f32 %v8876_v49, %v8828_v25 }
0x1098   : > { %v8732_v12 = vpop.f32.mrf.mxu3 }
0x1099   : > { %v17904_v48 = vadd.f32 %v8877_v47, %v18956_v63  ;;  %v8733_v50 = vadd.f32 %v17760_v32, %v8732_v12  ;;  %v8879_v17 = vpop.f32.mrf.mxu2 }
0x109a   : > { %v8781_v14 = vpop.f32.mrf.mxu0 }
0x109b   : > { %8922 = vst [vmem:[#allocation2 + $0x48] sm:$0xff] %v17904_v48  ;;  %v8782_v18 = vadd.f32 %v8781_v14, %v8733_v50 }
0x109d   : > { %v8831_v38 = vadd.f32 %v8830_v7, %v8782_v18  ;;  %v18962_v7 = vld [vmem:[#allocation44_spill] sm:$0xff] }
0x109e   : > { %v8832_v36 = vpop.f32.mrf.mxu1 }
0x109f   : > { %v8880_v27 = vadd.f32 %v8879_v17, %v8831_v38 }
0x10a0   : > { %v8734_v3 = vpop.f32.mrf.mxu3 }
0x10a1   : > { %v17909_v5 = vadd.f32 %v8880_v27, %v18957_v10  ;;  %v8735_v34 = vadd.f32 %v17760_v32, %v8734_v3  ;;  %v8881_v31 = vpop.f32.mrf.mxu2 }
0x10a2   : > { %v8783_v30 = vpop.f32.mrf.mxu0 }
0x10a3   : > { %8923 = vst [vmem:[#allocation2 + $0x40] sm:$0xff] %v17909_v5  ;;  %v8784_v0 = vadd.f32 %v8783_v30, %v8735_v34 }
0x10a5   : > { %v8833_v1 = vadd.f32 %v8832_v36, %v8784_v0 }
0x10a7   : > { %v8882_v33 = vadd.f32 %v8881_v31, %v8833_v1  ;;  %v18963_v1 = vld [vmem:[#allocation64_spill] sm:$0xff] }
0x10a9   : > { %v17914_v51 = vadd.f32 %v8882_v33, %v18958_v41 }
0x10ab   : > { %8924 = vst [vmem:[#allocation2 + $0x20] sm:$0xff] %v17914_v51 }
0x10c1   : > { %v8786_v24 = vpop.f32.mrf.mxu0  ;;  %v8835_v37 = vpop.f32.mrf.mxu1 }
0x10c6   : > { %v8737_v19 = vpop.f32.mrf.mxu3 }
0x10c7   : > { %v8738_v4 = vadd.f32 %v17760_v32, %v8737_v19 }
0x10c8   : > { %v8884_v57 = vpop.f32.mrf.mxu2 }
0x10c9   : > { %v8787_v55 = vadd.f32 %v8786_v24, %v8738_v4  ;;  %v8788_v54 = vpop.f32.mrf.mxu0  ;;  %v8837_v13 = vpop.f32.mrf.mxu1 }
0x10cb   : > { %v8836_v26 = vadd.f32 %v8835_v37, %v8787_v55 }
0x10cd   : > { %v8885_v23 = vadd.f32 %v8884_v57, %v8836_v26  ;;  %v18964_v57 = vld [vmem:[#allocation49_spill] sm:$0xff] }
0x10ce   : > { %v8739_v35 = vpop.f32.mrf.mxu3 }
0x10cf   : > { %v17919_v29 = vadd.f32 %v8885_v23, %v18959_v28  ;;  %v8740_v44 = vadd.f32 %v17760_v32, %v8739_v35 }
0x10d0   : > { %v8886_v53 = vpop.f32.mrf.mxu2 }
0x10d1   : > { %8925 = vst [vmem:[#allocation2 + $0x10] sm:$0xff] %v17919_v29  ;;  %v8789_v6 = vadd.f32 %v8788_v54, %v8740_v44  ;;  %v8791_v43 = vpop.f32.mrf.mxu0 }
0x10d2   : > { %v8840_v62 = vpop.f32.mrf.mxu1 }
0x10d3   : > { %v8838_v11 = vadd.f32 %v8837_v13, %v8789_v6 }
0x10d5   : > { %v8887_v8 = vadd.f32 %v8886_v53, %v8838_v11 }
0x10d7   : > { %v8742_v45 = vpop.f32.mrf.mxu3  ;;  %v17924_v15 = vadd.f32 %v8887_v8, %v18960_v61 }
0x10d8   : > { %v8743_v58 = vadd.f32 %v17760_v32, %v8742_v45 }
0x10d9   : > { %8926 = vst [vmem:[#allocation2 + $0x38] sm:$0xff] %v17924_v15  ;;  %v8793_v49 = vpop.f32.mrf.mxu0 }
0x10da   : > { %v8792_v2 = vadd.f32 %v8791_v43, %v8743_v58  ;;  %v8842_v14 = vpop.f32.mrf.mxu1 }
0x10dc   : > { %v8841_v59 = vadd.f32 %v8840_v62, %v8792_v2 }
0x10df   : > { %v8889_v16 = vpop.f32.mrf.mxu2  ;;  %v8744_v46 = vpop.f32.mrf.mxu3 }
0x10e0   : > { %v8890_v40 = vadd.f32 %v8889_v16, %v8841_v59  ;;  %v8745_v52 = vadd.f32 %v17760_v32, %v8744_v46 }
0x10e2   : > { %v17930_v25 = vadd.f32 %v8890_v40, %v18961_v9  ;;  %v8794_v47 = vadd.f32 %v8793_v49, %v8745_v52 }
0x10e4   : > { %8927 = vst [vmem:[#allocation2 + $0x60] sm:$0xff] %v17930_v25  ;;  %v8843_v12 = vadd.f32 %v8842_v14, %v8794_v47 }
0x10e7   : > { %v8891_v63 = vpop.f32.mrf.mxu2 }
0x10e8   : > { %v8892_v50 = vadd.f32 %v8891_v63, %v8843_v12 }
0x10ea   : > { %v17934_v18 = vadd.f32 %v8892_v50, %v18962_v7 }
0x10ec   : > { %8928 = vst [vmem:[#allocation2 + $0x70] sm:$0xff] %v17934_v18 }
0x10f1   : > { %v8796_v17 = vpop.f32.mrf.mxu0 }
0x10f3   : > { %v8845_v3 = vpop.f32.mrf.mxu1 }
0x10f9   : > { %v8798_v41 = vpop.f32.mrf.mxu0 }
0x10fb   : > { %v8847_v37 = vpop.f32.mrf.mxu1 }
0x1103   : > { %v8747_v38 = vpop.f32.mrf.mxu3 }
0x1104   : > { %v8748_v27 = vadd.f32 %v17760_v32, %v8747_v38 }
0x1106   : > { %v8797_v10 = vadd.f32 %v8796_v17, %v8748_v27 }
0x1108   : > { %v8846_v34 = vadd.f32 %v8845_v3, %v8797_v10 }
0x110b   : > { %v8894_v30 = vpop.f32.mrf.mxu2  ;;  %v8749_v36 = vpop.f32.mrf.mxu3 }
0x110c   : > { %v8895_v0 = vadd.f32 %v8894_v30, %v8846_v34  ;;  %v8750_v33 = vadd.f32 %v17760_v32, %v8749_v36 }
0x110e   : > { %v17939_v31 = vadd.f32 %v8895_v0, %v18963_v1  ;;  %v8799_v24 = vadd.f32 %v8798_v41, %v8750_v33 }
0x1110   : > { %8929 = vst [vmem:[#allocation2 + $0x78] sm:$0xff] %v17939_v31  ;;  %v8848_v19 = vadd.f32 %v8847_v37, %v8799_v24 }
0x1113   : > { %v8896_v4 = vpop.f32.mrf.mxu2 }
0x1114   : > { %v8897_v55 = vadd.f32 %v8896_v4, %v8848_v19  ;;  %8934 = sbr.rel (%p10902_p9) target bundleno = 5119 (0x13ff), region = 152 }
0x1116   : > { %v17944_v26 = vadd.f32 %v8897_v55, %v18964_v57 }
0x1118   : > { %8930 = vst [vmem:[#allocation2 + $0x28] sm:$0xff] %v17944_v26 }
0x1119   : > { %v10905_v32 = vld [vmem:[%s18965_s12] sm:$0xf]  ;;  %v11256_v54 = vld [vmem:[%s18965_s12] sm:$0x70]  ;;  %vm9254_vm3 = vcmask 1045504   ;;  %vm9255_vm8 = vcmask 1046528  }
0x111a   : > { %v10906_v23 = vor.u32 %v11256_v54, %v10905_v32  ;;  %v9236_v13 = vld [vmem:[%s18966_s20] sm:$0xff]  ;;  %v9237_v35 = vld [vmem:[%s18966_s20 + $0x8] sm:$0xff]  ;;  %vm9250_vm9 = vcmask 105472   ;;  %v8953_v28 = vrot.slane %v17845_v22, 7  ;;  %v12275_v44 = vmov 65535   ;;  %v11259_v24 = vld [vmem:[%s18967_s4 + $0x10] sm:$0xff] }
0x111b   : > { %v9256_v6 = vsel %vm9254_vm3, 4294967295, %v12275_v44  ;;  %v9238_v11 = vpack.c.bf16 %v9237_v35, %v9236_v13  ;;  %vm8954_vm11 = vcmask 1041409   ;;  %v8956_v53 = vrot.slane %v17857_v56, 6  ;;  %v9284_v36 = vld [vmem:[%s18967_s4 + $0x18] sm:$0x3]  ;;  %v11258_v37 = vld [vmem:[%s18967_s4 + $0x8] sm:$0xff] }
0x111c   : > { %v17954_v8 = vsel %vm9255_vm8, %v9256_v6, 0  ;;  %v8955_v43 = vsel %vm8954_vm11, %v8953_v28, %v17829_v60  ;;  %vm8957_vm12 = vcmask 1042434   ;;  %v8959_v45 = vrot.slane %v17882_v39, 5  ;;  %v11257_v19 = vld [vmem:[%s18967_s4] sm:$0xff] }
0x111d   : > { %v9259_v61 = vand.u32 %v10906_v23, %v17954_v8  ;;  %v8958_v58 = vsel %vm8957_vm12, %v8956_v53, %v8955_v43  ;;  %vm8960_vm13 = vcmask 1043459   ;;  %v8962_v62 = vrot.slane %v17889_v42, 4  ;;  %v18969_v55 = vld [vmem:[#allocation33_spill] sm:$0xff] }
0x111e   : > { %v8961_v2 = vsel %vm8960_vm13, %v8959_v45, %v8958_v58  ;;  %vm8963_vm14 = vcmask 1044484   ;;  %v8965_v59 = vrot.slane %v17894_v21, 3  ;;  %vm8966_vm15 = vcmask 1045509  }
0x111f   : > { %9268 = vmatpush.bf16.msra.mxu0 %v9259_v61  ;;  %v8964_v16 = vsel %vm8963_vm14, %v8962_v62, %v8961_v2  ;;  %v8968_v46 = vrot.slane %v17899_v20, 2  ;;  %vm8969_vm0 = vcmask 1046534   ;;  %v8971_v40 = vrot.slane %v17904_v48, 1  ;;  %v12190_v61 = vld [vmem:[%s18968_s22] ss:$0 sm:$0xff] }
0x1120   : > { %v8967_v52 = vsel %vm8966_vm15, %v8965_v59, %v8964_v16  ;;  %vm8972_vm1 = vcmask 1047559   ;;  %v8974_v49 = vrot.slane %v17914_v51, 7  ;;  %v8976_v9 = vrot.slane %v17919_v29, 6 }
0x1121   : > { %v8970_v47 = vsel %vm8969_vm0, %v8968_v46, %v8967_v52  ;;  %v8978_v14 = vrot.slane %v17924_v15, 5  ;;  %v8980_v12 = vrot.slane %v17930_v25, 4  ;;  %v8982_v7 = vrot.slane %v17934_v18, 3 }
0x1122   : > { %10907 = vmatmul.msk.bf16.vlgmr.msra.gmra.mxu0 %vm9250_vm9, %v9238_v11  ;;  %v8973_v63 = vsel %vm8972_vm1, %v8971_v40, %v8970_v47  ;;  %v8975_v50 = vsel %vm8954_vm11, %v8974_v49, %v17909_v5  ;;  %v8984_v38 = vrot.slane %v17939_v31, 2  ;;  %v8986_v3 = vrot.slane %v17944_v26, 1 }
0x1123   : > { %8990 = vadd.xlane.f32.xlu0 %v8973_v63  ;;  %v8977_v17 = vsel %vm8957_vm12, %v8976_v9, %v8975_v50  ;;  %v9302_v1 = vunpack.c.l.b16 %v9284_v36  ;;  %vm9314_vm2 = vcmask 1041408   ;;  %vm9310_vm4 = vcmask 424960  }
0x1124   : > { %v8979_v27 = vsel %vm8960_vm13, %v8978_v14, %v8977_v17 }
0x1125   : > { %v8981_v10 = vsel %vm8963_vm14, %v8980_v12, %v8979_v27  ;;  %v9306_v33 = vpack.c.b16 %v9302_v1, %v9302_v1 }
0x1126   : > { %v8983_v34 = vsel %vm8966_vm15, %v8982_v7, %v8981_v10 }
0x1127   : > { %v8985_v30 = vsel %vm8969_vm0, %v8984_v38, %v8983_v34  ;;  %v9316_v41 = vsel %vm9314_vm2, %v9306_v33, 0 }
0x1128   : > { %v8987_v0 = vsel %vm8972_vm1, %v8986_v3, %v8985_v30  ;;  %9322 = vmatpush.bf16.msrb.mxu0 %v9316_v41 }
0x112b   : > { %8992 = vadd.xlane.f32.xlu0 %v8987_v0 }
0x112c   : > { %9323 = vmatpush.bf16.msrb.mxu0 %v11259_v24 }
0x1130   : > { %9324 = vmatpush.bf16.msrb.mxu0 %v11258_v37 }
0x1134   : > { %9325 = vmatpush.bf16.msrb.mxu0 %v11257_v19 }
0x1196   : > { %v8991_v4 = vpop.xlane.xlu0 %8990 }
0x1197   : > { %v8994_v57 = vmul.f32 %v8991_v4, %v18969_v55 }
0x1199   : > { %v8998_v32 = vrot.slane %v8994_v57, 1  ;;  %v8999_v54 = vrot.slane %v8994_v57, 2  ;;  %v9000_v23 = vrot.slane %v8994_v57, 3  ;;  %v9001_v13 = vrot.slane %v8994_v57, 4 }
0x119a   : > { %v9002_v35 = vrot.slane %v8994_v57, 5  ;;  %v9003_v28 = vrot.slane %v8994_v57, 6  ;;  %v9004_v44 = vrot.slane %v8994_v57, 7  ;;  %v17993_v6 = vsub.f32 %v17829_v60, %v8994_v57 }
0x119b   : > { %v17996_v11 = vsub.f32 %v17845_v22, %v8998_v32  ;;  %v17999_v53 = vsub.f32 %v17857_v56, %v8999_v54  ;;  %v18002_v43 = vsub.f32 %v17882_v39, %v9000_v23  ;;  %v18005_v45 = vsub.f32 %v17889_v42, %v9001_v13 }
0x119c   : > { %v18009_v58 = vsub.f32 %v17894_v21, %v9002_v35  ;;  %v18012_v62 = vsub.f32 %v17899_v20, %v9003_v28  ;;  %v18015_v60 = vsub.f32 %v17904_v48, %v9004_v44  ;;  %v9044_v22 = vmul.f32 %v17993_v6, %v17993_v6 }
0x119d   : > { %v9045_v56 = vmul.f32 %v17996_v11, %v17996_v11  ;;  %v9046_v39 = vmul.f32 %v17999_v53, %v17999_v53  ;;  %v9047_v42 = vmul.f32 %v18002_v43, %v18002_v43  ;;  %v9048_v21 = vmul.f32 %v18005_v45, %v18005_v45 }
0x119e   : > { %v8993_v20 = vpop.xlane.xlu0 %8992  ;;  %v9049_v48 = vmul.f32 %v18009_v58, %v18009_v58  ;;  %v9050_v2 = vmul.f32 %v18012_v62, %v18012_v62  ;;  %v9051_v59 = vmul.f32 %v18015_v60, %v18015_v60 }
0x119f   : > { %v8995_v16 = vmul.f32 %v8993_v20, %v18969_v55  ;;  %v9270_v46 = vpop.f32.mrf.mxu0  ;;  %v9076_v40 = vrot.slane %v9045_v56, 7  ;;  %v9078_v52 = vrot.slane %v9046_v39, 6  ;;  %v9080_v49 = vrot.slane %v9047_v42, 5 }
0x11a0   : > { %v9271_v9 = vadd.f32 %v12190_v61, %v9270_v46  ;;  %v9082_v47 = vrot.slane %v9048_v21, 4  ;;  %v9084_v14 = vrot.slane %v9049_v48, 3  ;;  %v9086_v63 = vrot.slane %v9050_v2, 2 }
0x11a1   : > { %v9077_v12 = vsel %vm8954_vm11, %v9076_v40, %v9044_v22  ;;  %v9005_v50 = vrot.slane %v8995_v16, 1  ;;  %v9006_v7 = vrot.slane %v8995_v16, 2  ;;  %v9088_v38 = vrot.slane %v9051_v59, 1 }
0x11a2   : > { %v9079_v17 = vsel %vm8957_vm12, %v9078_v52, %v9077_v12  ;;  %v9007_v27 = vrot.slane %v8995_v16, 3  ;;  %v9008_v3 = vrot.slane %v8995_v16, 4  ;;  %v9009_v34 = vrot.slane %v8995_v16, 5 }
0x11a3   : > { %v9081_v10 = vsel %vm8960_vm13, %v9080_v49, %v9079_v17  ;;  %v9010_v30 = vrot.slane %v8995_v16, 6  ;;  %v9011_v0 = vrot.slane %v8995_v16, 7  ;;  %v18039_v1 = vsub.f32 %v17909_v5, %v8995_v16  ;;  %v11035_v17 = vld [vmem:[%s18972_s28 + $0xa8] sm:$0xf] }
0x11a4   : > { %v9083_v36 = vsel %vm8963_vm14, %v9082_v47, %v9081_v10  ;;  %v18042_v33 = vsub.f32 %v17914_v51, %v9005_v50  ;;  %v18045_v41 = vsub.f32 %v17919_v29, %v9006_v7  ;;  %v18049_v37 = vsub.f32 %v17924_v15, %v9007_v27  ;;  %v11261_v50 = vld [vmem:[%s18971_s0 + $0x8] sm:$0xff]  ;;  %v11260_v7 = vld [vmem:[%s18971_s0] sm:$0xff]  ;;  %v11037_v10 = vld [vmem:[%s18973_s2 + $0xb4] sm:$0xf0] }
0x11a5   : > { %v9085_v24 = vsel %vm8966_vm15, %v9084_v14, %v9083_v36  ;;  %v18052_v19 = vsub.f32 %v17930_v25, %v9008_v3  ;;  %v18055_v4 = vsub.f32 %v17934_v18, %v9009_v34  ;;  %v18059_v57 = vsub.f32 %v17939_v31, %v9010_v30  ;;  %v11284_v3 = vld [vmem:[%s18973_s2 + $0xac] sm:$0xf]  ;;  %v11023_v30 = vld [vmem:[%s18973_s2 + $0x90] sm:$0xf]  ;;  %v11281_v36 = vld [vmem:[%s18973_s2 + $0x94] sm:$0xf] }
0x11a6   : > { %v9087_v5 = vsel %vm8969_vm0, %v9086_v63, %v9085_v24  ;;  %v18062_v51 = vsub.f32 %v17944_v26, %v9011_v0  ;;  %v9052_v29 = vmul.f32 %v18039_v1, %v18039_v1  ;;  %v9053_v25 = vmul.f32 %v18042_v33, %v18042_v33  ;;  %v11262_v63 = vld [vmem:[%s18971_s0 + $0x10] sm:$0xff]  ;;  %v11282_v0 = vld [vmem:[%s18973_s2 + $0x98] sm:$0xf0] }
0x11a7   : > { %v9272_v32 = vpop.f32.mrf.mxu0  ;;  %v9089_v15 = vsel %vm8972_vm1, %v9088_v38, %v9087_v5  ;;  %v9054_v18 = vmul.f32 %v18045_v41, %v18045_v41  ;;  %v9055_v54 = vmul.f32 %v18049_v37, %v18049_v37  ;;  %v9056_v26 = vmul.f32 %v18052_v19, %v18052_v19  ;;  %v11285_v38 = vld [vmem:[%s18973_s2 + $0xb0] sm:$0xf0]  ;;  %v11025_v5 = vld [vmem:[%s18973_s2 + $0x9c] sm:$0xf0] }
0x11a8   : > { %v9273_v31 = vadd.f32 %v12190_v61, %v9272_v32  ;;  %9106 = vadd.xlane.f32.xlu1 %v9089_v15  ;;  %v9057_v23 = vmul.f32 %v18055_v4, %v18055_v4  ;;  %v9058_v13 = vmul.f32 %v18059_v57, %v18059_v57  ;;  %v9059_v35 = vmul.f32 %v18062_v51, %v18062_v51  ;;  %v11011_v32 = vld [vmem:[%s18973_s2 + $0x78] sm:$0xf]  ;;  %v11279_v15 = vld [vmem:[%s18973_s2 + $0x80] sm:$0xf0] }
0x11a9   : > { %v9090_v28 = vrot.slane %v9053_v25, 7  ;;  %v9092_v44 = vrot.slane %v9054_v18, 6  ;;  %v9094_v22 = vrot.slane %v9055_v54, 5  ;;  %v9275_v56 = vmax.f32 %v9271_v9, 0.0  ;;  %v9341_v9 = vld [vmem:[%s18970_s26 + $0x18] sm:$0x3] }
0x11aa   : > { %v9276_v39 = vmax.f32 %v9273_v31, 0.0  ;;  %v9096_v61 = vrot.slane %v9056_v26, 4  ;;  %v9098_v21 = vrot.slane %v9057_v23, 3  ;;  %v9100_v2 = vrot.slane %v9058_v13, 2  ;;  %v11278_v25 = vld [vmem:[%s18973_s2 + $0x7c] sm:$0xf] }
0x11ab   : > { %v9091_v42 = vsel %vm8954_vm11, %v9090_v28, %v9052_v29  ;;  %v9102_v16 = vrot.slane %v9059_v35, 1  ;;  %v9359_v47 = vunpack.c.l.b16 %v9341_v9  ;;  %v11036_v27 = vor.u32 %v11285_v38, %v11035_v17  ;;  %v11013_v54 = vld [vmem:[%s18973_s2 + $0x84] sm:$0xf0]  ;;  %v10999_v13 = vld [vmem:[%s18973_s2 + $0x60] sm:$0xf] }
0x11ac   : > { %v9277_v20 = vpack.c.bf16 %v9276_v39, %v9275_v56  ;;  %v9093_v48 = vsel %vm8957_vm12, %v9092_v44, %v9091_v42  ;;  %v11040_v34 = vor.u32 %v11284_v3, %v11037_v10  ;;  %v11024_v24 = vor.u32 %v11282_v0, %v11023_v30  ;;  %v11276_v35 = vld [vmem:[%s18973_s2 + $0x68] sm:$0xf0]  ;;  %v11275_v28 = vld [vmem:[%s18973_s2 + $0x64] sm:$0xf]  ;;  %v11001_v56 = vld [vmem:[%s18973_s2 + $0x6c] sm:$0xf0] }
0x11ad   : > { %v9095_v59 = vsel %vm8960_vm13, %v9094_v22, %v9093_v48  ;;  %v9363_v14 = vpack.c.b16 %v9359_v47, %v9359_v47  ;;  %9681 = vmatpush.bf16.msra.mxu1 %v11036_v27  ;;  %v11028_v29 = vor.u32 %v11281_v36, %v11025_v5  ;;  %v11012_v18 = vor.u32 %v11279_v15, %v11011_v32  ;;  %v10987_v39 = vld [vmem:[%s18973_s2 + $0x48] sm:$0xf]  ;;  %v11273_v42 = vld [vmem:[%s18973_s2 + $0x50] sm:$0xf0]  ;;  %v10963_v47 = vld [vmem:[%s18973_s2 + $0x18] sm:$0xf] }
0x11ae   : > { %10920 = vmatmul.msk.bf16.vlgmr.msrb.gmra.mxu0 %vm9310_vm4, %v9277_v20  ;;  %v9097_v46 = vsel %vm8963_vm14, %v9096_v61, %v9095_v59  ;;  %v11016_v26 = vor.u32 %v11278_v25, %v11013_v54  ;;  %v11000_v22 = vor.u32 %v11276_v35, %v10999_v13  ;;  %v11004_v61 = vor.u32 %v11275_v28, %v11001_v56  ;;  %v10989_v20 = vld [vmem:[%s18973_s2 + $0x54] sm:$0xf0]  ;;  %v10975_v59 = vld [vmem:[%s18973_s2 + $0x30] sm:$0xf]  ;;  %v12191_v10 = vld [vmem:[%s18974_s23] ss:$0 sm:$0xff] }
0x11af   : > { %v9099_v40 = vsel %vm8966_vm15, %v9098_v21, %v9097_v46  ;;  %v9371_v12 = vsel %vm9314_vm2, %v9363_v14, 0  ;;  %v11272_v21 = vld [vmem:[%s18973_s2 + $0x4c] sm:$0xf]  ;;  %v10988_v48 = vor.u32 %v11273_v42, %v10987_v39  ;;  %v11269_v46 = vld [vmem:[%s18973_s2 + $0x34] sm:$0xf] }
0x11b0   : > { %v9101_v52 = vsel %vm8969_vm0, %v9100_v2, %v9099_v40  ;;  %9377 = vmatpush.bf16.msra.mxu2 %v9371_v12  ;;  %v10992_v2 = vor.u32 %v11272_v21, %v10989_v20  ;;  %v10977_v40 = vld [vmem:[%s18973_s2 + $0x3c] sm:$0xf0]  ;;  %v11267_v14 = vld [vmem:[%s18973_s2 + $0x20] sm:$0xf0]  ;;  %v11264_v0 = vld [vmem:[%s18973_s2 + $0x8] sm:$0xf0] }
0x11b1   : > { %v9103_v49 = vsel %vm8972_vm1, %v9102_v16, %v9101_v52  ;;  %9682 = vmatpush.bf16.msra.mxu1 %v11024_v24  ;;  %v11270_v16 = vld [vmem:[%s18973_s2 + $0x38] sm:$0xf0]  ;;  %v10980_v9 = vor.u32 %v11269_v46, %v10977_v40  ;;  %v10964_v27 = vor.u32 %v11267_v14, %v10963_v47  ;;  %v10951_v30 = vld [vmem:[%s18973_s2] sm:$0xf]  ;;  %v11263_v36 = vld [vmem:[%s18973_s2 + $0x4] sm:$0xf] }
0x11b2   : > { %9108 = vadd.xlane.f32.xlu1 %v9103_v49  ;;  %v10976_v52 = vor.u32 %v11270_v16, %v10975_v59  ;;  %v10953_v24 = vld [vmem:[%s18973_s2 + $0xc] sm:$0xf0]  ;;  %v12193_v14 = vld [vmem:[%s18976_s15] ss:$0 sm:$0xff] }
0x11b3   : > { %v10956_v25 = vor.u32 %v11263_v36, %v10953_v24 }
0x11b4   : > { %9378 = vmatpush.bf16.msra.mxu2 %v11262_v63 }
0x11b5   : > { %9683 = vmatpush.bf16.msra.mxu1 %v11012_v18 }
0x11b8   : > { %9379 = vmatpush.bf16.msra.mxu2 %v11261_v50  ;;  %v11266_v50 = vld [vmem:[%s18973_s2 + $0x1c] sm:$0xf] }
0x11b9   : > { %9684 = vmatpush.bf16.msra.mxu1 %v11000_v22  ;;  %v12192_v22 = vld [vmem:[%s18975_s11] ss:$0 sm:$0xff] }
0x11bc   : > { %9380 = vmatpush.bf16.msra.mxu2 %v11260_v7  ;;  %v10965_v7 = vld [vmem:[%s18973_s2 + $0x24] sm:$0xf0] }
0x11bd   : > { %9685 = vmatpush.bf16.msra.mxu1 %v10988_v48 }
0x11c0   : > { %9695 = vmatpush.bf16.msrb.mxu2 %v11040_v34  ;;  %v10968_v34 = vor.u32 %v11266_v50, %v10965_v7 }
0x11c1   : > { %9686 = vmatpush.bf16.msra.mxu1 %v10976_v52 }
0x11c4   : > { %9696 = vmatpush.bf16.msrb.mxu2 %v11028_v29 }
0x11c5   : > { %9687 = vmatpush.bf16.msra.mxu1 %v10964_v27 }
0x11c8   : > { %9697 = vmatpush.bf16.msrb.mxu2 %v11016_v26 }
0x11cc   : > { %9698 = vmatpush.bf16.msrb.mxu2 %v11004_v61 }
0x11d0   : > { %9699 = vmatpush.bf16.msrb.mxu2 %v10992_v2 }
0x11d4   : > { %9700 = vmatpush.bf16.msrb.mxu2 %v10980_v9 }
0x11d8   : > { %9701 = vmatpush.bf16.msrb.mxu2 %v10968_v34 }
0x11dc   : > { %9702 = vmatpush.bf16.msrb.mxu2 %v10956_v25 }
0x121b   : > { %v9107_v31 = vpop.xlane.xlu1 %9106 }
0x121c   : > { %v9110_v23 = vmul.f32 %v9107_v31, %v18969_v55 }
0x121e   : > { %v9112_v44 = vadd.f32 1e-05, %v9110_v23 }
0x1220   : > { %12196 = vrsqrt.f32 %v9112_v44  ;;  %vm9120_vm5 = vweird.f32 %v9112_v44 }
0x1225   : > { %v9109_v49 = vpop.xlane.xlu1 %9108 }
0x1226   : > { %v12197_v12 = vpop.eup %12196  ;;  %v9111_v63 = vmul.f32 %v9109_v49, %v18969_v55  ;;  %v10952_v55 = vor.u32 %v11264_v0, %v10951_v30 }
0x1227   : > { %v9115_v17 = vmul.f32 %v12197_v12, %v9112_v44  ;;  %vm9121_vm6 = vweird.f32 %v12197_v12 }
0x1228   : > { %v9113_v38 = vadd.f32 1e-05, %v9111_v63  ;;  %vm9122_vm7 = vmor %vm9120_vm5, %vm9121_vm6  ;;  %9688 = vmatpush.bf16.msra.mxu1 %v10952_v55 }
0x1229   : > { %v9116_v3 = vmul.f32 %v12197_v12, %v9115_v17 }
0x122a   : > { %12198 = vrsqrt.f32 %v9113_v38  ;;  %vm9130_vm10 = vweird.f32 %v9113_v38 }
0x122b   : > { %v9117_v5 = vmul.f32 0.5, %v9116_v3  ;;  %v9327_v29 = vpop.f32.mrf.mxu0 }
0x122c   : > { %v9328_v15 = vadd.f32 %v12191_v10, %v9327_v29 }
0x122d   : > { %v9118_v32 = vsub.f32 1.5, %v9117_v5 }
0x122e   : > { %v9332_v23 = vmax.f32 %v9328_v15, 0.0 }
0x122f   : > { %v9119_v18 = vmul.f32 %v12197_v12, %v9118_v32 }
0x1230   : > { %v12199_v54 = vpop.eup %12198 }
0x1231   : > { %v9123_v31 = vsel %vm9122_vm7, %v12197_v12, %v9119_v18  ;;  %v9125_v26 = vmul.f32 %v12199_v54, %v9113_v38  ;;  %vm9131_vm3 = vweird.f32 %v12199_v54 }
0x1232   : > { %v9136_v13 = vrot.slane %v9123_v31, 1  ;;  %v9137_v35 = vrot.slane %v9123_v31, 2  ;;  %v9138_v28 = vrot.slane %v9123_v31, 3  ;;  %v9166_v44 = vmul.f32 %v9123_v31, %v17993_v6  ;;  %vm9132_vm8 = vmor %vm9130_vm10, %vm9131_vm3 }
0x1233   : > { %v9126_v56 = vmul.f32 %v12199_v54, %v9125_v26  ;;  %v9329_v39 = vpop.f32.mrf.mxu0  ;;  %v9139_v61 = vrot.slane %v9123_v31, 4  ;;  %v9140_v42 = vrot.slane %v9123_v31, 5  ;;  %v9141_v21 = vrot.slane %v9123_v31, 6 }
0x1234   : > { %v9167_v20 = vmul.f32 %v9136_v13, %v17996_v11  ;;  %v9330_v48 = vadd.f32 %v12191_v10, %v9329_v39  ;;  %v9142_v2 = vrot.slane %v9123_v31, 7  ;;  %v9168_v59 = vmul.f32 %v9137_v35, %v17999_v53 }
0x1235   : > { %v9127_v16 = vmul.f32 0.5, %v9126_v56  ;;  %v9169_v46 = vmul.f32 %v9138_v28, %v18002_v43  ;;  %v9170_v40 = vmul.f32 %v9139_v61, %v18005_v45  ;;  %v9171_v6 = vmul.f32 %v9140_v42, %v18009_v58 }
0x1236   : > { %v9333_v52 = vmax.f32 %v9330_v48, 0.0  ;;  %v9172_v49 = vmul.f32 %v9141_v21, %v18012_v62  ;;  %v9173_v9 = vmul.f32 %v9142_v2, %v18015_v60  ;;  %v9185_v47 = vmul.f32 %v12192_v22, %v9166_v44 }
0x1237   : > { %v9128_v12 = vsub.f32 1.5, %v9127_v16  ;;  %v9186_v11 = vmul.f32 %v12192_v22, %v9167_v20  ;;  %v9187_v63 = vmul.f32 %v12192_v22, %v9168_v59  ;;  %v9188_v50 = vmul.f32 %v12192_v22, %v9169_v46 }
0x1238   : > { %v9334_v53 = vpack.c.bf16 %v9333_v52, %v9332_v23  ;;  %v9189_v7 = vmul.f32 %v12192_v22, %v9170_v40  ;;  %v9190_v45 = vmul.f32 %v12192_v22, %v9171_v6  ;;  %v9191_v58 = vmul.f32 %v12192_v22, %v9172_v49 }
0x1239   : > { %v9129_v43 = vmul.f32 %v12199_v54, %v9128_v12  ;;  %v9192_v17 = vmul.f32 %v12192_v22, %v9173_v9  ;;  %v9204_v62 = vadd.f32 %v12193_v14, %v9185_v47  ;;  %v9205_v60 = vadd.f32 %v12193_v14, %v9186_v11 }
0x123a   : > { %10933 = vmatmul.msk.bf16.vlgmr.msra.gmra.mxu2 %vm9310_vm4, %v9334_v53  ;;  %v9206_v3 = vadd.f32 %v12193_v14, %v9187_v63  ;;  %v9207_v10 = vadd.f32 %v12193_v14, %v9188_v50  ;;  %v9208_v35 = vadd.f32 %v12193_v14, %v9189_v7  ;;  %v9210_v39 = vadd.f32 %v12193_v14, %v9191_v58 }
0x123b   : > { %v9133_v27 = vsel %vm9132_vm8, %v12199_v54, %v9129_v43  ;;  %v9211_v42 = vadd.f32 %v12193_v14, %v9192_v17  ;;  %v9220_v59 = vpack.c.bf16 %v9204_v62, %v9204_v62 }
0x123c   : > { %v9143_v34 = vrot.slane %v9133_v27, 1  ;;  %v9144_v30 = vrot.slane %v9133_v27, 2  ;;  %v9145_v0 = vrot.slane %v9133_v27, 3  ;;  %v9174_v36 = vmul.f32 %v9133_v27, %v18039_v1 }
0x123d   : > { %v9146_v38 = vrot.slane %v9133_v27, 4  ;;  %v9147_v24 = vrot.slane %v9133_v27, 5  ;;  %v9148_v5 = vrot.slane %v9133_v27, 6  ;;  %v9149_v29 = vrot.slane %v9133_v27, 7 }
0x123e   : > { %v9175_v55 = vmul.f32 %v9143_v34, %v18042_v33  ;;  %v9176_v32 = vmul.f32 %v9144_v30, %v18045_v41  ;;  %v9177_v15 = vmul.f32 %v9145_v0, %v18049_v37  ;;  %v9193_v25 = vmul.f32 %v12192_v22, %v9174_v36 }
0x123f   : > { %v9178_v18 = vmul.f32 %v9146_v38, %v18052_v19  ;;  %v9179_v54 = vmul.f32 %v9147_v24, %v18055_v4  ;;  %v9180_v31 = vmul.f32 %v9148_v5, %v18059_v57  ;;  %v9181_v26 = vmul.f32 %v9149_v29, %v18062_v51  ;;  %v11287_v24 = vld [vmem:[%s18977_s10 + $0x4] sm:$0xf] }
0x1240   : > { %v9194_v1 = vmul.f32 %v12192_v22, %v9175_v55  ;;  %v9195_v23 = vmul.f32 %v12192_v22, %v9176_v32  ;;  %v9196_v13 = vmul.f32 %v12192_v22, %v9177_v15  ;;  %v9209_v41 = vadd.f32 %v12193_v14, %v9190_v45  ;;  %v10938_v15 = vld [vmem:[%s18977_s10 + $0xc] sm:$0x70] }
0x1241   : > { %v9197_v28 = vmul.f32 %v12192_v22, %v9178_v18  ;;  %v9198_v44 = vmul.f32 %v12192_v22, %v9179_v54  ;;  %v9199_v33 = vmul.f32 %v12192_v22, %v9180_v31  ;;  %v9200_v56 = vmul.f32 %v12192_v22, %v9181_v26  ;;  %v11043_v26 = vld [vmem:[%s18973_s2 + $0xb0] sm:$0xf] }
0x1242   : > { %v9213_v37 = vadd.f32 %v12193_v14, %v9194_v1  ;;  %v9214_v61 = vadd.f32 %v12193_v14, %v9195_v23  ;;  %v9212_v19 = vadd.f32 %v12193_v14, %v9193_v25  ;;  %v9215_v21 = vadd.f32 %v12193_v14, %v9196_v13  ;;  %v11286_v1 = vld [vmem:[%s18973_s2 + $0xb8] sm:$0xf0] }
0x1243   : > { %v9221_v4 = vpack.c.bf16 %v9205_v60, %v9205_v60  ;;  %v9216_v20 = vadd.f32 %v12193_v14, %v9197_v28  ;;  %v9217_v57 = vadd.f32 %v12193_v14, %v9198_v44  ;;  %v9218_v48 = vadd.f32 %v12193_v14, %v9199_v33 }
0x1244   : > { %v9222_v51 = vpack.c.bf16 %v9206_v3, %v9206_v3  ;;  %v9219_v2 = vadd.f32 %v12193_v14, %v9200_v56  ;;  %v9223_v16 = vpack.c.bf16 %v9207_v10, %v9207_v10  ;;  %v9229_v46 = vpack.c.bf16 %v9213_v37, %v9213_v37 }
0x1245   : > { %v9224_v40 = vpack.c.bf16 %v9208_v35, %v9208_v35  ;;  %v9225_v6 = vpack.c.bf16 %v9209_v41, %v9209_v41  ;;  %v9226_v52 = vpack.c.bf16 %v9210_v39, %v9210_v39  ;;  %v9230_v22 = vpack.c.bf16 %v9214_v61, %v9214_v61 }
0x1246   : > { %v9227_v49 = vpack.c.bf16 %v9211_v42, %v9211_v42  ;;  %v9228_v9 = vpack.c.bf16 %v9212_v19, %v9212_v19  ;;  %v9231_v47 = vpack.c.bf16 %v9215_v21, %v9215_v21  ;;  %v9508_v12 = vunpack.c.l.b16 %v9221_v4 }
0x1247   : > { %v9232_v11 = vpack.c.bf16 %v9216_v20, %v9216_v20  ;;  %v9233_v63 = vpack.c.bf16 %v9217_v57, %v9217_v57  ;;  %v9234_v50 = vpack.c.bf16 %v9218_v48, %v9218_v48  ;;  %v9509_v53 = vunpack.c.l.b16 %v9222_v51 }
0x1248   : > { %v9235_v43 = vpack.c.bf16 %v9219_v2, %v9219_v2  ;;  %v9507_v7 = vunpack.c.l.b16 %v9220_v59  ;;  %v9510_v45 = vunpack.c.l.b16 %v9223_v16  ;;  %v9516_v14 = vunpack.c.l.b16 %v9229_v46 }
0x1249   : > { %v9511_v58 = vunpack.c.l.b16 %v9224_v40  ;;  %v9512_v17 = vunpack.c.l.b16 %v9225_v6  ;;  %v9513_v62 = vunpack.c.l.b16 %v9226_v52  ;;  %v9517_v27 = vunpack.c.l.b16 %v9230_v22  ;;  %v11031_v40 = vld [vmem:[%s18973_s2 + $0x98] sm:$0xf]  ;;  %v11283_v6 = vld [vmem:[%s18973_s2 + $0xa0] sm:$0xf0]  ;;  %v11019_v52 = vld [vmem:[%s18973_s2 + $0x80] sm:$0xf] }
0x124a   : > { %v9514_v60 = vunpack.c.l.b16 %v9227_v49  ;;  %v9518_v3 = vunpack.c.l.b16 %v9231_v47  ;;  %v9523_v10 = vrot.slane %v9508_v12, 7  ;;  %v9525_v34 = vrot.slane %v9509_v53, 6  ;;  %v11280_v49 = vld [vmem:[%s18973_s2 + $0x88] sm:$0xf0]  ;;  %v10936_v47 = vld [vmem:[%s18977_s10] sm:$0xf] }
0x124b   : > { %v9515_v30 = vunpack.c.l.b16 %v9228_v9  ;;  %v9519_v0 = vunpack.c.l.b16 %v9232_v11  ;;  %v9520_v36 = vunpack.c.l.b16 %v9233_v63  ;;  %v9521_v38 = vunpack.c.l.b16 %v9234_v50  ;;  %v11288_v12 = vld [vmem:[%s18977_s10 + $0x8] sm:$0x70]  ;;  %v11007_v11 = vld [vmem:[%s18973_s2 + $0x68] sm:$0xf]  ;;  %v11277_v50 = vld [vmem:[%s18973_s2 + $0x70] sm:$0xf0] }
0x124c   : > { %v9524_v5 = vsel %vm8954_vm11, %v9523_v10, %v9507_v7  ;;  %v9527_v29 = vrot.slane %v9510_v45, 5  ;;  %v9537_v55 = vrot.slane %v9516_v14, 7  ;;  %v9539_v32 = vrot.slane %v9517_v27, 6  ;;  %v11289_v7 = vld [vmem:[%s18977_s10 + $0x10] sm:$0x70] }
0x124d   : > { %v9522_v25 = vunpack.c.l.b16 %v9235_v43  ;;  %v9526_v18 = vsel %vm8957_vm12, %v9525_v34, %v9524_v5  ;;  %v9529_v54 = vrot.slane %v9511_v58, 4  ;;  %v9531_v31 = vrot.slane %v9512_v17, 3  ;;  %v10944_v43 = vld [vmem:[%s18977_s10 + $0x8] sm:$0xf]  ;;  %v10995_v45 = vld [vmem:[%s18973_s2 + $0x50] sm:$0xf] }
0x124e   : > { %v9528_v23 = vsel %vm8960_vm13, %v9527_v29, %v9526_v18  ;;  %v9533_v13 = vrot.slane %v9513_v62, 2  ;;  %v9538_v35 = vsel %vm8954_vm11, %v9537_v55, %v9515_v30  ;;  %v9541_v28 = vrot.slane %v9518_v3, 5  ;;  %v11274_v17 = vld [vmem:[%s18973_s2 + $0x58] sm:$0xf0]  ;;  %v11271_v3 = vld [vmem:[%s18973_s2 + $0x40] sm:$0xf0] }
0x124f   : > { %v9530_v44 = vsel %vm8963_vm14, %v9529_v54, %v9528_v23  ;;  %v9540_v33 = vsel %vm8957_vm12, %v9539_v32, %v9538_v35  ;;  %v9543_v56 = vrot.slane %v9519_v0, 4  ;;  %v10941_v41 = vor.u32 %v11287_v24, %v10938_v15  ;;  %v10971_v10 = vld [vmem:[%s18973_s2 + $0x20] sm:$0xf]  ;;  %v11268_v30 = vld [vmem:[%s18973_s2 + $0x28] sm:$0xf0]  ;;  %v11305_v29 = vld [vmem:[%s18979_s17 + $0x78] sm:$0xff] }
0x1250   : > { %v9532_v39 = vsel %vm8966_vm15, %v9531_v31, %v9530_v44  ;;  %v9542_v37 = vsel %vm8960_vm13, %v9541_v28, %v9540_v33  ;;  %v9545_v61 = vrot.slane %v9520_v36, 3  ;;  %v11044_v42 = vor.u32 %v11286_v1, %v11043_v26  ;;  %v11265_v24 = vld [vmem:[%s18973_s2 + $0x10] sm:$0xf0]  ;;  %9956 = vmatpush.bf16.msrb.mxu1 %v11305_v29  ;;  %v11297_v18 = vld [vmem:[%s18979_s17 + $0x38] sm:$0xff]  ;;  %v11303_v31 = vld [vmem:[%s18979_s17 + $0x68] sm:$0xff] }
0x1251   : > { %v9534_v19 = vsel %vm8969_vm0, %v9533_v13, %v9532_v39  ;;  %v9544_v21 = vsel %vm8963_vm14, %v9543_v56, %v9542_v37  ;;  %v9547_v4 = vrot.slane %v9521_v38, 2  ;;  %v9444_v20 = vand.u32 %v10941_v41, %v17954_v8  ;;  %v10959_v38 = vld [vmem:[%s18973_s2 + $0x8] sm:$0xf]  ;;  %v11304_v32 = vld [vmem:[%s18979_s17 + $0x70] sm:$0xff]  ;;  %v11302_v1 = vld [vmem:[%s18979_s17 + $0x60] sm:$0xff] }
0x1252   : > { %v9535_v57 = vrot.slane %v9514_v60, 1  ;;  %v9546_v48 = vsel %vm8966_vm15, %v9545_v61, %v9544_v21  ;;  %v9549_v51 = vrot.slane %v9522_v25, 1  ;;  %v11032_v22 = vor.u32 %v11283_v6, %v11031_v40  ;;  %v10983_v60 = vld [vmem:[%s18973_s2 + $0x38] sm:$0xf]  ;;  %v11296_v26 = vld [vmem:[%s18979_s17 + $0x30] sm:$0xff]  ;;  %v11295_v23 = vld [vmem:[%s18979_s17 + $0x28] sm:$0xff] }
0x1253   : > { %v9548_v2 = vsel %vm8969_vm0, %v9547_v4, %v9546_v48  ;;  %9470 = vmatpush.bf16.msra.mxu0 %v9444_v20  ;;  %v11020_v9 = vor.u32 %v11280_v49, %v11019_v52  ;;  %v10937_v63 = vor.u32 %v11288_v12, %v10936_v47  ;;  %v11008_v53 = vor.u32 %v11277_v50, %v11007_v11  ;;  %v11301_v13 = vld [vmem:[%s18979_s17 + $0x58] sm:$0xff]  ;;  %v11294_v35 = vld [vmem:[%s18979_s17 + $0x20] sm:$0xff]  ;;  %v11300_v28 = vld [vmem:[%s18979_s17 + $0x50] sm:$0xff] }
0x1254   : > { %v9536_v59 = vsel %vm8972_vm1, %v9535_v57, %v9534_v19  ;;  %v9550_v16 = vsel %vm8972_vm1, %v9549_v51, %v9548_v2  ;;  %v10945_v58 = vor.u32 %v11289_v7, %v10944_v43  ;;  %v10996_v62 = vor.u32 %v11274_v17, %v10995_v45  ;;  %9957 = vmatpush.bf16.msrb.mxu1 %v11304_v32  ;;  %v11293_v44 = vld [vmem:[%s18979_s17 + $0x18] sm:$0xff]  ;;  %v11299_v56 = vld [vmem:[%s18979_s17 + $0x48] sm:$0xff]  ;;  %v11292_v41 = vld [vmem:[%s18979_s17 + $0x10] sm:$0xff] }
0x1255   : > { %v9551_v46 = vpack.c.b16 %v9550_v16, %v9536_v59  ;;  %v9441_v14 = vand.u32 %v10937_v63, %v17954_v8  ;;  %v10984_v34 = vor.u32 %v11271_v3, %v10983_v60  ;;  %v10972_v0 = vor.u32 %v11268_v30, %v10971_v10  ;;  %v11313_v33 = vld [vmem:[%s18979_s17 + $0xb8] sm:$0xff]  ;;  %v11312_v39 = vld [vmem:[%s18979_s17 + $0xb0] sm:$0xff]  ;;  %v11298_v37 = vld [vmem:[%s18979_s17 + $0x40] sm:$0xff] }
0x1256   : > { %v9447_v27 = vand.u32 %v10945_v58, %v17954_v8  ;;  %v10960_v5 = vor.u32 %v11265_v24, %v10959_v38  ;;  %v12194_v8 = vld [vmem:[%s18978_s13] ss:$0 sm:$0xff]  ;;  %9970 = vmatpush.bf16.msra.mxu2 %v11313_v33  ;;  %v11291_v61 = vld [vmem:[%s18979_s17 + $0x8] sm:$0xff]  ;;  %v11309_v4 = vld [vmem:[%s18979_s17 + $0x98] sm:$0xff] }
0x1257   : > { %9709 = vmatpush.bf16.msrb.mxu0 %v11044_v42  ;;  %9689 = vmatmul.bf16.vlgmr.msra.gmra.mxu1 %v9551_v46  ;;  %v11311_v42 = vld [vmem:[%s18979_s17 + $0xa8] sm:$0xff]  ;;  %v11290_v19 = vld [vmem:[%s18979_s17] sm:$0xff]  ;;  %v11308_v48 = vld [vmem:[%s18979_s17 + $0x90] sm:$0xff] }
0x1258   : > { %9703 = vmatmul.bf16.vlgmr.msrb.gmra.mxu2 %v9551_v46  ;;  %9456 = vmatpush.bf16.msra.mxu3 %v9441_v14  ;;  %v11310_v21 = vld [vmem:[%s18979_s17 + $0xa0] sm:$0xff] }
0x1259   : > { %9958 = vmatpush.bf16.msrb.mxu1 %v11303_v31  ;;  %v9723_v51 = vld [vmem:[%s18980_s1] sm:$0x7] }
0x125a   : > { %9971 = vmatpush.bf16.msra.mxu2 %v11312_v39  ;;  %v9726_v16 = vperm.slane %v9723_v51, 1  ;;  %v9725_v12 = vperm.slane %v9723_v51, 0  ;;  %v12195_v32 = vld [vmem:[%s18981_s27] ss:$0 sm:$0xff] }
0x125b   : > { %9710 = vmatpush.bf16.msrb.mxu0 %v11032_v22  ;;  %v11306_v22 = vld [vmem:[%s18979_s17 + $0x80] sm:$0xff] }
0x125c   : > { %9484 = vmatpush.bf16.msrb.mxu3 %v9447_v27 }
0x125d   : > { %9959 = vmatpush.bf16.msrb.mxu1 %v11302_v1 }
0x125e   : > { %9972 = vmatpush.bf16.msra.mxu2 %v11311_v42 }
0x125f   : > { %9711 = vmatpush.bf16.msrb.mxu0 %v11020_v9 }
0x1261   : > { %9960 = vmatpush.bf16.msrb.mxu1 %v11301_v13 }
0x1262   : > { %9973 = vmatpush.bf16.msra.mxu2 %v11310_v21 }
0x1263   : > { %9712 = vmatpush.bf16.msrb.mxu0 %v11008_v53 }
0x1265   : > { %9961 = vmatpush.bf16.msrb.mxu1 %v11300_v28 }
0x1266   : > { %9974 = vmatpush.bf16.msra.mxu2 %v11309_v4 }
0x1267   : > { %9713 = vmatpush.bf16.msrb.mxu0 %v10996_v62 }
0x1269   : > { %9962 = vmatpush.bf16.msrb.mxu1 %v11299_v56 }
0x126a   : > { %9975 = vmatpush.bf16.msra.mxu2 %v11308_v48 }
0x126b   : > { %9714 = vmatpush.bf16.msrb.mxu0 %v10984_v34  ;;  %v9727_v34 = vperm.slane %v9723_v51, 2 }
0x126d   : > { %9963 = vmatpush.bf16.msrb.mxu1 %v11298_v37 }
0x126f   : > { %9715 = vmatpush.bf16.msrb.mxu0 %v10972_v0 }
0x1273   : > { %9716 = vmatpush.bf16.msrb.mxu0 %v10960_v5 }
0x12bd   : > { %v9382_v36 = vpop.f32.mrf.mxu2 }
0x12be   : > { %v9383_v15 = vadd.f32 %v12194_v8, %v9382_v36 }
0x12c5   : > { %v9384_v55 = vpop.f32.mrf.mxu2 }
0x12c6   : > { %v9385_v25 = vadd.f32 %v12194_v8, %v9384_v55 }
0x12c8   : > { %v9387_v54 = vpack.c.bf16 %v9385_v25, %v9383_v15 }
0x12ca   : > { %10946 = vmatmul.msk.bf16.vlgmr.msra.gmra.mxu3 %vm9250_vm9, %v9387_v54  ;;  %10947 = vmatmul.msk.bf16.vlgmr.msra.gmra.mxu0 %vm9250_vm9, %v9387_v54 }
0x12cb   : > { %9942 = vmatpush.bf16.msra.mxu3 %v11297_v18 }
0x12cf   : > { %9943 = vmatpush.bf16.msra.mxu3 %v11296_v26 }
0x12d3   : > { %9944 = vmatpush.bf16.msra.mxu3 %v11295_v23 }
0x12d4   : > { %v9690_v2 = vpop.f32.mrf.mxu1 }
0x12d7   : > { %9945 = vmatpush.bf16.msra.mxu3 %v11294_v35 }
0x12da   : > { %10948 = vmatmul.msk.bf16.vlgmr.msrb.gmra.mxu3 %vm9250_vm9, %v9387_v54  ;;  %9717 = vmatmul.bf16.vlgmr.msrb.gmra.mxu0 %v9551_v46  ;;  %v11307_v46 = vld [vmem:[%s18979_s17 + $0x88] sm:$0xff] }
0x12db   : > { %9946 = vmatpush.bf16.msra.mxu3 %v11293_v44  ;;  %v9704_v20 = vpop.f32.mrf.mxu2  ;;  %9976 = vmatpush.bf16.msra.mxu2 %v11307_v46 }
0x12dc   : > { %v9692_v53 = vpop.f32.mrf.mxu1 }
0x12df   : > { %9947 = vmatpush.bf16.msra.mxu3 %v11292_v41  ;;  %9977 = vmatpush.bf16.msra.mxu2 %v11306_v22 }
0x12e3   : > { %9948 = vmatpush.bf16.msra.mxu3 %v11291_v61  ;;  %v9706_v6 = vpop.f32.mrf.mxu2 }
0x12e7   : > { %9949 = vmatpush.bf16.msra.mxu3 %v11290_v19 }
0x1347   : > { %v9472_v57 = vpop.f32.mrf.mxu0 }
0x1348   : > { %v9705_v59 = vadd.f32 %v9704_v20, %v9472_v57 }
0x134a   : > { %v9732_v49 = vadd.f32 %v9726_v16, %v9705_v59 }
0x134c   : > { %v9738_v63 = vmax.f32 %v9732_v49, 0.0 }
0x134d   : > { %v9458_v40 = vpop.f32.mrf.mxu3 }
0x134e   : > { %v9691_v47 = vadd.f32 %v9690_v2, %v9458_v40 }
0x134f   : > { %v9474_v52 = vpop.f32.mrf.mxu0 }
0x1350   : > { %v9707_v9 = vadd.f32 %v9706_v6, %v9474_v52  ;;  %v9731_v7 = vadd.f32 %v9725_v12, %v9691_v47 }
0x1352   : > { %v9735_v11 = vadd.f32 %v9726_v16, %v9707_v9  ;;  %v9737_v17 = vmax.f32 %v9731_v7, 0.0 }
0x1354   : > { %v9741_v50 = vmax.f32 %v9735_v11, 0.0 }
0x1355   : > { %v9460_v43 = vpop.f32.mrf.mxu3 }
0x1356   : > { %v9693_v45 = vadd.f32 %v9692_v53, %v9460_v43  ;;  %v9744_v14 = vpack.c.bf16 %v9741_v50, %v9738_v63 }
0x1357   : > { %v9718_v27 = vpop.f32.mrf.mxu0 }
0x1358   : > { %v9734_v58 = vadd.f32 %v9725_v12, %v9693_v45  ;;  %9964 = vmatmul.bf16.vlgmr.msrb.gmra.mxu1 %v9744_v14 }
0x135a   : > { %v9740_v62 = vmax.f32 %v9734_v58, 0.0 }
0x135c   : > { %v9743_v60 = vpack.c.bf16 %v9740_v62, %v9737_v17 }
0x135d   : > { %v9486_v3 = vpop.f32.mrf.mxu3 }
0x135e   : > { %9950 = vmatmul.bf16.vlgmr.msra.gmra.mxu3 %v9743_v60  ;;  %v9719_v10 = vadd.f32 %v9718_v27, %v9486_v3 }
0x135f   : > { %v9720_v30 = vpop.f32.mrf.mxu0 }
0x1360   : > { %v9733_v36 = vadd.f32 %v9727_v34, %v9719_v10 }
0x1362   : > { %v9739_v5 = vmax.f32 %v9733_v36, 0.0 }
0x1365   : > { %v9488_v0 = vpop.f32.mrf.mxu3 }
0x1366   : > { %v9721_v38 = vadd.f32 %v9720_v30, %v9488_v0 }
0x1368   : > { %v9736_v24 = vadd.f32 %v9727_v34, %v9721_v38 }
0x136a   : > { %v9742_v8 = vmax.f32 %v9736_v24, 0.0 }
0x136c   : > { %v9745_v29 = vpack.c.bf16 %v9742_v8, %v9739_v5 }
0x136e   : > { %9978 = vmatmul.bf16.vlgmr.msra.gmra.mxu2 %v9745_v29 }
0x13d5   : > { %v9965_v25 = vpop.f32.mrf.mxu1 }
0x13dd   : > { %v9967_v13 = vpop.f32.mrf.mxu1 }
0x13e1   : > { %v9951_v55 = vpop.f32.mrf.mxu3 }
0x13e2   : > { %v9952_v15 = vadd.f32 %v12195_v32, %v9951_v55 }
0x13e4   : > { %v9966_v18 = vadd.f32 %v9965_v25, %v9952_v15 }
0x13e9   : > { %v9953_v54 = vpop.f32.mrf.mxu3 }
0x13ea   : > { %v9954_v1 = vadd.f32 %v12195_v32, %v9953_v54 }
0x13ec   : > { %v9968_v35 = vadd.f32 %v9967_v13, %v9954_v1 }
0x13f1   : > { %v9979_v31 = vpop.f32.mrf.mxu2 }
0x13f2   : > { %v9980_v26 = vadd.f32 %v9979_v31, %v9966_v18 }
0x13f4   : > { %v9984_v23 = vmax.f32 %v9980_v26, 0.0 }
0x13f6   : > { %9986 = vst [vmem:[%s18982_s16] sm:$0xff] %v9984_v23 }
0x13f9   : > { %v9981_v28 = vpop.f32.mrf.mxu2 }
0x13fa   : > { %v9982_v44 = vadd.f32 %v9981_v28, %v9968_v35 }
0x13fc   : > { %v9985_v33 = vmax.f32 %v9982_v44, 0.0 }
0x13fe   : > { %9987 = vst [vmem:[%s18982_s16 + $0x8] sm:$0xff] %v9985_v33 }
0x13ff PF: > { %s18983_s18 = sld [smem:[#allocation27_spill]] }
0x1400   : > { %s18984_s22 = sld [smem:[#allocation25_spill]] }
0x1401   : > { %s18985_s23 = sld [smem:[#allocation26_spill]] }
0x1402   : > { %s18986_s26 = sld [smem:[#allocation28_spill]] }
0x1403   : > { %s18987_s28 = sld [smem:[#allocation29_spill]] }
0x1405   : > { %s73_s1 = sadd.s32 1, %s18983_s18  }
0x1406   : > { %p70_p10 = scmp.ge.s32.totalorder %s73_s1, 6  }
0x1408   :  { %72 = sbr.rel (!%p70_p10) target bundleno = 67 (0x43), region = 258 }

</bundles_post_ra>
